<compile_context>
chip_gen: v6e
topology: v6e:2x2x1
jax: 0.10.0
libtpu: 0.0.40
codegen_flags: <defaults>
</compile_context>

<pallas_src>
import math

import jax
import jax.numpy as jnp
from jax.experimental import pallas as pl
from jax.experimental.pallas import tpu as pltpu

_BN_EPS = 1e-5
_BN_SCALE = 1.0 / math.sqrt(1.0 + _BN_EPS)   # BN(eval, default params) folded scale
_VMEM_LIMIT_BYTES = 48 * 1024 * 1024         # explicit limit, safe on v5e/v6e/v7x


def _round_up(n, m):
    return ((n + m - 1) // m) * m


def _pad_axis(x, size, axis=-1):
    pad = size - x.shape[axis]
    if pad <= 0:
        return x
    widths = [(0, 0)] * x.ndim
    widths[axis] = (0, pad)
    return jnp.pad(x, widths)


# ----------------------------------------------------------------------------
# Pallas kernels
# ----------------------------------------------------------------------------
def _sa_msg_kernel(x1_ref, x2_ref, x3_ref,
                   w1a_ref, w1b_ref, w1c_ref,
                   w2a_ref, w2b_ref, w2c_ref,
                   w3a_ref, w3b_ref, w3c_ref,
                   o_ref):
    """Fused MSG SA module: 3 radius branches x (3x Conv1x1+BN+ReLU) + max-pool,
    concatenated channel-wise and written with a single lane-dense store."""
    branches = (
        (x1_ref, w1a_ref, w1b_ref, w1c_ref),
        (x2_ref, w2a_ref, w2b_ref, w2c_ref),
        (x3_ref, w3a_ref, w3b_ref, w3c_ref),
    )
    outs = []
    for x_ref, wa_ref, wb_ref, wc_ref in branches:
        tg, s, c0 = x_ref.shape
        x = x_ref[...].reshape(tg * s, c0)
        if c0 <= 8:
            # SA1: 3-channel xyz input -> 3 VPU FMAs instead of a 3/128-lane MXU push.
            xw = x.astype(jnp.float32)
            wa = wa_ref[...].astype(jnp.float32)
            h = xw[:, 0:1] * wa[0:1, :]
            for c in range(1, c0):
                h = h + xw[:, c:c + 1] * wa[c:c + 1, :]
        else:
            h = jnp.dot(x, wa_ref[...], preferred_element_type=jnp.float32)
        h = jnp.maximum(h, 0.0).astype(jnp.bfloat16)      # Conv1x1 + folded BN + ReLU
        h = jnp.dot(h, wb_ref[...], preferred_element_type=jnp.float32)
        h = jnp.maximum(h, 0.0).astype(jnp.bfloat16)
        h = jnp.dot(h, wc_ref[...], preferred_element_type=jnp.float32)
        h = jnp.maximum(h, 0.0)
        outs.append(jnp.max(h.reshape(tg, s, -1), axis=1))  # max-pool over nsample
    o_ref[...] = jnp.concatenate(outs, axis=-1)              # lane-dense single store


def _sa3_fc_kernel(x_ref, w1_ref, w2_ref, w3_ref,
                   f1_ref, f2_ref, f3_ref, b3_ref, o_ref):
    """Fused GroupAll SA module + FC classification head (dropout = identity, eval)."""
    b, n, c0 = x_ref.shape
    x = x_ref[...].reshape(b * n, c0)
    h = jnp.maximum(jnp.dot(x, w1_ref[...], preferred_element_type=jnp.float32), 0.0)
    h = jnp.maximum(jnp.dot(h.astype(jnp.bfloat16), w2_ref[...],
                            preferred_element_type=jnp.float32), 0.0)
    h = jnp.maximum(jnp.dot(h.astype(jnp.bfloat16), w3_ref[...],
                            preferred_element_type=jnp.float32), 0.0)
    gfeat = jnp.max(h.reshape(b, n, -1), axis=1).astype(jnp.bfloat16)   # (B, 1024)
    h = jnp.maximum(jnp.dot(gfeat, f1_ref[...], preferred_element_type=jnp.float32), 0.0)
    h = jnp.maximum(jnp.dot(h.astype(jnp.bfloat16), f2_ref[...],
                            preferred_element_type=jnp.float32), 0.0)
    o_ref[...] = (jnp.dot(h.astype(jnp.bfloat16), f3_ref[...],
                          preferred_element_type=jnp.float32) + b3_ref[...])


# ----------------------------------------------------------------------------
# Pallas wrappers
# ----------------------------------------------------------------------------
def _pick_group_tile(g, per_group_bytes, weight_bytes):
    """Largest sublane-aligned divisor of g whose double-buffered tiles fit the VMEM
    budget; prefer >=2 grid steps so v7x can shard the parallel group axis across
    its 2 TensorCores (free on v5e/v6e)."""
    budget = max(_VMEM_LIMIT_BYTES // 2 - weight_bytes, per_group_bytes)
    cands = sorted({g} | {d for d in range(8, g, 8) if g % d == 0}, reverse=True)
    tg = cands[-1]
    for c in cands:
        if 2 * c * per_group_bytes <= budget:
            tg = c
            break
    if tg == g and g % 16 == 0:
        tg = g // 2
    return tg


def sa_msg_fused(xs, weights):
    """xs: list of 3 grouped tensors (G, S_i, C0_i); weights: 3 lists of 3 matrices.
    Returns (G, sum_i Cout_i) float32."""
    g = xs[0].shape[0]
    ctot = sum(ws[2].shape[1] for ws in weights)
    per_group_in = sum(x.shape[1] * x.shape[2] * x.dtype.itemsize for x in xs)
    per_group = per_group_in + ctot * 4
    weight_bytes = sum(int(w.size) * w.dtype.itemsize for ws in weights for w in ws)
    tg = _pick_group_tile(g, per_group, weight_bytes)
    assert g % tg == 0

    in_specs = [pl.BlockSpec((tg, x.shape[1], x.shape[2]), lambda i: (i, 0, 0))
                for x in xs]
    flat_w = [w for ws in weights for w in ws]
    in_specs += [pl.BlockSpec(w.shape, lambda i: (0, 0)) for w in flat_w]

    return pl.pallas_call(
        _sa_msg_kernel,
        out_shape=jax.ShapeDtypeStruct((g, ctot), jnp.float32),
        grid=(g // tg,),
        in_specs=in_specs,
        out_specs=pl.BlockSpec((tg, ctot), lambda i: (i, 0)),
        compiler_params=pltpu.CompilerParams(
            dimension_semantics=("parallel",),
            vmem_limit_bytes=_VMEM_LIMIT_BYTES,
        ),
    )(*xs, *flat_w)


def sa3_fc_head(grouped, sa3_w, fc):
    """grouped: (B, N, C0_padded) bf16. Returns padded logits (B, ncls_padded) f32."""
    b, n, c0 = grouped.shape
    ncls_pad = fc["w3"].shape[1]
    args = [grouped, *sa3_w, fc["w1"], fc["w2"], fc["w3"], fc["b3"]]
    in_specs = [pl.BlockSpec((b, n, c0), lambda i: (0, 0, 0))]
    in_specs += [pl.BlockSpec(a.shape, lambda i: (0, 0)) for a in args[1:]]
    return pl.pallas_call(
        _sa3_fc_kernel,
        out_shape=jax.ShapeDtypeStruct((b, ncls_pad), jnp.float32),
        grid=(1,),
        in_specs=in_specs,
        out_specs=pl.BlockSpec((b, ncls_pad), lambda i: (0, 0)),
        compiler_params=pltpu.CompilerParams(
            dimension_semantics=("arbitrary",),
            vmem_limit_bytes=_VMEM_LIMIT_BYTES,
        ),
    )(*args)


# ----------------------------------------------------------------------------
# Glue (plain JAX): FPS, ball query, grouping gathers
# TODO(synk): farthest-point-sampling / ball-query gathers are sequential /
# data-dependent index ops with no clean rectangular-tile Pallas mapping; they
# are done in plain JAX, while the heavy MLP/reduction compute runs in Pallas.
# ----------------------------------------------------------------------------
def farthest_point_sample(xyz, npoint):
    b, n, _ = xyz.shape

    def body(i, state):
        idx, dist, far = state
        idx = idx.at[:, i].set(far)
        centroid = jnp.take_along_axis(xyz, far[:, None, None], axis=1)  # (B,1,3)
        d = jnp.sum((xyz - centroid) ** 2, axis=-1)
        dist = jnp.minimum(dist, d)
        far = jnp.argmax(dist, axis=-1).astype(jnp.int32)
        return idx, dist, far

    idx0 = jnp.zeros((b, npoint), jnp.int32)
    dist0 = jnp.full((b, n), 1e10, jnp.float32)
    far0 = jnp.zeros((b,), jnp.int32)
    idx, _, _ = jax.lax.fori_loop(0, npoint, body, (idx0, dist0, far0))
    return idx


def index_points(points, idx):
    # points (B, N, C), idx (B, ...) int -> (B, ..., C)
    return jax.vmap(lambda p, i: p[i])(points, idx)


def ball_query(radius, nsample, xyz, new_xyz):
    # xyz (B, N, 3), new_xyz (B, S, 3) -> (B, S, nsample) int32
    n = xyz.shape[1]
    sqr = jnp.sum((new_xyz[:, :, None, :] - xyz[:, None, :, :]) ** 2, axis=-1)
    mask = sqr < radius * radius
    ar = jnp.arange(n, dtype=jnp.int32)
    key = jnp.where(mask, ar, n + ar)                 # in-radius points first, index order
    order = jnp.argsort(key, axis=-1).astype(jnp.int32)
    idx = order[..., :nsample]
    sel_mask = jnp.take_along_axis(mask, idx, axis=-1)
    idx = jnp.where(sel_mask, idx, idx[..., :1])      # pad misses with first hit
    return idx


def query_and_group(radius, nsample, xyz, new_xyz, features, use_xyz=True):
    idx = ball_query(radius, nsample, xyz, new_xyz)                # (B, S, K)
    grouped_xyz = index_points(xyz, idx) - new_xyz[:, :, None, :]  # centered
    if features is not None:
        grouped_feat = index_points(features, idx)
        if use_xyz:
            return jnp.concatenate([grouped_xyz, grouped_feat], axis=-1)
        return grouped_feat
    return grouped_xyz


# ----------------------------------------------------------------------------
# Pointnet2MSG forward (classification)
# ----------------------------------------------------------------------------
def sa_module_msg(xyz, features, npoint, radii, nsamples, weights):
    b = xyz.shape[0]
    fps_idx = farthest_point_sample(xyz, npoint)
    new_xyz = index_points(xyz, fps_idx)                           # (B, npoint, 3)
    groups = []
    for r, k, ws in zip(radii, nsamples, weights):
        grouped = query_and_group(r, k, xyz, new_xyz, features)    # (B, npoint, K, Craw)
        c_pad = ws[0].shape[0]                                     # weight rows (maybe padded)
        g_ = _pad_axis(grouped, c_pad, axis=-1).reshape(b * npoint, k, c_pad)
        if c_pad > 8:                                              # bf16 MXU operands
            g_ = g_.astype(jnp.bfloat16)
        groups.append(g_)
    out = sa_msg_fused(groups, weights)                            # (B*npoint, Ctot)
    return new_xyz, out.reshape(b, npoint, -1)


def pointnet2_forward(params, pc, normal=None, cls=None):
    # task == 'cls'
    assert cls is None and normal is None
    pc = pc.astype(jnp.float32)
    xyz, features = pc[..., :3], None                              # input_channels == 0
    xyz1, f1 = sa_module_msg(xyz, features, npoint=32, radii=(0.1, 0.2, 0.4),
                             nsamples=(8, 16, 32), weights=params["sa1"])
    xyz2, f2 = sa_module_msg(xyz1, f1, npoint=8, radii=(0.2, 0.4, 0.8),
                             nsamples=(8, 16, 32), weights=params["sa2"])
    # SA3 (GroupAll, use_xyz) fused with the FC head in one Pallas call.
    grouped = jnp.concatenate([xyz2, f2], axis=-1)                 # (B, N2, C2+3)
    c_pad = params["sa3"][0].shape[0]
    grouped = _pad_axis(grouped, c_pad, axis=-1).astype(jnp.bfloat16)
    logits_pad = sa3_fc_head(grouped, params["sa3"], params["fc"])
    return {"logit": logits_pad[:, : params["num_classes"]]}


def make_params(key, num_classes=40):
    # Channel widths mirror Pointnet2MSG (cls, use_xyz=True, input_channels=0);
    # point / neighbor counts are scaled down for a small example.
    sa1_mlps = [[3, 32, 32, 64], [3, 64, 64, 128], [3, 64, 96, 128]]
    c1 = 64 + 128 + 128
    sa2_mlps = [[c1 + 3, 64, 64, 128], [c1 + 3, 128, 128, 256], [c1 + 3, 128, 128, 256]]
    c2 = 128 + 256 + 256
    sa3_mlp = [c2 + 3, 256, 512, 1024]

    keys = iter(jax.random.split(key, 64))

    def w(cin, cout, bn=True, pad_cin=False):
        v = jax.random.normal(next(keys), (cin, cout), jnp.float32) * (2.0 / cin) ** 0.5
        if bn:
            v = v * _BN_SCALE                    # fold BN(eval, default stats) into weights
        if pad_cin and cin > 128:
            v = _pad_axis(v, _round_up(cin, 128), axis=0)   # zero rows for padded channels
        return v.astype(jnp.bfloat16)

    params = {"sa1": [], "sa2": []}
    for mlps, name in ((sa1_mlps, "sa1"), (sa2_mlps, "sa2")):
        for spec in mlps:
            params[name].append([w(spec[j], spec[j + 1], pad_cin=(j == 0))
                                 for j in range(3)])
    params["sa3"] = [w(sa3_mlp[j], sa3_mlp[j + 1], pad_cin=(j == 0)) for j in range(3)]

    ncls_pad = _round_up(num_classes, 128)       # lane-dense logits store; slice in wrapper
    w3 = jax.random.normal(next(keys), (256, num_classes), jnp.float32) * (2.0 / 256) ** 0.5
    params["fc"] = {
        "w1": w(1024, 512),                      # FC+BN+ReLU (+dropout = id in eval)
        "w2": w(512, 256),
        "w3": _pad_axis(w3, ncls_pad, axis=1).astype(jnp.bfloat16),   # final FC (no BN)
        "b3": jnp.zeros((1, ncls_pad), jnp.float32),
    }
    params["num_classes"] = num_classes
    return params


if __name__ == "__main__":
    key = jax.random.PRNGKey(0)
    pkey, xkey = jax.random.split(key)
    params = make_params(pkey, num_classes=40)          # DATASET_NUM_CLASS['modelnet40'] = 40
    pc = jax.random.normal(xkey, (2, 128, 3), jnp.float32)  # (B, N, 3) point cloud
    out = pointnet2_forward(params, pc)
    logit = jax.block_until_ready(out["logit"])
    assert logit.shape == (2, 40)
    assert bool(jnp.all(jnp.isfinite(logit)))
    print("KERNEL_OK")
</pallas_src>

<mosaic_0001>
module attributes {stable_mosaic.version = 11 : i64} {
  func.func @_sa_msg_kernel(%arg0: i32, %arg1: memref<32x8x3xf32, #tpu.memory_space<vmem>>, %arg2: memref<32x16x3xf32, #tpu.memory_space<vmem>>, %arg3: memref<32x32x3xf32, #tpu.memory_space<vmem>>, %arg4: memref<3x32xbf16, #tpu.memory_space<vmem>>, %arg5: memref<32x32xbf16, #tpu.memory_space<vmem>>, %arg6: memref<32x64xbf16, #tpu.memory_space<vmem>>, %arg7: memref<3x64xbf16, #tpu.memory_space<vmem>>, %arg8: memref<64x64xbf16, #tpu.memory_space<vmem>>, %arg9: memref<64x128xbf16, #tpu.memory_space<vmem>>, %arg10: memref<3x64xbf16, #tpu.memory_space<vmem>>, %arg11: memref<64x96xbf16, #tpu.memory_space<vmem>>, %arg12: memref<96x128xbf16, #tpu.memory_space<vmem>>, %arg13: memref<32x320xf32, #tpu.memory_space<vmem>>) attributes {dimension_semantics = [#tpu.dimension_semantics<parallel>], iteration_bounds = array<i64: 2>, scalar_prefetch = 0 : i64, scratch_operands = 0 : i64, tpu.core_type = #tpu.core_type<tc>, window_params = [{transform_indices = @transform_0, window_bounds = array<i64: 32, 8, 3>}, {transform_indices = @transform_1, window_bounds = array<i64: 32, 16, 3>}, {transform_indices = @transform_2, window_bounds = array<i64: 32, 32, 3>}, {pipeline_mode = #tpu.pipeline_mode<synchronous>, transform_indices = @transform_3, window_bounds = array<i64: 3, 32>}, {pipeline_mode = #tpu.pipeline_mode<synchronous>, transform_indices = @transform_4, window_bounds = array<i64: 32, 32>}, {pipeline_mode = #tpu.pipeline_mode<synchronous>, transform_indices = @transform_5, window_bounds = array<i64: 32, 64>}, {pipeline_mode = #tpu.pipeline_mode<synchronous>, transform_indices = @transform_6, window_bounds = array<i64: 3, 64>}, {pipeline_mode = #tpu.pipeline_mode<synchronous>, transform_indices = @transform_7, window_bounds = array<i64: 64, 64>}, {pipeline_mode = #tpu.pipeline_mode<synchronous>, transform_indices = @transform_8, window_bounds = array<i64: 64, 128>}, {pipeline_mode = #tpu.pipeline_mode<synchronous>, transform_indices = @transform_9, window_bounds = array<i64: 3, 64>}, {pipeline_mode = #tpu.pipeline_mode<synchronous>, transform_indices = @transform_10, window_bounds = array<i64: 64, 96>}, {pipeline_mode = #tpu.pipeline_mode<synchronous>, transform_indices = @transform_11, window_bounds = array<i64: 96, 128>}, {transform_indices = @transform_12, window_bounds = array<i64: 32, 320>}]} {
    %c0 = arith.constant 0 : index
    %c0_0 = arith.constant 0 : index
    %c0_1 = arith.constant 0 : index
    %0 = vector.load %arg1[%c0, %c0_0, %c0_1] : memref<32x8x3xf32, #tpu.memory_space<vmem>>, vector<32x8x3xf32>
    %1 = vector.shape_cast %0 : vector<32x8x3xf32> to vector<256x3xf32>
    %c0_2 = arith.constant 0 : index
    %c0_3 = arith.constant 0 : index
    %2 = vector.load %arg4[%c0_2, %c0_3] : memref<3x32xbf16, #tpu.memory_space<vmem>>, vector<3x32xbf16>
    %3 = arith.extf %2 : vector<3x32xbf16> to vector<3x32xf32>
    %4 = vector.extract_strided_slice %1 {offsets = [0, 0], sizes = [256, 1], strides = [1, 1]} : vector<256x3xf32> to vector<256x1xf32>
    %5 = vector.extract_strided_slice %3 {offsets = [0, 0], sizes = [1, 32], strides = [1, 1]} : vector<3x32xf32> to vector<1x32xf32>
    %6 = vector.broadcast %4 : vector<256x1xf32> to vector<256x32xf32>
    %7 = vector.broadcast %5 : vector<1x32xf32> to vector<256x32xf32>
    %8 = arith.mulf %6, %7 : vector<256x32xf32>
    %9 = vector.extract_strided_slice %1 {offsets = [0, 1], sizes = [256, 1], strides = [1, 1]} : vector<256x3xf32> to vector<256x1xf32>
    %10 = vector.extract_strided_slice %3 {offsets = [1, 0], sizes = [1, 32], strides = [1, 1]} : vector<3x32xf32> to vector<1x32xf32>
    %11 = vector.broadcast %9 : vector<256x1xf32> to vector<256x32xf32>
    %12 = vector.broadcast %10 : vector<1x32xf32> to vector<256x32xf32>
    %13 = arith.mulf %11, %12 : vector<256x32xf32>
    %14 = arith.addf %8, %13 : vector<256x32xf32>
    %15 = vector.extract_strided_slice %1 {offsets = [0, 2], sizes = [256, 1], strides = [1, 1]} : vector<256x3xf32> to vector<256x1xf32>
    %16 = vector.extract_strided_slice %3 {offsets = [2, 0], sizes = [1, 32], strides = [1, 1]} : vector<3x32xf32> to vector<1x32xf32>
    %17 = vector.broadcast %15 : vector<256x1xf32> to vector<256x32xf32>
    %18 = vector.broadcast %16 : vector<1x32xf32> to vector<256x32xf32>
    %19 = arith.mulf %17, %18 : vector<256x32xf32>
    %20 = arith.addf %14, %19 : vector<256x32xf32>
    %cst = arith.constant 0.000000e+00 : f32
    %21 = vector.broadcast %cst : f32 to vector<256x32xf32>
    %22 = arith.maximumf %20, %21 : vector<256x32xf32>
    %23 = arith.truncf %22 : vector<256x32xf32> to vector<256x32xbf16>
    %c0_4 = arith.constant 0 : index
    %c0_5 = arith.constant 0 : index
    %24 = vector.load %arg5[%c0_4, %c0_5] : memref<32x32xbf16, #tpu.memory_space<vmem>>, vector<32x32xbf16>
    %cst_6 = arith.constant dense<0.000000e+00> : vector<256x32xf32>
    %25 = tpu.matmul %23, %24, %cst_6 {dimension_numbers = #tpu.dot_dimension_numbers<[1], [0], [0], [1], [0, 0, 1, 1], [], []>} : vector<256x32xbf16>, vector<32x32xbf16>, vector<256x32xf32> -> vector<256x32xf32>
    %cst_7 = arith.constant 0.000000e+00 : f32
    %26 = vector.broadcast %cst_7 : f32 to vector<256x32xf32>
    %27 = arith.maximumf %25, %26 : vector<256x32xf32>
    %28 = arith.truncf %27 : vector<256x32xf32> to vector<256x32xbf16>
    %c0_8 = arith.constant 0 : index
    %c0_9 = arith.constant 0 : index
    %29 = vector.load %arg6[%c0_8, %c0_9] : memref<32x64xbf16, #tpu.memory_space<vmem>>, vector<32x64xbf16>
    %cst_10 = arith.constant dense<0.000000e+00> : vector<256x64xf32>
    %30 = tpu.matmul %28, %29, %cst_10 {dimension_numbers = #tpu.dot_dimension_numbers<[1], [0], [0], [1], [0, 0, 1, 1], [], []>} : vector<256x32xbf16>, vector<32x64xbf16>, vector<256x64xf32> -> vector<256x64xf32>
    %cst_11 = arith.constant 0.000000e+00 : f32
    %31 = vector.broadcast %cst_11 : f32 to vector<256x64xf32>
    %32 = arith.maximumf %30, %31 : vector<256x64xf32>
    %33 = vector.shape_cast %32 : vector<256x64xf32> to vector<32x8x64xf32>
    %cst_12 = arith.constant dense<0xFF800000> : vector<32x64xf32>
    %34 = vector.multi_reduction <maximumf>, %33, %cst_12 [1] : vector<32x8x64xf32> to vector<32x64xf32>
    %c0_13 = arith.constant 0 : index
    %c0_14 = arith.constant 0 : index
    %c0_15 = arith.constant 0 : index
    %35 = vector.load %arg2[%c0_13, %c0_14, %c0_15] : memref<32x16x3xf32, #tpu.memory_space<vmem>>, vector<32x16x3xf32>
    %36 = vector.shape_cast %35 : vector<32x16x3xf32> to vector<512x3xf32>
    %c0_16 = arith.constant 0 : index
    %c0_17 = arith.constant 0 : index
    %37 = vector.load %arg7[%c0_16, %c0_17] : memref<3x64xbf16, #tpu.memory_space<vmem>>, vector<3x64xbf16>
    %38 = arith.extf %37 : vector<3x64xbf16> to vector<3x64xf32>
    %39 = vector.extract_strided_slice %36 {offsets = [0, 0], sizes = [512, 1], strides = [1, 1]} : vector<512x3xf32> to vector<512x1xf32>
    %40 = vector.extract_strided_slice %38 {offsets = [0, 0], sizes = [1, 64], strides = [1, 1]} : vector<3x64xf32> to vector<1x64xf32>
    %41 = vector.broadcast %39 : vector<512x1xf32> to vector<512x64xf32>
    %42 = vector.broadcast %40 : vector<1x64xf32> to vector<512x64xf32>
    %43 = arith.mulf %41, %42 : vector<512x64xf32>
    %44 = vector.extract_strided_slice %36 {offsets = [0, 1], sizes = [512, 1], strides = [1, 1]} : vector<512x3xf32> to vector<512x1xf32>
    %45 = vector.extract_strided_slice %38 {offsets = [1, 0], sizes = [1, 64], strides = [1, 1]} : vector<3x64xf32> to vector<1x64xf32>
    %46 = vector.broadcast %44 : vector<512x1xf32> to vector<512x64xf32>
    %47 = vector.broadcast %45 : vector<1x64xf32> to vector<512x64xf32>
    %48 = arith.mulf %46, %47 : vector<512x64xf32>
    %49 = arith.addf %43, %48 : vector<512x64xf32>
    %50 = vector.extract_strided_slice %36 {offsets = [0, 2], sizes = [512, 1], strides = [1, 1]} : vector<512x3xf32> to vector<512x1xf32>
    %51 = vector.extract_strided_slice %38 {offsets = [2, 0], sizes = [1, 64], strides = [1, 1]} : vector<3x64xf32> to vector<1x64xf32>
    %52 = vector.broadcast %50 : vector<512x1xf32> to vector<512x64xf32>
    %53 = vector.broadcast %51 : vector<1x64xf32> to vector<512x64xf32>
    %54 = arith.mulf %52, %53 : vector<512x64xf32>
    %55 = arith.addf %49, %54 : vector<512x64xf32>
    %cst_18 = arith.constant 0.000000e+00 : f32
    %56 = vector.broadcast %cst_18 : f32 to vector<512x64xf32>
    %57 = arith.maximumf %55, %56 : vector<512x64xf32>
    %58 = arith.truncf %57 : vector<512x64xf32> to vector<512x64xbf16>
    %c0_19 = arith.constant 0 : index
    %c0_20 = arith.constant 0 : index
    %59 = vector.load %arg8[%c0_19, %c0_20] : memref<64x64xbf16, #tpu.memory_space<vmem>>, vector<64x64xbf16>
    %cst_21 = arith.constant dense<0.000000e+00> : vector<512x64xf32>
    %60 = tpu.matmul %58, %59, %cst_21 {dimension_numbers = #tpu.dot_dimension_numbers<[1], [0], [0], [1], [0, 0, 1, 1], [], []>} : vector<512x64xbf16>, vector<64x64xbf16>, vector<512x64xf32> -> vector<512x64xf32>
    %cst_22 = arith.constant 0.000000e+00 : f32
    %61 = vector.broadcast %cst_22 : f32 to vector<512x64xf32>
    %62 = arith.maximumf %60, %61 : vector<512x64xf32>
    %63 = arith.truncf %62 : vector<512x64xf32> to vector<512x64xbf16>
    %c0_23 = arith.constant 0 : index
    %c0_24 = arith.constant 0 : index
    %64 = vector.load %arg9[%c0_23, %c0_24] : memref<64x128xbf16, #tpu.memory_space<vmem>>, vector<64x128xbf16>
    %cst_25 = arith.constant dense<0.000000e+00> : vector<512x128xf32>
    %65 = tpu.matmul %63, %64, %cst_25 {dimension_numbers = #tpu.dot_dimension_numbers<[1], [0], [0], [1], [0, 0, 1, 1], [], []>} : vector<512x64xbf16>, vector<64x128xbf16>, vector<512x128xf32> -> vector<512x128xf32>
    %cst_26 = arith.constant 0.000000e+00 : f32
    %66 = vector.broadcast %cst_26 : f32 to vector<512x128xf32>
    %67 = arith.maximumf %65, %66 : vector<512x128xf32>
    %68 = vector.shape_cast %67 : vector<512x128xf32> to vector<32x16x128xf32>
    %cst_27 = arith.constant dense<0xFF800000> : vector<32x128xf32>
    %69 = vector.multi_reduction <maximumf>, %68, %cst_27 [1] : vector<32x16x128xf32> to vector<32x128xf32>
    %c0_28 = arith.constant 0 : index
    %c0_29 = arith.constant 0 : index
    %c0_30 = arith.constant 0 : index
    %70 = vector.load %arg3[%c0_28, %c0_29, %c0_30] : memref<32x32x3xf32, #tpu.memory_space<vmem>>, vector<32x32x3xf32>
    %71 = vector.shape_cast %70 : vector<32x32x3xf32> to vector<1024x3xf32>
    %c0_31 = arith.constant 0 : index
    %c0_32 = arith.constant 0 : index
    %72 = vector.load %arg10[%c0_31, %c0_32] : memref<3x64xbf16, #tpu.memory_space<vmem>>, vector<3x64xbf16>
    %73 = arith.extf %72 : vector<3x64xbf16> to vector<3x64xf32>
    %74 = vector.extract_strided_slice %71 {offsets = [0, 0], sizes = [1024, 1], strides = [1, 1]} : vector<1024x3xf32> to vector<1024x1xf32>
    %75 = vector.extract_strided_slice %73 {offsets = [0, 0], sizes = [1, 64], strides = [1, 1]} : vector<3x64xf32> to vector<1x64xf32>
    %76 = vector.broadcast %74 : vector<1024x1xf32> to vector<1024x64xf32>
    %77 = vector.broadcast %75 : vector<1x64xf32> to vector<1024x64xf32>
    %78 = arith.mulf %76, %77 : vector<1024x64xf32>
    %79 = vector.extract_strided_slice %71 {offsets = [0, 1], sizes = [1024, 1], strides = [1, 1]} : vector<1024x3xf32> to vector<1024x1xf32>
    %80 = vector.extract_strided_slice %73 {offsets = [1, 0], sizes = [1, 64], strides = [1, 1]} : vector<3x64xf32> to vector<1x64xf32>
    %81 = vector.broadcast %79 : vector<1024x1xf32> to vector<1024x64xf32>
    %82 = vector.broadcast %80 : vector<1x64xf32> to vector<1024x64xf32>
    %83 = arith.mulf %81, %82 : vector<1024x64xf32>
    %84 = arith.addf %78, %83 : vector<1024x64xf32>
    %85 = vector.extract_strided_slice %71 {offsets = [0, 2], sizes = [1024, 1], strides = [1, 1]} : vector<1024x3xf32> to vector<1024x1xf32>
    %86 = vector.extract_strided_slice %73 {offsets = [2, 0], sizes = [1, 64], strides = [1, 1]} : vector<3x64xf32> to vector<1x64xf32>
    %87 = vector.broadcast %85 : vector<1024x1xf32> to vector<1024x64xf32>
    %88 = vector.broadcast %86 : vector<1x64xf32> to vector<1024x64xf32>
    %89 = arith.mulf %87, %88 : vector<1024x64xf32>
    %90 = arith.addf %84, %89 : vector<1024x64xf32>
    %cst_33 = arith.constant 0.000000e+00 : f32
    %91 = vector.broadcast %cst_33 : f32 to vector<1024x64xf32>
    %92 = arith.maximumf %90, %91 : vector<1024x64xf32>
    %93 = arith.truncf %92 : vector<1024x64xf32> to vector<1024x64xbf16>
    %c0_34 = arith.constant 0 : index
    %c0_35 = arith.constant 0 : index
    %94 = vector.load %arg11[%c0_34, %c0_35] : memref<64x96xbf16, #tpu.memory_space<vmem>>, vector<64x96xbf16>
    %cst_36 = arith.constant dense<0.000000e+00> : vector<1024x96xf32>
    %95 = tpu.matmul %93, %94, %cst_36 {dimension_numbers = #tpu.dot_dimension_numbers<[1], [0], [0], [1], [0, 0, 1, 1], [], []>} : vector<1024x64xbf16>, vector<64x96xbf16>, vector<1024x96xf32> -> vector<1024x96xf32>
    %cst_37 = arith.constant 0.000000e+00 : f32
    %96 = vector.broadcast %cst_37 : f32 to vector<1024x96xf32>
    %97 = arith.maximumf %95, %96 : vector<1024x96xf32>
    %98 = arith.truncf %97 : vector<1024x96xf32> to vector<1024x96xbf16>
    %c0_38 = arith.constant 0 : index
    %c0_39 = arith.constant 0 : index
    %99 = vector.load %arg12[%c0_38, %c0_39] : memref<96x128xbf16, #tpu.memory_space<vmem>>, vector<96x128xbf16>
    %cst_40 = arith.constant dense<0.000000e+00> : vector<1024x128xf32>
    %100 = tpu.matmul %98, %99, %cst_40 {dimension_numbers = #tpu.dot_dimension_numbers<[1], [0], [0], [1], [0, 0, 1, 1], [], []>} : vector<1024x96xbf16>, vector<96x128xbf16>, vector<1024x128xf32> -> vector<1024x128xf32>
    %cst_41 = arith.constant 0.000000e+00 : f32
    %101 = vector.broadcast %cst_41 : f32 to vector<1024x128xf32>
    %102 = arith.maximumf %100, %101 : vector<1024x128xf32>
    %103 = vector.shape_cast %102 : vector<1024x128xf32> to vector<32x32x128xf32>
    %cst_42 = arith.constant dense<0xFF800000> : vector<32x128xf32>
    %104 = vector.multi_reduction <maximumf>, %103, %cst_42 [1] : vector<32x32x128xf32> to vector<32x128xf32>
    %105 = tpu.concatenate %34, %69, %104 in 1 : vector<32x64xf32>, vector<32x128xf32>, vector<32x128xf32> -> vector<32x320xf32>
    %c0_43 = arith.constant 0 : index
    %c0_44 = arith.constant 0 : index
    %106 = vector.load %arg13[%c0_43, %c0_44] : memref<32x320xf32, #tpu.memory_space<vmem>>, vector<32x320xf32>
    tpu.vector_store %arg13[%c0_43, %c0_44], %105 {strides = array<i32>} : memref<32x320xf32, #tpu.memory_space<vmem>>, vector<32x320xf32>,
    return
  }
  func.func @transform_0(%arg0: i32) -> (i32, i32, i32) {
    %c0_i32 = arith.constant 0 : i32
    %c0_i32_0 = arith.constant 0 : i32
    %c0_i32_1 = arith.constant 0 : i32
    return %arg0, %c0_i32, %c0_i32_0 : i32, i32, i32
  }
  func.func @transform_1(%arg0: i32) -> (i32, i32, i32) {
    %c0_i32 = arith.constant 0 : i32
    %c0_i32_0 = arith.constant 0 : i32
    %c0_i32_1 = arith.constant 0 : i32
    return %arg0, %c0_i32, %c0_i32_0 : i32, i32, i32
  }
  func.func @transform_2(%arg0: i32) -> (i32, i32, i32) {
    %c0_i32 = arith.constant 0 : i32
    %c0_i32_0 = arith.constant 0 : i32
    %c0_i32_1 = arith.constant 0 : i32
    return %arg0, %c0_i32, %c0_i32_0 : i32, i32, i32
  }
  func.func @transform_3(%arg0: i32) -> (i32, i32) {
    %c0_i32 = arith.constant 0 : i32
    %c0_i32_0 = arith.constant 0 : i32
    %c0_i32_1 = arith.constant 0 : i32
    return %c0_i32, %c0_i32_0 : i32, i32
  }
  func.func @transform_4(%arg0: i32) -> (i32, i32) {
    %c0_i32 = arith.constant 0 : i32
    %c0_i32_0 = arith.constant 0 : i32
    %c0_i32_1 = arith.constant 0 : i32
    return %c0_i32, %c0_i32_0 : i32, i32
  }
  func.func @transform_5(%arg0: i32) -> (i32, i32) {
    %c0_i32 = arith.constant 0 : i32
    %c0_i32_0 = arith.constant 0 : i32
    %c0_i32_1 = arith.constant 0 : i32
    return %c0_i32, %c0_i32_0 : i32, i32
  }
  func.func @transform_6(%arg0: i32) -> (i32, i32) {
    %c0_i32 = arith.constant 0 : i32
    %c0_i32_0 = arith.constant 0 : i32
    %c0_i32_1 = arith.constant 0 : i32
    return %c0_i32, %c0_i32_0 : i32, i32
  }
  func.func @transform_7(%arg0: i32) -> (i32, i32) {
    %c0_i32 = arith.constant 0 : i32
    %c0_i32_0 = arith.constant 0 : i32
    %c0_i32_1 = arith.constant 0 : i32
    return %c0_i32, %c0_i32_0 : i32, i32
  }
  func.func @transform_8(%arg0: i32) -> (i32, i32) {
    %c0_i32 = arith.constant 0 : i32
    %c0_i32_0 = arith.constant 0 : i32
    %c0_i32_1 = arith.constant 0 : i32
    return %c0_i32, %c0_i32_0 : i32, i32
  }
  func.func @transform_9(%arg0: i32) -> (i32, i32) {
    %c0_i32 = arith.constant 0 : i32
    %c0_i32_0 = arith.constant 0 : i32
    %c0_i32_1 = arith.constant 0 : i32
    return %c0_i32, %c0_i32_0 : i32, i32
  }
  func.func @transform_10(%arg0: i32) -> (i32, i32) {
    %c0_i32 = arith.constant 0 : i32
    %c0_i32_0 = arith.constant 0 : i32
    %c0_i32_1 = arith.constant 0 : i32
    return %c0_i32, %c0_i32_0 : i32, i32
  }
  func.func @transform_11(%arg0: i32) -> (i32, i32) {
    %c0_i32 = arith.constant 0 : i32
    %c0_i32_0 = arith.constant 0 : i32
    %c0_i32_1 = arith.constant 0 : i32
    return %c0_i32, %c0_i32_0 : i32, i32
  }
  func.func @transform_12(%arg0: i32) -> (i32, i32) {
    %c0_i32 = arith.constant 0 : i32
    %c0_i32_0 = arith.constant 0 : i32
    return %arg0, %c0_i32 : i32, i32
  }
}

</mosaic_0001>

<bundles_post_ra>
// kernel: tpu_custom_call.1
= control target key start
LH: loop header
LB: loop body
LE: loop exit
PB: predicated region body
PF: predicated region fallthrough
CT: control target
= control target key end

     0   :  { %s16072_s0 = inlined_call_operand.vmem [shape: f32[64,8,3], index: 0, kind: input, shape index: {}]   ;;  %s16073_s1 = inlined_call_operand.vmem [shape: f32[64,16,3], index: 1, kind: input, shape index: {}]   ;;  %s16074_s2 = inlined_call_operand.vmem [shape: f32[64,32,3], index: 2, kind: input, shape index: {}]   ;;  %s16075_s3 = inlined_call_operand.vmem [shape: bf16[3,32], index: 3, kind: input, shape index: {}]   ;;  %s16076_s4 = inlined_call_operand.vmem [shape: bf16[32,32], index: 4, kind: input, shape index: {}]   ;;  %s16077_s5 = inlined_call_operand.vmem [shape: bf16[32,64], index: 5, kind: input, shape index: {}]   ;;  %s16078_s6 = inlined_call_operand.vmem [shape: bf16[3,64], index: 6, kind: input, shape index: {}]   ;;  %s16079_s7 = inlined_call_operand.vmem [shape: bf16[64,64], index: 7, kind: input, shape index: {}]   ;;  %s16080_s8 = inlined_call_operand.vmem [shape: bf16[64,128], index: 8, kind: input, shape index: {}]   ;;  %s16081_s9 = inlined_call_operand.vmem [shape: bf16[3,64], index: 9, kind: input, shape index: {}]   ;;  %s16082_s10 = inlined_call_operand.vmem [shape: bf16[64,96], index: 10, kind: input, shape index: {}]   ;;  %s16083_s11 = inlined_call_operand.vmem [shape: bf16[96,128], index: 11, kind: input, shape index: {}]   ;;  %s16084_s12 = inlined_call_operand.hbm [shape: f32[64,320], index: 12, kind: output, shape index: {}]  }
   0x1   :  { %16127 = sst [smem:[#allocation333_spill]] %s16072_s0 }
   0x2   :  { %16128 = sst [smem:[#allocation334_spill]] %s16073_s1 }
   0x3   :  { %17 = vsyncpa [#allocation3], 0 }
   0x4   :  { %19 = vsyncpa [#allocation3 + $0x1], 0  ;;  %s11057_s21 = smov 0   ;;  %s11059_s22 = smov 0  }
   0x5   :  { %s11061_s23 = smov 0   ;;  %s11063_s24 = smov 0  }
   0x6 LB: > { %s11078_s25 = sadd.s32 4294967295, %s10983_s24   ;;  %s9573_s26 = sadd.s32 4294967294, %s10983_s24   ;;  %s10983_s24 = sphi %s11063_s24, %s17292_s24   ;;  %s10979_s23 = sphi %s11061_s23, %s17291_s23   ;;  %s10975_s22 = sphi %s11059_s22, %s17290_s22   ;;  %s10971_s21 = sphi %s11057_s21, %s17289_s21  }
   0x7   : > { %s11082_s27 = sadd.s32 1, %s10983_s24   ;;  %s299_s28 = sadd.s32 1, %s10979_s23 }
   0x8   : > { %s296_s29 = ssub.s32 %s10983_s24, %s11082_s27  ;;  %p309_p0 = scmp.ne.s32.totalorder %s10979_s23, %s10975_s22 }
   0x9   : > { %p297_p1 = scmp.eq.s32.totalorder %s296_s29, 0  ;;  %p310_p2 = scmp.eq.s32.totalorder %s11078_s25, 1 }
   0xa   : > { %p315_p3 = scmp.ne.s32.totalorder %s10975_s22, %s10971_s21  ;;  %p316_p4 = scmp.eq.s32.totalorder %s9573_s26, 1 }
   0xb   : > { %s11093_s30 = scalar_select %p297_p1, %s10979_s23, %s299_s28  }
   0xc   : > { %p11095_p5 = por %p310_p2, %p309_p0  ;;  %p11099_p6 = por %p316_p4, %p315_p3 }
   0xd   : > { %p9576_p7 = scmp.ge.s32.totalorder %s10983_s24, 1  ;;  %p390_p8 = scmp.lt.s32.totalorder %s10983_s24, 3 }
   0xf   : > { %p391_p9 = pnand %p9576_p7, %p390_p8 }
  0x11   : > { %394 = sbr.rel (%p391_p9) target bundleno = 2199 (0x897), region = 68 }
  0x16   : > { %s9577_s15 = sshll.u32 %s11078_s25, 5  ;;  %v16088_v0 = vmov 1   ;;  %v16087_v1 = vmov 0   ;;  %s16131_s0 = sld [smem:[#allocation333_spill]]  ;;  %v16085_v39 = vmov 2   ;;  %vm1152_vm0 = vcmask 261120  }
  0x17   : > { %10624 = vset.pattern.permute.xlu0 %v16088_v0  ;;  %10623 = vset.pattern.permute.xlu1 %v16087_v1  ;;  %p445_p10 = scmp.lt.s32.totalorder %s9577_s15, 63  ;;  %s16132_s1 = sld [smem:[#allocation334_spill]]  ;;  %vm1667_vm1 = vcmask 523264   ;;  %vm9269_vm2 = vcmask 1041409   ;;  %vm9271_vm3 = vcmask 1042434   ;;  %vm9273_vm4 = vcmask 1043459  }
  0x18   : > { %vm9275_vm5 = vcmask 1044484   ;;  %vm9277_vm6 = vcmask 1045509   ;;  %vm9279_vm7 = vcmask 1046534   ;;  %vm9281_vm8 = vcmask 1047559  }
  0x19   : > { %s17294_s15 = smov (!%p445_p10, %s9577_s15), 63  ;;  %vm8083_vm9 = vcmask 785408  }
  0x1a   : > { %s9578_s16 = sshll.u32 %s17294_s15, 3  ;;  %s9836_s20 = sshll.u32 %s17294_s15, 4 }
  0x1c   : > { %s11114_s19 = scalar_lea.vmem %s16131_s0, %s9578_s16  ;;  %s9837_s16 = sshll.u32 %s17294_s15, 5 }
  0x1d   : > { %v11117_v2 = vld [vmem:[%s11114_s19 + $0x10] sm:$0xff]  ;;  %v11120_v3 = vld [vmem:[%s11114_s19] sm:$0xff]  ;;  %v11125_v4 = vld [vmem:[%s11114_s19 + $0x18] sm:$0xff]  ;;  %s11222_s29 = scalar_lea.vmem %s16132_s1, %s9836_s20  ;;  %s11557_s20 = scalar_lea.vmem %s16074_s2, %s9837_s16 }
  0x1e   : > { %512 = vperm.xlu1 %10623, %v11117_v2   ;;  %697 = vperm.xlu0 %10624, %v11120_v3   ;;  %v11130_v5 = vld [vmem:[%s11114_s19 + $0x28] sm:$0xff]  ;;  %v11135_v6 = vld [vmem:[%s11114_s19 + $0x38] sm:$0xff]  ;;  %v470_v20 = vld [vmem:[%s11114_s19 + $0x20] sm:$0xff]  ;;  %s10577_s15 = smul.u32 1536, %s11078_s25 }
  0x1f   : > { %v11140_v7 = vld [vmem:[%s11114_s19 + $0x48] sm:$0xff]  ;;  %v11145_v8 = vld [vmem:[%s11114_s19 + $0x58] sm:$0xff]  ;;  %v472_v21 = vld [vmem:[%s11114_s19 + $0x30] sm:$0xff] }
  0x20   : > { %v11150_v9 = vld [vmem:[%s11114_s19 + $0x68] sm:$0xff]  ;;  %v11155_v10 = vld [vmem:[%s11114_s19 + $0x78] sm:$0xff]  ;;  %v474_v22 = vld [vmem:[%s11114_s19 + $0x40] sm:$0xff]  ;;  %s16023_s16 = scalar_lea.hbm %s16084_s12, %s10577_s15 }
  0x21   : > { %v11160_v11 = vld [vmem:[%s11114_s19 + $0x88] sm:$0xff]  ;;  %v11165_v12 = vld [vmem:[%s11114_s19 + $0x98] sm:$0xff]  ;;  %v476_v23 = vld [vmem:[%s11114_s19 + $0x50] sm:$0xff] }
  0x22   : > { %517 = vperm.xlu1 %10623, %v11125_v4   ;;  %709 = vperm.xlu0 %10624, %v11125_v4   ;;  %v11170_v13 = vld [vmem:[%s11114_s19 + $0xa8] sm:$0xff]  ;;  %v11175_v14 = vld [vmem:[%s11114_s19 + $0xb8] sm:$0xff]  ;;  %v478_v24 = vld [vmem:[%s11114_s19 + $0x60] sm:$0xff] }
  0x23   : > { %v11180_v15 = vld [vmem:[%s11114_s19 + $0xc8] sm:$0xff]  ;;  %v11185_v16 = vld [vmem:[%s11114_s19 + $0xd8] sm:$0xff]  ;;  %v480_v25 = vld [vmem:[%s11114_s19 + $0x70] sm:$0xff] }
  0x24   : > { %v11190_v17 = vld [vmem:[%s11114_s19 + $0xe8] sm:$0xff]  ;;  %v11195_v18 = vld [vmem:[%s11114_s19 + $0xf8] sm:$0xff]  ;;  %v482_v26 = vld [vmem:[%s11114_s19 + $0x80] sm:$0xff] }
  0x25   : > { %v467_v19 = vld [vmem:[%s11114_s19 + $0x8] sm:$0xff]  ;;  %v484_v27 = vld [vmem:[%s11114_s19 + $0x90] sm:$0xff]  ;;  %v486_v28 = vld [vmem:[%s11114_s19 + $0xa0] sm:$0xff] }
  0x26   : > { %527 = vperm.xlu1 %10623, %v11130_v5   ;;  %717 = vperm.xlu0 %10624, %v11130_v5   ;;  %v488_v29 = vld [vmem:[%s11114_s19 + $0xb0] sm:$0xff]  ;;  %v490_v30 = vld [vmem:[%s11114_s19 + $0xc0] sm:$0xff]  ;;  %v11239_v40 = vld [vmem:[%s11222_s29 + $0x18] sm:$0xff] }
  0x27   : > { %v492_v31 = vld [vmem:[%s11114_s19 + $0xd0] sm:$0xff]  ;;  %v494_v32 = vld [vmem:[%s11114_s19 + $0xe0] sm:$0xff]  ;;  %v11248_v43 = vld [vmem:[%s11222_s29 + $0x28] sm:$0xff] }
  0x28   : > { %v496_v33 = vld [vmem:[%s11114_s19 + $0xf0] sm:$0xff]  ;;  %v11229_v36 = vld [vmem:[%s11222_s29] sm:$0xff]  ;;  %v11257_v46 = vld [vmem:[%s11222_s29 + $0x38] sm:$0xff] }
  0x29   : > { %v11266_v49 = vld [vmem:[%s11222_s29 + $0x48] sm:$0xff]  ;;  %v11275_v52 = vld [vmem:[%s11222_s29 + $0x58] sm:$0xff] }
  0x2a   : > { %537 = vperm.xlu1 %10623, %v11135_v6   ;;  %725 = vperm.xlu0 %10624, %v11135_v6   ;;  %v11284_v55 = vld [vmem:[%s11222_s29 + $0x68] sm:$0xff]  ;;  %v11293_v58 = vld [vmem:[%s11222_s29 + $0x78] sm:$0xff] }
  0x2b   : > { %v11302_v61 = vld [vmem:[%s11222_s29 + $0x88] sm:$0xff] }
  0x2e   : > { %547 = vperm.xlu1 %10623, %v11140_v7   ;;  %733 = vperm.xlu0 %10624, %v11140_v7  }
  0x32   : > { %557 = vperm.xlu1 %10623, %v11145_v8   ;;  %741 = vperm.xlu0 %10624, %v11145_v8  }
  0x36   : > { %567 = vperm.xlu1 %10623, %v11150_v9   ;;  %749 = vperm.xlu0 %10624, %v11150_v9  }
  0x3a   : > { %577 = vperm.xlu1 %10623, %v11155_v10   ;;  %757 = vperm.xlu0 %10624, %v11155_v10  }
  0x3e   : > { %587 = vperm.xlu1 %10623, %v11160_v11   ;;  %765 = vperm.xlu0 %10624, %v11160_v11  }
  0x42   : > { %597 = vperm.xlu1 %10623, %v11165_v12   ;;  %773 = vperm.xlu0 %10624, %v11165_v12  }
  0x46   : > { %607 = vperm.xlu1 %10623, %v11170_v13   ;;  %781 = vperm.xlu0 %10624, %v11170_v13  }
  0x4a   : > { %617 = vperm.xlu1 %10623, %v11175_v14   ;;  %789 = vperm.xlu0 %10624, %v11175_v14  }
  0x4e   : > { %627 = vperm.xlu1 %10623, %v11180_v15   ;;  %797 = vperm.xlu0 %10624, %v11180_v15  }
  0x52   : > { %637 = vperm.xlu1 %10623, %v11185_v16   ;;  %805 = vperm.xlu0 %10624, %v11185_v16  }
  0x56   : > { %647 = vperm.xlu1 %10623, %v11190_v17   ;;  %813 = vperm.xlu0 %10624, %v11190_v17  }
  0x5a   : > { %657 = vperm.xlu1 %10623, %v11195_v18   ;;  %821 = vperm.xlu0 %10624, %v11195_v18  }
  0x5e   : > { %10625 = vset.pattern.permute.xlu1 %v16088_v0  ;;  %10626 = vset.pattern.permute.xlu0 %v16087_v1 }
  0x5f   : > { %701 = vperm.xlu1 %10625, %v467_v19   ;;  %502 = vperm.xlu0 %10626, %v11120_v3  }
  0x63   : > { %705 = vperm.xlu1 %10625, %v11117_v2   ;;  %507 = vperm.xlu0 %10626, %v467_v19  }
  0x67   : > { %713 = vperm.xlu1 %10625, %v470_v20   ;;  %522 = vperm.xlu0 %10626, %v470_v20  }
  0x6b   : > { %721 = vperm.xlu1 %10625, %v472_v21   ;;  %532 = vperm.xlu0 %10626, %v472_v21  }
  0x6f   : > { %729 = vperm.xlu1 %10625, %v474_v22   ;;  %542 = vperm.xlu0 %10626, %v474_v22  }
  0x73   : > { %737 = vperm.xlu1 %10625, %v476_v23   ;;  %552 = vperm.xlu0 %10626, %v476_v23  }
  0x77   : > { %745 = vperm.xlu1 %10625, %v478_v24   ;;  %562 = vperm.xlu0 %10626, %v478_v24  }
  0x7b   : > { %753 = vperm.xlu1 %10625, %v480_v25   ;;  %572 = vperm.xlu0 %10626, %v480_v25  }
  0x7f   : > { %761 = vperm.xlu1 %10625, %v482_v26   ;;  %582 = vperm.xlu0 %10626, %v482_v26  }
  0x83   : > { %769 = vperm.xlu1 %10625, %v484_v27   ;;  %592 = vperm.xlu0 %10626, %v484_v27  }
  0x87   : > { %777 = vperm.xlu1 %10625, %v486_v28   ;;  %602 = vperm.xlu0 %10626, %v486_v28  }
  0x8b   : > { %785 = vperm.xlu1 %10625, %v488_v29   ;;  %612 = vperm.xlu0 %10626, %v488_v29  }
  0x8f   : > { %793 = vperm.xlu1 %10625, %v490_v30   ;;  %622 = vperm.xlu0 %10626, %v490_v30  }
  0x93   : > { %801 = vperm.xlu1 %10625, %v492_v31   ;;  %632 = vperm.xlu0 %10626, %v492_v31   ;;  %v11395_v31 = vld [vmem:[%s11222_s29 + $0x128] sm:$0xff] }
  0x97   : > { %809 = vperm.xlu1 %10625, %v494_v32   ;;  %642 = vperm.xlu0 %10626, %v494_v32  }
  0x99   : > { %v11224_v34 = vpop.permute.xlu1 %512  ;;  %v11226_v35 = vpop.permute.xlu0 %697 }
  0x9a   : > { %16133 = vst [vmem:[#allocation5_spill] sm:$0xff] %v11224_v34  ;;  %16134 = vst [vmem:[#allocation6_spill] sm:$0xff] %v11226_v35 }
  0x9b   : > { %817 = vperm.xlu1 %10625, %v496_v33   ;;  %652 = vperm.xlu0 %10626, %v496_v33   ;;  %v11403_v33 = vld [vmem:[%s11222_s29 + $0x10] sm:$0xff] }
  0x9d   : > { %v11231_v37 = vpop.permute.xlu1 %517  ;;  %v11233_v38 = vpop.permute.xlu0 %709 }
  0x9e   : > { %16135 = vst [vmem:[#allocation7_spill] sm:$0xff] %v11231_v37  ;;  %16136 = vst [vmem:[#allocation8_spill] sm:$0xff] %v11233_v38 }
  0x9f   : > { %10627 = vset.pattern.permute.xlu1 %v16085_v39  ;;  %1960 = vperm.xlu0 %10626, %v11229_v36   ;;  %v11407_v39 = vld [vmem:[%s11222_s29 + $0x138] sm:$0xff] }
  0xa0   : > { %893 = vperm.xlu1 %10627, %v11120_v3  }
  0xa1   : > { %v11241_v41 = vpop.permute.xlu1 %527  ;;  %v11243_v42 = vpop.permute.xlu0 %717 }
  0xa2   : > { %16137 = vst [vmem:[#allocation9_spill] sm:$0xff] %v11241_v41  ;;  %16138 = vst [vmem:[#allocation10_spill] sm:$0xff] %v11243_v42 }
  0xa3   : > { %1975 = vperm.xlu0 %10626, %v11239_v40  }
  0xa4   : > { %901 = vperm.xlu1 %10627, %v11117_v2   ;;  %v11311_v2 = vld [vmem:[%s11222_s29 + $0x98] sm:$0xff] }
  0xa5   : > { %v11250_v44 = vpop.permute.xlu1 %537  ;;  %v11252_v45 = vpop.permute.xlu0 %725 }
  0xa6   : > { %16139 = vst [vmem:[#allocation11_spill] sm:$0xff] %v11250_v44  ;;  %16140 = vst [vmem:[#allocation12_spill] sm:$0xff] %v11252_v45  ;;  %v11573_v44 = vld [vmem:[%s11222_s29 + $0xf0] sm:$0xff] }
  0xa7   : > { %1985 = vperm.xlu0 %10626, %v11248_v43  }
  0xa8   : > { %905 = vperm.xlu1 %10627, %v11125_v4  }
  0xa9   : > { %v11259_v47 = vpop.permute.xlu1 %547  ;;  %v11261_v48 = vpop.permute.xlu0 %733 }
  0xaa   : > { %16141 = vst [vmem:[#allocation13_spill] sm:$0xff] %v11259_v47  ;;  %16142 = vst [vmem:[#allocation14_spill] sm:$0xff] %v11261_v48  ;;  %v11535_v48 = vld [vmem:[%s11222_s29 + $0xc0] sm:$0xff] }
  0xab   : > { %1995 = vperm.xlu0 %10626, %v11257_v46  }
  0xac   : > { %913 = vperm.xlu1 %10627, %v11130_v5   ;;  %v11320_v5 = vld [vmem:[%s11222_s29 + $0xa8] sm:$0xff] }
  0xad   : > { %v11268_v50 = vpop.permute.xlu1 %557  ;;  %v11270_v51 = vpop.permute.xlu0 %741 }
  0xae   : > { %16143 = vst [vmem:[#allocation15_spill] sm:$0xff] %v11268_v50  ;;  %16144 = vst [vmem:[#allocation16_spill] sm:$0xff] %v11270_v51  ;;  %v11511_v51 = vld [vmem:[%s11222_s29 + $0xa0] sm:$0xff] }
  0xaf   : > { %2005 = vperm.xlu0 %10626, %v11266_v49  }
  0xb0   : > { %921 = vperm.xlu1 %10627, %v11135_v6  }
  0xb1   : > { %v11277_v53 = vpop.permute.xlu1 %567  ;;  %v11279_v54 = vpop.permute.xlu0 %749 }
  0xb2   : > { %16145 = vst [vmem:[#allocation17_spill] sm:$0xff] %v11277_v53  ;;  %16146 = vst [vmem:[#allocation18_spill] sm:$0xff] %v11279_v54  ;;  %v11487_v54 = vld [vmem:[%s11222_s29 + $0x80] sm:$0xff] }
  0xb3   : > { %2015 = vperm.xlu0 %10626, %v11275_v52  }
  0xb4   : > { %929 = vperm.xlu1 %10627, %v11140_v7  }
  0xb5   : > { %v11286_v56 = vpop.permute.xlu1 %577  ;;  %v11288_v57 = vpop.permute.xlu0 %757 }
  0xb6   : > { %16147 = vst [vmem:[#allocation19_spill] sm:$0xff] %v11286_v56  ;;  %16148 = vst [vmem:[#allocation20_spill] sm:$0xff] %v11288_v57  ;;  %v11463_v57 = vld [vmem:[%s11222_s29 + $0x60] sm:$0xff] }
  0xb7   : > { %2025 = vperm.xlu0 %10626, %v11284_v55  }
  0xb8   : > { %937 = vperm.xlu1 %10627, %v11145_v8   ;;  %v11329_v8 = vld [vmem:[%s11222_s29 + $0xb8] sm:$0xff] }
  0xb9   : > { %v11295_v59 = vpop.permute.xlu1 %587  ;;  %v11297_v60 = vpop.permute.xlu0 %765 }
  0xba   : > { %16149 = vst [vmem:[#allocation21_spill] sm:$0xff] %v11295_v59  ;;  %16150 = vst [vmem:[#allocation22_spill] sm:$0xff] %v11297_v60 }
  0xbb   : > { %2035 = vperm.xlu0 %10626, %v11293_v58  }
  0xbc   : > { %945 = vperm.xlu1 %10627, %v11150_v9  }
  0xbd   : > { %v11304_v62 = vpop.permute.xlu1 %597  ;;  %v11306_v63 = vpop.permute.xlu0 %773 }
  0xbe   : > { %16151 = vst [vmem:[#allocation23_spill] sm:$0xff] %v11304_v62  ;;  %16152 = vst [vmem:[#allocation24_spill] sm:$0xff] %v11306_v63  ;;  %v11451_v63 = vld [vmem:[%s11222_s29 + $0x50] sm:$0xff]  ;;  %v11455_v62 = vld [vmem:[%s11222_s29 + $0x178] sm:$0xff] }
  0xbf   : > { %2045 = vperm.xlu0 %10626, %v11302_v61  }
  0xc0   : > { %953 = vperm.xlu1 %10627, %v11155_v10  }
  0xc1   : > { %v11313_v3 = vpop.permute.xlu1 %607  ;;  %v11315_v4 = vpop.permute.xlu0 %781 }
  0xc2   : > { %16153 = vst [vmem:[#allocation25_spill] sm:$0xff] %v11313_v3  ;;  %16154 = vst [vmem:[#allocation26_spill] sm:$0xff] %v11315_v4 }
  0xc3   : > { %2055 = vperm.xlu0 %10626, %v11311_v2  }
  0xc4   : > { %961 = vperm.xlu1 %10627, %v11160_v11   ;;  %v11338_v11 = vld [vmem:[%s11222_s29 + $0xc8] sm:$0xff] }
  0xc5   : > { %v11322_v6 = vpop.permute.xlu1 %617  ;;  %v11324_v7 = vpop.permute.xlu0 %789 }
  0xc6   : > { %16155 = vst [vmem:[#allocation27_spill] sm:$0xff] %v11322_v6  ;;  %16156 = vst [vmem:[#allocation28_spill] sm:$0xff] %v11324_v7  ;;  %v11439_v7 = vld [vmem:[%s11222_s29 + $0x40] sm:$0xff]  ;;  %v11443_v6 = vld [vmem:[%s11222_s29 + $0x168] sm:$0xff] }
  0xc7   : > { %2065 = vperm.xlu0 %10626, %v11320_v5  }
  0xc8   : > { %969 = vperm.xlu1 %10627, %v11165_v12   ;;  %v11347_v12 = vld [vmem:[%s11222_s29 + $0xd8] sm:$0xff] }
  0xc9   : > { %v11331_v9 = vpop.permute.xlu1 %627  ;;  %v11333_v10 = vpop.permute.xlu0 %797 }
  0xca   : > { %16157 = vst [vmem:[#allocation29_spill] sm:$0xff] %v11331_v9  ;;  %16158 = vst [vmem:[#allocation30_spill] sm:$0xff] %v11333_v10 }
  0xcb   : > { %2075 = vperm.xlu0 %10626, %v11329_v8  }
  0xcc   : > { %977 = vperm.xlu1 %10627, %v11170_v13   ;;  %v11356_v13 = vld [vmem:[%s11222_s29 + $0xe8] sm:$0xff] }
  0xcd   : > { %v11340_v19 = vpop.permute.xlu1 %637  ;;  %v11342_v20 = vpop.permute.xlu0 %805 }
  0xce   : > { %16159 = vst [vmem:[#allocation31_spill] sm:$0xff] %v11340_v19  ;;  %16160 = vst [vmem:[#allocation32_spill] sm:$0xff] %v11342_v20  ;;  %v11427_v20 = vld [vmem:[%s11222_s29 + $0x30] sm:$0xff]  ;;  %v11431_v19 = vld [vmem:[%s11222_s29 + $0x158] sm:$0xff] }
  0xcf   : > { %2085 = vperm.xlu0 %10626, %v11338_v11  }
  0xd0   : > { %985 = vperm.xlu1 %10627, %v11175_v14   ;;  %v11365_v14 = vld [vmem:[%s11222_s29 + $0xf8] sm:$0xff] }
  0xd1   : > { %v11349_v21 = vpop.permute.xlu1 %647  ;;  %v11351_v22 = vpop.permute.xlu0 %813 }
  0xd2   : > { %16161 = vst [vmem:[#allocation33_spill] sm:$0xff] %v11349_v21  ;;  %16162 = vst [vmem:[#allocation34_spill] sm:$0xff] %v11351_v22 }
  0xd3   : > { %2095 = vperm.xlu0 %10626, %v11347_v12  }
  0xd4   : > { %993 = vperm.xlu1 %10627, %v11180_v15   ;;  %v11374_v15 = vld [vmem:[%s11222_s29 + $0x108] sm:$0xff] }
  0xd5   : > { %v11358_v23 = vpop.permute.xlu1 %657  ;;  %v11360_v24 = vpop.permute.xlu0 %821 }
  0xd6   : > { %16163 = vst [vmem:[#allocation35_spill] sm:$0xff] %v11358_v23  ;;  %16164 = vst [vmem:[#allocation36_spill] sm:$0xff] %v11360_v24  ;;  %v11415_v24 = vld [vmem:[%s11222_s29 + $0x20] sm:$0xff]  ;;  %v11419_v23 = vld [vmem:[%s11222_s29 + $0x148] sm:$0xff] }
  0xd7   : > { %2105 = vperm.xlu0 %10626, %v11356_v13  }
  0xd8   : > { %1001 = vperm.xlu1 %10627, %v11185_v16   ;;  %v11383_v16 = vld [vmem:[%s11222_s29 + $0x118] sm:$0xff] }
  0xda   : > { %v11367_v25 = vpop.permute.xlu1 %701  ;;  %v11369_v26 = vpop.permute.xlu0 %502 }
  0xdb   : > { %16165 = vst [vmem:[#allocation37_spill] sm:$0xff] %v11367_v25  ;;  %16166 = vst [vmem:[#allocation38_spill] sm:$0xff] %v11369_v26  ;;  %2115 = vperm.xlu0 %10626, %v11365_v14   ;;  %v11582_v25 = vld [vmem:[%s11222_s29 + $0x100] sm:$0xff] }
  0xdc   : > { %1009 = vperm.xlu1 %10627, %v11190_v17   ;;  %v11390_v17 = vld [vmem:[%s11222_s29 + $0x8] sm:$0xff] }
  0xde   : > { %v11376_v27 = vpop.permute.xlu1 %705  ;;  %v11378_v28 = vpop.permute.xlu0 %507 }
  0xdf   : > { %16167 = vst [vmem:[#allocation39_spill] sm:$0xff] %v11376_v27  ;;  %16168 = vst [vmem:[#allocation40_spill] sm:$0xff] %v11378_v28  ;;  %2125 = vperm.xlu0 %10626, %v11374_v15  }
  0xe0   : > { %1017 = vperm.xlu1 %10627, %v11195_v18  }
  0xe2   : > { %v11385_v29 = vpop.permute.xlu1 %713  ;;  %v11387_v30 = vpop.permute.xlu0 %522 }
  0xe3   : > { %16169 = vst [vmem:[#allocation41_spill] sm:$0xff] %v11385_v29  ;;  %16170 = vst [vmem:[#allocation42_spill] sm:$0xff] %v11387_v30  ;;  %2135 = vperm.xlu0 %10626, %v11383_v16  }
  0xe4   : > { %10628 = vset.pattern.permute.xlu1 %v16087_v1 }
  0xe5   : > { %1965 = vperm.xlu1 %10628, %v11390_v17  }
  0xe6   : > { %v11398_v18 = vpop.permute.xlu1 %721  ;;  %v11400_v32 = vpop.permute.xlu0 %532 }
  0xe7   : > { %16171 = vst [vmem:[#allocation43_spill] sm:$0xff] %v11398_v18  ;;  %16172 = vst [vmem:[#allocation44_spill] sm:$0xff] %v11400_v32  ;;  %2145 = vperm.xlu0 %10626, %v11395_v31   ;;  %v11548_v32 = vld [vmem:[%s11222_s29 + $0xd0] sm:$0xff]  ;;  %v4437_v18 = vld [vmem:[%s11557_s20 + $0x8] sm:$0xff] }
  0xe9   : > { %1970 = vperm.xlu1 %10628, %v11403_v33  }
  0xea   : > { %v11410_v1 = vpop.permute.xlu1 %729  ;;  %v11412_v0 = vpop.permute.xlu0 %542 }
  0xeb   : > { %16173 = vst [vmem:[#allocation45_spill] sm:$0xff] %v11410_v1  ;;  %16174 = vst [vmem:[#allocation46_spill] sm:$0xff] %v11412_v0  ;;  %2155 = vperm.xlu0 %10626, %v11407_v39   ;;  %v11523_v0 = vld [vmem:[%s11222_s29 + $0xb0] sm:$0xff] }
  0xed   : > { %1980 = vperm.xlu1 %10628, %v11415_v24  }
  0xee   : > { %v11422_v22 = vpop.permute.xlu1 %737  ;;  %v11424_v21 = vpop.permute.xlu0 %552 }
  0xef   : > { %16175 = vst [vmem:[#allocation47_spill] sm:$0xff] %v11422_v22  ;;  %16176 = vst [vmem:[#allocation48_spill] sm:$0xff] %v11424_v21  ;;  %2165 = vperm.xlu0 %10626, %v11419_v23   ;;  %v11499_v21 = vld [vmem:[%s11222_s29 + $0x90] sm:$0xff] }
  0xf1   : > { %1990 = vperm.xlu1 %10628, %v11427_v20  }
  0xf2   : > { %v11434_v10 = vpop.permute.xlu1 %745  ;;  %v11436_v9 = vpop.permute.xlu0 %562 }
  0xf3   : > { %16177 = vst [vmem:[#allocation49_spill] sm:$0xff] %v11434_v10  ;;  %16178 = vst [vmem:[#allocation50_spill] sm:$0xff] %v11436_v9  ;;  %2175 = vperm.xlu0 %10626, %v11431_v19   ;;  %v11475_v9 = vld [vmem:[%s11222_s29 + $0x70] sm:$0xff] }
  0xf5   : > { %2000 = vperm.xlu1 %10628, %v11439_v7  }
  0xf6   : > { %v11446_v4 = vpop.permute.xlu1 %753  ;;  %v11448_v3 = vpop.permute.xlu0 %572 }
  0xf7   : > { %16179 = vst [vmem:[#allocation51_spill] sm:$0xff] %v11446_v4  ;;  %16180 = vst [vmem:[#allocation52_spill] sm:$0xff] %v11448_v3  ;;  %2185 = vperm.xlu0 %10626, %v11443_v6   ;;  %v11467_v4 = vld [vmem:[%s11222_s29 + $0x188] sm:$0xff] }
  0xf9   : > { %2010 = vperm.xlu1 %10628, %v11451_v63  }
  0xfa   : > { %v11458_v60 = vpop.permute.xlu1 %761  ;;  %v11460_v59 = vpop.permute.xlu0 %582 }
  0xfb   : > { %16181 = vst [vmem:[#allocation53_spill] sm:$0xff] %v11458_v60  ;;  %16182 = vst [vmem:[#allocation54_spill] sm:$0xff] %v11460_v59  ;;  %2195 = vperm.xlu0 %10626, %v11455_v62   ;;  %v11479_v60 = vld [vmem:[%s11222_s29 + $0x198] sm:$0xff] }
  0xfd   : > { %2020 = vperm.xlu1 %10628, %v11463_v57  }
  0xfe   : > { %v11470_v3 = vpop.permute.xlu1 %769  ;;  %v11472_v56 = vpop.permute.xlu0 %592 }
  0xff   : > { %16183 = vst [vmem:[#allocation55_spill] sm:$0xff] %v11470_v3  ;;  %16184 = vst [vmem:[#allocation56_spill] sm:$0xff] %v11472_v56  ;;  %2205 = vperm.xlu0 %10626, %v11467_v4   ;;  %v11491_v3 = vld [vmem:[%s11222_s29 + $0x1a8] sm:$0xff] }
 0x101   : > { %2030 = vperm.xlu1 %10628, %v11475_v9  }
 0x102   : > { %v11482_v59 = vpop.permute.xlu1 %777  ;;  %v11484_v10 = vpop.permute.xlu0 %602 }
 0x103   : > { %16185 = vst [vmem:[#allocation57_spill] sm:$0xff] %v11482_v59  ;;  %16186 = vst [vmem:[#allocation58_spill] sm:$0xff] %v11484_v10  ;;  %2215 = vperm.xlu0 %10626, %v11479_v60   ;;  %v11503_v59 = vld [vmem:[%s11222_s29 + $0x1b8] sm:$0xff] }
 0x105   : > { %2040 = vperm.xlu1 %10628, %v11487_v54  }
 0x106   : > { %v11494_v56 = vpop.permute.xlu1 %785  ;;  %v11496_v53 = vpop.permute.xlu0 %612 }
 0x107   : > { %16187 = vst [vmem:[#allocation59_spill] sm:$0xff] %v11494_v56  ;;  %16188 = vst [vmem:[#allocation60_spill] sm:$0xff] %v11496_v53  ;;  %2225 = vperm.xlu0 %10626, %v11491_v3   ;;  %v11515_v53 = vld [vmem:[%s11222_s29 + $0x1c8] sm:$0xff] }
 0x109   : > { %2050 = vperm.xlu1 %10628, %v11499_v21  }
 0x10a   : > { %v11506_v10 = vpop.permute.xlu1 %793  ;;  %v11508_v22 = vpop.permute.xlu0 %622 }
 0x10b   : > { %16189 = vst [vmem:[#allocation61_spill] sm:$0xff] %v11506_v10  ;;  %16190 = vst [vmem:[#allocation62_spill] sm:$0xff] %v11508_v22  ;;  %2235 = vperm.xlu0 %10626, %v11503_v59   ;;  %v11527_v22 = vld [vmem:[%s11222_s29 + $0x1d8] sm:$0xff] }
 0x10d   : > { %2060 = vperm.xlu1 %10628, %v11511_v51  }
 0x10e   : > { %v11518_v56 = vpop.permute.xlu1 %801  ;;  %v11520_v50 = vpop.permute.xlu0 %632 }
 0x10f   : > { %16191 = vst [vmem:[#allocation63_spill] sm:$0xff] %v11518_v56  ;;  %16192 = vst [vmem:[#allocation64_spill] sm:$0xff] %v11520_v50  ;;  %2245 = vperm.xlu0 %10626, %v11515_v53   ;;  %v11539_v56 = vld [vmem:[%s11222_s29 + $0x1e8] sm:$0xff] }
 0x111   : > { %2070 = vperm.xlu1 %10628, %v11523_v0  }
 0x112   : > { %v11530_v10 = vpop.permute.xlu1 %809  ;;  %v11532_v1 = vpop.permute.xlu0 %642 }
 0x113   : > { %16193 = vst [vmem:[#allocation65_spill] sm:$0xff] %v11530_v10  ;;  %16194 = vst [vmem:[#allocation66_spill] sm:$0xff] %v11532_v1  ;;  %2255 = vperm.xlu0 %10626, %v11527_v22   ;;  %v11552_v10 = vld [vmem:[%s11222_s29 + $0x1f8] sm:$0xff] }
 0x115   : > { %2080 = vperm.xlu1 %10628, %v11535_v48  }
 0x116   : > { %v11543_v50 = vpop.permute.xlu1 %817  ;;  %v11545_v47 = vpop.permute.xlu0 %652 }
 0x117   : > { %16195 = vst [vmem:[#allocation67_spill] sm:$0xff] %v11543_v50  ;;  %16196 = vst [vmem:[#allocation68_spill] sm:$0xff] %v11545_v47  ;;  %2265 = vperm.xlu0 %10626, %v11539_v56   ;;  %v11563_v47 = vld [vmem:[%s11222_s29 + $0xe0] sm:$0xff] }
 0x119   : > { %2090 = vperm.xlu1 %10628, %v11548_v32  }
 0x11a   : > { %v11560_v1 = vpop.permute.xlu0 %1960 }
 0x11b   : > { %16197 = vst [vmem:[#allocation69_spill] sm:$0xff] %v11560_v1  ;;  %v11565_v50 = vpop.permute.xlu1 %893  ;;  %2275 = vperm.xlu0 %10626, %v11552_v10   ;;  %v4440_v1 = vld [vmem:[%s11557_s20 + $0x20] sm:$0xff] }
 0x11c   : > { %16198 = vst [vmem:[#allocation70_spill] sm:$0xff] %v11565_v50 }
 0x11d   : > { %2100 = vperm.xlu1 %10628, %v11563_v47  }
 0x11e   : > { %v11570_v45 = vpop.permute.xlu0 %1975 }
 0x11f   : > { %16199 = vst [vmem:[#allocation71_spill] sm:$0xff] %v11570_v45  ;;  %v11575_v30 = vpop.permute.xlu1 %901  ;;  %4573 = vperm.xlu0 %10626, %v4437_v18   ;;  %v4442_v45 = vld [vmem:[%s11557_s20 + $0x30] sm:$0xff] }
 0x120   : > { %16200 = vst [vmem:[#allocation72_spill] sm:$0xff] %v11575_v30  ;;  %v11591_v18 = vld [vmem:[%s11222_s29 + $0x110] sm:$0xff] }
 0x121   : > { %2110 = vperm.xlu1 %10628, %v11573_v44  }
 0x122   : > { %v11579_v29 = vpop.permute.xlu0 %1985 }
 0x123   : > { %16201 = vst [vmem:[#allocation73_spill] sm:$0xff] %v11579_v29  ;;  %v11584_v42 = vpop.permute.xlu1 %905  ;;  %4588 = vperm.xlu0 %10626, %v4440_v1   ;;  %v4444_v29 = vld [vmem:[%s11557_s20 + $0x40] sm:$0xff] }
 0x124   : > { %16202 = vst [vmem:[#allocation74_spill] sm:$0xff] %v11584_v42  ;;  %v11600_v1 = vld [vmem:[%s11222_s29 + $0x120] sm:$0xff] }
 0x125   : > { %2120 = vperm.xlu1 %10628, %v11582_v25  }
 0x126   : > { %v11588_v41 = vpop.permute.xlu0 %1995 }
 0x127   : > { %16203 = vst [vmem:[#allocation75_spill] sm:$0xff] %v11588_v41  ;;  %v11593_v30 = vpop.permute.xlu1 %913  ;;  %4598 = vperm.xlu0 %10626, %v4442_v45   ;;  %v4446_v41 = vld [vmem:[%s11557_s20 + $0x50] sm:$0xff] }
 0x128   : > { %16204 = vst [vmem:[#allocation76_spill] sm:$0xff] %v11593_v30  ;;  %v11609_v45 = vld [vmem:[%s11222_s29 + $0x130] sm:$0xff] }
 0x129   : > { %2130 = vperm.xlu1 %10628, %v11591_v18  }
 0x12a   : > { %v11597_v28 = vpop.permute.xlu0 %2005 }
 0x12b   : > { %16205 = vst [vmem:[#allocation77_spill] sm:$0xff] %v11597_v28  ;;  %v11602_v34 = vpop.permute.xlu1 %921  ;;  %4608 = vperm.xlu0 %10626, %v4444_v29   ;;  %v4448_v28 = vld [vmem:[%s11557_s20 + $0x60] sm:$0xff] }
 0x12c   : > { %16206 = vst [vmem:[#allocation78_spill] sm:$0xff] %v11602_v34  ;;  %v11618_v29 = vld [vmem:[%s11222_s29 + $0x140] sm:$0xff] }
 0x12d   : > { %2140 = vperm.xlu1 %10628, %v11600_v1  }
 0x12e   : > { %v11606_v42 = vpop.permute.xlu0 %2015 }
 0x12f   : > { %16207 = vst [vmem:[#allocation79_spill] sm:$0xff] %v11606_v42  ;;  %v11611_v30 = vpop.permute.xlu1 %929  ;;  %4618 = vperm.xlu0 %10626, %v4446_v41   ;;  %v4450_v42 = vld [vmem:[%s11557_s20 + $0x70] sm:$0xff] }
 0x130   : > { %16208 = vst [vmem:[#allocation80_spill] sm:$0xff] %v11611_v30  ;;  %v11627_v41 = vld [vmem:[%s11222_s29 + $0x150] sm:$0xff] }
 0x131   : > { %2150 = vperm.xlu1 %10628, %v11609_v45  }
 0x132   : > { %v11615_v50 = vpop.permute.xlu0 %2025 }
 0x133   : > { %16209 = vst [vmem:[#allocation81_spill] sm:$0xff] %v11615_v50  ;;  %v11620_v34 = vpop.permute.xlu1 %937  ;;  %4628 = vperm.xlu0 %10626, %v4448_v28   ;;  %v4452_v50 = vld [vmem:[%s11557_s20 + $0x80] sm:$0xff] }
 0x134   : > { %16210 = vst [vmem:[#allocation82_spill] sm:$0xff] %v11620_v34  ;;  %v11636_v28 = vld [vmem:[%s11222_s29 + $0x160] sm:$0xff] }
 0x135   : > { %2160 = vperm.xlu1 %10628, %v11618_v29   ;;  %16214 = vst [vmem:[#allocation86_spill] sm:$0xff] %v11636_v28 }
 0x136   : > { %v11624_v27 = vpop.permute.xlu0 %2035 }
 0x137   : > { %16211 = vst [vmem:[#allocation83_spill] sm:$0xff] %v11624_v27  ;;  %v11629_v30 = vpop.permute.xlu1 %945  ;;  %4638 = vperm.xlu0 %10626, %v4450_v42   ;;  %v4454_v27 = vld [vmem:[%s11557_s20 + $0x90] sm:$0xff] }
 0x138   : > { %16212 = vst [vmem:[#allocation84_spill] sm:$0xff] %v11629_v30  ;;  %v11645_v42 = vld [vmem:[%s11222_s29 + $0x170] sm:$0xff] }
 0x139   : > { %2170 = vperm.xlu1 %10628, %v11627_v41   ;;  %16217 = vst [vmem:[#allocation89_spill] sm:$0xff] %v11645_v42 }
 0x13a   : > { %v11633_v38 = vpop.permute.xlu0 %2045 }
 0x13b   : > { %16213 = vst [vmem:[#allocation85_spill] sm:$0xff] %v11633_v38  ;;  %v11638_v34 = vpop.permute.xlu1 %953  ;;  %4648 = vperm.xlu0 %10626, %v4452_v50   ;;  %v4456_v38 = vld [vmem:[%s11557_s20 + $0xa0] sm:$0xff] }
 0x13c   : > { %16215 = vst [vmem:[#allocation87_spill] sm:$0xff] %v11638_v34  ;;  %v11654_v50 = vld [vmem:[%s11222_s29 + $0x180] sm:$0xff] }
 0x13d   : > { %2180 = vperm.xlu1 %10628, %v11636_v28   ;;  %16220 = vst [vmem:[#allocation92_spill] sm:$0xff] %v11654_v50  ;;  %v11717_v28 = vld [vmem:[%s11222_s29 + $0x1f0] sm:$0xff] }
 0x13e   : > { %v11642_v37 = vpop.permute.xlu0 %2055  ;;  %16240 = vst [vmem:[#allocation112_spill] sm:$0xff] %v11717_v28 }
 0x13f   : > { %16216 = vst [vmem:[#allocation88_spill] sm:$0xff] %v11642_v37  ;;  %v11647_v30 = vpop.permute.xlu1 %961  ;;  %4658 = vperm.xlu0 %10626, %v4454_v27   ;;  %v4458_v37 = vld [vmem:[%s11557_s20 + $0xb0] sm:$0xff] }
 0x140   : > { %16218 = vst [vmem:[#allocation90_spill] sm:$0xff] %v11647_v30  ;;  %v11663_v27 = vld [vmem:[%s11222_s29 + $0x190] sm:$0xff] }
 0x141   : > { %2190 = vperm.xlu1 %10628, %v11645_v42   ;;  %16223 = vst [vmem:[#allocation95_spill] sm:$0xff] %v11663_v27 }
 0x142   : > { %v11651_v26 = vpop.permute.xlu0 %2065 }
 0x143   : > { %16219 = vst [vmem:[#allocation91_spill] sm:$0xff] %v11651_v26  ;;  %v11656_v34 = vpop.permute.xlu1 %969  ;;  %4668 = vperm.xlu0 %10626, %v4456_v38   ;;  %v4460_v26 = vld [vmem:[%s11557_s20 + $0xc0] sm:$0xff] }
 0x144   : > { %16221 = vst [vmem:[#allocation93_spill] sm:$0xff] %v11656_v34  ;;  %v11672_v38 = vld [vmem:[%s11222_s29 + $0x1a0] sm:$0xff] }
 0x145   : > { %2200 = vperm.xlu1 %10628, %v11654_v50   ;;  %16226 = vst [vmem:[#allocation98_spill] sm:$0xff] %v11672_v38 }
 0x146   : > { %v11660_v35 = vpop.permute.xlu0 %2075 }
 0x147   : > { %16222 = vst [vmem:[#allocation94_spill] sm:$0xff] %v11660_v35  ;;  %v11665_v30 = vpop.permute.xlu1 %977  ;;  %4678 = vperm.xlu0 %10626, %v4458_v37   ;;  %v4462_v35 = vld [vmem:[%s11557_s20 + $0xd0] sm:$0xff] }
 0x148   : > { %16224 = vst [vmem:[#allocation96_spill] sm:$0xff] %v11665_v30  ;;  %v11681_v37 = vld [vmem:[%s11222_s29 + $0x1b0] sm:$0xff] }
 0x149   : > { %2210 = vperm.xlu1 %10628, %v11663_v27   ;;  %16229 = vst [vmem:[#allocation101_spill] sm:$0xff] %v11681_v37 }
 0x14a   : > { %v11669_v42 = vpop.permute.xlu0 %2085 }
 0x14b   : > { %16225 = vst [vmem:[#allocation97_spill] sm:$0xff] %v11669_v42  ;;  %v11674_v34 = vpop.permute.xlu1 %985  ;;  %4688 = vperm.xlu0 %10626, %v4460_v26   ;;  %v4464_v42 = vld [vmem:[%s11557_s20 + $0xe0] sm:$0xff] }
 0x14c   : > { %16227 = vst [vmem:[#allocation99_spill] sm:$0xff] %v11674_v34  ;;  %v11690_v26 = vld [vmem:[%s11222_s29 + $0x1c0] sm:$0xff] }
 0x14d   : > { %2220 = vperm.xlu1 %10628, %v11672_v38   ;;  %16232 = vst [vmem:[#allocation104_spill] sm:$0xff] %v11690_v26 }
 0x14e   : > { %v11678_v50 = vpop.permute.xlu0 %2095 }
 0x14f   : > { %16228 = vst [vmem:[#allocation100_spill] sm:$0xff] %v11678_v50  ;;  %v11683_v30 = vpop.permute.xlu1 %993  ;;  %4698 = vperm.xlu0 %10626, %v4462_v35   ;;  %v4466_v50 = vld [vmem:[%s11557_s20 + $0xf0] sm:$0xff] }
 0x150   : > { %16230 = vst [vmem:[#allocation102_spill] sm:$0xff] %v11683_v30  ;;  %v11699_v35 = vld [vmem:[%s11222_s29 + $0x1d0] sm:$0xff] }
 0x151   : > { %2230 = vperm.xlu1 %10628, %v11681_v37   ;;  %16235 = vst [vmem:[#allocation107_spill] sm:$0xff] %v11699_v35  ;;  %v4468_v37 = vld [vmem:[%s11557_s20 + $0x100] sm:$0xff] }
 0x152   : > { %v11687_v27 = vpop.permute.xlu0 %2105 }
 0x153   : > { %16231 = vst [vmem:[#allocation103_spill] sm:$0xff] %v11687_v27  ;;  %v11692_v34 = vpop.permute.xlu1 %1001  ;;  %4708 = vperm.xlu0 %10626, %v4464_v42  }
 0x154   : > { %16233 = vst [vmem:[#allocation105_spill] sm:$0xff] %v11692_v34  ;;  %v11708_v34 = vld [vmem:[%s11222_s29 + $0x1e0] sm:$0xff] }
 0x155   : > { %2240 = vperm.xlu1 %10628, %v11690_v26   ;;  %v4470_v26 = vld [vmem:[%s11557_s20 + $0x110] sm:$0xff] }
 0x156   : > { %v11696_v38 = vpop.permute.xlu0 %2115 }
 0x157   : > { %16234 = vst [vmem:[#allocation106_spill] sm:$0xff] %v11696_v38  ;;  %v11701_v30 = vpop.permute.xlu1 %1009  ;;  %4718 = vperm.xlu0 %10626, %v4466_v50  }
 0x158   : > { %16236 = vst [vmem:[#allocation108_spill] sm:$0xff] %v11701_v30  ;;  %v4472_v30 = vld [vmem:[%s11557_s20 + $0x120] sm:$0xff] }
 0x159   : > { %2250 = vperm.xlu1 %10628, %v11699_v35   ;;  %v16244_v35 = vmov 1  }
 0x15a   : > { %v11705_v27 = vpop.permute.xlu0 %2125 }
 0x15b   : > { %16237 = vst [vmem:[#allocation109_spill] sm:$0xff] %v11705_v27  ;;  %v11710_v42 = vpop.permute.xlu1 %1017  ;;  %4728 = vperm.xlu0 %10626, %v4468_v37   ;;  %v4474_v37 = vld [vmem:[%s11557_s20 + $0x130] sm:$0xff] }
 0x15c   : > { %16238 = vst [vmem:[#allocation110_spill] sm:$0xff] %v11710_v42 }
 0x15d   : > { %2260 = vperm.xlu1 %10628, %v11708_v34  }
 0x15e   : > { %v11714_v38 = vpop.permute.xlu0 %2135 }
 0x15f   : > { %16239 = vst [vmem:[#allocation111_spill] sm:$0xff] %v11714_v38  ;;  %4738 = vperm.xlu0 %10626, %v4470_v26  }
 0x160   : > { %v11719_v50 = vpop.permute.xlu1 %1965 }
 0x161   : > { %16241 = vst [vmem:[#allocation113_spill] sm:$0xff] %v11719_v50  ;;  %2270 = vperm.xlu1 %10628, %v11717_v28   ;;  %v4476_v50 = vld [vmem:[%s11557_s20 + $0x140] sm:$0xff] }
 0x162   : > { %v11723_v27 = vpop.permute.xlu0 %2145 }
 0x163   : > { %16242 = vst [vmem:[#allocation114_spill] sm:$0xff] %v11723_v27  ;;  %4748 = vperm.xlu0 %10626, %v4472_v30  }
 0x164   : > { %v11725_v42 = vpop.permute.xlu1 %1970 }
 0x165   : > { %16243 = vst [vmem:[#allocation115_spill] sm:$0xff] %v11725_v42  ;;  %10629 = vset.pattern.permute.xlu1 %v16244_v35  ;;  %v4478_v42 = vld [vmem:[%s11557_s20 + $0x150] sm:$0xff] }
 0x166   : > { %2347 = vperm.xlu1 %10629, %v11229_v36   ;;  %v11730_v38 = vpop.permute.xlu0 %2155 }
 0x167   : > { %4758 = vperm.xlu0 %10626, %v4474_v37   ;;  %v4480_v37 = vld [vmem:[%s11557_s20 + $0x160] sm:$0xff] }
 0x168   : > { %v11732_v26 = vpop.permute.xlu1 %1980 }
 0x169   : > { %16245 = vst [vmem:[#allocation116_spill] sm:$0xff] %v11732_v26 }
 0x16a   : > { %2355 = vperm.xlu1 %10629, %v11403_v33   ;;  %v11736_v28 = vpop.permute.xlu0 %2165 }
 0x16b   : > { %16246 = vst [vmem:[#allocation117_spill] sm:$0xff] %v11736_v28  ;;  %4768 = vperm.xlu0 %10626, %v4476_v50   ;;  %v4482_v50 = vld [vmem:[%s11557_s20 + $0x170] sm:$0xff] }
 0x16c   : > { %v11738_v30 = vpop.permute.xlu1 %1990 }
 0x16d   : > { %16247 = vst [vmem:[#allocation118_spill] sm:$0xff] %v11738_v30 }
 0x16e   : > { %2359 = vperm.xlu1 %10629, %v11239_v40   ;;  %v11742_v27 = vpop.permute.xlu0 %2175 }
 0x16f   : > { %4778 = vperm.xlu0 %10626, %v4478_v42   ;;  %v4484_v42 = vld [vmem:[%s11557_s20 + $0x180] sm:$0xff] }
 0x170   : > { %v11744_v36 = vpop.permute.xlu1 %2000 }
 0x171   : > { %16248 = vst [vmem:[#allocation119_spill] sm:$0xff] %v11744_v36 }
 0x172   : > { %2367 = vperm.xlu1 %10629, %v11248_v43   ;;  %v11748_v26 = vpop.permute.xlu0 %2185 }
 0x173   : > { %4788 = vperm.xlu0 %10626, %v4480_v37   ;;  %v4486_v37 = vld [vmem:[%s11557_s20 + $0x190] sm:$0xff] }
 0x174   : > { %v11750_v28 = vpop.permute.xlu1 %2010 }
 0x175   : > { %16249 = vst [vmem:[#allocation120_spill] sm:$0xff] %v11750_v28 }
 0x176   : > { %2375 = vperm.xlu1 %10629, %v11257_v46   ;;  %v11754_v30 = vpop.permute.xlu0 %2195 }
 0x177   : > { %4798 = vperm.xlu0 %10626, %v4482_v50   ;;  %v4488_v50 = vld [vmem:[%s11557_s20 + $0x1a0] sm:$0xff] }
 0x178   : > { %v11756_v40 = vpop.permute.xlu1 %2020 }
 0x179   : > { %16250 = vst [vmem:[#allocation121_spill] sm:$0xff] %v11756_v40 }
 0x17a   : > { %2383 = vperm.xlu1 %10629, %v11266_v49   ;;  %v11760_v36 = vpop.permute.xlu0 %2205 }
 0x17b   : > { %4808 = vperm.xlu0 %10626, %v4484_v42   ;;  %v4490_v42 = vld [vmem:[%s11557_s20 + $0x1b0] sm:$0xff] }
 0x17c   : > { %v11762_v43 = vpop.permute.xlu1 %2030 }
 0x17d   : > { %16251 = vst [vmem:[#allocation122_spill] sm:$0xff] %v11762_v43 }
 0x17e   : > { %2391 = vperm.xlu1 %10629, %v11275_v52   ;;  %v11766_v28 = vpop.permute.xlu0 %2215 }
 0x17f   : > { %4818 = vperm.xlu0 %10626, %v4486_v37   ;;  %v4492_v37 = vld [vmem:[%s11557_s20 + $0x1c0] sm:$0xff] }
 0x180   : > { %v11768_v46 = vpop.permute.xlu1 %2040 }
 0x181   : > { %16252 = vst [vmem:[#allocation123_spill] sm:$0xff] %v11768_v46 }
 0x182   : > { %2399 = vperm.xlu1 %10629, %v11284_v55   ;;  %v11772_v40 = vpop.permute.xlu0 %2225 }
 0x183   : > { %4828 = vperm.xlu0 %10626, %v4488_v50   ;;  %v4494_v50 = vld [vmem:[%s11557_s20 + $0x1d0] sm:$0xff] }
 0x184   : > { %v11774_v49 = vpop.permute.xlu1 %2050 }
 0x185   : > { %16253 = vst [vmem:[#allocation124_spill] sm:$0xff] %v11774_v49 }
 0x186   : > { %2407 = vperm.xlu1 %10629, %v11293_v58   ;;  %v11778_v43 = vpop.permute.xlu0 %2235 }
 0x187   : > { %4838 = vperm.xlu0 %10626, %v4490_v42   ;;  %v4496_v42 = vld [vmem:[%s11557_s20 + $0x1e0] sm:$0xff] }
 0x188   : > { %v11780_v52 = vpop.permute.xlu1 %2060 }
 0x189   : > { %16254 = vst [vmem:[#allocation125_spill] sm:$0xff] %v11780_v52 }
 0x18a   : > { %2415 = vperm.xlu1 %10629, %v11302_v61   ;;  %v11784_v46 = vpop.permute.xlu0 %2245 }
 0x18b   : > { %16255 = vst [vmem:[#allocation126_spill] sm:$0xff] %v11784_v46  ;;  %4848 = vperm.xlu0 %10626, %v4492_v37   ;;  %v4498_v37 = vld [vmem:[%s11557_s20 + $0x1f0] sm:$0xff]  ;;  %v16494_v46 = vld [vmem:[#allocation110_spill] sm:$0xff] }
 0x18c   : > { %v11786_v55 = vpop.permute.xlu1 %2070 }
 0x18d   : > { %16256 = vst [vmem:[#allocation127_spill] sm:$0xff] %v11786_v55 }
 0x18e   : > { %2423 = vperm.xlu1 %10629, %v11311_v2   ;;  %v11790_v49 = vpop.permute.xlu0 %2255 }
 0x18f   : > { %16257 = vst [vmem:[#allocation128_spill] sm:$0xff] %v11790_v49  ;;  %4858 = vperm.xlu0 %10626, %v4494_v50   ;;  %v4500_v50 = vld [vmem:[%s11557_s20 + $0x200] sm:$0xff] }
 0x190   : > { %v11792_v58 = vpop.permute.xlu1 %2080 }
 0x191   : > { %16258 = vst [vmem:[#allocation129_spill] sm:$0xff] %v11792_v58 }
 0x192   : > { %2431 = vperm.xlu1 %10629, %v11320_v5   ;;  %v11796_v52 = vpop.permute.xlu0 %2265 }
 0x193   : > { %16259 = vst [vmem:[#allocation130_spill] sm:$0xff] %v11796_v52  ;;  %4868 = vperm.xlu0 %10626, %v4496_v42   ;;  %v4502_v42 = vld [vmem:[%s11557_s20 + $0x210] sm:$0xff] }
 0x194   : > { %v11798_v61 = vpop.permute.xlu1 %2090 }
 0x195   : > { %16260 = vst [vmem:[#allocation131_spill] sm:$0xff] %v11798_v61 }
 0x196   : > { %2439 = vperm.xlu1 %10629, %v11329_v8   ;;  %v11802_v55 = vpop.permute.xlu0 %2275 }
 0x197   : > { %16261 = vst [vmem:[#allocation132_spill] sm:$0xff] %v11802_v55  ;;  %4878 = vperm.xlu0 %10626, %v4498_v37   ;;  %v4504_v37 = vld [vmem:[%s11557_s20 + $0x220] sm:$0xff] }
 0x198   : > { %v11804_v2 = vpop.permute.xlu1 %2100 }
 0x199   : > { %16262 = vst [vmem:[#allocation133_spill] sm:$0xff] %v11804_v2 }
 0x19a   : > { %2447 = vperm.xlu1 %10629, %v11338_v11   ;;  %v11808_v58 = vpop.permute.xlu0 %4573 }
 0x19b   : > { %16263 = vst [vmem:[#allocation134_spill] sm:$0xff] %v11808_v58  ;;  %4888 = vperm.xlu0 %10626, %v4500_v50   ;;  %v4506_v50 = vld [vmem:[%s11557_s20 + $0x230] sm:$0xff] }
 0x19c   : > { %v11810_v5 = vpop.permute.xlu1 %2110 }
 0x19d   : > { %16264 = vst [vmem:[#allocation135_spill] sm:$0xff] %v11810_v5 }
 0x19e   : > { %2455 = vperm.xlu1 %10629, %v11347_v12   ;;  %v11814_v61 = vpop.permute.xlu0 %4588 }
 0x19f   : > { %16265 = vst [vmem:[#allocation136_spill] sm:$0xff] %v11814_v61  ;;  %4898 = vperm.xlu0 %10626, %v4502_v42   ;;  %v4508_v42 = vld [vmem:[%s11557_s20 + $0x240] sm:$0xff] }
 0x1a0   : > { %v11816_v8 = vpop.permute.xlu1 %2120 }
 0x1a1   : > { %16266 = vst [vmem:[#allocation137_spill] sm:$0xff] %v11816_v8 }
 0x1a2   : > { %2463 = vperm.xlu1 %10629, %v11356_v13   ;;  %v11820_v2 = vpop.permute.xlu0 %4598 }
 0x1a3   : > { %16267 = vst [vmem:[#allocation138_spill] sm:$0xff] %v11820_v2  ;;  %4908 = vperm.xlu0 %10626, %v4504_v37   ;;  %v4510_v37 = vld [vmem:[%s11557_s20 + $0x250] sm:$0xff]  ;;  %v16458_v2 = vld [vmem:[#allocation93_spill] sm:$0xff] }
 0x1a4   : > { %v11822_v11 = vpop.permute.xlu1 %2130 }
 0x1a5   : > { %16268 = vst [vmem:[#allocation139_spill] sm:$0xff] %v11822_v11 }
 0x1a6   : > { %2471 = vperm.xlu1 %10629, %v11365_v14   ;;  %v11826_v5 = vpop.permute.xlu0 %4608 }
 0x1a7   : > { %16269 = vst [vmem:[#allocation140_spill] sm:$0xff] %v11826_v5  ;;  %4918 = vperm.xlu0 %10626, %v4506_v50   ;;  %v4512_v50 = vld [vmem:[%s11557_s20 + $0x260] sm:$0xff] }
 0x1a8   : > { %v11828_v12 = vpop.permute.xlu1 %2140 }
 0x1a9   : > { %16270 = vst [vmem:[#allocation141_spill] sm:$0xff] %v11828_v12 }
 0x1aa   : > { %2479 = vperm.xlu1 %10629, %v11374_v15   ;;  %v11832_v8 = vpop.permute.xlu0 %4618 }
 0x1ab   : > { %16271 = vst [vmem:[#allocation142_spill] sm:$0xff] %v11832_v8  ;;  %4928 = vperm.xlu0 %10626, %v4508_v42   ;;  %v4514_v42 = vld [vmem:[%s11557_s20 + $0x270] sm:$0xff] }
 0x1ac   : > { %v11834_v13 = vpop.permute.xlu1 %2150 }
 0x1ad   : > { %16272 = vst [vmem:[#allocation143_spill] sm:$0xff] %v11834_v13 }
 0x1ae   : > { %2487 = vperm.xlu1 %10629, %v11383_v16   ;;  %v11838_v11 = vpop.permute.xlu0 %4628 }
 0x1af   : > { %16273 = vst [vmem:[#allocation144_spill] sm:$0xff] %v11838_v11  ;;  %4938 = vperm.xlu0 %10626, %v4510_v37   ;;  %v4516_v37 = vld [vmem:[%s11557_s20 + $0x280] sm:$0xff] }
 0x1b0   : > { %v11840_v14 = vpop.permute.xlu1 %2160 }
 0x1b1   : > { %16274 = vst [vmem:[#allocation145_spill] sm:$0xff] %v11840_v14 }
 0x1b2   : > { %2495 = vperm.xlu1 %10629, %v11395_v31   ;;  %v11844_v12 = vpop.permute.xlu0 %4638 }
 0x1b3   : > { %16275 = vst [vmem:[#allocation146_spill] sm:$0xff] %v11844_v12  ;;  %4948 = vperm.xlu0 %10626, %v4512_v50   ;;  %v4518_v50 = vld [vmem:[%s11557_s20 + $0x290] sm:$0xff] }
 0x1b4   : > { %v11846_v15 = vpop.permute.xlu1 %2170 }
 0x1b5   : > { %16276 = vst [vmem:[#allocation147_spill] sm:$0xff] %v11846_v15  ;;  %v16422_v15 = vld [vmem:[#allocation78_spill] sm:$0xff] }
 0x1b6   : > { %2503 = vperm.xlu1 %10629, %v11407_v39   ;;  %v11850_v13 = vpop.permute.xlu0 %4648 }
 0x1b7   : > { %16277 = vst [vmem:[#allocation148_spill] sm:$0xff] %v11850_v13  ;;  %4958 = vperm.xlu0 %10626, %v4514_v42   ;;  %v4520_v42 = vld [vmem:[%s11557_s20 + $0x2a0] sm:$0xff] }
 0x1b8   : > { %v11852_v16 = vpop.permute.xlu1 %2180 }
 0x1b9   : > { %16278 = vst [vmem:[#allocation149_spill] sm:$0xff] %v11852_v16 }
 0x1ba   : > { %2511 = vperm.xlu1 %10629, %v11419_v23   ;;  %v11856_v14 = vpop.permute.xlu0 %4658 }
 0x1bb   : > { %16279 = vst [vmem:[#allocation150_spill] sm:$0xff] %v11856_v14  ;;  %4968 = vperm.xlu0 %10626, %v4516_v37   ;;  %v4522_v37 = vld [vmem:[%s11557_s20 + $0x2b0] sm:$0xff] }
 0x1bc   : > { %v11858_v31 = vpop.permute.xlu1 %2190 }
 0x1bd   : > { %16280 = vst [vmem:[#allocation151_spill] sm:$0xff] %v11858_v31 }
 0x1be   : > { %2519 = vperm.xlu1 %10629, %v11431_v19   ;;  %v11862_v12 = vpop.permute.xlu0 %4668 }
 0x1bf   : > { %16281 = vst [vmem:[#allocation152_spill] sm:$0xff] %v11862_v12  ;;  %4978 = vperm.xlu0 %10626, %v4518_v50   ;;  %v4524_v50 = vld [vmem:[%s11557_s20 + $0x2c0] sm:$0xff] }
 0x1c0   : > { %v11864_v39 = vpop.permute.xlu1 %2200 }
 0x1c1   : > { %16282 = vst [vmem:[#allocation153_spill] sm:$0xff] %v11864_v39 }
 0x1c2   : > { %2527 = vperm.xlu1 %10629, %v11443_v6   ;;  %v11868_v13 = vpop.permute.xlu0 %4678 }
 0x1c3   : > { %16283 = vst [vmem:[#allocation154_spill] sm:$0xff] %v11868_v13  ;;  %4988 = vperm.xlu0 %10626, %v4520_v42   ;;  %v4526_v42 = vld [vmem:[%s11557_s20 + $0x2d0] sm:$0xff] }
 0x1c4   : > { %v11870_v23 = vpop.permute.xlu1 %2210 }
 0x1c5   : > { %16284 = vst [vmem:[#allocation155_spill] sm:$0xff] %v11870_v23  ;;  %v16416_v23 = vld [vmem:[#allocation76_spill] sm:$0xff] }
 0x1c6   : > { %2535 = vperm.xlu1 %10629, %v11455_v62   ;;  %v11874_v14 = vpop.permute.xlu0 %4688 }
 0x1c7   : > { %16285 = vst [vmem:[#allocation156_spill] sm:$0xff] %v11874_v14  ;;  %4998 = vperm.xlu0 %10626, %v4522_v37   ;;  %v4528_v37 = vld [vmem:[%s11557_s20 + $0x2e0] sm:$0xff] }
 0x1c8   : > { %v11876_v19 = vpop.permute.xlu1 %2220 }
 0x1c9   : > { %16286 = vst [vmem:[#allocation157_spill] sm:$0xff] %v11876_v19 }
 0x1ca   : > { %2543 = vperm.xlu1 %10629, %v11467_v4   ;;  %v11880_v12 = vpop.permute.xlu0 %4698 }
 0x1cb   : > { %16287 = vst [vmem:[#allocation158_spill] sm:$0xff] %v11880_v12  ;;  %5008 = vperm.xlu0 %10626, %v4524_v50   ;;  %v4530_v50 = vld [vmem:[%s11557_s20 + $0x2f0] sm:$0xff] }
 0x1cc   : > { %v11882_v6 = vpop.permute.xlu1 %2230 }
 0x1cd   : > { %16288 = vst [vmem:[#allocation159_spill] sm:$0xff] %v11882_v6 }
 0x1ce   : > { %2551 = vperm.xlu1 %10629, %v11479_v60   ;;  %v11886_v13 = vpop.permute.xlu0 %4708 }
 0x1cf   : > { %16289 = vst [vmem:[#allocation160_spill] sm:$0xff] %v11886_v13  ;;  %5018 = vperm.xlu0 %10626, %v4526_v42   ;;  %v4532_v42 = vld [vmem:[%s11557_s20 + $0x300] sm:$0xff] }
 0x1d0   : > { %v11888_v62 = vpop.permute.xlu1 %2240 }
 0x1d1   : > { %16290 = vst [vmem:[#allocation161_spill] sm:$0xff] %v11888_v62 }
 0x1d2   : > { %2559 = vperm.xlu1 %10629, %v11491_v3   ;;  %v11892_v14 = vpop.permute.xlu0 %4718 }
 0x1d3   : > { %16291 = vst [vmem:[#allocation162_spill] sm:$0xff] %v11892_v14  ;;  %5028 = vperm.xlu0 %10626, %v4528_v37   ;;  %v4534_v37 = vld [vmem:[%s11557_s20 + $0x310] sm:$0xff] }
 0x1d4   : > { %v11894_v4 = vpop.permute.xlu1 %2250 }
 0x1d5   : > { %16292 = vst [vmem:[#allocation163_spill] sm:$0xff] %v11894_v4  ;;  %v16407_v4 = vld [vmem:[#allocation5_spill] sm:$0xff] }
 0x1d6   : > { %2567 = vperm.xlu1 %10629, %v11503_v59   ;;  %v11898_v12 = vpop.permute.xlu0 %4728  ;;  %v4536_v59 = vld [vmem:[%s11557_s20 + $0x320] sm:$0xff] }
 0x1d7   : > { %16293 = vst [vmem:[#allocation164_spill] sm:$0xff] %v11898_v12  ;;  %5038 = vperm.xlu0 %10626, %v4530_v50  }
 0x1d8   : > { %v11900_v60 = vpop.permute.xlu1 %2260 }
 0x1d9   : > { %16294 = vst [vmem:[#allocation165_spill] sm:$0xff] %v11900_v60  ;;  %v16406_v60 = vld [vmem:[#allocation74_spill] sm:$0xff] }
 0x1da   : > { %2575 = vperm.xlu1 %10629, %v11515_v53   ;;  %v11904_v13 = vpop.permute.xlu0 %4738  ;;  %v4538_v53 = vld [vmem:[%s11557_s20 + $0x330] sm:$0xff] }
 0x1db   : > { %16295 = vst [vmem:[#allocation166_spill] sm:$0xff] %v11904_v13  ;;  %5048 = vperm.xlu0 %10626, %v4532_v42  }
 0x1dc   : > { %v11906_v3 = vpop.permute.xlu1 %2270 }
 0x1dd   : > { %16296 = vst [vmem:[#allocation167_spill] sm:$0xff] %v11906_v3 }
 0x1de   : > { %2583 = vperm.xlu1 %10629, %v11527_v22   ;;  %v11910_v14 = vpop.permute.xlu0 %4748  ;;  %v4540_v22 = vld [vmem:[%s11557_s20 + $0x340] sm:$0xff] }
 0x1df   : > { %16297 = vst [vmem:[#allocation168_spill] sm:$0xff] %v11910_v14  ;;  %5058 = vperm.xlu0 %10626, %v4534_v37   ;;  %v16303_v14 = vmov 2  }
 0x1e1   : > { %v11913_v50 = vpop.permute.xlu1 %2347 }
 0x1e2   : > { %16298 = vst [vmem:[#allocation169_spill] sm:$0xff] %v11913_v50  ;;  %2591 = vperm.xlu1 %10629, %v11539_v56   ;;  %v11916_v12 = vpop.permute.xlu0 %4758  ;;  %v4542_v56 = vld [vmem:[%s11557_s20 + $0x350] sm:$0xff] }
 0x1e3   : > { %16299 = vst [vmem:[#allocation170_spill] sm:$0xff] %v11916_v12  ;;  %5068 = vperm.xlu0 %10626, %v4536_v59  }
 0x1e5   : > { %v11919_v42 = vpop.permute.xlu1 %2355 }
 0x1e6   : > { %16300 = vst [vmem:[#allocation171_spill] sm:$0xff] %v11919_v42  ;;  %2599 = vperm.xlu1 %10629, %v11552_v10   ;;  %v11922_v13 = vpop.permute.xlu0 %4768  ;;  %v4544_v10 = vld [vmem:[%s11557_s20 + $0x360] sm:$0xff] }
 0x1e7   : > { %16301 = vst [vmem:[#allocation172_spill] sm:$0xff] %v11922_v13  ;;  %5078 = vperm.xlu0 %10626, %v4538_v53  }
 0x1e9   : > { %v11925_v37 = vpop.permute.xlu1 %2359 }
 0x1ea   : > { %16302 = vst [vmem:[#allocation173_spill] sm:$0xff] %v11925_v37  ;;  %10630 = vset.pattern.permute.xlu1 %v16303_v14  ;;  %v11928_v3 = vpop.permute.xlu0 %4778 }
 0x1eb   : > { %16304 = vst [vmem:[#allocation174_spill] sm:$0xff] %v11928_v3  ;;  %2739 = vperm.xlu1 %10630, %v11390_v17   ;;  %5088 = vperm.xlu0 %10626, %v4540_v22   ;;  %v4546_v17 = vld [vmem:[%s11557_s20 + $0x370] sm:$0xff] }
 0x1ed   : > { %v11932_v59 = vpop.permute.xlu1 %2367 }
 0x1ee   : > { %16305 = vst [vmem:[#allocation175_spill] sm:$0xff] %v11932_v59  ;;  %v11934_v12 = vpop.permute.xlu0 %4788 }
 0x1ef   : > { %16306 = vst [vmem:[#allocation176_spill] sm:$0xff] %v11934_v12  ;;  %2743 = vperm.xlu1 %10630, %v11403_v33   ;;  %5098 = vperm.xlu0 %10626, %v4542_v56   ;;  %v4548_v33 = vld [vmem:[%s11557_s20 + $0x380] sm:$0xff] }
 0x1f1   : > { %v11938_v53 = vpop.permute.xlu1 %2375 }
 0x1f2   : > { %16307 = vst [vmem:[#allocation177_spill] sm:$0xff] %v11938_v53  ;;  %v11940_v13 = vpop.permute.xlu0 %4798  ;;  %v16412_v53 = vld [vmem:[#allocation37_spill] sm:$0xff] }
 0x1f3   : > { %16308 = vst [vmem:[#allocation178_spill] sm:$0xff] %v11940_v13  ;;  %2751 = vperm.xlu1 %10630, %v11415_v24   ;;  %5108 = vperm.xlu0 %10626, %v4544_v10   ;;  %v4550_v24 = vld [vmem:[%s11557_s20 + $0x390] sm:$0xff] }
 0x1f5   : > { %v11944_v22 = vpop.permute.xlu1 %2383 }
 0x1f6   : > { %16309 = vst [vmem:[#allocation179_spill] sm:$0xff] %v11944_v22  ;;  %v11946_v3 = vpop.permute.xlu0 %4808  ;;  %v16409_v22 = vld [vmem:[#allocation72_spill] sm:$0xff] }
 0x1f7   : > { %16310 = vst [vmem:[#allocation180_spill] sm:$0xff] %v11946_v3  ;;  %2759 = vperm.xlu1 %10630, %v11427_v20   ;;  %5118 = vperm.xlu0 %10626, %v4546_v17   ;;  %v4552_v20 = vld [vmem:[%s11557_s20 + $0x3a0] sm:$0xff] }
 0x1f9   : > { %v11950_v56 = vpop.permute.xlu1 %2391 }
 0x1fa   : > { %16311 = vst [vmem:[#allocation181_spill] sm:$0xff] %v11950_v56  ;;  %v11952_v12 = vpop.permute.xlu0 %4818  ;;  %v16405_v56 = vld [vmem:[#allocation70_spill] sm:$0xff] }
 0x1fb   : > { %16312 = vst [vmem:[#allocation182_spill] sm:$0xff] %v11952_v12  ;;  %2767 = vperm.xlu1 %10630, %v11439_v7   ;;  %5128 = vperm.xlu0 %10626, %v4548_v33   ;;  %v4554_v7 = vld [vmem:[%s11557_s20 + $0x3b0] sm:$0xff] }
 0x1fd   : > { %v11956_v10 = vpop.permute.xlu1 %2399 }
 0x1fe   : > { %16313 = vst [vmem:[#allocation183_spill] sm:$0xff] %v11956_v10  ;;  %v11958_v13 = vpop.permute.xlu0 %4828 }
 0x1ff   : > { %16314 = vst [vmem:[#allocation184_spill] sm:$0xff] %v11958_v13  ;;  %2775 = vperm.xlu1 %10630, %v11451_v63   ;;  %5138 = vperm.xlu0 %10626, %v4550_v24   ;;  %v4556_v63 = vld [vmem:[%s11557_s20 + $0x3c0] sm:$0xff] }
 0x201   : > { %v11962_v17 = vpop.permute.xlu1 %2407 }
 0x202   : > { %16315 = vst [vmem:[#allocation185_spill] sm:$0xff] %v11962_v17  ;;  %v11964_v3 = vpop.permute.xlu0 %4838  ;;  %v12239_v17 = vld [vmem:[%s11557_s20 + $0x98] sm:$0xff] }
 0x203   : > { %16316 = vst [vmem:[#allocation186_spill] sm:$0xff] %v11964_v3  ;;  %2783 = vperm.xlu1 %10630, %v11463_v57   ;;  %5148 = vperm.xlu0 %10626, %v4552_v20   ;;  %v4558_v57 = vld [vmem:[%s11557_s20 + $0x3d0] sm:$0xff] }
 0x205   : > { %v11968_v33 = vpop.permute.xlu1 %2415 }
 0x206   : > { %16317 = vst [vmem:[#allocation187_spill] sm:$0xff] %v11968_v33  ;;  %v11970_v12 = vpop.permute.xlu0 %4848 }
 0x207   : > { %16318 = vst [vmem:[#allocation188_spill] sm:$0xff] %v11970_v12  ;;  %2791 = vperm.xlu1 %10630, %v11475_v9   ;;  %5158 = vperm.xlu0 %10626, %v4554_v7   ;;  %v4560_v12 = vld [vmem:[%s11557_s20 + $0x3e0] sm:$0xff] }
 0x209   : > { %v11974_v24 = vpop.permute.xlu1 %2423 }
 0x20a   : > { %16319 = vst [vmem:[#allocation189_spill] sm:$0xff] %v11974_v24  ;;  %v11976_v13 = vpop.permute.xlu0 %4858  ;;  %v16400_v24 = vld [vmem:[#allocation7_spill] sm:$0xff] }
 0x20b   : > { %16320 = vst [vmem:[#allocation190_spill] sm:$0xff] %v11976_v13  ;;  %2799 = vperm.xlu1 %10630, %v11487_v54   ;;  %5168 = vperm.xlu0 %10626, %v4556_v63   ;;  %v4562_v13 = vld [vmem:[%s11557_s20 + $0x3f0] sm:$0xff] }
 0x20d   : > { %v11980_v20 = vpop.permute.xlu1 %2431 }
 0x20e   : > { %16321 = vst [vmem:[#allocation191_spill] sm:$0xff] %v11980_v20  ;;  %v11982_v3 = vpop.permute.xlu0 %4868 }
 0x20f   : > { %16322 = vst [vmem:[#allocation192_spill] sm:$0xff] %v11982_v3  ;;  %2807 = vperm.xlu1 %10630, %v11499_v21   ;;  %5178 = vperm.xlu0 %10626, %v4558_v57   ;;  %v10673_v21 = vld [vmem:[%s16076_s4 + $0x8] sm:$0xff]  }
 0x210   : > { %10084 = vmatprep.subr.bf16.mxu0 %v10673_v21 }
 0x211   : > { %v11986_v9 = vpop.permute.xlu1 %2439  ;;  %10085 = vmatpush3.bf16.msra.mxu0 %v10673_v21  ;;  %v10696_v21 = vld [vmem:[%s11114_s19 + $0x20] sm:$0xff] }
 0x212   : > { %16323 = vst [vmem:[#allocation193_spill] sm:$0xff] %v11986_v9  ;;  %v11988_v7 = vpop.permute.xlu0 %4878  ;;  %v16399_v9 = vld [vmem:[#allocation38_spill] sm:$0xff] }
 0x213   : > { %16324 = vst [vmem:[#allocation194_spill] sm:$0xff] %v11988_v7  ;;  %2815 = vperm.xlu1 %10630, %v11511_v51   ;;  %5188 = vperm.xlu0 %10626, %v4560_v12   ;;  %v10695_v51 = vld [vmem:[%s11114_s19 + $0x8] sm:$0xff] }
 0x215   : > { %v11992_v54 = vpop.permute.xlu1 %2447 }
 0x216   : > { %16325 = vst [vmem:[#allocation195_spill] sm:$0xff] %v11992_v54  ;;  %v11994_v63 = vpop.permute.xlu0 %4888 }
 0x217   : > { %16326 = vst [vmem:[#allocation196_spill] sm:$0xff] %v11994_v63  ;;  %2823 = vperm.xlu1 %10630, %v11523_v0   ;;  %5198 = vperm.xlu0 %10626, %v4562_v13   ;;  %v10674_v0 = vld [vmem:[%s16076_s4] sm:$0xff]  }
 0x218   : > { %10086 = vmatprep.subr.bf16.mxu0 %v10674_v0 }
 0x219   : > { %v12000_v57 = vpop.permute.xlu1 %2455  ;;  %10087 = vmatpush3.bf16.msra.mxu0 %v10674_v0 }
 0x21a   : > { %16327 = vst [vmem:[#allocation197_spill] sm:$0xff] %v12000_v57  ;;  %v12002_v7 = vpop.permute.xlu0 %4898  ;;  %v12219_v57 = vld [vmem:[%s11557_s20 + $0x88] sm:$0xff] }
 0x21b   : > { %16328 = vst [vmem:[#allocation198_spill] sm:$0xff] %v12002_v7  ;;  %2831 = vperm.xlu1 %10630, %v11535_v48   ;;  %10632 = vset.pattern.permute.xlu0 %v16303_v14 }
 0x21c   : > { %897 = vperm.xlu0 %10632, %v10695_v51   ;;  %v10697_v51 = vld [vmem:[%s11114_s19 + $0x30] sm:$0xff] }
 0x21d   : > { %v12010_v12 = vpop.permute.xlu1 %2463 }
 0x21e   : > { %16329 = vst [vmem:[#allocation199_spill] sm:$0xff] %v12010_v12  ;;  %v12012_v13 = vpop.permute.xlu0 %4908 }
 0x21f   : > { %16330 = vst [vmem:[#allocation200_spill] sm:$0xff] %v12012_v13  ;;  %2839 = vperm.xlu1 %10630, %v11548_v32   ;;  %v10698_v32 = vld [vmem:[%s11114_s19 + $0x40] sm:$0xff]  ;;  %v16349_v13 = vld [vmem:[#allocation86_spill] sm:$0xff] }
 0x220   : > { %909 = vperm.xlu0 %10632, %v10696_v21  }
 0x221   : > { %v12016_v48 = vpop.permute.xlu1 %2471 }
 0x222   : > { %16331 = vst [vmem:[#allocation201_spill] sm:$0xff] %v12016_v48  ;;  %v12018_v7 = vpop.permute.xlu0 %4918 }
 0x223   : > { %16332 = vst [vmem:[#allocation202_spill] sm:$0xff] %v12018_v7  ;;  %2847 = vperm.xlu1 %10630, %v11563_v47   ;;  %v10699_v47 = vld [vmem:[%s11114_s19 + $0x50] sm:$0xff] }
 0x224   : > { %917 = vperm.xlu0 %10632, %v10697_v51  }
 0x225   : > { %v12022_v63 = vpop.permute.xlu1 %2479 }
 0x226   : > { %16333 = vst [vmem:[#allocation203_spill] sm:$0xff] %v12022_v63  ;;  %v12024_v3 = vpop.permute.xlu0 %4928 }
 0x227   : > { %16334 = vst [vmem:[#allocation204_spill] sm:$0xff] %v12024_v3  ;;  %2855 = vperm.xlu1 %10630, %v11573_v44   ;;  %v10700_v44 = vld [vmem:[%s11114_s19 + $0x60] sm:$0xff] }
 0x228   : > { %925 = vperm.xlu0 %10632, %v10698_v32  }
 0x229   : > { %v12028_v0 = vpop.permute.xlu1 %2487 }
 0x22a   : > { %16335 = vst [vmem:[#allocation205_spill] sm:$0xff] %v12028_v0  ;;  %v12030_v21 = vpop.permute.xlu0 %4938 }
 0x22b   : > { %16336 = vst [vmem:[#allocation206_spill] sm:$0xff] %v12030_v21  ;;  %2863 = vperm.xlu1 %10630, %v11582_v25   ;;  %v10701_v25 = vld [vmem:[%s11114_s19 + $0x70] sm:$0xff] }
 0x22c   : > { %933 = vperm.xlu0 %10632, %v10699_v47  }
 0x22d   : > { %v12034_v7 = vpop.permute.xlu1 %2495 }
 0x22e   : > { %16337 = vst [vmem:[#allocation207_spill] sm:$0xff] %v12034_v7  ;;  %v12036_v51 = vpop.permute.xlu0 %4948  ;;  %v12177_v7 = vld [vmem:[%s11557_s20 + $0x58] sm:$0xff] }
 0x22f   : > { %16338 = vst [vmem:[#allocation208_spill] sm:$0xff] %v12036_v51  ;;  %2871 = vperm.xlu1 %10630, %v11591_v18   ;;  %v10702_v18 = vld [vmem:[%s11114_s19 + $0x80] sm:$0xff] }
 0x230   : > { %941 = vperm.xlu0 %10632, %v10700_v44  }
 0x231   : > { %v12040_v3 = vpop.permute.xlu1 %2503 }
 0x232   : > { %16339 = vst [vmem:[#allocation209_spill] sm:$0xff] %v12040_v3  ;;  %v12042_v32 = vpop.permute.xlu0 %4958 }
 0x233   : > { %16340 = vst [vmem:[#allocation210_spill] sm:$0xff] %v12042_v32  ;;  %2879 = vperm.xlu1 %10630, %v11600_v1   ;;  %v10703_v1 = vld [vmem:[%s11114_s19 + $0x90] sm:$0xff] }
 0x234   : > { %949 = vperm.xlu0 %10632, %v10701_v25  }
 0x235   : > { %v12046_v21 = vpop.permute.xlu1 %2511 }
 0x236   : > { %16341 = vst [vmem:[#allocation211_spill] sm:$0xff] %v12046_v21  ;;  %v12048_v47 = vpop.permute.xlu0 %4968  ;;  %v12159_v21 = vld [vmem:[%s11557_s20 + $0x38] sm:$0xff] }
 0x237   : > { %16342 = vst [vmem:[#allocation212_spill] sm:$0xff] %v12048_v47  ;;  %2887 = vperm.xlu1 %10630, %v11609_v45   ;;  %v10704_v45 = vld [vmem:[%s11114_s19 + $0xa0] sm:$0xff] }
 0x238   : > { %957 = vperm.xlu0 %10632, %v10702_v18  }
 0x239   : > { %v12052_v51 = vpop.permute.xlu1 %2519 }
 0x23a   : > { %16343 = vst [vmem:[#allocation213_spill] sm:$0xff] %v12052_v51  ;;  %v12054_v44 = vpop.permute.xlu0 %4978  ;;  %v12150_v51 = vld [vmem:[%s11557_s20 + $0x28] sm:$0xff] }
 0x23b   : > { %16344 = vst [vmem:[#allocation214_spill] sm:$0xff] %v12054_v44  ;;  %2895 = vperm.xlu1 %10630, %v11618_v29   ;;  %v10705_v29 = vld [vmem:[%s11114_s19 + $0xb0] sm:$0xff] }
 0x23c   : > { %965 = vperm.xlu0 %10632, %v10703_v1  }
 0x23d   : > { %v12058_v32 = vpop.permute.xlu1 %2527 }
 0x23e   : > { %16345 = vst [vmem:[#allocation215_spill] sm:$0xff] %v12058_v32  ;;  %v12060_v25 = vpop.permute.xlu0 %4988  ;;  %v16352_v32 = vld [vmem:[#allocation89_spill] sm:$0xff] }
 0x23f   : > { %16346 = vst [vmem:[#allocation216_spill] sm:$0xff] %v12060_v25  ;;  %2903 = vperm.xlu1 %10630, %v11627_v41   ;;  %v10706_v41 = vld [vmem:[%s11114_s19 + $0xc0] sm:$0xff] }
 0x240   : > { %973 = vperm.xlu0 %10632, %v10704_v45  }
 0x241   : > { %v12064_v47 = vpop.permute.xlu1 %2535 }
 0x242   : > { %16347 = vst [vmem:[#allocation217_spill] sm:$0xff] %v12064_v47  ;;  %v12066_v18 = vpop.permute.xlu0 %4998  ;;  %v16355_v47 = vld [vmem:[#allocation92_spill] sm:$0xff] }
 0x243   : > { %16348 = vst [vmem:[#allocation218_spill] sm:$0xff] %v12066_v18  ;;  %2911 = vperm.xlu1 %10630, %v16349_v13   ;;  %v10707_v13 = vld [vmem:[%s11114_s19 + $0xd0] sm:$0xff] }
 0x244   : > { %981 = vperm.xlu0 %10632, %v10705_v29  }
 0x245   : > { %v12070_v44 = vpop.permute.xlu1 %2543 }
 0x246   : > { %16350 = vst [vmem:[#allocation86_spill] sm:$0xff] %v12070_v44  ;;  %v12072_v1 = vpop.permute.xlu0 %5008  ;;  %v16358_v44 = vld [vmem:[#allocation95_spill] sm:$0xff] }
 0x247   : > { %16351 = vst [vmem:[#allocation219_spill] sm:$0xff] %v12072_v1  ;;  %2919 = vperm.xlu1 %10630, %v16352_v32   ;;  %v10708_v32 = vld [vmem:[%s11114_s19 + $0xe0] sm:$0xff] }
 0x248   : > { %989 = vperm.xlu0 %10632, %v10706_v41  }
 0x249   : > { %v12076_v25 = vpop.permute.xlu1 %2551 }
 0x24a   : > { %16353 = vst [vmem:[#allocation89_spill] sm:$0xff] %v12076_v25  ;;  %v12078_v45 = vpop.permute.xlu0 %5018  ;;  %v16361_v25 = vld [vmem:[#allocation98_spill] sm:$0xff] }
 0x24b   : > { %16354 = vst [vmem:[#allocation220_spill] sm:$0xff] %v12078_v45  ;;  %2927 = vperm.xlu1 %10630, %v16355_v47   ;;  %v10709_v47 = vld [vmem:[%s11114_s19 + $0xf0] sm:$0xff]  ;;  %s10988_s19 = smov 64  }
 0x24c   : > { %997 = vperm.xlu0 %10632, %v10707_v13  }
 0x24d   : > { %v12082_v18 = vpop.permute.xlu1 %2559 }
 0x24e   : > { %16356 = vst [vmem:[#allocation92_spill] sm:$0xff] %v12082_v18  ;;  %v12084_v29 = vpop.permute.xlu0 %5028  ;;  %v16364_v18 = vld [vmem:[#allocation101_spill] sm:$0xff] }
 0x24f   : > { %16357 = vst [vmem:[#allocation221_spill] sm:$0xff] %v12084_v29  ;;  %2935 = vperm.xlu1 %10630, %v16358_v44   ;;  %v10710_v44 = vld [vmem:[%s11222_s29] sm:$0xff] }
 0x250   : > { %1005 = vperm.xlu0 %10632, %v10708_v32  }
 0x251   : > { %v12088_v1 = vpop.permute.xlu1 %2567 }
 0x252   : > { %16359 = vst [vmem:[#allocation95_spill] sm:$0xff] %v12088_v1  ;;  %v12090_v41 = vpop.permute.xlu0 %5038  ;;  %v16367_v1 = vld [vmem:[#allocation104_spill] sm:$0xff] }
 0x253   : > { %16360 = vst [vmem:[#allocation222_spill] sm:$0xff] %v12090_v41  ;;  %2943 = vperm.xlu1 %10630, %v16361_v25   ;;  %v10711_v25 = vld [vmem:[%s11222_s29 + $0x18] sm:$0xff] }
 0x254   : > { %1013 = vperm.xlu0 %10632, %v10709_v47  }
 0x255   : > { %v12094_v45 = vpop.permute.xlu1 %2575 }
 0x256   : > { %16362 = vst [vmem:[#allocation98_spill] sm:$0xff] %v12094_v45  ;;  %v12096_v13 = vpop.permute.xlu0 %5048  ;;  %v12141_v45 = vld [vmem:[%s11557_s20 + $0x18] sm:$0xff] }
 0x257   : > { %16363 = vst [vmem:[#allocation223_spill] sm:$0xff] %v12096_v13  ;;  %2951 = vperm.xlu1 %10630, %v16364_v18   ;;  %v16370_v13 = vld [vmem:[#allocation107_spill] sm:$0xff]  ;;  %v10712_v18 = vld [vmem:[%s11222_s29 + $0x28] sm:$0xff] }
 0x258   : > { %2735 = vperm.xlu0 %10632, %v10710_v44  }
 0x259   : > { %v12100_v29 = vpop.permute.xlu1 %2583 }
 0x25a   : > { %16365 = vst [vmem:[#allocation101_spill] sm:$0xff] %v12100_v29  ;;  %v12102_v32 = vpop.permute.xlu0 %5058 }
 0x25b   : > { %16366 = vst [vmem:[#allocation224_spill] sm:$0xff] %v12102_v32  ;;  %2959 = vperm.xlu1 %10630, %v16367_v1   ;;  %v10713_v1 = vld [vmem:[%s11222_s29 + $0x38] sm:$0xff] }
 0x25c   : > { %2747 = vperm.xlu0 %10632, %v10711_v25  }
 0x25d   : > { %v12106_v47 = vpop.permute.xlu1 %2591 }
 0x25e   : > { %16368 = vst [vmem:[#allocation104_spill] sm:$0xff] %v12106_v47  ;;  %v12108_v41 = vpop.permute.xlu0 %5068 }
 0x25f   : > { %16369 = vst [vmem:[#allocation225_spill] sm:$0xff] %v12108_v41  ;;  %2967 = vperm.xlu1 %10630, %v16370_v13   ;;  %v16375_v41 = vld [vmem:[#allocation112_spill] sm:$0xff]  ;;  %v10714_v13 = vld [vmem:[%s11222_s29 + $0x48] sm:$0xff] }
 0x260   : > { %2755 = vperm.xlu0 %10632, %v10712_v18   ;;  %v12125_v18 = vld [vmem:[%s11557_s20] sm:$0xff] }
 0x261   : > { %v12112_v44 = vpop.permute.xlu1 %2599 }
 0x262   : > { %16371 = vst [vmem:[#allocation107_spill] sm:$0xff] %v12112_v44  ;;  %v12114_v29 = vpop.permute.xlu0 %5078 }
 0x263   : > { %16372 = vst [vmem:[#allocation226_spill] sm:$0xff] %v12114_v29  ;;  %2975 = vperm.xlu1 %10630, %v11708_v34   ;;  %v16378_v34 = vmov 0  }
 0x264   : > { %2763 = vperm.xlu0 %10632, %v10713_v1   ;;  %v10715_v1 = vld [vmem:[%s11222_s29 + $0x58] sm:$0xff] }
 0x266   : > { %v12118_v25 = vpop.permute.xlu1 %2739  ;;  %v12120_v32 = vpop.permute.xlu0 %5088 }
 0x267   : > { %16373 = vst [vmem:[#allocation227_spill] sm:$0xff] %v12118_v25  ;;  %16374 = vst [vmem:[#allocation228_spill] sm:$0xff] %v12120_v32  ;;  %2983 = vperm.xlu1 %10630, %v16375_v41   ;;  %v4438_v32 = vld [vmem:[%s11557_s20 + $0x10] sm:$0xff] }
 0x268   : > { %2771 = vperm.xlu0 %10632, %v10714_v13   ;;  %v10716_v13 = vld [vmem:[%s11222_s29 + $0x68] sm:$0xff] }
 0x26a   : > { %v12127_v44 = vpop.permute.xlu1 %2743  ;;  %v12129_v29 = vpop.permute.xlu0 %5098 }
 0x26b   : > { %16376 = vst [vmem:[#allocation112_spill] sm:$0xff] %v12127_v44  ;;  %16377 = vst [vmem:[#allocation229_spill] sm:$0xff] %v12129_v29  ;;  %10631 = vset.pattern.permute.xlu1 %v16378_v34  ;;  %v10724_v44 = vld [vmem:[%s11222_s29 + $0xe8] sm:$0xff] }
 0x26c   : > { %4568 = vperm.xlu1 %10631, %v12125_v18   ;;  %2779 = vperm.xlu0 %10632, %v10715_v1   ;;  %v10717_v1 = vld [vmem:[%s11222_s29 + $0x78] sm:$0xff] }
 0x26e   : > { %v12135_v41 = vpop.permute.xlu1 %2751  ;;  %v12137_v47 = vpop.permute.xlu0 %5108 }
 0x26f   : > { %16379 = vst [vmem:[#allocation230_spill] sm:$0xff] %v12135_v41  ;;  %16380 = vst [vmem:[#allocation231_spill] sm:$0xff] %v12137_v47 }
 0x270   : > { %4578 = vperm.xlu1 %10631, %v4438_v32   ;;  %2787 = vperm.xlu0 %10632, %v10716_v13   ;;  %v10718_v13 = vld [vmem:[%s11222_s29 + $0x88] sm:$0xff] }
 0x272   : > { %v12143_v29 = vpop.permute.xlu1 %2759  ;;  %v12145_v34 = vpop.permute.xlu0 %5118 }
 0x273   : > { %16381 = vst [vmem:[#allocation232_spill] sm:$0xff] %v12143_v29  ;;  %16382 = vst [vmem:[#allocation233_spill] sm:$0xff] %v12145_v34 }
 0x274   : > { %4583 = vperm.xlu1 %10631, %v12141_v45   ;;  %2795 = vperm.xlu0 %10632, %v10717_v1   ;;  %v10719_v1 = vld [vmem:[%s11222_s29 + $0x98] sm:$0xff] }
 0x276   : > { %v12152_v47 = vpop.permute.xlu1 %2767  ;;  %v12154_v32 = vpop.permute.xlu0 %5128 }
 0x277   : > { %16383 = vst [vmem:[#allocation234_spill] sm:$0xff] %v12152_v47  ;;  %16384 = vst [vmem:[#allocation235_spill] sm:$0xff] %v12154_v32  ;;  %v12168_v47 = vld [vmem:[%s11557_s20 + $0x48] sm:$0xff] }
 0x278   : > { %4593 = vperm.xlu1 %10631, %v12150_v51   ;;  %2803 = vperm.xlu0 %10632, %v10718_v13   ;;  %v10720_v13 = vld [vmem:[%s11222_s29 + $0xa8] sm:$0xff] }
 0x27a   : > { %v12161_v34 = vpop.permute.xlu1 %2775  ;;  %v12163_v29 = vpop.permute.xlu0 %5138 }
 0x27b   : > { %16385 = vst [vmem:[#allocation236_spill] sm:$0xff] %v12161_v34  ;;  %16386 = vst [vmem:[#allocation237_spill] sm:$0xff] %v12163_v29  ;;  %v660_v34 = vlaneseq }
 0x27c   : > { %4603 = vperm.xlu1 %10631, %v12159_v21   ;;  %2811 = vperm.xlu0 %10632, %v10719_v1   ;;  %v10721_v1 = vld [vmem:[%s11222_s29 + $0xb8] sm:$0xff] }
 0x27e   : > { %v12170_v32 = vpop.permute.xlu1 %2783  ;;  %v12172_v3 = vpop.permute.xlu0 %5148 }
 0x27f   : > { %16387 = vst [vmem:[#allocation238_spill] sm:$0xff] %v12170_v32  ;;  %16388 = vst [vmem:[#allocation239_spill] sm:$0xff] %v12172_v3  ;;  %v661_v32 = vshrl.u32 %v660_v34, 7  ;;  %v12186_v3 = vld [vmem:[%s11557_s20 + $0x68] sm:$0xff] }
 0x280   : > { %4613 = vperm.xlu1 %10631, %v12168_v47   ;;  %2819 = vperm.xlu0 %10632, %v10720_v13   ;;  %v498_v13 = vld [vmem:[%s16075_s3] sm:$0x3] }
 0x281   : > { %v12197_v25 = vsub.s32 0, %v661_v32  ;;  %v12199_v34 = vsub.s32 1, %v661_v32 }
 0x282   : > { %v12179_v29 = vpop.permute.xlu1 %2791  ;;  %v12181_v0 = vpop.permute.xlu0 %5158 }
 0x283   : > { %16389 = vst [vmem:[#allocation240_spill] sm:$0xff] %v12179_v29  ;;  %16390 = vst [vmem:[#allocation241_spill] sm:$0xff] %v12181_v0  ;;  %v10722_v0 = vld [vmem:[%s11222_s29 + $0xc8] sm:$0xff]  ;;  %v499_v29 = vunpack.c.l.bf16 %v498_v13 }
 0x284   : > { %4623 = vperm.xlu1 %10631, %v12177_v7   ;;  %2827 = vperm.xlu0 %10632, %v10721_v1   ;;  %v12202_v1 = vld [vmem:[%s11557_s20 + $0x78] sm:$0xff] }
 0x285   : > { %v12216_v13 = vrot.slane %v499_v29, %v12199_v34 }
 0x286   : > { %v12191_v41 = vpop.permute.xlu1 %2799  ;;  %v12193_v63 = vpop.permute.xlu0 %5168 }
 0x287   : > { %16391 = vst [vmem:[#allocation242_spill] sm:$0xff] %v12191_v41  ;;  %16392 = vst [vmem:[#allocation243_spill] sm:$0xff] %v12193_v63  ;;  %v12208_v41 = vsub.s32 2, %v661_v32  ;;  %v10723_v63 = vld [vmem:[%s11222_s29 + $0xd8] sm:$0xff] }
 0x288   : > { %4633 = vperm.xlu1 %10631, %v12186_v3   ;;  %2835 = vperm.xlu0 %10632, %v10722_v0   ;;  %v12213_v0 = vrot.slane %v499_v29, %v12197_v25 }
 0x289   : > { %16395 = vst [vmem:[#allocation246_spill] sm:$0xff] %v12208_v41 }
 0x28a   : > { %v12204_v48 = vpop.permute.xlu1 %2807  ;;  %v12206_v12 = vpop.permute.xlu0 %5178  ;;  %v664_v20 = vmul.f32 %v12213_v0, %v16399_v9  ;;  %v667_v33 = vmul.f32 %v12213_v0, %v16400_v24  ;;  %v666_v62 = vmul.f32 %v12213_v0, %v16407_v4 }
 0x28b   : > { %16393 = vst [vmem:[#allocation244_spill] sm:$0xff] %v12204_v48  ;;  %16394 = vst [vmem:[#allocation245_spill] sm:$0xff] %v12206_v12  ;;  %v16398_v12 = vld [vmem:[#allocation6_spill] sm:$0xff] }
 0x28c   : > { %4643 = vperm.xlu1 %10631, %v12202_v1   ;;  %2843 = vperm.xlu0 %10632, %v10723_v63   ;;  %v828_v32 = vmul.f32 %v12216_v13, %v16398_v12  ;;  %v12230_v63 = vrot.slane %v499_v29, %v12208_v41  ;;  %v16402_v12 = vld [vmem:[#allocation39_spill] sm:$0xff] }
 0x28d   : > { %v830_v9 = vmul.f32 %v12216_v13, %v16402_v12  ;;  %v10725_v12 = vld [vmem:[%s11222_s29 + $0xf8] sm:$0xff] }
 0x28e   : > { %v12221_v54 = vpop.permute.xlu1 %2815  ;;  %v12223_v48 = vpop.permute.xlu0 %5188  ;;  %v860_v41 = vadd.f32 %v828_v32, %v664_v20  ;;  %v1027_v24 = vmul.f32 %v12230_v63, %v16406_v60  ;;  %v1026_v20 = vmul.f32 %v12230_v63, %v16409_v22  ;;  %v12260_v32 = vld [vmem:[%s11557_s20 + $0xa8] sm:$0xff] }
 0x28f   : > { %16396 = vst [vmem:[#allocation247_spill] sm:$0xff] %v12221_v54  ;;  %16397 = vst [vmem:[#allocation248_spill] sm:$0xff] %v12223_v48  ;;  %v16401_v54 = vld [vmem:[#allocation8_spill] sm:$0xff]  ;;  %v862_v59 = vadd.f32 %v830_v9, %v666_v62  ;;  %v16415_v22 = vld [vmem:[#allocation42_spill] sm:$0xff] }
 0x290   : > { %4653 = vperm.xlu1 %10631, %v12219_v57   ;;  %2851 = vperm.xlu0 %10632, %v10724_v44   ;;  %v831_v48 = vmul.f32 %v12216_v13, %v16401_v54  ;;  %v1024_v44 = vmul.f32 %v12230_v63, %v16405_v56  ;;  %v16408_v54 = vld [vmem:[#allocation40_spill] sm:$0xff]  ;;  %v16410_v56 = vld [vmem:[#allocation9_spill] sm:$0xff]  ;;  %v10726_v62 = vld [vmem:[%s11222_s29 + $0x108] sm:$0xff] }
 0x291   : > { %v665_v6 = vmul.f32 %v12213_v0, %v16408_v54  ;;  %v669_v60 = vmul.f32 %v12213_v0, %v16410_v56  ;;  %v829_v54 = vmul.f32 %v12216_v13, %v16412_v53  ;;  %v16417_v53 = vld [vmem:[#allocation11_spill] sm:$0xff] }
 0x292   : > { %v12243_v10 = vpop.permute.xlu1 %2823  ;;  %v12245_v29 = vpop.permute.xlu0 %5198  ;;  %v1056_v42 = vadd.f32 %v1024_v44, %v860_v41  ;;  %v671_v9 = vmul.f32 %v12213_v0, %v16417_v53  ;;  %v1058_v41 = vadd.f32 %v1026_v20, %v862_v59  ;;  %v16419_v44 = vld [vmem:[#allocation43_spill] sm:$0xff]  ;;  %v1031_v59 = vmul.f32 %v12230_v63, %v16422_v15 }
 0x293   : > { %16403 = vst [vmem:[#allocation6_spill] sm:$0xff] %v12243_v10  ;;  %16404 = vst [vmem:[#allocation38_spill] sm:$0xff] %v12245_v29  ;;  %v863_v10 = vadd.f32 %v831_v48, %v667_v33  ;;  %v16411_v29 = vld [vmem:[#allocation10_spill] sm:$0xff]  ;;  %v16414_v33 = vld [vmem:[#allocation41_spill] sm:$0xff]  ;;  %v861_v56 = vadd.f32 %v829_v54, %v665_v6 }
 0x294   : > { %4663 = vperm.xlu1 %10631, %v12239_v17   ;;  %2859 = vperm.xlu0 %10632, %v10725_v12   ;;  %v833_v4 = vmul.f32 %v12216_v13, %v16411_v29  ;;  %v832_v48 = vmul.f32 %v12216_v13, %v16414_v33  ;;  %v668_v12 = vmul.f32 %v12213_v0, %v16415_v22  ;;  %v16418_v33 = vld [vmem:[#allocation12_spill] sm:$0xff]  ;;  %v1088_v16 = vmax.f32 %v1056_v42, 0.0  ;;  %v12302_v42 = vld [vmem:[%s11557_s20 + $0xc8] sm:$0xff] }
 0x295   : > { %v1059_v50 = vadd.f32 %v1027_v24, %v863_v10  ;;  %v1029_v29 = vmul.f32 %v12230_v63, %v16416_v23  ;;  %v12284_v10 = vld [vmem:[%s11557_s20 + $0xb8] sm:$0xff]  ;;  %v834_v23 = vmul.f32 %v12216_v13, %v16419_v44 }
 0x296   : > { %v12268_v37 = vpop.permute.xlu1 %2831  ;;  %v865_v6 = vadd.f32 %v833_v4, %v669_v60  ;;  %v16420_v24 = vld [vmem:[#allocation44_spill] sm:$0xff] }
 0x297   : > { %16413 = vst [vmem:[#allocation7_spill] sm:$0xff] %v12268_v37  ;;  %v898_v19 = vpop.permute.xlu0 %897  ;;  %v835_v37 = vmul.f32 %v12216_v13, %v16418_v33  ;;  %v1091_v53 = vmax.f32 %v1059_v50, 0.0  ;;  %v10727_v60 = vld [vmem:[%s11222_s29 + $0x118] sm:$0xff] }
 0x298   : > { %v1025_v39 = vmul.f32 %v12230_v63, %v898_v19  ;;  %4673 = vperm.xlu1 %10631, %v12260_v32   ;;  %2867 = vperm.xlu0 %10632, %v10726_v62   ;;  %v670_v19 = vmul.f32 %v12213_v0, %v16420_v24  ;;  %v864_v62 = vadd.f32 %v832_v48, %v668_v12  ;;  %v16424_v24 = vld [vmem:[#allocation14_spill] sm:$0xff]  ;;  %v1090_v48 = vmax.f32 %v1058_v41, 0.0 }
 0x299   : > { %v1061_v33 = vadd.f32 %v1029_v29, %v865_v6  ;;  %v867_v44 = vadd.f32 %v835_v37, %v671_v9  ;;  %v837_v50 = vmul.f32 %v12216_v13, %v16424_v24  ;;  %v16426_v6 = vld [vmem:[#allocation45_spill] sm:$0xff]  ;;  %v16427_v37 = vld [vmem:[#allocation46_spill] sm:$0xff] }
 0x29a   : > { %v1057_v54 = vadd.f32 %v1025_v39, %v861_v56  ;;  %v12290_v22 = vpop.permute.xlu1 %2839  ;;  %v16423_v39 = vld [vmem:[#allocation13_spill] sm:$0xff]  ;;  %v866_v12 = vadd.f32 %v834_v23, %v670_v19  ;;  %v672_v9 = vmul.f32 %v12213_v0, %v16427_v37  ;;  %v16433_v37 = vld [vmem:[#allocation48_spill] sm:$0xff] }
 0x29b   : > { %16421 = vst [vmem:[#allocation8_spill] sm:$0xff] %v12290_v22  ;;  %v910_v31 = vpop.permute.xlu0 %909  ;;  %v673_v56 = vmul.f32 %v12213_v0, %v16423_v39  ;;  %v16428_v39 = vld [vmem:[#allocation80_spill] sm:$0xff]  ;;  %v1093_v22 = vmax.f32 %v1061_v33, 0.0  ;;  %v1063_v11 = vadd.f32 %v1031_v59, %v867_v44 }
 0x29c   : > { %v1028_v20 = vmul.f32 %v12230_v63, %v910_v31  ;;  %4683 = vperm.xlu1 %10631, %v12284_v10   ;;  %2875 = vperm.xlu0 %10632, %v10727_v60   ;;  %v1089_v4 = vmax.f32 %v1057_v54, 0.0  ;;  %v836_v54 = vmul.f32 %v12216_v13, %v16426_v6  ;;  %v1121_v60 = vpack.c.bf16 %v1091_v53, %v1090_v48  ;;  %v16430_v6 = vld [vmem:[#allocation16_spill] sm:$0xff] }
 0x29d   : > { %v1033_v41 = vmul.f32 %v12230_v63, %v16428_v39  ;;  %v839_v53 = vmul.f32 %v12216_v13, %v16430_v6  ;;  %v12321_v48 = vld [vmem:[%s11557_s20 + $0xd8] sm:$0xff]  ;;  %v674_v39 = vmul.f32 %v12213_v0, %v16433_v37 }
 0x29e   : > { %v1060_v15 = vadd.f32 %v1028_v20, %v864_v62  ;;  %v12304_v29 = vpop.permute.xlu1 %2847  ;;  %v1120_v31 = vpack.c.bf16 %v1089_v4, %v1088_v16  ;;  %v10728_v16 = vld [vmem:[%s11222_s29 + $0x128] sm:$0xff]  ;;  %v869_v62 = vadd.f32 %v837_v50, %v673_v56  ;;  %v16429_v20 = vld [vmem:[#allocation15_spill] sm:$0xff] }
 0x29f   : > { %16425 = vst [vmem:[#allocation39_spill] sm:$0xff] %v12304_v29  ;;  %v918_v24 = vpop.permute.xlu0 %917  ;;  %v675_v4 = vmul.f32 %v12213_v0, %v16429_v20  ;;  %v16432_v56 = vld [vmem:[#allocation47_spill] sm:$0xff]  ;;  %v16434_v20 = vld [vmem:[#allocation82_spill] sm:$0xff]  ;;  %v16440_v29 = vld [vmem:[#allocation84_spill] sm:$0xff] }
 0x2a0   : > { %v1092_v23 = vmax.f32 %v1060_v15, 0.0  ;;  %v1030_v19 = vmul.f32 %v12230_v63, %v918_v24  ;;  %4693 = vperm.xlu1 %10631, %v12302_v42   ;;  %2883 = vperm.xlu0 %10632, %v10728_v16   ;;  %v868_v15 = vadd.f32 %v836_v54, %v672_v9  ;;  %v838_v50 = vmul.f32 %v12216_v13, %v16432_v56  ;;  %v12337_v9 = vld [vmem:[%s11557_s20 + $0xe8] sm:$0xff] }
 0x2a1   : > { %10088 = vmatprep.mubr.msk.bf16.mxu0 %vm1152_vm0, %v1120_v31  ;;  %v1065_v24 = vadd.f32 %v1033_v41, %v869_v62  ;;  %v1095_v31 = vmax.f32 %v1063_v11, 0.0  ;;  %v1035_v6 = vmul.f32 %v12230_v63, %v16434_v20  ;;  %v871_v54 = vadd.f32 %v839_v53, %v675_v4  ;;  %v16436_v11 = vld [vmem:[#allocation18_spill] sm:$0xff] }
 0x2a2   : > { %v1122_v33 = vpack.c.bf16 %v1093_v22, %v1092_v23  ;;  %v1062_v59 = vadd.f32 %v1030_v19, %v866_v12  ;;  %10089 = vmatmul.mubr.msk.bf16.vlgmr.msra.gmra.mxu0 %vm1152_vm0, %v1121_v60  ;;  %v12324_v44 = vpop.permute.xlu1 %2855  ;;  %v10729_v60 = vld [vmem:[%s11222_s29 + $0x138] sm:$0xff]  ;;  %v16435_v23 = vld [vmem:[#allocation17_spill] sm:$0xff]  ;;  %v841_v19 = vmul.f32 %v12216_v13, %v16436_v11  ;;  %v870_v37 = vadd.f32 %v838_v50, %v674_v39  ;;  %v16439_v53 = vld [vmem:[#allocation50_spill] sm:$0xff] }
 0x2a3   : > { %16431 = vst [vmem:[#allocation70_spill] sm:$0xff] %v12324_v44  ;;  %v926_v16 = vpop.permute.xlu0 %925  ;;  %v677_v41 = vmul.f32 %v12213_v0, %v16435_v23  ;;  %v1097_v20 = vmax.f32 %v1065_v24, 0.0  ;;  %v1067_v44 = vadd.f32 %v1035_v6, %v871_v54  ;;  %v1037_v23 = vmul.f32 %v12230_v63, %v16440_v29  ;;  %v16441_v50 = vld [vmem:[#allocation19_spill] sm:$0xff]  ;;  %v12359_v11 = vld [vmem:[%s11557_s20 + $0xf8] sm:$0xff] }
 0x2a4   : > { %v1094_v22 = vmax.f32 %v1062_v59, 0.0  ;;  %v1032_v12 = vmul.f32 %v12230_v63, %v926_v16  ;;  %4703 = vperm.xlu1 %10631, %v12321_v48   ;;  %2891 = vperm.xlu0 %10632, %v10729_v60   ;;  %v16438_v16 = vld [vmem:[#allocation49_spill] sm:$0xff]  ;;  %v679_v39 = vmul.f32 %v12213_v0, %v16441_v50  ;;  %v16446_v50 = vld [vmem:[#allocation87_spill] sm:$0xff] }
 0x2a5   : > { %10092 = vmatprep.mubr.msk.bf16.mxu0 %vm1152_vm0, %v1122_v33  ;;  %v840_v4 = vmul.f32 %v12216_v13, %v16438_v16  ;;  %v676_v33 = vmul.f32 %v12213_v0, %v16439_v53  ;;  %v873_v24 = vadd.f32 %v841_v19, %v677_v41  ;;  %v16444_v16 = vld [vmem:[#allocation51_spill] sm:$0xff]  ;;  %v1099_v5 = vmax.f32 %v1067_v44, 0.0 }
 0x2a6   : > { %v1123_v62 = vpack.c.bf16 %v1095_v31, %v1094_v22  ;;  %v1064_v59 = vadd.f32 %v1032_v12, %v868_v15  ;;  %v12343_v56 = vpop.permute.xlu1 %2863  ;;  %v10730_v15 = vld [vmem:[%s11222_s29 + $0x148] sm:$0xff]  ;;  %v16442_v22 = vld [vmem:[#allocation20_spill] sm:$0xff]  ;;  %v842_v53 = vmul.f32 %v12216_v13, %v16444_v16 }
 0x2a7   : > { %16437 = vst [vmem:[#allocation74_spill] sm:$0xff] %v12343_v56  ;;  %v934_v60 = vpop.permute.xlu0 %933  ;;  %v843_v12 = vmul.f32 %v12216_v13, %v16442_v22  ;;  %v1039_v22 = vmul.f32 %v12230_v63, %v16446_v50  ;;  %v1069_v41 = vadd.f32 %v1037_v23, %v873_v24  ;;  %v12379_v16 = vld [vmem:[%s11557_s20 + $0x108] sm:$0xff] }
 0x2a8   : > { %v1096_v8 = vmax.f32 %v1064_v59, 0.0  ;;  %v1034_v31 = vmul.f32 %v12230_v63, %v934_v60  ;;  %4713 = vperm.xlu1 %10631, %v12337_v9   ;;  %2899 = vperm.xlu0 %10632, %v10730_v15   ;;  %v872_v59 = vadd.f32 %v840_v4, %v676_v33  ;;  %v16445_v60 = vld [vmem:[#allocation52_spill] sm:$0xff]  ;;  %v16447_v4 = vld [vmem:[#allocation21_spill] sm:$0xff] }
 0x2a9   : > { %v678_v15 = vmul.f32 %v12213_v0, %v16445_v60  ;;  %v681_v33 = vmul.f32 %v12213_v0, %v16447_v4  ;;  %v1101_v4 = vmax.f32 %v1069_v41, 0.0 }
 0x2aa   : > { %v1124_v6 = vpack.c.bf16 %v1097_v20, %v1096_v8  ;;  %v1066_v54 = vadd.f32 %v1034_v31, %v870_v37  ;;  %10093 = vmatmul.mubr.msk.bf16.gmra.mxu0 %vm1152_vm0, %v1123_v62  ;;  %v12362_v29 = vpop.permute.xlu1 %2871  ;;  %v10731_v62 = vld [vmem:[%s11222_s29 + $0x158] sm:$0xff]  ;;  %v875_v37 = vadd.f32 %v843_v12, %v679_v39  ;;  %v16448_v20 = vld [vmem:[#allocation22_spill] sm:$0xff] }
 0x2ab   : > { %16443 = vst [vmem:[#allocation5_spill] sm:$0xff] %v12362_v29  ;;  %v942_v56 = vpop.permute.xlu0 %941  ;;  %v845_v31 = vmul.f32 %v12216_v13, %v16448_v20  ;;  %v874_v24 = vadd.f32 %v842_v53, %v678_v15  ;;  %v16451_v12 = vld [vmem:[#allocation54_spill] sm:$0xff]  ;;  %v12393_v15 = vld [vmem:[%s11557_s20 + $0x118] sm:$0xff] }
 0x2ac   : > { %v1098_v8 = vmax.f32 %v1066_v54, 0.0  ;;  %v1036_v19 = vmul.f32 %v12230_v63, %v942_v56  ;;  %4723 = vperm.xlu1 %10631, %v12359_v11   ;;  %2907 = vperm.xlu0 %10632, %v10731_v62   ;;  %v16450_v54 = vld [vmem:[#allocation53_spill] sm:$0xff]  ;;  %v680_v60 = vmul.f32 %v12213_v0, %v16451_v12  ;;  %v1071_v50 = vadd.f32 %v1039_v22, %v875_v37  ;;  %v16452_v20 = vld [vmem:[#allocation90_spill] sm:$0xff] }
 0x2ad   : > { %10096 = vmatprep.mubr.msk.bf16.mxu0 %vm1152_vm0, %v1124_v6  ;;  %v844_v39 = vmul.f32 %v12216_v13, %v16450_v54  ;;  %v1041_v6 = vmul.f32 %v12230_v63, %v16452_v20  ;;  %v877_v53 = vadd.f32 %v845_v31, %v681_v33  ;;  %v16454_v54 = vld [vmem:[#allocation24_spill] sm:$0xff] }
 0x2ae   : > { %v1125_v44 = vpack.c.bf16 %v1099_v5, %v1098_v8  ;;  %v1068_v23 = vadd.f32 %v1036_v19, %v872_v59  ;;  %v12381_v56 = vpop.permute.xlu1 %2879  ;;  %v10732_v59 = vld [vmem:[%s11222_s29 + $0x168] sm:$0xff]  ;;  %v16453_v8 = vld [vmem:[#allocation23_spill] sm:$0xff]  ;;  %v847_v22 = vmul.f32 %v12216_v13, %v16454_v54  ;;  %v16457_v31 = vld [vmem:[#allocation56_spill] sm:$0xff]  ;;  %v1043_v54 = vmul.f32 %v12230_v63, %v16458_v2 }
 0x2af   : > { %16449 = vst [vmem:[#allocation40_spill] sm:$0xff] %v12381_v56  ;;  %v950_v62 = vpop.permute.xlu0 %949  ;;  %v683_v19 = vmul.f32 %v12213_v0, %v16453_v8  ;;  %v876_v12 = vadd.f32 %v844_v39, %v680_v60  ;;  %v682_v20 = vmul.f32 %v12213_v0, %v16457_v31  ;;  %v1073_v56 = vadd.f32 %v1041_v6, %v877_v53  ;;  %v16459_v39 = vld [vmem:[#allocation25_spill] sm:$0xff] }
 0x2b0   : > { %v1100_v29 = vmax.f32 %v1068_v23, 0.0  ;;  %v1038_v5 = vmul.f32 %v12230_v63, %v950_v62  ;;  %4733 = vperm.xlu1 %10631, %v12379_v16   ;;  %2915 = vperm.xlu0 %10632, %v10732_v59   ;;  %v16456_v62 = vld [vmem:[#allocation55_spill] sm:$0xff]  ;;  %v1103_v59 = vmax.f32 %v1071_v50, 0.0  ;;  %v685_v60 = vmul.f32 %v12213_v0, %v16459_v39  ;;  %v12417_v50 = vld [vmem:[%s11557_s20 + $0x128] sm:$0xff]  ;;  %v16462_v31 = vld [vmem:[#allocation57_spill] sm:$0xff] }
 0x2b1   : > { %v846_v33 = vmul.f32 %v12216_v13, %v16456_v62  ;;  %v879_v6 = vadd.f32 %v847_v22, %v683_v19  ;;  %v1105_v61 = vmax.f32 %v1073_v56, 0.0  ;;  %v10734_v22 = vld [vmem:[%s11222_s29 + $0x188] sm:$0xff] }
 0x2b2   : > { %v1126_v41 = vpack.c.bf16 %v1101_v4, %v1100_v29  ;;  %v1070_v37 = vadd.f32 %v1038_v5, %v874_v24  ;;  %10097 = vmatmul.mubr.msk.bf16.gmra.mxu0 %vm1152_vm0, %v1125_v44  ;;  %v12400_v23 = vpop.permute.xlu1 %2887  ;;  %v10733_v44 = vld [vmem:[%s11222_s29 + $0x178] sm:$0xff]  ;;  %v16460_v4 = vld [vmem:[#allocation26_spill] sm:$0xff] }
 0x2b3   : > { %16455 = vst [vmem:[#allocation72_spill] sm:$0xff] %v12400_v23  ;;  %v958_v8 = vpop.permute.xlu0 %957  ;;  %v849_v5 = vmul.f32 %v12216_v13, %v16460_v4  ;;  %v878_v62 = vadd.f32 %v846_v33, %v682_v20  ;;  %v16464_v23 = vld [vmem:[#allocation96_spill] sm:$0xff]  ;;  %v1075_v58 = vadd.f32 %v1043_v54, %v879_v6  ;;  %v16465_v33 = vld [vmem:[#allocation27_spill] sm:$0xff] }
 0x2b4   : > { %v1102_v29 = vmax.f32 %v1070_v37, 0.0  ;;  %v1040_v24 = vmul.f32 %v12230_v63, %v958_v8  ;;  %4743 = vperm.xlu1 %10631, %v12393_v15   ;;  %2923 = vperm.xlu0 %10632, %v10733_v44   ;;  %v848_v8 = vmul.f32 %v12216_v13, %v16462_v31  ;;  %v16463_v44 = vld [vmem:[#allocation58_spill] sm:$0xff]  ;;  %v1045_v4 = vmul.f32 %v12230_v63, %v16464_v23 }
 0x2b5   : > { %10100 = vmatprep.mubr.msk.bf16.mxu0 %vm1152_vm0, %v1126_v41  ;;  %v684_v39 = vmul.f32 %v12213_v0, %v16463_v44  ;;  %v687_v20 = vmul.f32 %v12213_v0, %v16465_v33  ;;  %v16470_v33 = vld [vmem:[#allocation99_spill] sm:$0xff] }
 0x2b6   : > { %v1127_v2 = vpack.c.bf16 %v1103_v59, %v1102_v29  ;;  %v1072_v53 = vadd.f32 %v1040_v24, %v876_v12  ;;  %v12419_v37 = vpop.permute.xlu1 %2895  ;;  %v881_v12 = vadd.f32 %v849_v5, %v685_v60  ;;  %v16466_v59 = vld [vmem:[#allocation28_spill] sm:$0xff] }
 0x2b7   : > { %16461 = vst [vmem:[#allocation9_spill] sm:$0xff] %v12419_v37  ;;  %v966_v41 = vpop.permute.xlu0 %965  ;;  %v851_v29 = vmul.f32 %v12216_v13, %v16466_v59  ;;  %v12435_v24 = vld [vmem:[%s11557_s20 + $0x138] sm:$0xff]  ;;  %v880_v6 = vadd.f32 %v848_v8, %v684_v39  ;;  %v1047_v59 = vmul.f32 %v12230_v63, %v16470_v33  ;;  %v12451_v8 = vld [vmem:[%s11557_s20 + $0x148] sm:$0xff]  ;;  %v16471_v39 = vld [vmem:[#allocation29_spill] sm:$0xff] }
 0x2b8   : > { %v1104_v55 = vmax.f32 %v1072_v53, 0.0  ;;  %v1042_v19 = vmul.f32 %v12230_v63, %v966_v41  ;;  %4753 = vperm.xlu1 %10631, %v12417_v50   ;;  %2931 = vperm.xlu0 %10632, %v10734_v22   ;;  %v16468_v53 = vld [vmem:[#allocation59_spill] sm:$0xff]  ;;  %v16469_v5 = vld [vmem:[#allocation60_spill] sm:$0xff]  ;;  %v1077_v44 = vadd.f32 %v1045_v4, %v881_v12  ;;  %v1107_v22 = vmax.f32 %v1075_v58, 0.0  ;;  %v16472_v58 = vld [vmem:[#allocation30_spill] sm:$0xff] }
 0x2b9   : > { %v850_v60 = vmul.f32 %v12216_v13, %v16468_v53  ;;  %v686_v31 = vmul.f32 %v12213_v0, %v16469_v5  ;;  %v689_v4 = vmul.f32 %v12213_v0, %v16471_v39  ;;  %v16476_v37 = vld [vmem:[#allocation102_spill] sm:$0xff] }
 0x2ba   : > { %v1128_v23 = vpack.c.bf16 %v1105_v61, %v1104_v55  ;;  %v1074_v56 = vadd.f32 %v1042_v19, %v878_v62  ;;  %10101 = vmatmul.mubr.msk.bf16.gmra.mxu0 %vm1152_vm0, %v1127_v2  ;;  %v12438_v54 = vpop.permute.xlu1 %2903  ;;  %v10735_v2 = vld [vmem:[%s11222_s29 + $0x198] sm:$0xff]  ;;  %v883_v62 = vadd.f32 %v851_v29, %v687_v20  ;;  %v853_v19 = vmul.f32 %v12216_v13, %v16472_v58  ;;  %v16475_v29 = vld [vmem:[#allocation62_spill] sm:$0xff] }
 0x2bb   : > { %16467 = vst [vmem:[#allocation10_spill] sm:$0xff] %v12438_v54  ;;  %v974_v41 = vpop.permute.xlu0 %973  ;;  %v882_v5 = vadd.f32 %v850_v60, %v686_v31  ;;  %v1109_v33 = vmax.f32 %v1077_v44, 0.0  ;;  %v1049_v39 = vmul.f32 %v12230_v63, %v16476_v37  ;;  %v16477_v60 = vld [vmem:[#allocation31_spill] sm:$0xff]  ;;  %v12473_v58 = vld [vmem:[%s11557_s20 + $0x158] sm:$0xff] }
 0x2bc   : > { %v1106_v55 = vmax.f32 %v1074_v56, 0.0  ;;  %v1044_v61 = vmul.f32 %v12230_v63, %v974_v41  ;;  %4763 = vperm.xlu1 %10631, %v12435_v24   ;;  %2939 = vperm.xlu0 %10632, %v10735_v2   ;;  %v16474_v41 = vld [vmem:[#allocation61_spill] sm:$0xff]  ;;  %v1079_v54 = vadd.f32 %v1047_v59, %v883_v62  ;;  %v691_v31 = vmul.f32 %v12213_v0, %v16477_v60 }
 0x2bd   : > { %10104 = vmatprep.mubr.msk.bf16.mxu0 %vm1152_vm0, %v1128_v23  ;;  %v852_v20 = vmul.f32 %v12216_v13, %v16474_v41  ;;  %v688_v23 = vmul.f32 %v12213_v0, %v16475_v29  ;;  %v885_v44 = vadd.f32 %v853_v19, %v689_v4  ;;  %v16480_v41 = vld [vmem:[#allocation63_spill] sm:$0xff]  ;;  %v16482_v60 = vld [vmem:[#allocation105_spill] sm:$0xff] }
 0x2be   : > { %v1129_v12 = vpack.c.bf16 %v1107_v22, %v1106_v55  ;;  %v1076_v56 = vadd.f32 %v1044_v61, %v880_v6  ;;  %v12457_v53 = vpop.permute.xlu1 %2911  ;;  %v10736_v6 = vld [vmem:[%s11222_s29 + $0x1a8] sm:$0xff]  ;;  %v16478_v55 = vld [vmem:[#allocation32_spill] sm:$0xff]  ;;  %v854_v29 = vmul.f32 %v12216_v13, %v16480_v41  ;;  %v1111_v49 = vmax.f32 %v1079_v54, 0.0 }
 0x2bf   : > { %16473 = vst [vmem:[#allocation37_spill] sm:$0xff] %v12457_v53  ;;  %v982_v2 = vpop.permute.xlu0 %981  ;;  %v855_v61 = vmul.f32 %v12216_v13, %v16478_v55  ;;  %v1051_v55 = vmul.f32 %v12230_v63, %v16482_v60  ;;  %v1081_v4 = vadd.f32 %v1049_v39, %v885_v44  ;;  %v12493_v41 = vld [vmem:[%s11557_s20 + $0x168] sm:$0xff] }
 0x2c0   : > { %v1108_v52 = vmax.f32 %v1076_v56, 0.0  ;;  %v1046_v22 = vmul.f32 %v12230_v63, %v982_v2  ;;  %4773 = vperm.xlu1 %10631, %v12451_v8   ;;  %2947 = vperm.xlu0 %10632, %v10736_v6   ;;  %v884_v56 = vadd.f32 %v852_v20, %v688_v23  ;;  %v16481_v2 = vld [vmem:[#allocation64_spill] sm:$0xff]  ;;  %v16483_v20 = vld [vmem:[#allocation33_spill] sm:$0xff] }
 0x2c1   : > { %v690_v6 = vmul.f32 %v12213_v0, %v16481_v2  ;;  %v693_v23 = vmul.f32 %v12213_v0, %v16483_v20  ;;  %v1113_v20 = vmax.f32 %v1081_v4, 0.0 }
 0x2c2   : > { %v1130_v59 = vpack.c.bf16 %v1109_v33, %v1108_v52  ;;  %v1078_v62 = vadd.f32 %v1046_v22, %v882_v5  ;;  %10105 = vmatmul.mubr.msk.bf16.gmra.mxu0 %vm1152_vm0, %v1129_v12  ;;  %v12476_v37 = vpop.permute.xlu1 %2919  ;;  %v10737_v12 = vld [vmem:[%s11222_s29 + $0x1b8] sm:$0xff]  ;;  %v887_v5 = vadd.f32 %v855_v61, %v691_v31  ;;  %v16484_v33 = vld [vmem:[#allocation34_spill] sm:$0xff] }
 0x2c3   : > { %16479 = vst [vmem:[#allocation41_spill] sm:$0xff] %v12476_v37  ;;  %v990_v53 = vpop.permute.xlu0 %989  ;;  %v857_v22 = vmul.f32 %v12216_v13, %v16484_v33  ;;  %v886_v44 = vadd.f32 %v854_v29, %v690_v6  ;;  %v16487_v61 = vld [vmem:[#allocation66_spill] sm:$0xff]  ;;  %v16488_v33 = vld [vmem:[#allocation108_spill] sm:$0xff] }
 0x2c4   : > { %v1110_v52 = vmax.f32 %v1078_v62, 0.0  ;;  %v1048_v19 = vmul.f32 %v12230_v63, %v990_v53  ;;  %4783 = vperm.xlu1 %10631, %v12473_v58   ;;  %2955 = vperm.xlu0 %10632, %v10737_v12   ;;  %v16486_v62 = vld [vmem:[#allocation65_spill] sm:$0xff]  ;;  %v692_v2 = vmul.f32 %v12213_v0, %v16487_v61  ;;  %v1083_v60 = vadd.f32 %v1051_v55, %v887_v5  ;;  %v12507_v6 = vld [vmem:[%s11557_s20 + $0x178] sm:$0xff] }
 0x2c5   : > { %10108 = vmatprep.mubr.msk.bf16.mxu0 %vm1152_vm0, %v1130_v59  ;;  %v856_v31 = vmul.f32 %v12216_v13, %v16486_v62  ;;  %v1053_v59 = vmul.f32 %v12230_v63, %v16488_v33  ;;  %v889_v29 = vadd.f32 %v857_v22, %v693_v23  ;;  %v16490_v62 = vld [vmem:[#allocation36_spill] sm:$0xff] }
 0x2c6   : > { %v1131_v54 = vpack.c.bf16 %v1111_v49, %v1110_v52  ;;  %v1080_v39 = vadd.f32 %v1048_v19, %v884_v56  ;;  %v12495_v53 = vpop.permute.xlu1 %2927  ;;  %v10738_v56 = vld [vmem:[%s11222_s29 + $0x1c8] sm:$0xff]  ;;  %v16489_v52 = vld [vmem:[#allocation35_spill] sm:$0xff]  ;;  %v859_v55 = vmul.f32 %v12216_v13, %v16490_v62  ;;  %v16493_v22 = vld [vmem:[#allocation68_spill] sm:$0xff]  ;;  %v1055_v62 = vmul.f32 %v12230_v63, %v16494_v46 }
 0x2c7   : > { %16485 = vst [vmem:[#allocation42_spill] sm:$0xff] %v12495_v53  ;;  %v998_v12 = vpop.permute.xlu0 %997  ;;  %v695_v19 = vmul.f32 %v12213_v0, %v16489_v52  ;;  %v888_v61 = vadd.f32 %v856_v31, %v692_v2  ;;  %v694_v33 = vmul.f32 %v12213_v0, %v16493_v22  ;;  %v1085_v53 = vadd.f32 %v1053_v59, %v889_v29 }
 0x2c8   : > { %v1112_v37 = vmax.f32 %v1080_v39, 0.0  ;;  %v1050_v49 = vmul.f32 %v12230_v63, %v998_v12  ;;  %4793 = vperm.xlu1 %10631, %v12493_v41   ;;  %2963 = vperm.xlu0 %10632, %v10738_v56   ;;  %v16492_v12 = vld [vmem:[#allocation67_spill] sm:$0xff]  ;;  %v1115_v56 = vmax.f32 %v1083_v60, 0.0 }
 0x2c9   : > { %v858_v23 = vmul.f32 %v12216_v13, %v16492_v12  ;;  %v12527_v13 = vld [vmem:[%s11557_s20 + $0x188] sm:$0xff]  ;;  %v891_v0 = vadd.f32 %v859_v55, %v695_v19  ;;  %v1117_v59 = vmax.f32 %v1085_v53, 0.0 }
 0x2ca   : > { %v1132_v4 = vpack.c.bf16 %v1113_v20, %v1112_v37  ;;  %v1082_v5 = vadd.f32 %v1050_v49, %v886_v44  ;;  %10109 = vmatmul.mubr.msk.bf16.gmra.mxu0 %vm1152_vm0, %v1131_v54  ;;  %v12514_v39 = vpop.permute.xlu1 %2935  ;;  %v10739_v54 = vld [vmem:[%s11222_s29 + $0x1d8] sm:$0xff]  ;;  %v10740_v12 = vld [vmem:[%s11222_s29 + $0x1e8] sm:$0xff] }
 0x2cb   : > { %16491 = vst [vmem:[#allocation76_spill] sm:$0xff] %v12514_v39  ;;  %v1006_v52 = vpop.permute.xlu0 %1005  ;;  %v890_v20 = vadd.f32 %v858_v23, %v694_v33  ;;  %v1087_v49 = vadd.f32 %v1055_v62, %v891_v0  ;;  %v12546_v33 = vld [vmem:[%s11557_s20 + $0x1a8] sm:$0xff] }
 0x2cc   : > { %v1114_v37 = vmax.f32 %v1082_v5, 0.0  ;;  %v1052_v44 = vmul.f32 %v12230_v63, %v1006_v52  ;;  %4803 = vperm.xlu1 %10631, %v12507_v6   ;;  %2971 = vperm.xlu0 %10632, %v10739_v54   ;;  %v4493_v0 = vld [vmem:[%s11557_s20 + $0x1c8] sm:$0xff] }
 0x2cd   : > { %10112 = vmatprep.mubr.msk.bf16.mxu0 %vm1152_vm0, %v1132_v4  ;;  %v12535_v4 = vld [vmem:[%s11557_s20 + $0x198] sm:$0xff]  ;;  %v1119_v23 = vmax.f32 %v1087_v49, 0.0 }
 0x2ce   : > { %v1133_v31 = vpack.c.bf16 %v1115_v56, %v1114_v37  ;;  %v1084_v2 = vadd.f32 %v1052_v44, %v888_v61  ;;  %v12529_v60 = vpop.permute.xlu1 %2943  ;;  %v12555_v37 = vld [vmem:[%s11557_s20 + $0x1b8] sm:$0xff] }
 0x2cf   : > { %16495 = vst [vmem:[#allocation11_spill] sm:$0xff] %v12529_v60  ;;  %v1014_v46 = vpop.permute.xlu0 %1013 }
 0x2d0   : > { %v1116_v29 = vmax.f32 %v1084_v2, 0.0  ;;  %v1054_v5 = vmul.f32 %v12230_v63, %v1014_v46  ;;  %4813 = vperm.xlu1 %10631, %v12527_v13   ;;  %2979 = vperm.xlu0 %10632, %v10740_v12   ;;  %v10741_v63 = vld [vmem:[%s11222_s29 + $0x1f8] sm:$0xff] }
 0x2d2   : > { %v1134_v19 = vpack.c.bf16 %v1117_v59, %v1116_v29  ;;  %v1086_v55 = vadd.f32 %v1054_v5, %v890_v20  ;;  %10113 = vmatmul.mubr.msk.bf16.gmra.mxu0 %vm1152_vm0, %v1133_v31  ;;  %v12538_v61 = vpop.permute.xlu1 %2951  ;;  %v12580_v59 = vld [vmem:[%s11557_s20 + $0x1e8] sm:$0xff] }
 0x2d3   : > { %16496 = vst [vmem:[#allocation12_spill] sm:$0xff] %v12538_v61  ;;  %v12540_v53 = vpop.permute.xlu0 %2735  ;;  %v16664_v61 = vld [vmem:[#allocation111_spill] sm:$0xff] }
 0x2d4   : > { %v1118_v22 = vmax.f32 %v1086_v55, 0.0  ;;  %4823 = vperm.xlu1 %10631, %v12535_v4   ;;  %2987 = vperm.xlu0 %10632, %v10741_v63  }
 0x2d5   : > { %10116 = vmatprep.mubr.msk.bf16.mxu0 %vm1152_vm0, %v1134_v19  ;;  %v12598_v19 = vld [vmem:[%s11557_s20 + $0x208] sm:$0xff] }
 0x2d6   : > { %v1135_v56 = vpack.c.bf16 %v1119_v23, %v1118_v22  ;;  %v12548_v52 = vpop.permute.xlu1 %2959  ;;  %v4503_v23 = vld [vmem:[%s11557_s20 + $0x218] sm:$0xff] }
 0x2d7   : > { %16497 = vst [vmem:[#allocation43_spill] sm:$0xff] %v12548_v52  ;;  %v12550_v62 = vpop.permute.xlu0 %2747  ;;  %v16663_v52 = vld [vmem:[#allocation109_spill] sm:$0xff] }
 0x2d8   : > { %4833 = vperm.xlu1 %10631, %v12546_v33   ;;  %6111 = vperm.xlu0 %10632, %v12125_v18   ;;  %v4495_v18 = vld [vmem:[%s11557_s20 + $0x1d8] sm:$0xff] }
 0x2da   : > { %10117 = vmatmul.mubr.msk.bf16.gmra.mxu0 %vm1152_vm0, %v1135_v56  ;;  %v12558_v44 = vpop.permute.xlu1 %2967 }
 0x2db   : > { %16498 = vst [vmem:[#allocation44_spill] sm:$0xff] %v12558_v44  ;;  %v12560_v54 = vpop.permute.xlu0 %2755  ;;  %v16661_v44 = vld [vmem:[#allocation103_spill] sm:$0xff] }
 0x2dc   : > { %4843 = vperm.xlu1 %10631, %v12555_v37   ;;  %6123 = vperm.xlu0 %10632, %v12141_v45   ;;  %v10675_v45 = vld [vmem:[%s16077_s5 + $0x8] sm:$0xff]  }
 0x2dd   : > { %10120 = vmatprep.subr.bf16.mxu1 %v10675_v45 }
 0x2de   : > { %v12565_v31 = vpop.permute.xlu1 %2975  ;;  %10121 = vmatpush3.bf16.msra.mxu1 %v10675_v45 }
 0x2df   : > { %16499 = vst [vmem:[#allocation78_spill] sm:$0xff] %v12565_v31  ;;  %v12567_v2 = vpop.permute.xlu0 %2763 }
 0x2e0   : > { %4853 = vperm.xlu1 %10631, %v4493_v0   ;;  %6131 = vperm.xlu0 %10632, %v12150_v51   ;;  %v4499_v51 = vld [vmem:[%s11557_s20 + $0x1f8] sm:$0xff] }
 0x2e2   : > { %v12571_v20 = vpop.permute.xlu1 %2983 }
 0x2e3   : > { %16500 = vst [vmem:[#allocation13_spill] sm:$0xff] %v12571_v20  ;;  %v12573_v46 = vpop.permute.xlu0 %2771 }
 0x2e4   : > { %4863 = vperm.xlu1 %10631, %v4495_v18   ;;  %6139 = vperm.xlu0 %10632, %v12159_v21   ;;  %v10676_v21 = vld [vmem:[%s16077_s5] sm:$0xff]  }
 0x2e5   : > { %10122 = vmatprep.subr.bf16.mxu1 %v10676_v21 }
 0x2e6   : > { %10123 = vmatpush3.bf16.msra.mxu1 %v10676_v21 }
 0x2e7   : > { %v12582_v49 = vpop.permute.xlu1 %4568  ;;  %v12584_v29 = vpop.permute.xlu0 %2779 }
 0x2e8   : > { %16501 = vst [vmem:[#allocation14_spill] sm:$0xff] %v12582_v49  ;;  %4873 = vperm.xlu1 %10631, %v12580_v59   ;;  %6147 = vperm.xlu0 %10632, %v12168_v47  }
 0x2eb   : > { %v12592_v5 = vpop.permute.xlu1 %4578  ;;  %v12594_v12 = vpop.permute.xlu0 %2787 }
 0x2ec   : > { %16502 = vst [vmem:[#allocation45_spill] sm:$0xff] %v12592_v5  ;;  %4883 = vperm.xlu1 %10631, %v4499_v51   ;;  %6155 = vperm.xlu0 %10632, %v12177_v7   ;;  %v12613_v7 = vld [vmem:[%s11557_s20 + $0x228] sm:$0xff]  ;;  %v16655_v5 = vld [vmem:[#allocation85_spill] sm:$0xff] }
 0x2ef   : > { %v12600_v55 = vpop.permute.xlu1 %4583  ;;  %v12602_v47 = vpop.permute.xlu0 %2795 }
 0x2f0   : > { %16503 = vst [vmem:[#allocation46_spill] sm:$0xff] %v12600_v55  ;;  %16504 = vst [vmem:[#allocation80_spill] sm:$0xff] %v12602_v47  ;;  %4893 = vperm.xlu1 %10631, %v12598_v19   ;;  %6163 = vperm.xlu0 %10632, %v12186_v3   ;;  %v4507_v3 = vld [vmem:[%s11557_s20 + $0x238] sm:$0xff]  ;;  %v10798_v47 = vld [vmem:[%s11222_s29 + $0x1b0] sm:$0xff] }
 0x2f3   : > { %v12607_v22 = vpop.permute.xlu1 %4593  ;;  %v12609_v63 = vpop.permute.xlu0 %2803 }
 0x2f4   : > { %16505 = vst [vmem:[#allocation15_spill] sm:$0xff] %v12607_v22  ;;  %16506 = vst [vmem:[#allocation16_spill] sm:$0xff] %v12609_v63  ;;  %4903 = vperm.xlu1 %10631, %v4503_v23   ;;  %6171 = vperm.xlu0 %10632, %v12202_v1   ;;  %v12628_v1 = vld [vmem:[%s11557_s20 + $0x248] sm:$0xff] }
 0x2f7   : > { %v12615_v56 = vpop.permute.xlu1 %4603  ;;  %v12617_v0 = vpop.permute.xlu0 %2811 }
 0x2f8   : > { %16507 = vst [vmem:[#allocation47_spill] sm:$0xff] %v12615_v56  ;;  %16508 = vst [vmem:[#allocation48_spill] sm:$0xff] %v12617_v0  ;;  %4913 = vperm.xlu1 %10631, %v12613_v7   ;;  %6179 = vperm.xlu0 %10632, %v12219_v57   ;;  %v4511_v57 = vld [vmem:[%s11557_s20 + $0x258] sm:$0xff] }
 0x2fb   : > { %v12622_v18 = vpop.permute.xlu1 %4613  ;;  %v12624_v45 = vpop.permute.xlu0 %2819 }
 0x2fc   : > { %16509 = vst [vmem:[#allocation82_spill] sm:$0xff] %v12622_v18  ;;  %16510 = vst [vmem:[#allocation17_spill] sm:$0xff] %v12624_v45  ;;  %4923 = vperm.xlu1 %10631, %v4507_v3   ;;  %6187 = vperm.xlu0 %10632, %v12239_v17   ;;  %v12643_v17 = vld [vmem:[%s11557_s20 + $0x268] sm:$0xff]  ;;  %v10797_v45 = vld [vmem:[%s11222_s29 + $0x1a0] sm:$0xff] }
 0x2ff   : > { %v12630_v21 = vpop.permute.xlu1 %4623  ;;  %v12632_v51 = vpop.permute.xlu0 %2827 }
 0x300   : > { %16511 = vst [vmem:[#allocation18_spill] sm:$0xff] %v12630_v21  ;;  %16512 = vst [vmem:[#allocation49_spill] sm:$0xff] %v12632_v51  ;;  %4933 = vperm.xlu1 %10631, %v12628_v1   ;;  %6195 = vperm.xlu0 %10632, %v12260_v32   ;;  %v4515_v32 = vld [vmem:[%s11557_s20 + $0x278] sm:$0xff] }
 0x303   : > { %v12637_v23 = vpop.permute.xlu1 %4633  ;;  %v12639_v18 = vpop.permute.xlu0 %2835 }
 0x304   : > { %16513 = vst [vmem:[#allocation50_spill] sm:$0xff] %v12637_v23  ;;  %16514 = vst [vmem:[#allocation84_spill] sm:$0xff] %v12639_v18  ;;  %4943 = vperm.xlu1 %10631, %v4511_v57   ;;  %6203 = vperm.xlu0 %10632, %v12284_v10   ;;  %v12658_v10 = vld [vmem:[%s11557_s20 + $0x288] sm:$0xff] }
 0x307   : > { %v12645_v3 = vpop.permute.xlu1 %4643  ;;  %v12647_v21 = vpop.permute.xlu0 %2843 }
 0x308   : > { %16515 = vst [vmem:[#allocation19_spill] sm:$0xff] %v12645_v3  ;;  %16516 = vst [vmem:[#allocation20_spill] sm:$0xff] %v12647_v21  ;;  %4953 = vperm.xlu1 %10631, %v12643_v17   ;;  %6211 = vperm.xlu0 %10632, %v12302_v42   ;;  %v4519_v42 = vld [vmem:[%s11557_s20 + $0x298] sm:$0xff]  ;;  %v10790_v21 = vld [vmem:[%s11557_s20 + $0x1b0] sm:$0xff] }
 0x30b   : > { %v12652_v56 = vpop.permute.xlu1 %4653  ;;  %v12654_v23 = vpop.permute.xlu0 %2851 }
 0x30c   : > { %16517 = vst [vmem:[#allocation51_spill] sm:$0xff] %v12652_v56  ;;  %16518 = vst [vmem:[#allocation52_spill] sm:$0xff] %v12654_v23  ;;  %4963 = vperm.xlu1 %10631, %v4515_v32   ;;  %6219 = vperm.xlu0 %10632, %v12321_v48   ;;  %v12673_v48 = vld [vmem:[%s11557_s20 + $0x2a8] sm:$0xff] }
 0x30f   : > { %v12660_v57 = vpop.permute.xlu1 %4663  ;;  %v12662_v3 = vpop.permute.xlu0 %2859 }
 0x310   : > { %16519 = vst [vmem:[#allocation87_spill] sm:$0xff] %v12660_v57  ;;  %16520 = vst [vmem:[#allocation21_spill] sm:$0xff] %v12662_v3  ;;  %4973 = vperm.xlu1 %10631, %v12658_v10   ;;  %6227 = vperm.xlu0 %10632, %v12337_v9   ;;  %v4523_v9 = vld [vmem:[%s11557_s20 + $0x2b8] sm:$0xff] }
 0x313   : > { %v12667_v22 = vpop.permute.xlu1 %4673  ;;  %v12669_v56 = vpop.permute.xlu0 %2867 }
 0x314   : > { %16521 = vst [vmem:[#allocation22_spill] sm:$0xff] %v12667_v22  ;;  %16522 = vst [vmem:[#allocation53_spill] sm:$0xff] %v12669_v56  ;;  %4983 = vperm.xlu1 %10631, %v4519_v42   ;;  %6235 = vperm.xlu0 %10632, %v12359_v11   ;;  %v12688_v11 = vld [vmem:[%s11557_s20 + $0x2c8] sm:$0xff] }
 0x317   : > { %v12675_v32 = vpop.permute.xlu1 %4683  ;;  %v12677_v57 = vpop.permute.xlu0 %2875 }
 0x318   : > { %16523 = vst [vmem:[#allocation54_spill] sm:$0xff] %v12675_v32  ;;  %16524 = vst [vmem:[#allocation90_spill] sm:$0xff] %v12677_v57  ;;  %4993 = vperm.xlu1 %10631, %v12673_v48   ;;  %6243 = vperm.xlu0 %10632, %v12379_v16   ;;  %v4527_v16 = vld [vmem:[%s11557_s20 + $0x2d8] sm:$0xff] }
 0x31b   : > { %v12682_v55 = vpop.permute.xlu1 %4693  ;;  %v12684_v22 = vpop.permute.xlu0 %2883 }
 0x31c   : > { %16525 = vst [vmem:[#allocation23_spill] sm:$0xff] %v12682_v55  ;;  %16526 = vst [vmem:[#allocation24_spill] sm:$0xff] %v12684_v22  ;;  %5003 = vperm.xlu1 %10631, %v4523_v9   ;;  %6251 = vperm.xlu0 %10632, %v12393_v15   ;;  %v12703_v15 = vld [vmem:[%s11557_s20 + $0x2e8] sm:$0xff] }
 0x31f   : > { %v12690_v42 = vpop.permute.xlu1 %4703  ;;  %v12692_v32 = vpop.permute.xlu0 %2891 }
 0x320   : > { %16527 = vst [vmem:[#allocation55_spill] sm:$0xff] %v12690_v42  ;;  %16528 = vst [vmem:[#allocation56_spill] sm:$0xff] %v12692_v32  ;;  %5013 = vperm.xlu1 %10631, %v12688_v11   ;;  %6259 = vperm.xlu0 %10632, %v12417_v50   ;;  %v4531_v50 = vld [vmem:[%s11557_s20 + $0x2f8] sm:$0xff] }
 0x323   : > { %v12697_v57 = vpop.permute.xlu1 %4713  ;;  %v12699_v55 = vpop.permute.xlu0 %2899 }
 0x324   : > { %16529 = vst [vmem:[#allocation93_spill] sm:$0xff] %v12697_v57  ;;  %16530 = vst [vmem:[#allocation25_spill] sm:$0xff] %v12699_v55  ;;  %5023 = vperm.xlu1 %10631, %v4527_v16   ;;  %6267 = vperm.xlu0 %10632, %v12435_v24   ;;  %v12718_v24 = vld [vmem:[%s11557_s20 + $0x308] sm:$0xff] }
 0x327   : > { %v12705_v9 = vpop.permute.xlu1 %4723  ;;  %v12707_v42 = vpop.permute.xlu0 %2907 }
 0x328   : > { %16531 = vst [vmem:[#allocation26_spill] sm:$0xff] %v12705_v9  ;;  %16532 = vst [vmem:[#allocation57_spill] sm:$0xff] %v12707_v42  ;;  %5033 = vperm.xlu1 %10631, %v12703_v15   ;;  %6275 = vperm.xlu0 %10632, %v12451_v8   ;;  %v4535_v8 = vld [vmem:[%s11557_s20 + $0x318] sm:$0xff] }
 0x32b   : > { %v12712_v32 = vpop.permute.xlu1 %4733  ;;  %v12714_v57 = vpop.permute.xlu0 %2915 }
 0x32c   : > { %16533 = vst [vmem:[#allocation58_spill] sm:$0xff] %v12712_v32  ;;  %16534 = vst [vmem:[#allocation96_spill] sm:$0xff] %v12714_v57  ;;  %5043 = vperm.xlu1 %10631, %v4531_v50   ;;  %6283 = vperm.xlu0 %10632, %v12473_v58   ;;  %v12733_v58 = vld [vmem:[%s11557_s20 + $0x328] sm:$0xff] }
 0x32f   : > { %v12720_v16 = vpop.permute.xlu1 %4743  ;;  %v12722_v9 = vpop.permute.xlu0 %2923 }
 0x330   : > { %16535 = vst [vmem:[#allocation27_spill] sm:$0xff] %v12720_v16  ;;  %16536 = vst [vmem:[#allocation28_spill] sm:$0xff] %v12722_v9  ;;  %5053 = vperm.xlu1 %10631, %v12718_v24   ;;  %6291 = vperm.xlu0 %10632, %v12493_v41   ;;  %v4539_v41 = vld [vmem:[%s11557_s20 + $0x338] sm:$0xff] }
 0x333   : > { %v12727_v42 = vpop.permute.xlu1 %4753  ;;  %v12729_v32 = vpop.permute.xlu0 %2931 }
 0x334   : > { %16537 = vst [vmem:[#allocation59_spill] sm:$0xff] %v12727_v42  ;;  %16538 = vst [vmem:[#allocation60_spill] sm:$0xff] %v12729_v32  ;;  %5063 = vperm.xlu1 %10631, %v4535_v8   ;;  %6299 = vperm.xlu0 %10632, %v12507_v6   ;;  %v12748_v6 = vld [vmem:[%s11557_s20 + $0x348] sm:$0xff] }
 0x337   : > { %v12735_v50 = vpop.permute.xlu1 %4763  ;;  %v12737_v16 = vpop.permute.xlu0 %2939 }
 0x338   : > { %16539 = vst [vmem:[#allocation99_spill] sm:$0xff] %v12735_v50  ;;  %16540 = vst [vmem:[#allocation29_spill] sm:$0xff] %v12737_v16  ;;  %5073 = vperm.xlu1 %10631, %v12733_v58   ;;  %6307 = vperm.xlu0 %10632, %v12527_v13   ;;  %v4543_v13 = vld [vmem:[%s11557_s20 + $0x358] sm:$0xff] }
 0x33b   : > { %v12742_v9 = vpop.permute.xlu1 %4773  ;;  %v12744_v42 = vpop.permute.xlu0 %2947 }
 0x33c   : > { %16541 = vst [vmem:[#allocation30_spill] sm:$0xff] %v12742_v9  ;;  %16542 = vst [vmem:[#allocation61_spill] sm:$0xff] %v12744_v42  ;;  %5083 = vperm.xlu1 %10631, %v4539_v41   ;;  %6315 = vperm.xlu0 %10632, %v12535_v4   ;;  %v12763_v4 = vld [vmem:[%s11557_s20 + $0x368] sm:$0xff] }
 0x33f   : > { %v12750_v8 = vpop.permute.xlu1 %4783  ;;  %v12752_v50 = vpop.permute.xlu0 %2955 }
 0x340   : > { %16543 = vst [vmem:[#allocation62_spill] sm:$0xff] %v12750_v8  ;;  %16544 = vst [vmem:[#allocation102_spill] sm:$0xff] %v12752_v50  ;;  %5093 = vperm.xlu1 %10631, %v12748_v6   ;;  %6323 = vperm.xlu0 %10632, %v12546_v33   ;;  %v12771_v33 = vld [vmem:[%s11557_s20 + $0x1c0] sm:$0xff] }
 0x343   : > { %v12757_v9 = vpop.permute.xlu1 %4793  ;;  %v12759_v41 = vpop.permute.xlu0 %2963 }
 0x344   : > { %16545 = vst [vmem:[#allocation31_spill] sm:$0xff] %v12757_v9  ;;  %16546 = vst [vmem:[#allocation32_spill] sm:$0xff] %v12759_v41  ;;  %5103 = vperm.xlu1 %10631, %v4543_v13   ;;  %6331 = vperm.xlu0 %10632, %v12555_v37   ;;  %v4547_v9 = vld [vmem:[%s11557_s20 + $0x378] sm:$0xff]  ;;  %v12780_v37 = vld [vmem:[%s11557_s20 + $0x1d0] sm:$0xff] }
 0x347   : > { %v12765_v42 = vpop.permute.xlu1 %4803  ;;  %v12767_v8 = vpop.permute.xlu0 %2971 }
 0x348   : > { %16547 = vst [vmem:[#allocation63_spill] sm:$0xff] %v12765_v42  ;;  %16548 = vst [vmem:[#allocation64_spill] sm:$0xff] %v12767_v8  ;;  %5113 = vperm.xlu1 %10631, %v12763_v4   ;;  %6335 = vperm.xlu0 %10632, %v12771_v33   ;;  %v12784_v42 = vld [vmem:[%s11557_s20 + $0x388] sm:$0xff] }
 0x34b   : > { %v12775_v50 = vpop.permute.xlu1 %4813  ;;  %v12777_v13 = vpop.permute.xlu0 %2979 }
 0x34c   : > { %16549 = vst [vmem:[#allocation105_spill] sm:$0xff] %v12775_v50  ;;  %16550 = vst [vmem:[#allocation33_spill] sm:$0xff] %v12777_v13  ;;  %5123 = vperm.xlu1 %10631, %v4547_v9   ;;  %6343 = vperm.xlu0 %10632, %v12780_v37   ;;  %v4551_v50 = vld [vmem:[%s11557_s20 + $0x398] sm:$0xff]  ;;  %v12799_v13 = vld [vmem:[%s11557_s20 + $0x3a8] sm:$0xff] }
 0x34f   : > { %v12786_v8 = vpop.permute.xlu1 %4823  ;;  %v12788_v41 = vpop.permute.xlu0 %2987 }
 0x350   : > { %16551 = vst [vmem:[#allocation34_spill] sm:$0xff] %v12786_v8  ;;  %16552 = vst [vmem:[#allocation65_spill] sm:$0xff] %v12788_v41  ;;  %5133 = vperm.xlu1 %10631, %v12784_v42   ;;  %6355 = vperm.xlu0 %10632, %v12580_v59   ;;  %v4555_v59 = vld [vmem:[%s11557_s20 + $0x3b8] sm:$0xff] }
 0x353   : > { %v12793_v16 = vpop.permute.xlu1 %4833  ;;  %v12795_v9 = vpop.permute.xlu0 %6111 }
 0x354   : > { %16553 = vst [vmem:[#allocation66_spill] sm:$0xff] %v12793_v16  ;;  %16554 = vst [vmem:[#allocation108_spill] sm:$0xff] %v12795_v9  ;;  %5143 = vperm.xlu1 %10631, %v4551_v50   ;;  %6371 = vperm.xlu0 %10632, %v12598_v19   ;;  %v12814_v19 = vld [vmem:[%s11557_s20 + $0x3c8] sm:$0xff] }
 0x357   : > { %v12801_v32 = vpop.permute.xlu1 %4843  ;;  %v12803_v8 = vpop.permute.xlu0 %6123 }
 0x358   : > { %16555 = vst [vmem:[#allocation35_spill] sm:$0xff] %v12801_v32  ;;  %16556 = vst [vmem:[#allocation36_spill] sm:$0xff] %v12803_v8  ;;  %5153 = vperm.xlu1 %10631, %v12799_v13   ;;  %6387 = vperm.xlu0 %10632, %v12613_v7   ;;  %v4559_v7 = vld [vmem:[%s11557_s20 + $0x3d8] sm:$0xff] }
 0x35b   : > { %v12808_v41 = vpop.permute.xlu1 %4853  ;;  %v12810_v16 = vpop.permute.xlu0 %6131 }
 0x35c   : > { %16557 = vst [vmem:[#allocation67_spill] sm:$0xff] %v12808_v41  ;;  %16558 = vst [vmem:[#allocation68_spill] sm:$0xff] %v12810_v16  ;;  %5163 = vperm.xlu1 %10631, %v4555_v59   ;;  %6403 = vperm.xlu0 %10632, %v12628_v1   ;;  %v4561_v1 = vld [vmem:[%s11557_s20 + $0x3e8] sm:$0xff] }
 0x35f   : > { %v12816_v50 = vpop.permute.xlu1 %4863  ;;  %v12818_v32 = vpop.permute.xlu0 %6139 }
 0x360   : > { %16559 = vst [vmem:[#allocation110_spill] sm:$0xff] %v12816_v50  ;;  %16560 = vst [vmem:[#allocation249_spill] sm:$0xff] %v12818_v32  ;;  %5173 = vperm.xlu1 %10631, %v12814_v19   ;;  %6419 = vperm.xlu0 %10632, %v12643_v17  }
 0x362   : > { %v10090_v8 = vpop.f32.mrf.mxu0 }
 0x363   : > { %v12823_v41 = vpop.permute.xlu1 %4873  ;;  %v12825_v9 = vpop.permute.xlu0 %6147  ;;  %v1364_v56 = vmax.f32 %v10090_v8, 0.0 }
 0x364   : > { %16561 = vst [vmem:[#allocation250_spill] sm:$0xff] %v12823_v41  ;;  %16562 = vst [vmem:[#allocation251_spill] sm:$0xff] %v12825_v9  ;;  %v1235_v59 = vpop.f32.mrf.mxu0  ;;  %5183 = vperm.xlu1 %10631, %v4559_v7   ;;  %6435 = vperm.xlu0 %10632, %v12658_v10   ;;  %v4563_v41 = vld [vmem:[%s11557_s20 + $0x3f8] sm:$0xff] }
 0x365   : > { %v1362_v17 = vmax.f32 %v1235_v59, 0.0 }
 0x366   : > { %v10091_v16 = vpop.f32.mrf.mxu0 }
 0x367   : > { %v12829_v50 = vpop.permute.xlu1 %4883  ;;  %v12831_v32 = vpop.permute.xlu0 %6155  ;;  %v1365_v57 = vmax.f32 %v10091_v16, 0.0 }
 0x368   : > { %16563 = vst [vmem:[#allocation252_spill] sm:$0xff] %v12829_v50  ;;  %16564 = vst [vmem:[#allocation253_spill] sm:$0xff] %v12831_v32  ;;  %v1238_v55 = vpop.f32.mrf.mxu0  ;;  %5193 = vperm.xlu1 %10631, %v4561_v1   ;;  %6451 = vperm.xlu0 %10632, %v12673_v48   ;;  %v13064_v32 = vld [vmem:[%s11557_s20 + $0x150] sm:$0xff] }
 0x369   : > { %v1363_v22 = vmax.f32 %v1238_v55, 0.0  ;;  %v1395_v23 = vpack.c.bf16 %v1365_v57, %v1364_v56  ;;  %v12849_v57 = vld [vmem:[%s11557_s20 + $0x8] sm:$0xff]  ;;  %16618 = vst [vmem:[#allocation307_spill] sm:$0xff] %v13064_v32 }
 0x36a   : > { %v10094_v9 = vpop.f32.mrf.mxu0 }
 0x36b   : > { %v12835_v3 = vpop.permute.xlu1 %4893  ;;  %v12837_v7 = vpop.permute.xlu0 %6163  ;;  %v1394_v10 = vpack.c.bf16 %v1363_v22, %v1362_v17 }
 0x36c   : > { %16565 = vst [vmem:[#allocation254_spill] sm:$0xff] %v12835_v3  ;;  %16566 = vst [vmem:[#allocation255_spill] sm:$0xff] %v12837_v7  ;;  %v1251_v50 = vpop.f32.mrf.mxu0  ;;  %5203 = vperm.xlu1 %10631, %v4563_v41   ;;  %6467 = vperm.xlu0 %10632, %v12688_v11   ;;  %v1368_v11 = vmax.f32 %v10094_v9, 0.0  ;;  %v13055_v7 = vld [vmem:[%s11557_s20 + $0x140] sm:$0xff] }
 0x36d   : > { %10124 = vmatprep.mubr.msk.bf16.mxu1 %vm1152_vm0, %v1394_v10  ;;  %v1366_v22 = vmax.f32 %v1251_v50, 0.0  ;;  %16615 = vst [vmem:[#allocation304_spill] sm:$0xff] %v13055_v7 }
 0x36e   : > { %v10095_v16 = vpop.f32.mrf.mxu0  ;;  %10125 = vmatmul.mubr.msk.bf16.vlgmr.msra.gmra.mxu1 %vm1152_vm0, %v1395_v23 }
 0x36f   : > { %v12842_v55 = vpop.permute.xlu1 %4903  ;;  %v12844_v48 = vpop.permute.xlu0 %6171  ;;  %v1369_v8 = vmax.f32 %v10095_v16, 0.0 }
 0x370   : > { %16567 = vst [vmem:[#allocation256_spill] sm:$0xff] %v12842_v55  ;;  %16568 = vst [vmem:[#allocation257_spill] sm:$0xff] %v12844_v48  ;;  %v1254_v59 = vpop.f32.mrf.mxu0  ;;  %10633 = vset.pattern.permute.xlu1 %v16244_v35  ;;  %6483 = vperm.xlu0 %10632, %v12703_v15   ;;  %v12859_v15 = vld [vmem:[%s11557_s20 + $0x10] sm:$0xff] }
 0x371   : > { %v1367_v56 = vmax.f32 %v1254_v59, 0.0  ;;  %5343 = vperm.xlu1 %10633, %v12849_v57   ;;  %v1397_v10 = vpack.c.bf16 %v1369_v8, %v1368_v11  ;;  %v12869_v11 = vld [vmem:[%s11557_s20 + $0x20] sm:$0xff]  ;;  %v10757_v48 = vld [vmem:[%s11222_s29 + $0x30] sm:$0xff] }
 0x372   : > { %v10098_v41 = vpop.f32.mrf.mxu0 }
 0x373   : > { %v1396_v23 = vpack.c.bf16 %v1367_v56, %v1366_v22  ;;  %v12852_v1 = vpop.permute.xlu1 %4913  ;;  %v12854_v17 = vpop.permute.xlu0 %6179 }
 0x374   : > { %16569 = vst [vmem:[#allocation258_spill] sm:$0xff] %v12852_v1  ;;  %16570 = vst [vmem:[#allocation259_spill] sm:$0xff] %v12854_v17  ;;  %v1267_v16 = vpop.f32.mrf.mxu0  ;;  %6499 = vperm.xlu0 %10632, %v12718_v24  }
 0x375   : > { %10128 = vmatprep.mubr.msk.bf16.mxu1 %vm1152_vm0, %v1396_v23  ;;  %5347 = vperm.xlu1 %10633, %v12859_v15   ;;  %v1370_v8 = vmax.f32 %v1267_v16, 0.0  ;;  %v1372_v23 = vmax.f32 %v10098_v41, 0.0 }
 0x376   : > { %v10099_v50 = vpop.f32.mrf.mxu0  ;;  %10129 = vmatmul.mubr.msk.bf16.gmra.mxu1 %vm1152_vm0, %v1397_v10 }
 0x377   : > { %v12863_v9 = vpop.permute.xlu1 %4923  ;;  %v12865_v59 = vpop.permute.xlu0 %6187  ;;  %v1373_v22 = vmax.f32 %v10099_v50, 0.0 }
 0x378   : > { %16571 = vst [vmem:[#allocation260_spill] sm:$0xff] %v12863_v9  ;;  %16572 = vst [vmem:[#allocation261_spill] sm:$0xff] %v12865_v59  ;;  %v1270_v56 = vpop.f32.mrf.mxu0  ;;  %6515 = vperm.xlu0 %10632, %v12733_v58   ;;  %v12879_v58 = vld [vmem:[%s11557_s20 + $0x30] sm:$0xff] }
 0x379   : > { %v1371_v24 = vmax.f32 %v1270_v56, 0.0  ;;  %5355 = vperm.xlu1 %10633, %v12869_v11   ;;  %v1399_v9 = vpack.c.bf16 %v1373_v22, %v1372_v23  ;;  %v12889_v23 = vld [vmem:[%s11557_s20 + $0x40] sm:$0xff] }
 0x37a   : > { %v10102_v1 = vpop.f32.mrf.mxu0 }
 0x37b   : > { %v1398_v55 = vpack.c.bf16 %v1371_v24, %v1370_v8  ;;  %v12872_v3 = vpop.permute.xlu1 %4933  ;;  %v12874_v10 = vpop.permute.xlu0 %6195 }
 0x37c   : > { %16573 = vst [vmem:[#allocation262_spill] sm:$0xff] %v12872_v3  ;;  %16574 = vst [vmem:[#allocation263_spill] sm:$0xff] %v12874_v10  ;;  %v1283_v50 = vpop.f32.mrf.mxu0  ;;  %6531 = vperm.xlu0 %10632, %v12748_v6  }
 0x37d   : > { %10132 = vmatprep.mubr.msk.bf16.mxu1 %vm1152_vm0, %v1398_v55  ;;  %5363 = vperm.xlu1 %10633, %v12879_v58   ;;  %v1374_v22 = vmax.f32 %v1283_v50, 0.0  ;;  %v1376_v55 = vmax.f32 %v10102_v1, 0.0 }
 0x37e   : > { %v10103_v16 = vpop.f32.mrf.mxu0  ;;  %10133 = vmatmul.mubr.msk.bf16.gmra.mxu1 %vm1152_vm0, %v1399_v9 }
 0x37f   : > { %v12883_v41 = vpop.permute.xlu1 %4943  ;;  %v12885_v56 = vpop.permute.xlu0 %6203  ;;  %v1377_v8 = vmax.f32 %v10103_v16, 0.0 }
 0x380   : > { %16575 = vst [vmem:[#allocation264_spill] sm:$0xff] %v12883_v41  ;;  %16576 = vst [vmem:[#allocation265_spill] sm:$0xff] %v12885_v56  ;;  %v1286_v24 = vpop.f32.mrf.mxu0  ;;  %6547 = vperm.xlu0 %10632, %v12763_v4   ;;  %v12899_v4 = vld [vmem:[%s11557_s20 + $0x50] sm:$0xff] }
 0x381   : > { %v1375_v6 = vmax.f32 %v1286_v24, 0.0  ;;  %5371 = vperm.xlu1 %10633, %v12889_v23   ;;  %v1401_v41 = vpack.c.bf16 %v1377_v8, %v1376_v55  ;;  %v10677_v8 = vld [vmem:[%s16079_s7 + $0x18] sm:$0xff]   ;;  %v12912_v55 = vld [vmem:[%s11557_s20 + $0x60] sm:$0xff] }
 0x382   : > { %v10106_v3 = vpop.f32.mrf.mxu0  ;;  %10156 = vmatprep.subr.bf16.mxu0 %v10677_v8 }
 0x383   : > { %v1400_v10 = vpack.c.bf16 %v1375_v6, %v1374_v22  ;;  %v12892_v59 = vpop.permute.xlu1 %4953  ;;  %v12894_v9 = vpop.permute.xlu0 %6211  ;;  %10157 = vmatpush3.bf16.msra.mxu0 %v10677_v8 }
 0x384   : > { %16577 = vst [vmem:[#allocation266_spill] sm:$0xff] %v12892_v59  ;;  %16578 = vst [vmem:[#allocation267_spill] sm:$0xff] %v12894_v9  ;;  %v1299_v16 = vpop.f32.mrf.mxu0  ;;  %6563 = vperm.xlu0 %10632, %v12784_v42  }
 0x385   : > { %10136 = vmatprep.mubr.msk.bf16.mxu1 %vm1152_vm0, %v1400_v10  ;;  %5379 = vperm.xlu1 %10633, %v12899_v4   ;;  %v1378_v42 = vmax.f32 %v1299_v16, 0.0 }
 0x386   : > { %v10107_v50 = vpop.f32.mrf.mxu0  ;;  %10137 = vmatmul.mubr.msk.bf16.gmra.mxu1 %vm1152_vm0, %v1401_v41  ;;  %v1380_v41 = vmax.f32 %v10106_v3, 0.0 }
 0x387   : > { %v12903_v1 = vpop.permute.xlu1 %4963  ;;  %v12905_v24 = vpop.permute.xlu0 %6219  ;;  %v1381_v22 = vmax.f32 %v10107_v50, 0.0 }
 0x388   : > { %16579 = vst [vmem:[#allocation268_spill] sm:$0xff] %v12903_v1  ;;  %16580 = vst [vmem:[#allocation269_spill] sm:$0xff] %v12905_v24  ;;  %v1302_v6 = vpop.f32.mrf.mxu0  ;;  %6579 = vperm.xlu0 %10632, %v12799_v13   ;;  %v10678_v13 = vld [vmem:[%s16079_s7 + $0x10] sm:$0xff]  }
 0x389   : > { %v1379_v10 = vmax.f32 %v1302_v6, 0.0  ;;  %5387 = vperm.xlu1 %10633, %v12912_v55   ;;  %v1403_v16 = vpack.c.bf16 %v1381_v22, %v1380_v41  ;;  %v12925_v6 = vld [vmem:[%s11557_s20 + $0x70] sm:$0xff]  ;;  %10158 = vmatprep.subr.bf16.mxu0 %v10678_v13 }
 0x38a   : > { %v10110_v1 = vpop.f32.mrf.mxu0  ;;  %10159 = vmatpush3.bf16.msra.mxu0 %v10678_v13 }
 0x38b   : > { %v1402_v59 = vpack.c.bf16 %v1379_v10, %v1378_v42  ;;  %v12915_v24 = vpop.permute.xlu1 %4973  ;;  %v12917_v9 = vpop.permute.xlu0 %6227 }
 0x38c   : > { %16581 = vst [vmem:[#allocation270_spill] sm:$0xff] %v12915_v24  ;;  %16582 = vst [vmem:[#allocation271_spill] sm:$0xff] %v12917_v9  ;;  %v1315_v50 = vpop.f32.mrf.mxu0  ;;  %6595 = vperm.xlu0 %10632, %v12814_v19   ;;  %v10679_v19 = vld [vmem:[%s16079_s7 + $0x8] sm:$0xff]   ;;  %v12938_v24 = vld [vmem:[%s11557_s20 + $0x80] sm:$0xff] }
 0x38d   : > { %10140 = vmatprep.mubr.msk.bf16.mxu1 %vm1152_vm0, %v1402_v59  ;;  %5395 = vperm.xlu1 %10633, %v12925_v6   ;;  %v1382_v10 = vmax.f32 %v1315_v50, 0.0  ;;  %v10680_v50 = vld [vmem:[%s16079_s7] sm:$0xff]  }
 0x38e   : > { %v10111_v3 = vpop.f32.mrf.mxu0  ;;  %10141 = vmatmul.mubr.msk.bf16.gmra.mxu1 %vm1152_vm0, %v1403_v16  ;;  %v10753_v16 = vld [vmem:[%s11222_s29 + $0x8] sm:$0xff]  ;;  %10160 = vmatprep.subr.bf16.mxu0 %v10679_v19 }
 0x38f   : > { %v12929_v8 = vpop.permute.xlu1 %4983  ;;  %v12931_v42 = vpop.permute.xlu0 %6235  ;;  %v1385_v22 = vmax.f32 %v10111_v3, 0.0  ;;  %10161 = vmatpush3.bf16.msra.mxu0 %v10679_v19 }
 0x390   : > { %16583 = vst [vmem:[#allocation272_spill] sm:$0xff] %v12929_v8  ;;  %16584 = vst [vmem:[#allocation273_spill] sm:$0xff] %v12931_v42  ;;  %v1318_v59 = vpop.f32.mrf.mxu0  ;;  %10669 = vset.pattern.permute.xlu0 %v16244_v35  ;;  %v1384_v8 = vmax.f32 %v10110_v1, 0.0  ;;  %10162 = vmatprep.subr.bf16.mxu0 %v10680_v50 }
 0x391   : > { %v1383_v41 = vmax.f32 %v1318_v59, 0.0  ;;  %5403 = vperm.xlu1 %10633, %v12938_v24   ;;  %2351 = vperm.xlu0 %10669, %v10753_v16   ;;  %v12951_v16 = vld [vmem:[%s11557_s20 + $0x90] sm:$0xff] }
 0x392   : > { %v10114_v13 = vpop.f32.mrf.mxu0  ;;  %v1405_v59 = vpack.c.bf16 %v1385_v22, %v1384_v8 }
 0x393   : > { %v1404_v42 = vpack.c.bf16 %v1383_v41, %v1382_v10  ;;  %v12942_v9 = vpop.permute.xlu1 %4993  ;;  %v12944_v3 = vpop.permute.xlu0 %6243  ;;  %v10755_v10 = vld [vmem:[%s11222_s29 + $0x20] sm:$0xff]  ;;  %10163 = vmatpush3.bf16.msra.mxu0 %v10680_v50  ;;  %v1388_v17 = vmax.f32 %v10114_v13, 0.0 }
 0x394   : > { %16585 = vst [vmem:[#allocation274_spill] sm:$0xff] %v12942_v9  ;;  %16586 = vst [vmem:[#allocation275_spill] sm:$0xff] %v12944_v3  ;;  %v1331_v56 = vpop.f32.mrf.mxu0  ;;  %v12961_v3 = vld [vmem:[%s11557_s20 + $0xa0] sm:$0xff] }
 0x395   : > { %10144 = vmatprep.mubr.msk.bf16.mxu1 %vm1152_vm0, %v1404_v42  ;;  %5411 = vperm.xlu1 %10633, %v12951_v16   ;;  %v1386_v42 = vmax.f32 %v1331_v56, 0.0  ;;  %v12971_v56 = vld [vmem:[%s11557_s20 + $0xb0] sm:$0xff]  ;;  %v10759_v13 = vld [vmem:[%s11222_s29 + $0x40] sm:$0xff] }
 0x396   : > { %v10115_v1 = vpop.f32.mrf.mxu0  ;;  %10145 = vmatmul.mubr.msk.bf16.gmra.mxu1 %vm1152_vm0, %v1405_v59  ;;  %2363 = vperm.xlu0 %10669, %v10755_v10  }
 0x397   : > { %v12956_v19 = vpop.permute.xlu1 %5003  ;;  %v12958_v41 = vpop.permute.xlu0 %6251  ;;  %v1389_v8 = vmax.f32 %v10115_v1, 0.0 }
 0x398   : > { %16587 = vst [vmem:[#allocation276_spill] sm:$0xff] %v12956_v19  ;;  %16588 = vst [vmem:[#allocation277_spill] sm:$0xff] %v12958_v41  ;;  %v1334_v22 = vpop.f32.mrf.mxu0 }
 0x399   : > { %v1387_v9 = vmax.f32 %v1334_v22, 0.0  ;;  %5419 = vperm.xlu1 %10633, %v12961_v3   ;;  %v1407_v1 = vpack.c.bf16 %v1389_v8, %v1388_v17 }
 0x39a   : > { %v10118_v59 = vpop.f32.mrf.mxu0  ;;  %2371 = vperm.xlu0 %10669, %v10757_v48  }
 0x39b   : > { %v1406_v10 = vpack.c.bf16 %v1387_v9, %v1386_v42  ;;  %v12965_v19 = vpop.permute.xlu1 %5013  ;;  %v12967_v41 = vpop.permute.xlu0 %6259 }
 0x39c   : > { %16589 = vst [vmem:[#allocation278_spill] sm:$0xff] %v12965_v19  ;;  %16590 = vst [vmem:[#allocation279_spill] sm:$0xff] %v12967_v41  ;;  %v1347_v35 = vpop.f32.mrf.mxu0  ;;  %v1392_v19 = vmax.f32 %v10118_v59, 0.0  ;;  %v10761_v41 = vld [vmem:[%s11222_s29 + $0x50] sm:$0xff]  ;;  %v10763_v59 = vld [vmem:[%s11222_s29 + $0x60] sm:$0xff] }
 0x39d   : > { %10148 = vmatprep.mubr.msk.bf16.mxu1 %vm1152_vm0, %v1406_v10  ;;  %5427 = vperm.xlu1 %10633, %v12971_v56   ;;  %v1390_v8 = vmax.f32 %v1347_v35, 0.0  ;;  %v12981_v10 = vld [vmem:[%s11557_s20 + $0xc0] sm:$0xff]  ;;  %v12991_v35 = vld [vmem:[%s11557_s20 + $0xd0] sm:$0xff] }
 0x39e   : > { %v10119_v50 = vpop.f32.mrf.mxu0  ;;  %10149 = vmatmul.mubr.msk.bf16.gmra.mxu1 %vm1152_vm0, %v1407_v1  ;;  %2379 = vperm.xlu0 %10669, %v10759_v13  }
 0x39f   : > { %v12976_v48 = vpop.permute.xlu1 %5023  ;;  %v12978_v9 = vpop.permute.xlu0 %6267  ;;  %v1393_v22 = vmax.f32 %v10119_v50, 0.0 }
 0x3a0   : > { %16591 = vst [vmem:[#allocation280_spill] sm:$0xff] %v12976_v48  ;;  %16592 = vst [vmem:[#allocation281_spill] sm:$0xff] %v12978_v9  ;;  %v1350_v17 = vpop.f32.mrf.mxu0  ;;  %v13046_v9 = vld [vmem:[%s11557_s20 + $0x130] sm:$0xff] }
 0x3a1   : > { %v1391_v42 = vmax.f32 %v1350_v17, 0.0  ;;  %5435 = vperm.xlu1 %10633, %v12981_v10   ;;  %v1409_v50 = vpack.c.bf16 %v1393_v22, %v1392_v19  ;;  %v10765_v19 = vld [vmem:[%s11222_s29 + $0x70] sm:$0xff]  ;;  %16612 = vst [vmem:[#allocation301_spill] sm:$0xff] %v13046_v9 }
 0x3a2   : > { %2387 = vperm.xlu0 %10669, %v10761_v41  }
 0x3a3   : > { %v1408_v1 = vpack.c.bf16 %v1391_v42, %v1390_v8  ;;  %v12985_v13 = vpop.permute.xlu1 %5033  ;;  %v12987_v48 = vpop.permute.xlu0 %6275  ;;  %v13001_v8 = vld [vmem:[%s11557_s20 + $0xe0] sm:$0xff] }
 0x3a4   : > { %16593 = vst [vmem:[#allocation282_spill] sm:$0xff] %v12985_v13  ;;  %16594 = vst [vmem:[#allocation283_spill] sm:$0xff] %v12987_v48  ;;  %v13019_v13 = vld [vmem:[%s11557_s20 + $0x100] sm:$0xff] }
 0x3a5   : > { %10152 = vmatprep.mubr.msk.bf16.mxu1 %vm1152_vm0, %v1408_v1  ;;  %5443 = vperm.xlu1 %10633, %v12991_v35   ;;  %16597 = vst [vmem:[#allocation286_spill] sm:$0xff] %v13001_v8  ;;  %v13010_v1 = vld [vmem:[%s11557_s20 + $0xf0] sm:$0xff]  ;;  %16603 = vst [vmem:[#allocation292_spill] sm:$0xff] %v13019_v13  ;;  %v13037_v48 = vld [vmem:[%s11557_s20 + $0x120] sm:$0xff] }
 0x3a6   : > { %10153 = vmatmul.mubr.msk.bf16.gmra.mxu1 %vm1152_vm0, %v1409_v50  ;;  %2395 = vperm.xlu0 %10669, %v10763_v59   ;;  %16600 = vst [vmem:[#allocation289_spill] sm:$0xff] %v13010_v1  ;;  %v10767_v50 = vld [vmem:[%s11222_s29 + $0x80] sm:$0xff]  ;;  %16609 = vst [vmem:[#allocation298_spill] sm:$0xff] %v13037_v48 }
 0x3a7   : > { %v12996_v41 = vpop.permute.xlu1 %5043  ;;  %v12998_v17 = vpop.permute.xlu0 %6283 }
 0x3a8   : > { %16595 = vst [vmem:[#allocation284_spill] sm:$0xff] %v12996_v41  ;;  %16596 = vst [vmem:[#allocation285_spill] sm:$0xff] %v12998_v17  ;;  %v13028_v17 = vld [vmem:[%s11557_s20 + $0x110] sm:$0xff] }
 0x3a9   : > { %5451 = vperm.xlu1 %10633, %v13001_v8   ;;  %16606 = vst [vmem:[#allocation295_spill] sm:$0xff] %v13028_v17  ;;  %v16680_v8 = vld [vmem:[#allocation122_spill] sm:$0xff] }
 0x3aa   : > { %2403 = vperm.xlu0 %10669, %v10765_v19   ;;  %v10769_v19 = vld [vmem:[%s11222_s29 + $0x90] sm:$0xff] }
 0x3ab   : > { %v13005_v22 = vpop.permute.xlu1 %5053  ;;  %v13007_v42 = vpop.permute.xlu0 %6291 }
 0x3ac   : > { %16598 = vst [vmem:[#allocation287_spill] sm:$0xff] %v13005_v22  ;;  %16599 = vst [vmem:[#allocation288_spill] sm:$0xff] %v13007_v42 }
 0x3ad   : > { %5459 = vperm.xlu1 %10633, %v13010_v1  }
 0x3ae   : > { %2411 = vperm.xlu0 %10669, %v10767_v50   ;;  %v10771_v50 = vld [vmem:[%s11222_s29 + $0xa0] sm:$0xff] }
 0x3af   : > { %v13014_v59 = vpop.permute.xlu1 %5063  ;;  %v13016_v41 = vpop.permute.xlu0 %6299 }
 0x3b0   : > { %16601 = vst [vmem:[#allocation290_spill] sm:$0xff] %v13014_v59  ;;  %16602 = vst [vmem:[#allocation291_spill] sm:$0xff] %v13016_v41 }
 0x3b1   : > { %5467 = vperm.xlu1 %10633, %v13019_v13  }
 0x3b2   : > { %2419 = vperm.xlu0 %10669, %v10769_v19   ;;  %v10773_v19 = vld [vmem:[%s11222_s29 + $0xb0] sm:$0xff] }
 0x3b3   : > { %v13023_v22 = vpop.permute.xlu1 %5073  ;;  %v13025_v42 = vpop.permute.xlu0 %6307 }
 0x3b4   : > { %16604 = vst [vmem:[#allocation293_spill] sm:$0xff] %v13023_v22  ;;  %16605 = vst [vmem:[#allocation294_spill] sm:$0xff] %v13025_v42 }
 0x3b5   : > { %5475 = vperm.xlu1 %10633, %v13028_v17   ;;  %v16670_v17 = vld [vmem:[#allocation116_spill] sm:$0xff] }
 0x3b6   : > { %2427 = vperm.xlu0 %10669, %v10771_v50   ;;  %v10775_v50 = vld [vmem:[%s11222_s29 + $0xc0] sm:$0xff] }
 0x3b7   : > { %v13032_v59 = vpop.permute.xlu1 %5083  ;;  %v13034_v41 = vpop.permute.xlu0 %6315 }
 0x3b8   : > { %16607 = vst [vmem:[#allocation296_spill] sm:$0xff] %v13032_v59  ;;  %16608 = vst [vmem:[#allocation297_spill] sm:$0xff] %v13034_v41 }
 0x3b9   : > { %5483 = vperm.xlu1 %10633, %v13037_v48  }
 0x3ba   : > { %2435 = vperm.xlu0 %10669, %v10773_v19   ;;  %v10777_v19 = vld [vmem:[%s11222_s29 + $0xd0] sm:$0xff] }
 0x3bb   : > { %v13041_v22 = vpop.permute.xlu1 %5093  ;;  %v13043_v42 = vpop.permute.xlu0 %6323 }
 0x3bc   : > { %16610 = vst [vmem:[#allocation299_spill] sm:$0xff] %v13041_v22  ;;  %16611 = vst [vmem:[#allocation300_spill] sm:$0xff] %v13043_v42 }
 0x3bd   : > { %5491 = vperm.xlu1 %10633, %v13046_v9   ;;  %v10788_v9 = vld [vmem:[%s11557_s20 + $0x1a0] sm:$0xff] }
 0x3be   : > { %2443 = vperm.xlu0 %10669, %v10775_v50   ;;  %v10779_v50 = vld [vmem:[%s11222_s29 + $0xe0] sm:$0xff] }
 0x3bf   : > { %v13050_v59 = vpop.permute.xlu1 %5103  ;;  %v13052_v41 = vpop.permute.xlu0 %6331 }
 0x3c0   : > { %16613 = vst [vmem:[#allocation302_spill] sm:$0xff] %v13050_v59  ;;  %16614 = vst [vmem:[#allocation303_spill] sm:$0xff] %v13052_v41 }
 0x3c1   : > { %5499 = vperm.xlu1 %10633, %v13055_v7   ;;  %v13073_v7 = vld [vmem:[%s11557_s20 + $0x160] sm:$0xff] }
 0x3c2   : > { %2451 = vperm.xlu0 %10669, %v10777_v19   ;;  %16621 = vst [vmem:[#allocation310_spill] sm:$0xff] %v13073_v7  ;;  %v10781_v19 = vld [vmem:[%s11222_s29 + $0xf0] sm:$0xff] }
 0x3c3   : > { %v13059_v22 = vpop.permute.xlu1 %5113  ;;  %v13061_v42 = vpop.permute.xlu0 %6335 }
 0x3c4   : > { %16616 = vst [vmem:[#allocation305_spill] sm:$0xff] %v13059_v22  ;;  %16617 = vst [vmem:[#allocation306_spill] sm:$0xff] %v13061_v42 }
 0x3c5   : > { %5507 = vperm.xlu1 %10633, %v13064_v32   ;;  %v13082_v32 = vld [vmem:[%s11557_s20 + $0x170] sm:$0xff] }
 0x3c6   : > { %2459 = vperm.xlu0 %10669, %v10779_v50   ;;  %16624 = vst [vmem:[#allocation313_spill] sm:$0xff] %v13082_v32  ;;  %v10783_v50 = vld [vmem:[%s11222_s29 + $0x100] sm:$0xff] }
 0x3c7   : > { %v13068_v59 = vpop.permute.xlu1 %5123  ;;  %v13070_v41 = vpop.permute.xlu0 %6343 }
 0x3c8   : > { %16619 = vst [vmem:[#allocation308_spill] sm:$0xff] %v13068_v59  ;;  %16620 = vst [vmem:[#allocation309_spill] sm:$0xff] %v13070_v41 }
 0x3c9   : > { %5515 = vperm.xlu1 %10633, %v13073_v7   ;;  %v13091_v7 = vld [vmem:[%s11557_s20 + $0x180] sm:$0xff] }
 0x3ca   : > { %2467 = vperm.xlu0 %10669, %v10781_v19   ;;  %16627 = vst [vmem:[#allocation316_spill] sm:$0xff] %v13091_v7  ;;  %v10785_v19 = vld [vmem:[%s11222_s29 + $0x110] sm:$0xff] }
 0x3cb   : > { %v13077_v22 = vpop.permute.xlu1 %5133  ;;  %v13079_v42 = vpop.permute.xlu0 %6355 }
 0x3cc   : > { %16622 = vst [vmem:[#allocation311_spill] sm:$0xff] %v13077_v22  ;;  %16623 = vst [vmem:[#allocation312_spill] sm:$0xff] %v13079_v42 }
 0x3cd   : > { %5523 = vperm.xlu1 %10633, %v13082_v32   ;;  %v10786_v32 = vld [vmem:[%s11557_s20 + $0x190] sm:$0xff] }
 0x3ce   : > { %2475 = vperm.xlu0 %10669, %v10783_v50   ;;  %v10787_v50 = vld [vmem:[%s11222_s29 + $0x120] sm:$0xff] }
 0x3cf   : > { %v13086_v59 = vpop.permute.xlu1 %5143  ;;  %v13088_v41 = vpop.permute.xlu0 %6371 }
 0x3d0   : > { %16625 = vst [vmem:[#allocation314_spill] sm:$0xff] %v13086_v59  ;;  %16626 = vst [vmem:[#allocation315_spill] sm:$0xff] %v13088_v41 }
 0x3d1   : > { %5531 = vperm.xlu1 %10633, %v13091_v7   ;;  %v10789_v7 = vld [vmem:[%s11222_s29 + $0x130] sm:$0xff] }
 0x3d2   : > { %2483 = vperm.xlu0 %10669, %v10785_v19  }
 0x3d3   : > { %v13095_v22 = vpop.permute.xlu1 %5153  ;;  %v13097_v42 = vpop.permute.xlu0 %6387 }
 0x3d4   : > { %16628 = vst [vmem:[#allocation317_spill] sm:$0xff] %v13095_v22  ;;  %16629 = vst [vmem:[#allocation318_spill] sm:$0xff] %v13097_v42  ;;  %v10791_v42 = vld [vmem:[%s11222_s29 + $0x140] sm:$0xff] }
 0x3d5   : > { %5539 = vperm.xlu1 %10633, %v10786_v32  }
 0x3d6   : > { %2491 = vperm.xlu0 %10669, %v10787_v50  }
 0x3d7   : > { %v13101_v59 = vpop.permute.xlu1 %5163  ;;  %v13103_v41 = vpop.permute.xlu0 %6403 }
 0x3d8   : > { %16630 = vst [vmem:[#allocation319_spill] sm:$0xff] %v13101_v59  ;;  %16631 = vst [vmem:[#allocation320_spill] sm:$0xff] %v13103_v41  ;;  %v10792_v59 = vld [vmem:[%s11222_s29 + $0x150] sm:$0xff] }
 0x3d9   : > { %5547 = vperm.xlu1 %10633, %v10788_v9  }
 0x3da   : > { %2499 = vperm.xlu0 %10669, %v10789_v7  }
 0x3db   : > { %v13107_v19 = vpop.permute.xlu1 %5173  ;;  %v13109_v22 = vpop.permute.xlu0 %6419 }
 0x3dc   : > { %16632 = vst [vmem:[#allocation321_spill] sm:$0xff] %v13107_v19  ;;  %16633 = vst [vmem:[#allocation322_spill] sm:$0xff] %v13109_v22  ;;  %v10793_v19 = vld [vmem:[%s11222_s29 + $0x160] sm:$0xff]  ;;  %v16647_v22 = vld [vmem:[#allocation75_spill] sm:$0xff] }
 0x3dd   : > { %5555 = vperm.xlu1 %10633, %v10790_v21  }
 0x3de   : > { %2507 = vperm.xlu0 %10669, %v10791_v42  }
 0x3df   : > { %v13113_v32 = vpop.permute.xlu1 %5183  ;;  %v13115_v50 = vpop.permute.xlu0 %6435 }
 0x3e0   : > { %16634 = vst [vmem:[#allocation323_spill] sm:$0xff] %v13113_v32  ;;  %16635 = vst [vmem:[#allocation324_spill] sm:$0xff] %v13115_v50  ;;  %v1956_v32 = vld [vmem:[%s16078_s6] sm:$0x3]  ;;  %v10796_v50 = vld [vmem:[%s11222_s29 + $0x190] sm:$0xff] }
 0x3e1   : > { %5563 = vperm.xlu1 %10633, %v12771_v33   ;;  %v10794_v33 = vld [vmem:[%s11222_s29 + $0x170] sm:$0xff] }
 0x3e2   : > { %2515 = vperm.xlu0 %10669, %v10792_v59  }
 0x3e3   : > { %v13119_v9 = vpop.permute.xlu1 %5193  ;;  %v13121_v7 = vpop.permute.xlu0 %6451 }
 0x3e4   : > { %16636 = vst [vmem:[#allocation325_spill] sm:$0xff] %v13119_v9  ;;  %16637 = vst [vmem:[#allocation326_spill] sm:$0xff] %v13121_v7  ;;  %v10795_v9 = vld [vmem:[%s11222_s29 + $0x180] sm:$0xff] }
 0x3e5   : > { %5571 = vperm.xlu1 %10633, %v12780_v37   ;;  %v13137_v37 = vunpack.c.l.bf16 %v1956_v32 }
 0x3e6   : > { %2523 = vperm.xlu0 %10669, %v10793_v19   ;;  %v4564_v19 = vld [vmem:[%s16081_s9] sm:$0x3] }
 0x3e7   : > { %v13125_v21 = vpop.permute.xlu1 %5203  ;;  %v13127_v42 = vpop.permute.xlu0 %6467 }
 0x3e8   : > { %16638 = vst [vmem:[#allocation327_spill] sm:$0xff] %v13125_v21  ;;  %16639 = vst [vmem:[#allocation328_spill] sm:$0xff] %v13127_v42  ;;  %v13146_v42 = vunpack.c.l.bf16 %v4564_v19  ;;  %v16646_v19 = vld [vmem:[#allocation73_spill] sm:$0xff] }
 0x3e9   : > { %10634 = vset.pattern.permute.xlu1 %v16303_v14 }
 0x3ea   : > { %2531 = vperm.xlu0 %10669, %v10794_v33   ;;  %6115 = vperm.xlu1 %10634, %v12849_v57   ;;  %v13152_v57 = vrot.slane %v13137_v37, %v12197_v25  ;;  %v16644_v33 = vld [vmem:[#allocation69_spill] sm:$0xff] }
 0x3eb   : > { %v13135_v59 = vpop.permute.xlu0 %6483 }
 0x3ec   : > { %16640 = vst [vmem:[#allocation329_spill] sm:$0xff] %v13135_v59  ;;  %v13142_v21 = vpop.permute.xlu1 %5343  ;;  %v13158_v59 = vmul.f32 %v13152_v57, %v16644_v33  ;;  %v13172_v41 = vmul.f32 %v13152_v57, %v16647_v22  ;;  %v13176_v33 = vrot.slane %v13146_v42, %v12197_v25  ;;  %v16653_v22 = vld [vmem:[#allocation83_spill] sm:$0xff] }
 0x3ed   : > { %16641 = vst [vmem:[#allocation330_spill] sm:$0xff] %v13142_v21  ;;  %v13194_v18 = vmul.f32 %v13152_v57, %v16653_v22  ;;  %v16659_v22 = vld [vmem:[#allocation97_spill] sm:$0xff] }
 0x3ee   : > { %2539 = vperm.xlu0 %10669, %v10795_v9   ;;  %6119 = vperm.xlu1 %10634, %v12859_v15   ;;  %v16645_v9 = vld [vmem:[#allocation71_spill] sm:$0xff]  ;;  %16648 = vst [vmem:[#allocation69_spill] sm:$0xff] %v13176_v33  ;;  %v13216_v31 = vmul.f32 %v13152_v57, %v16659_v22  ;;  %v13234_v22 = vmul.f32 %v13152_v57, %v16663_v52 }
 0x3ef   : > { %v13148_v7 = vpop.permute.xlu0 %6499  ;;  %v13164_v15 = vmul.f32 %v13152_v57, %v16645_v9  ;;  %v16651_v9 = vld [vmem:[#allocation79_spill] sm:$0xff] }
 0x3f0   : > { %16642 = vst [vmem:[#allocation331_spill] sm:$0xff] %v13148_v7  ;;  %v13154_v32 = vpop.permute.xlu1 %5347  ;;  %v13168_v7 = vmul.f32 %v13152_v57, %v16646_v19  ;;  %v16652_v19 = vld [vmem:[#allocation81_spill] sm:$0xff]  ;;  %v16668_v52 = vld [vmem:[#allocation115_spill] sm:$0xff] }
 0x3f1   : > { %16643 = vst [vmem:[#allocation332_spill] sm:$0xff] %v13154_v32  ;;  %v13186_v32 = vmul.f32 %v13152_v57, %v16651_v9  ;;  %v13190_v21 = vmul.f32 %v13152_v57, %v16652_v19  ;;  %v16657_v9 = vld [vmem:[#allocation91_spill] sm:$0xff]  ;;  %v16658_v19 = vld [vmem:[#allocation94_spill] sm:$0xff]  ;;  %v13256_v0 = vmul.f32 %v13152_v57, %v16668_v52  ;;  %v13278_v52 = vmul.f32 %v13152_v57, %v11742_v27 }
 0x3f2   : > { %2547 = vperm.xlu0 %10669, %v10796_v50   ;;  %6127 = vperm.xlu1 %10634, %v12869_v11   ;;  %v16650_v11 = vld [vmem:[#allocation77_spill] sm:$0xff]  ;;  %v13208_v20 = vmul.f32 %v13152_v57, %v16657_v9  ;;  %v13212_v51 = vmul.f32 %v13152_v57, %v16658_v19  ;;  %v16662_v9 = vld [vmem:[#allocation106_spill] sm:$0xff]  ;;  %v13296_v27 = vmul.f32 %v13152_v57, %v11754_v30  ;;  %v16684_v30 = vld [vmem:[#allocation123_spill] sm:$0xff] }
 0x3f3   : > { %v13178_v50 = vpop.permute.xlu0 %6515  ;;  %v13182_v14 = vmul.f32 %v13152_v57, %v16650_v11  ;;  %v16656_v11 = vld [vmem:[#allocation88_spill] sm:$0xff]  ;;  %v13230_v19 = vmul.f32 %v13152_v57, %v16662_v9  ;;  %v16667_v9 = vld [vmem:[#allocation114_spill] sm:$0xff] }
 0x3f4   : > { %16649 = vst [vmem:[#allocation71_spill] sm:$0xff] %v13178_v50  ;;  %v13196_v25 = vpop.permute.xlu1 %5355  ;;  %v13200_v50 = vmul.f32 %v13152_v57, %v16655_v5  ;;  %v13204_v49 = vmul.f32 %v13152_v57, %v16656_v11  ;;  %v13224_v11 = vmul.f32 %v13152_v57, %v16661_v44  ;;  %v13242_v44 = vrot.slane %v13137_v37, %v12199_v34 }
 0x3f5   : > { %16654 = vst [vmem:[#allocation73_spill] sm:$0xff] %v13196_v25  ;;  %v16660_v25 = vld [vmem:[#allocation100_spill] sm:$0xff]  ;;  %v13252_v48 = vmul.f32 %v13152_v57, %v16667_v9  ;;  %v16672_v9 = vld [vmem:[#allocation118_spill] sm:$0xff]  ;;  %16676 = vst [vmem:[#allocation81_spill] sm:$0xff] %v13296_v27  ;;  %v13318_v27 = vmul.f32 %v13152_v57, %v16684_v30 }
 0x3f6   : > { %v13220_v5 = vmul.f32 %v13152_v57, %v16660_v25  ;;  %2555 = vperm.xlu0 %10669, %v10797_v45   ;;  %6135 = vperm.xlu1 %10634, %v12879_v58   ;;  %v13238_v25 = vmul.f32 %v13152_v57, %v16664_v61  ;;  %v16666_v58 = vld [vmem:[#allocation113_spill] sm:$0xff]  ;;  %v13260_v61 = vmul.f32 %v13152_v57, %v11730_v38  ;;  %v16673_v38 = vld [vmem:[#allocation119_spill] sm:$0xff]  ;;  %v16693_v30 = vld [vmem:[#allocation126_spill] sm:$0xff] }
 0x3f7   : > { %v13244_v45 = vpop.permute.xlu0 %6531  ;;  %v13248_v60 = vmul.f32 %v13152_v57, %v16666_v58  ;;  %v16671_v58 = vld [vmem:[#allocation117_spill] sm:$0xff]  ;;  %v13274_v63 = vmul.f32 %v13152_v57, %v16672_v9  ;;  %v13282_v1 = vmul.f32 %v13152_v57, %v16673_v38  ;;  %16685 = vst [vmem:[#allocation97_spill] sm:$0xff] %v13318_v27  ;;  %v13340_v27 = vmul.f32 %v13152_v57, %v16693_v30  ;;  %v16703_v30 = vld [vmem:[#allocation131_spill] sm:$0xff] }
 0x3f8   : > { %16665 = vst [vmem:[#allocation75_spill] sm:$0xff] %v13244_v45  ;;  %v13262_v39 = vpop.permute.xlu1 %5363  ;;  %v13266_v45 = vmul.f32 %v13152_v57, %v16670_v17  ;;  %v13270_v13 = vmul.f32 %v13152_v57, %v16671_v58  ;;  %v13286_v17 = vmul.f32 %v13152_v57, %v11748_v26  ;;  %v16677_v9 = vld [vmem:[#allocation121_spill] sm:$0xff]  ;;  %v13304_v26 = vmul.f32 %v13152_v57, %v11760_v36  ;;  %v16687_v36 = vld [vmem:[#allocation124_spill] sm:$0xff] }
 0x3f9   : > { %16669 = vst [vmem:[#allocation77_spill] sm:$0xff] %v13262_v39  ;;  %v16674_v39 = vld [vmem:[#allocation120_spill] sm:$0xff]  ;;  %v13300_v38 = vmul.f32 %v13152_v57, %v16677_v9  ;;  %v13322_v9 = vmul.f32 %v13152_v57, %v11772_v40  ;;  %16694 = vst [vmem:[#allocation113_spill] sm:$0xff] %v13340_v27  ;;  %v16695_v40 = vld [vmem:[#allocation127_spill] sm:$0xff] }
 0x3fa   : > { %v13290_v58 = vmul.f32 %v13152_v57, %v16674_v39  ;;  %2563 = vperm.xlu0 %10669, %v10798_v47   ;;  %6143 = vperm.xlu1 %10634, %v12889_v23   ;;  %16679 = vst [vmem:[#allocation85_spill] sm:$0xff] %v13304_v26  ;;  %v13308_v39 = vmul.f32 %v13152_v57, %v16680_v8  ;;  %v16754_v27 = vld [vmem:[#allocation179_spill] sm:$0xff]  ;;  %v10801_v26 = vld [vmem:[%s11222_s29 + $0x1e0] sm:$0xff] }
 0x3fb   : > { %16678 = vst [vmem:[#allocation83_spill] sm:$0xff] %v13300_v38  ;;  %v13310_v47 = vpop.permute.xlu0 %6547  ;;  %v13314_v23 = vmul.f32 %v13152_v57, %v11766_v28  ;;  %16686 = vst [vmem:[#allocation100_spill] sm:$0xff] %v13322_v9  ;;  %v13326_v38 = vmul.f32 %v13152_v57, %v16687_v36  ;;  %v16691_v28 = vld [vmem:[#allocation125_spill] sm:$0xff]  ;;  %v13344_v9 = vmul.f32 %v13152_v57, %v16695_v40  ;;  %v16697_v36 = vld [vmem:[#allocation128_spill] sm:$0xff] }
 0x3fc   : > { %16675 = vst [vmem:[#allocation79_spill] sm:$0xff] %v13290_v58  ;;  %16681 = vst [vmem:[#allocation88_spill] sm:$0xff] %v13308_v39  ;;  %v13328_v8 = vpop.permute.xlu1 %5371  ;;  %v13336_v39 = vmul.f32 %v13152_v57, %v16691_v28  ;;  %v13362_v40 = vmul.f32 %v13152_v57, %v16703_v30  ;;  %v16714_v30 = vld [vmem:[#allocation136_spill] sm:$0xff]  ;;  %v16768_v58 = vld [vmem:[#allocation185_spill] sm:$0xff] }
 0x3fd   : > { %16682 = vst [vmem:[#allocation91_spill] sm:$0xff] %v13310_v47  ;;  %16683 = vst [vmem:[#allocation94_spill] sm:$0xff] %v13314_v23  ;;  %v13332_v47 = vmul.f32 %v13152_v57, %v11778_v43  ;;  %v16757_v23 = vld [vmem:[#allocation161_spill] sm:$0xff] }
 0x3fe   : > { %16688 = vst [vmem:[#allocation103_spill] sm:$0xff] %v13326_v38  ;;  %16689 = vst [vmem:[#allocation106_spill] sm:$0xff] %v13328_v8  ;;  %v13348_v38 = vmul.f32 %v13152_v57, %v16697_v36  ;;  %v16699_v8 = vld [vmem:[#allocation129_spill] sm:$0xff]  ;;  %6151 = vperm.xlu1 %10634, %v12899_v4   ;;  %v16712_v4 = vld [vmem:[#allocation135_spill] sm:$0xff] }
 0x3ff   : > { %16690 = vst [vmem:[#allocation109_spill] sm:$0xff] %v13332_v47  ;;  %16692 = vst [vmem:[#allocation111_spill] sm:$0xff] %v13336_v39  ;;  %v13352_v43 = vmul.f32 %v13152_v57, %v16699_v8  ;;  %v16701_v47 = vld [vmem:[#allocation130_spill] sm:$0xff]  ;;  %v10799_v39 = vld [vmem:[%s11222_s29 + $0x1c0] sm:$0xff] }
 0x400   : > { %16696 = vst [vmem:[#allocation114_spill] sm:$0xff] %v13344_v9  ;;  %16698 = vst [vmem:[#allocation115_spill] sm:$0xff] %v13348_v38  ;;  %v13356_v28 = vmul.f32 %v13152_v57, %v16701_v47  ;;  %2571 = vperm.xlu0 %10669, %v10799_v39   ;;  %v16705_v9 = vld [vmem:[#allocation132_spill] sm:$0xff]  ;;  %v16707_v38 = vld [vmem:[#allocation133_spill] sm:$0xff]  ;;  %v13376_v39 = vpop.permute.xlu0 %6563 }
 0x401   : > { %16700 = vst [vmem:[#allocation116_spill] sm:$0xff] %v13352_v43  ;;  %16704 = vst [vmem:[#allocation118_spill] sm:$0xff] %v13362_v40  ;;  %v13366_v36 = vmul.f32 %v13152_v57, %v16705_v9  ;;  %v13370_v8 = vmul.f32 %v13152_v57, %v16707_v38  ;;  %v16709_v43 = vld [vmem:[#allocation134_spill] sm:$0xff]  ;;  %v13384_v40 = vmul.f32 %v13176_v33, %v16714_v30  ;;  %v16716_v9 = vld [vmem:[#allocation137_spill] sm:$0xff] }
 0x402   : > { %16702 = vst [vmem:[#allocation117_spill] sm:$0xff] %v13356_v28  ;;  %v13374_v47 = vmul.f32 %v13176_v33, %v16709_v43  ;;  %16711 = vst [vmem:[#allocation122_spill] sm:$0xff] %v13376_v39  ;;  %v13380_v28 = vmul.f32 %v13152_v57, %v16712_v4  ;;  %v16718_v38 = vld [vmem:[#allocation138_spill] sm:$0xff]  ;;  %v13394_v43 = vpop.permute.xlu1 %5379  ;;  %v16723_v4 = vld [vmem:[#allocation140_spill] sm:$0xff]  ;;  %6159 = vperm.xlu1 %10634, %v12912_v55  }
 0x403   : > { %16706 = vst [vmem:[#allocation119_spill] sm:$0xff] %v13366_v36  ;;  %16708 = vst [vmem:[#allocation120_spill] sm:$0xff] %v13370_v8  ;;  %v13388_v36 = vmul.f32 %v13152_v57, %v16716_v9  ;;  %v13392_v8 = vmul.f32 %v13176_v33, %v16718_v38  ;;  %v16725_v30 = vld [vmem:[#allocation141_spill] sm:$0xff]  ;;  %v16727_v9 = vld [vmem:[#allocation142_spill] sm:$0xff] }
 0x404   : > { %16710 = vst [vmem:[#allocation121_spill] sm:$0xff] %v13374_v47  ;;  %16713 = vst [vmem:[#allocation123_spill] sm:$0xff] %v13380_v28  ;;  %v16721_v47 = vld [vmem:[#allocation139_spill] sm:$0xff]  ;;  %v13402_v28 = vmul.f32 %v13176_v33, %v16723_v4 }
 0x405   : > { %16715 = vst [vmem:[#allocation124_spill] sm:$0xff] %v13384_v40  ;;  %16717 = vst [vmem:[#allocation125_spill] sm:$0xff] %v13388_v36  ;;  %v13398_v39 = vmul.f32 %v13152_v57, %v16721_v47  ;;  %v13406_v40 = vmul.f32 %v13152_v57, %v16725_v30  ;;  %v13410_v36 = vmul.f32 %v13176_v33, %v16727_v9  ;;  %v16729_v38 = vld [vmem:[#allocation143_spill] sm:$0xff] }
 0x406   : > { %16719 = vst [vmem:[#allocation126_spill] sm:$0xff] %v13392_v8  ;;  %16720 = vst [vmem:[#allocation127_spill] sm:$0xff] %v13394_v43  ;;  %v13414_v8 = vmul.f32 %v13152_v57, %v16729_v38  ;;  %v16731_v43 = vld [vmem:[#allocation144_spill] sm:$0xff]  ;;  %v16735_v30 = vld [vmem:[#allocation147_spill] sm:$0xff]  ;;  %6167 = vperm.xlu1 %10634, %v12925_v6  }
 0x407   : > { %16722 = vst [vmem:[#allocation128_spill] sm:$0xff] %v13398_v39  ;;  %16724 = vst [vmem:[#allocation129_spill] sm:$0xff] %v13402_v28  ;;  %v13418_v47 = vmul.f32 %v13176_v33, %v16731_v43  ;;  %v16733_v39 = vld [vmem:[#allocation145_spill] sm:$0xff]  ;;  %v10800_v28 = vld [vmem:[%s11222_s29 + $0x1d0] sm:$0xff]  ;;  %v13428_v9 = vmul.f32 %v13152_v57, %v16735_v30 }
 0x408   : > { %16726 = vst [vmem:[#allocation130_spill] sm:$0xff] %v13406_v40  ;;  %16728 = vst [vmem:[#allocation131_spill] sm:$0xff] %v13410_v36  ;;  %v13422_v4 = vmul.f32 %v13152_v57, %v16733_v39  ;;  %2579 = vperm.xlu0 %10669, %v10800_v28   ;;  %v16737_v40 = vld [vmem:[#allocation149_spill] sm:$0xff]  ;;  %v13442_v28 = vpop.permute.xlu0 %6579  ;;  %v16744_v55 = vld [vmem:[#allocation155_spill] sm:$0xff] }
 0x409   : > { %16730 = vst [vmem:[#allocation132_spill] sm:$0xff] %v13414_v8  ;;  %16732 = vst [vmem:[#allocation133_spill] sm:$0xff] %v13418_v47  ;;  %v13432_v38 = vmul.f32 %v13152_v57, %v16737_v40  ;;  %v16739_v8 = vld [vmem:[#allocation151_spill] sm:$0xff]  ;;  %v16741_v47 = vld [vmem:[#allocation153_spill] sm:$0xff] }
 0x40a   : > { %16734 = vst [vmem:[#allocation134_spill] sm:$0xff] %v13422_v4  ;;  %16736 = vst [vmem:[#allocation135_spill] sm:$0xff] %v13428_v9  ;;  %v13436_v43 = vmul.f32 %v13152_v57, %v16739_v8  ;;  %v13440_v39 = vmul.f32 %v13152_v57, %v16741_v47  ;;  %v13446_v4 = vmul.f32 %v13152_v57, %v16744_v55  ;;  %v16746_v30 = vld [vmem:[#allocation157_spill] sm:$0xff]  ;;  %v16749_v36 = vld [vmem:[#allocation171_spill] sm:$0xff]  ;;  %6175 = vperm.xlu1 %10634, %v12938_v24  }
 0x40b   : > { %16738 = vst [vmem:[#allocation136_spill] sm:$0xff] %v13432_v38  ;;  %16743 = vst [vmem:[#allocation139_spill] sm:$0xff] %v13442_v28  ;;  %v13450_v9 = vmul.f32 %v13152_v57, %v16746_v30  ;;  %v16748_v40 = vld [vmem:[#allocation169_spill] sm:$0xff]  ;;  %v2608_v8 = vmul.f32 %v13242_v44, %v16749_v36  ;;  %v16752_v28 = vld [vmem:[#allocation175_spill] sm:$0xff]  ;;  %v2615_v30 = vmul.f32 %v13242_v44, %v16754_v27 }
 0x40c   : > { %16740 = vst [vmem:[#allocation137_spill] sm:$0xff] %v13436_v43  ;;  %16742 = vst [vmem:[#allocation138_spill] sm:$0xff] %v13440_v39  ;;  %v2606_v38 = vmul.f32 %v13242_v44, %v16748_v40  ;;  %v13456_v43 = vpop.permute.xlu1 %5387  ;;  %v16751_v47 = vld [vmem:[#allocation173_spill] sm:$0xff]  ;;  %v2611_v33 = vmul.f32 %v13242_v44, %v16752_v28  ;;  %v13472_v36 = vmul.f32 %v13152_v57, %v16757_v23  ;;  %2587 = vperm.xlu0 %10669, %v10801_v26   ;;  %v16763_v27 = vld [vmem:[#allocation167_spill] sm:$0xff] }
 0x40d   : > { %16745 = vst [vmem:[#allocation140_spill] sm:$0xff] %v13446_v4  ;;  %16747 = vst [vmem:[#allocation141_spill] sm:$0xff] %v13450_v9  ;;  %v2609_v39 = vmul.f32 %v13242_v44, %v16751_v47  ;;  %v16753_v55 = vld [vmem:[#allocation177_spill] sm:$0xff]  ;;  %v16755_v9 = vld [vmem:[#allocation159_spill] sm:$0xff]  ;;  %v2672_v6 = vadd.f32 %v2608_v8, %v13256_v0 }
 0x40e   : > { %16750 = vst [vmem:[#allocation142_spill] sm:$0xff] %v13456_v43  ;;  %v2613_v4 = vmul.f32 %v13242_v44, %v16753_v55  ;;  %v13468_v40 = vmul.f32 %v13152_v57, %v16755_v9  ;;  %16758 = vst [vmem:[#allocation144_spill] sm:$0xff] %v13472_v36  ;;  %v16759_v43 = vld [vmem:[#allocation163_spill] sm:$0xff]  ;;  %v16761_v28 = vld [vmem:[#allocation165_spill] sm:$0xff]  ;;  %v13486_v9 = vmul.f32 %v13152_v57, %v16763_v27  ;;  %6183 = vperm.xlu1 %10634, %v12951_v16  }
 0x40f   : > { %v13476_v47 = vmul.f32 %v13152_v57, %v16759_v43  ;;  %v13482_v55 = vmul.f32 %v13152_v57, %v16761_v28  ;;  %v16766_v36 = vld [vmem:[#allocation183_spill] sm:$0xff]  ;;  %v2670_v26 = vadd.f32 %v2606_v38, %v13158_v59  ;;  %v2621_v28 = vmul.f32 %v13242_v44, %v16768_v58  ;;  %v16772_v58 = vld [vmem:[#allocation189_spill] sm:$0xff] }
 0x410   : > { %16756 = vst [vmem:[#allocation143_spill] sm:$0xff] %v13468_v40  ;;  %16764 = vst [vmem:[#allocation149_spill] sm:$0xff] %v13486_v9  ;;  %v16765_v40 = vld [vmem:[#allocation181_spill] sm:$0xff]  ;;  %v2619_v43 = vmul.f32 %v13242_v44, %v16766_v36  ;;  %v13502_v27 = vpop.permute.xlu1 %5395  ;;  %v2675_v9 = vadd.f32 %v2611_v33, %v13168_v7  ;;  %v13507_v36 = vadd.f32 %v2613_v4, %v13172_v41  ;;  %v16771_v0 = vld [vmem:[#allocation187_spill] sm:$0xff] }
 0x411   : > { %16760 = vst [vmem:[#allocation145_spill] sm:$0xff] %v13476_v47  ;;  %16762 = vst [vmem:[#allocation147_spill] sm:$0xff] %v13482_v55  ;;  %v2617_v23 = vmul.f32 %v13242_v44, %v16765_v40  ;;  %v13492_v47 = vpop.permute.xlu0 %6595  ;;  %v16769_v55 = vld [vmem:[#allocation246_spill] sm:$0xff]  ;;  %v2673_v40 = vadd.f32 %v2609_v39, %v13164_v15  ;;  %v13510_v59 = vadd.f32 %v2615_v30, %v13182_v14  ;;  %v16773_v14 = vld [vmem:[#allocation112_spill] sm:$0xff] }
 0x412   : > { %16767 = vst [vmem:[#allocation151_spill] sm:$0xff] %v13492_v47  ;;  %v13500_v57 = vrot.slane %v13137_v37, %v16769_v55  ;;  %16770 = vst [vmem:[#allocation153_spill] sm:$0xff] %v13502_v27  ;;  %v2623_v38 = vmul.f32 %v13242_v44, %v16771_v0  ;;  %v2625_v8 = vmul.f32 %v13242_v44, %v16772_v58  ;;  %v10802_v47 = vld [vmem:[%s11222_s29 + $0x1f0] sm:$0xff]  ;;  %v16776_v24 = vld [vmem:[#allocation193_spill] sm:$0xff]  ;;  %6191 = vperm.xlu1 %10634, %v12961_v3  }
 0x413   : > { %2595 = vperm.xlu0 %10669, %v10802_v47   ;;  %v13521_v7 = vadd.f32 %v2617_v23, %v13186_v32  ;;  %v13524_v41 = vadd.f32 %v2619_v43, %v13190_v21  ;;  %v13531_v4 = vadd.f32 %v2621_v28, %v13194_v18  ;;  %v2629_v32 = vmul.f32 %v13242_v44, %v16776_v24  ;;  %v16777_v30 = vld [vmem:[#allocation195_spill] sm:$0xff]  ;;  %v16779_v43 = vld [vmem:[#allocation197_spill] sm:$0xff] }
 0x414   : > { %v2997_v37 = vmul.f32 %v13500_v57, %v12550_v62  ;;  %v2996_v15 = vmul.f32 %v13500_v57, %v16773_v14  ;;  %v2994_v33 = vmul.f32 %v13500_v57, %v12540_v53  ;;  %v16775_v62 = vld [vmem:[#allocation191_spill] sm:$0xff]  ;;  %v2631_v21 = vmul.f32 %v13242_v44, %v16777_v30  ;;  %v13539_v47 = vpop.permute.xlu1 %5403  ;;  %v16781_v18 = vld [vmem:[#allocation201_spill] sm:$0xff] }
 0x415   : > { %16774 = vst [vmem:[#allocation155_spill] sm:$0xff] %v13531_v4  ;;  %v2627_v39 = vmul.f32 %v13242_v44, %v16775_v62  ;;  %16778 = vst [vmem:[#allocation157_spill] sm:$0xff] %v13539_v47  ;;  %v2352_v23 = vpop.permute.xlu0 %2351  ;;  %v2633_v0 = vmul.f32 %v13242_v44, %v16779_v43  ;;  %v16780_v58 = vld [vmem:[#allocation199_spill] sm:$0xff]  ;;  %v2637_v28 = vmul.f32 %v13242_v44, %v16781_v18  ;;  %v10803_v47 = vld [vmem:[%s11557_s20] sm:$0xff] }
 0x416   : > { %v2635_v53 = vmul.f32 %v13242_v44, %v16780_v58  ;;  %v2607_v14 = vmul.f32 %v13242_v44, %v2352_v23  ;;  %v13549_v62 = vadd.f32 %v2623_v38, %v13200_v50  ;;  %v13552_v24 = vadd.f32 %v2625_v8, %v13204_v49  ;;  %v16782_v43 = vld [vmem:[#allocation227_spill] sm:$0xff]  ;;  %6199 = vperm.xlu1 %10634, %v12971_v56  }
 0x417   : > { %v3061_v30 = vadd.f32 %v2997_v37, %v2673_v40  ;;  %5339 = vperm.xlu0 %10669, %v10803_v47   ;;  %v2995_v27 = vmul.f32 %v13500_v57, %v16782_v43  ;;  %v3060_v58 = vadd.f32 %v2996_v15, %v2672_v6  ;;  %v3058_v4 = vadd.f32 %v2994_v33, %v2670_v26  ;;  %v16784_v38 = vld [vmem:[#allocation203_spill] sm:$0xff]  ;;  %v16786_v33 = vld [vmem:[#allocation230_spill] sm:$0xff]  ;;  %v16788_v47 = vld [vmem:[#allocation205_spill] sm:$0xff] }
 0x418   : > { %v2671_v18 = vadd.f32 %v2607_v14, %v13248_v60  ;;  %v13560_v23 = vadd.f32 %v2627_v39, %v13208_v20  ;;  %v13563_v50 = vadd.f32 %v2629_v32, %v13212_v51  ;;  %v13566_v49 = vadd.f32 %v2631_v21, %v13216_v31  ;;  %v13570_v40 = vpop.permute.xlu1 %5411  ;;  %v16789_v3 = vld [vmem:[#allocation207_spill] sm:$0xff] }
 0x419   : > { %v2999_v16 = vmul.f32 %v13500_v57, %v12560_v54  ;;  %16783 = vst [vmem:[#allocation169_spill] sm:$0xff] %v13570_v40  ;;  %v13573_v6 = vadd.f32 %v2633_v0, %v13220_v5  ;;  %v13576_v26 = vadd.f32 %v2635_v53, %v13224_v11  ;;  %v13579_v60 = vadd.f32 %v2637_v28, %v13230_v19  ;;  %v2364_v51 = vpop.permute.xlu0 %2363  ;;  %v10804_v5 = vld [vmem:[%s11557_s20 + $0x18] sm:$0xff]  ;;  %v16790_v53 = vld [vmem:[#allocation209_spill] sm:$0xff] }
 0x41a   : > { %v3059_v20 = vadd.f32 %v2995_v27, %v2671_v18  ;;  %v2639_v31 = vmul.f32 %v13242_v44, %v16784_v38  ;;  %v13585_v8 = vrot.slane %v13146_v42, %v12199_v34  ;;  %v3125_v54 = vmax.f32 %v3061_v30, 0.0  ;;  %v16791_v18 = vld [vmem:[#allocation232_spill] sm:$0xff]  ;;  %6207 = vperm.xlu1 %10634, %v12981_v10  }
 0x41b   : > { %v2610_v37 = vmul.f32 %v13242_v44, %v2364_v51  ;;  %5351 = vperm.xlu0 %10669, %v10804_v5   ;;  %v3124_v11 = vmax.f32 %v3060_v58, 0.0  ;;  %v3122_v15 = vmax.f32 %v3058_v4, 0.0  ;;  %v3001_v19 = vmul.f32 %v13500_v57, %v12567_v2  ;;  %v10805_v58 = vld [vmem:[%s11557_s20 + $0x28] sm:$0xff]  ;;  %v16867_v40 = vld [vmem:[#allocation12_spill] sm:$0xff] }
 0x41c   : > { %16785 = vst [vmem:[#allocation171_spill] sm:$0xff] %v13585_v8  ;;  %v3123_v27 = vmax.f32 %v3059_v20, 0.0  ;;  %v2998_v39 = vmul.f32 %v13500_v57, %v16786_v33  ;;  %v3063_v32 = vadd.f32 %v2999_v16, %v2675_v9  ;;  %v13595_v21 = vpop.permute.xlu1 %5419  ;;  %v2641_v0 = vmul.f32 %v13242_v44, %v16788_v47 }
 0x41d   : > { %v2674_v34 = vadd.f32 %v2610_v37, %v13266_v45  ;;  %16787 = vst [vmem:[#allocation173_spill] sm:$0xff] %v13595_v21  ;;  %v2643_v4 = vmul.f32 %v13242_v44, %v16789_v3  ;;  %v2645_v28 = vmul.f32 %v13242_v44, %v16790_v53  ;;  %v2372_v2 = vpop.permute.xlu0 %2371  ;;  %v3187_v30 = vpack.c.bf16 %v3125_v54, %v3124_v11  ;;  %v16799_v53 = vld [vmem:[#allocation217_spill] sm:$0xff]  ;;  %v16865_v21 = vld [vmem:[#allocation11_spill] sm:$0xff] }
 0x41e   : > { %v3186_v14 = vpack.c.bf16 %v3123_v27, %v3122_v15  ;;  %v2612_v9 = vmul.f32 %v13242_v44, %v2372_v2  ;;  %v13607_v45 = vadd.f32 %v2639_v31, %v13234_v22  ;;  %v3000_v16 = vmul.f32 %v13500_v57, %v16791_v18  ;;  %v10806_v15 = vld [vmem:[%s11557_s20 + $0x38] sm:$0xff]  ;;  %v16800_v2 = vld [vmem:[#allocation86_spill] sm:$0xff]  ;;  %6215 = vperm.xlu1 %10634, %v12991_v35  }
 0x41f   : > { %v3062_v43 = vadd.f32 %v2998_v39, %v2674_v34  ;;  %5359 = vperm.xlu0 %10669, %v10805_v58   ;;  %v13613_v20 = vrot.slane %v13146_v42, %v16769_v55  ;;  %v3065_v51 = vadd.f32 %v3001_v19, %v13507_v36  ;;  %v3127_v38 = vmax.f32 %v3063_v32, 0.0  ;;  %v16794_v36 = vld [vmem:[#allocation211_spill] sm:$0xff] }
 0x420   : > { %10164 = vmatprep.mubr.msk.bf16.mxu0 %vm1667_vm1, %v3186_v14  ;;  %v3003_v54 = vmul.f32 %v13500_v57, %v12573_v46  ;;  %v2676_v22 = vadd.f32 %v2612_v9, %v13274_v63  ;;  %v13620_v31 = vpop.permute.xlu1 %5427  ;;  %v13624_v37 = vadd.f32 %v2641_v0, %v13238_v25  ;;  %v13627_v42 = vadd.f32 %v2643_v4, %v13252_v48  ;;  %v16795_v25 = vld [vmem:[#allocation213_spill] sm:$0xff]  ;;  %v16796_v48 = vld [vmem:[#allocation215_spill] sm:$0xff]  ;;  %v10807_v9 = vld [vmem:[%s11557_s20 + $0x48] sm:$0xff] }
 0x421   : > { %16792 = vst [vmem:[#allocation175_spill] sm:$0xff] %v13613_v20  ;;  %v3126_v56 = vmax.f32 %v3062_v43, 0.0  ;;  %16793 = vst [vmem:[#allocation177_spill] sm:$0xff] %v13620_v31  ;;  %10165 = vmatmul.mubr.msk.bf16.vlgmr.msra.gmra.mxu0 %vm1667_vm1, %v3187_v30  ;;  %v13630_v55 = vadd.f32 %v2645_v28, %v13260_v61  ;;  %v2647_v5 = vmul.f32 %v13242_v44, %v16794_v36  ;;  %v2380_v46 = vpop.permute.xlu0 %2379  ;;  %v16797_v61 = vld [vmem:[#allocation234_spill] sm:$0xff]  ;;  %v3129_v32 = vmax.f32 %v3065_v51, 0.0  ;;  %v16803_v36 = vld [vmem:[#allocation79_spill] sm:$0xff] }
 0x422   : > { %v3064_v11 = vadd.f32 %v3000_v16, %v2676_v22  ;;  %v2614_v63 = vmul.f32 %v13242_v44, %v2380_v46  ;;  %v2649_v27 = vmul.f32 %v13242_v44, %v16795_v25  ;;  %v2651_v33 = vmul.f32 %v13242_v44, %v16796_v48  ;;  %v16802_v16 = vld [vmem:[#allocation236_spill] sm:$0xff]  ;;  %v16806_v46 = vld [vmem:[#allocation85_spill] sm:$0xff]  ;;  %v16864_v31 = vld [vmem:[#allocation298_spill] sm:$0xff] }
 0x423   : > { %5367 = vperm.xlu0 %10669, %v10806_v15   ;;  %v3188_v19 = vpack.c.bf16 %v3127_v38, %v3126_v56  ;;  %v3002_v39 = vmul.f32 %v13500_v57, %v16797_v61  ;;  %v3067_v34 = vadd.f32 %v3003_v54, %v13510_v59  ;;  %v3005_v47 = vmul.f32 %v13500_v57, %v12584_v29  ;;  %v16801_v59 = vld [vmem:[#allocation89_spill] sm:$0xff]  ;;  %v10808_v48 = vld [vmem:[%s11557_s20 + $0x58] sm:$0xff] }
 0x424   : > { %v3128_v0 = vmax.f32 %v3064_v11, 0.0  ;;  %v2678_v10 = vadd.f32 %v2614_v63, %v13282_v1  ;;  %v13648_v3 = vpop.permute.xlu1 %5435  ;;  %v13651_v4 = vadd.f32 %v2647_v5, %v13270_v13  ;;  %v2653_v28 = vmul.f32 %v13242_v44, %v16799_v53  ;;  %v16807_v63 = vld [vmem:[#allocation94_spill] sm:$0xff] }
 0x425   : > { %10168 = vmatprep.mubr.msk.bf16.mxu0 %vm1667_vm1, %v3188_v19  ;;  %16798 = vst [vmem:[#allocation179_spill] sm:$0xff] %v13648_v3  ;;  %v2655_v14 = vmul.f32 %v13242_v44, %v16800_v2  ;;  %v2657_v30 = vmul.f32 %v13242_v44, %v16801_v59  ;;  %v2388_v29 = vpop.permute.xlu0 %2387  ;;  %v13663_v13 = vadd.f32 %v2649_v27, %v13278_v52  ;;  %v3131_v54 = vmax.f32 %v3067_v34, 0.0  ;;  %v16805_v52 = vld [vmem:[#allocation81_spill] sm:$0xff]  ;;  %v16811_v34 = vld [vmem:[#allocation98_spill] sm:$0xff]  ;;  %v16813_v2 = vld [vmem:[#allocation80_spill] sm:$0xff] }
 0x426   : > { %v3066_v43 = vadd.f32 %v3002_v39, %v2678_v10  ;;  %v2616_v1 = vmul.f32 %v13242_v44, %v2388_v29  ;;  %v3189_v58 = vpack.c.bf16 %v3129_v32, %v3128_v0  ;;  %v13666_v18 = vadd.f32 %v2651_v33, %v13286_v17  ;;  %v16809_v33 = vld [vmem:[#allocation286_spill] sm:$0xff]  ;;  %v16810_v39 = vld [vmem:[#allocation95_spill] sm:$0xff] }
 0x427   : > { %5375 = vperm.xlu0 %10669, %v10807_v9   ;;  %v3004_v51 = vmul.f32 %v13500_v57, %v16802_v16  ;;  %v3007_v38 = vmul.f32 %v13500_v57, %v12594_v12  ;;  %v3069_v56 = vadd.f32 %v3005_v47, %v13521_v7  ;;  %v13678_v17 = vadd.f32 %v2653_v28, %v16805_v52  ;;  %v16808_v12 = vld [vmem:[#allocation92_spill] sm:$0xff]  ;;  %v16812_v0 = vld [vmem:[#allocation238_spill] sm:$0xff]  ;;  %v16820_v52 = vld [vmem:[#allocation289_spill] sm:$0xff] }
 0x428   : > { %v3130_v22 = vmax.f32 %v3066_v43, 0.0  ;;  %v2680_v35 = vadd.f32 %v2616_v1, %v16803_v36  ;;  %v13674_v5 = vpop.permute.xlu1 %5443  ;;  %v13681_v11 = vadd.f32 %v2655_v14, %v16806_v46  ;;  %v13684_v15 = vadd.f32 %v2657_v30, %v16807_v63  ;;  %6223 = vperm.xlu1 %10634, %v16809_v33   ;;  %v16814_v30 = vld [vmem:[#allocation83_spill] sm:$0xff]  ;;  %v16816_v1 = vld [vmem:[#allocation100_spill] sm:$0xff] }
 0x429   : > { %16804 = vst [vmem:[#allocation159_spill] sm:$0xff] %v13674_v5  ;;  %10169 = vmatmul.mubr.msk.bf16.gmra.mxu0 %vm1667_vm1, %v3189_v58  ;;  %v2659_v19 = vmul.f32 %v13242_v44, %v16808_v12  ;;  %v2396_v7 = vpop.permute.xlu0 %2395  ;;  %v2661_v32 = vmul.f32 %v13242_v44, %v16810_v39  ;;  %v2663_v47 = vmul.f32 %v13242_v44, %v16811_v34  ;;  %v3133_v28 = vmax.f32 %v3069_v56, 0.0  ;;  %v16817_v58 = vld [vmem:[#allocation101_spill] sm:$0xff]  ;;  %v10681_v63 = vld [vmem:[%s16082_s10 + $0x18] sm:$0xff]   ;;  %v16824_v39 = vld [vmem:[#allocation155_spill] sm:$0xff] }
 0x42a   : > { %v3068_v25 = vadd.f32 %v3004_v51, %v2680_v35  ;;  %v2618_v27 = vmul.f32 %v13242_v44, %v2396_v7  ;;  %v3190_v61 = vpack.c.bf16 %v3131_v54, %v3130_v22  ;;  %v3006_v10 = vmul.f32 %v13500_v57, %v16812_v0  ;;  %v16818_v51 = vld [vmem:[#allocation104_spill] sm:$0xff]  ;;  %v10809_v35 = vld [vmem:[%s11557_s20 + $0x68] sm:$0xff]  ;;  %v16821_v12 = vld [vmem:[#allocation109_spill] sm:$0xff]  ;;  %10300 = vmatprep.subr.bf16.mxu0 %v10681_v63 }
 0x42b   : > { %5383 = vperm.xlu0 %10669, %v10808_v48   ;;  %v3071_v53 = vadd.f32 %v3007_v38, %v13524_v41  ;;  %v3009_v14 = vmul.f32 %v13500_v57, %v16813_v2  ;;  %v13705_v9 = vadd.f32 %v2659_v19, %v16816_v1  ;;  %v2665_v16 = vmul.f32 %v13242_v44, %v16817_v58  ;;  %v16819_v38 = vld [vmem:[#allocation107_spill] sm:$0xff]  ;;  %v16822_v7 = vld [vmem:[#allocation113_spill] sm:$0xff]  ;;  %v16825_v0 = vld [vmem:[#allocation16_spill] sm:$0xff] }
 0x42c   : > { %v3132_v59 = vmax.f32 %v3068_v25, 0.0  ;;  %v2682_v29 = vadd.f32 %v2618_v27, %v16814_v30  ;;  %10172 = vmatprep.mubr.msk.bf16.mxu0 %vm1667_vm1, %v3190_v61  ;;  %v13702_v43 = vpop.permute.xlu1 %5451  ;;  %v2667_v41 = vmul.f32 %v13242_v44, %v16818_v51  ;;  %v2669_v54 = vmul.f32 %v13242_v44, %v16819_v38  ;;  %6231 = vperm.xlu1 %10634, %v16820_v52   ;;  %v16823_v27 = vld [vmem:[#allocation240_spill] sm:$0xff]  ;;  %v10682_v61 = vld [vmem:[%s16082_s10 + $0x10] sm:$0xff]   ;;  %v16829_v30 = vld [vmem:[#allocation117_spill] sm:$0xff] }
 0x42d   : > { %16815 = vst [vmem:[#allocation161_spill] sm:$0xff] %v13702_v43  ;;  %v2404_v56 = vpop.permute.xlu0 %2403  ;;  %v13720_v19 = vadd.f32 %v2661_v32, %v16821_v12  ;;  %v13723_v25 = vadd.f32 %v2663_v47, %v16822_v7  ;;  %v3008_v48 = vmul.f32 %v13500_v57, %v16823_v27  ;;  %v3135_v33 = vmax.f32 %v3071_v53, 0.0  ;;  %v16826_v32 = vld [vmem:[#allocation88_spill] sm:$0xff]  ;;  %v16828_v47 = vld [vmem:[#allocation115_spill] sm:$0xff]  ;;  %10301 = vmatpush3.bf16.msra.mxu0 %v10681_v63  ;;  %v16835_v12 = vld [vmem:[#allocation6_spill] sm:$0xff] }
 0x42e   : > { %v3070_v22 = vadd.f32 %v3006_v10, %v2682_v29  ;;  %v2620_v36 = vmul.f32 %v13242_v44, %v2404_v56  ;;  %v3191_v46 = vpack.c.bf16 %v3133_v28, %v3132_v59  ;;  %v3073_v34 = vadd.f32 %v3009_v14, %v16824_v39  ;;  %v16830_v1 = vld [vmem:[#allocation119_spill] sm:$0xff]  ;;  %v16831_v14 = vld [vmem:[#allocation242_spill] sm:$0xff]  ;;  %v16833_v52 = vld [vmem:[#allocation244_spill] sm:$0xff]  ;;  %10302 = vmatprep.subr.bf16.mxu0 %v10682_v61 }
 0x42f   : > { %5391 = vperm.xlu0 %10669, %v10809_v35   ;;  %v3011_v10 = vmul.f32 %v13500_v57, %v16825_v0  ;;  %v13738_v53 = vadd.f32 %v2665_v16, %v16828_v47  ;;  %v13741_v29 = vadd.f32 %v2667_v41, %v16829_v30  ;;  %v13744_v58 = vadd.f32 %v2669_v54, %v16830_v1  ;;  %v16832_v35 = vld [vmem:[#allocation292_spill] sm:$0xff]  ;;  %v16836_v63 = vld [vmem:[#allocation7_spill] sm:$0xff]  ;;  %v16837_v0 = vld [vmem:[#allocation97_spill] sm:$0xff] }
 0x430   : > { %v3134_v28 = vmax.f32 %v3070_v22, 0.0  ;;  %v2684_v2 = vadd.f32 %v2620_v36, %v16826_v32  ;;  %v13734_v59 = vpop.permute.xlu1 %5459  ;;  %v3010_v51 = vmul.f32 %v13500_v57, %v16831_v14  ;;  %v10810_v36 = vld [vmem:[%s11557_s20 + $0x78] sm:$0xff]  ;;  %6239 = vperm.xlu1 %10634, %v16832_v35   ;;  %v13753_v41 = vmul.f32 %v13500_v57, %v16833_v52  ;;  %v16840_v30 = vld [vmem:[#allocation39_spill] sm:$0xff]  ;;  %v16841_v14 = vld [vmem:[#allocation70_spill] sm:$0xff] }
 0x431   : > { %16827 = vst [vmem:[#allocation163_spill] sm:$0xff] %v13734_v59  ;;  %10173 = vmatmul.mubr.msk.bf16.gmra.mxu0 %vm1667_vm1, %v3191_v46  ;;  %v2412_v38 = vpop.permute.xlu0 %2411  ;;  %v16834_v46 = vld [vmem:[#allocation247_spill] sm:$0xff]  ;;  %v13761_v7 = vmul.f32 %v13500_v57, %v16835_v12  ;;  %v13765_v27 = vmul.f32 %v13500_v57, %v16836_v63  ;;  %v13778_v1 = vmul.f32 %v13500_v57, %v16840_v30  ;;  %v10811_v35 = vld [vmem:[%s11557_s20 + $0x88] sm:$0xff]  ;;  %v16844_v12 = vld [vmem:[#allocation5_spill] sm:$0xff] }
 0x432   : > { %v3072_v56 = vadd.f32 %v3008_v48, %v2684_v2  ;;  %v2622_v22 = vmul.f32 %v13242_v44, %v2412_v38  ;;  %v3192_v16 = vpack.c.bf16 %v3135_v33, %v3134_v28  ;;  %v13757_v54 = vmul.f32 %v13500_v57, %v16834_v46  ;;  %v16839_v2 = vld [vmem:[#allocation8_spill] sm:$0xff]  ;;  %10303 = vmatpush3.bf16.msra.mxu0 %v10682_v61  ;;  %v10683_v46 = vld [vmem:[%s16082_s10 + $0x8] sm:$0xff]  }
 0x433   : > { %5399 = vperm.xlu0 %10669, %v10810_v36   ;;  %v3137_v48 = vmax.f32 %v3073_v34, 0.0  ;;  %v3075_v33 = vadd.f32 %v3011_v10, %v13549_v62  ;;  %v13774_v47 = vmul.f32 %v13500_v57, %v16839_v2  ;;  %v13782_v34 = vmul.f32 %v13500_v57, %v16841_v14  ;;  %v16842_v62 = vld [vmem:[#allocation74_spill] sm:$0xff]  ;;  %v13789_v36 = vpop.f32.mrf.mxu1  ;;  %v16849_v2 = vld [vmem:[#allocation9_spill] sm:$0xff]  ;;  %10304 = vmatprep.subr.bf16.mxu0 %v10683_v46 }
 0x434   : > { %v3136_v39 = vmax.f32 %v3072_v56, 0.0  ;;  %v2686_v28 = vadd.f32 %v2622_v22, %v16837_v0  ;;  %10176 = vmatprep.mubr.msk.bf16.mxu0 %vm1667_vm1, %v3192_v16  ;;  %v13770_v32 = vpop.permute.xlu1 %5467  ;;  %v13786_v10 = vmul.f32 %v13500_v57, %v16842_v62  ;;  %v16843_v16 = vld [vmem:[#allocation295_spill] sm:$0xff]  ;;  %v13798_v63 = vmul.f32 %v13500_v57, %v16844_v12  ;;  %v16845_v0 = vld [vmem:[#allocation40_spill] sm:$0xff]  ;;  %v16853_v62 = vld [vmem:[#allocation37_spill] sm:$0xff] }
 0x435   : > { %16838 = vst [vmem:[#allocation165_spill] sm:$0xff] %v13770_v32  ;;  %v2420_v38 = vpop.permute.xlu0 %2419  ;;  %6247 = vperm.xlu1 %10634, %v16843_v16   ;;  %v13802_v61 = vmul.f32 %v13500_v57, %v16845_v0  ;;  %v13810_v30 = vmul.f32 %v13500_v57, %v16849_v2  ;;  %v13823_v12 = vpop.f32.mrf.mxu1 }
 0x436   : > { %v3074_v56 = vadd.f32 %v3010_v51, %v2686_v28  ;;  %v2624_v22 = vmul.f32 %v13242_v44, %v2420_v38  ;;  %v3193_v52 = vpack.c.bf16 %v3137_v48, %v3136_v39  ;;  %v16847_v51 = vld [vmem:[#allocation72_spill] sm:$0xff]  ;;  %v10684_v48 = vld [vmem:[%s16082_s10] sm:$0xff]   ;;  %v16851_v39 = vld [vmem:[#allocation10_spill] sm:$0xff]  ;;  %v13821_v38 = vmul.f32 %v13500_v57, %v16853_v62  ;;  %10305 = vmatpush3.bf16.msra.mxu0 %v10683_v46 }
 0x437   : > { %5407 = vperm.xlu0 %10669, %v10811_v35   ;;  %16846 = vst [vmem:[#allocation167_spill] sm:$0xff] %v13802_v61  ;;  %v13806_v28 = vmul.f32 %v13500_v57, %v16847_v51  ;;  %16850 = vst [vmem:[#allocation183_spill] sm:$0xff] %v13810_v30  ;;  %v13817_v14 = vmul.f32 %v13500_v57, %v16851_v39  ;;  %v3139_v35 = vmax.f32 %v3075_v33, 0.0  ;;  %v16856_v51 = vld [vmem:[#allocation41_spill] sm:$0xff]  ;;  %v16858_v39 = vld [vmem:[#allocation42_spill] sm:$0xff]  ;;  %v13844_v3 = vpop.f32.mrf.mxu1  ;;  %10306 = vmatprep.subr.bf16.mxu0 %v10684_v48 }
 0x438   : > { %16854 = vst [vmem:[#allocation246_spill] sm:$0xff] %v13821_v38  ;;  %v3138_v16 = vmax.f32 %v3074_v56, 0.0  ;;  %v13825_v0 = vpop.permute.xlu1 %5475  ;;  %v13830_v2 = vmul.f32 %v13500_v57, %v16856_v51  ;;  %v13834_v32 = vmul.f32 %v13500_v57, %v16858_v39  ;;  %v16860_v62 = vld [vmem:[#allocation76_spill] sm:$0xff]  ;;  %v16869_v46 = vld [vmem:[#allocation43_spill] sm:$0xff] }
 0x439   : > { %16848 = vst [vmem:[#allocation181_spill] sm:$0xff] %v13806_v28  ;;  %16852 = vst [vmem:[#allocation185_spill] sm:$0xff] %v13817_v14  ;;  %10177 = vmatmul.mubr.msk.bf16.gmra.mxu0 %vm1667_vm1, %v3193_v52  ;;  %v13838_v59 = vmul.f32 %v13500_v57, %v16860_v62  ;;  %v16862_v33 = vld [vmem:[#allocation48_spill] sm:$0xff]  ;;  %v2428_v43 = vpop.permute.xlu0 %2427  ;;  %6255 = vperm.xlu1 %10634, %v16864_v31   ;;  %v13850_v62 = vmul.f32 %v13500_v57, %v16865_v21  ;;  %v16890_v14 = vld [vmem:[#allocation46_spill] sm:$0xff] }
 0x43a   : > { %16855 = vst [vmem:[#allocation187_spill] sm:$0xff] %v13825_v0  ;;  %16857 = vst [vmem:[#allocation189_spill] sm:$0xff] %v13830_v2  ;;  %v3013_v56 = vmul.f32 %v13500_v57, %v16862_v33  ;;  %v16863_v0 = vld [vmem:[#allocation103_spill] sm:$0xff]  ;;  %v2626_v5 = vmul.f32 %v13242_v44, %v2428_v43  ;;  %v10812_v51 = vld [vmem:[%s11557_s20 + $0x98] sm:$0xff]  ;;  %v3194_v39 = vpack.c.bf16 %v3139_v35, %v3138_v16  ;;  %10307 = vmatpush3.bf16.msra.mxu0 %v10684_v48 }
 0x43b   : > { %16859 = vst [vmem:[#allocation112_spill] sm:$0xff] %v13834_v32  ;;  %16861 = vst [vmem:[#allocation191_spill] sm:$0xff] %v13838_v59  ;;  %v2688_v52 = vadd.f32 %v2624_v22, %v16863_v0  ;;  %5415 = vperm.xlu0 %10669, %v10812_v51   ;;  %v13854_v33 = vmul.f32 %v13500_v57, %v16867_v40  ;;  %v13858_v22 = vmul.f32 %v13500_v57, %v16869_v46  ;;  %v16871_v43 = vld [vmem:[#allocation17_spill] sm:$0xff]  ;;  %v16872_v51 = vld [vmem:[#allocation44_spill] sm:$0xff]  ;;  %v13873_v46 = vpop.f32.mrf.mxu1 }
 0x43c   : > { %16866 = vst [vmem:[#allocation193_spill] sm:$0xff] %v13850_v62  ;;  %v3015_v0 = vmul.f32 %v13500_v57, %v16871_v43  ;;  %v13864_v31 = vmul.f32 %v13500_v57, %v16872_v51  ;;  %v16874_v35 = vld [vmem:[#allocation78_spill] sm:$0xff]  ;;  %v16876_v16 = vld [vmem:[#allocation49_spill] sm:$0xff]  ;;  %10180 = vmatprep.mubr.msk.bf16.mxu0 %vm1667_vm1, %v3194_v39  ;;  %v13876_v43 = vpop.permute.xlu1 %5483  ;;  %v16888_v38 = vld [vmem:[#allocation52_spill] sm:$0xff] }
 0x43d   : > { %16868 = vst [vmem:[#allocation195_spill] sm:$0xff] %v13854_v33  ;;  %16870 = vst [vmem:[#allocation197_spill] sm:$0xff] %v13858_v22  ;;  %v13868_v21 = vmul.f32 %v13500_v57, %v16874_v35  ;;  %v3017_v40 = vmul.f32 %v13500_v57, %v16876_v16  ;;  %v16877_v33 = vld [vmem:[#allocation111_spill] sm:$0xff]  ;;  %v16879_v22 = vld [vmem:[#allocation13_spill] sm:$0xff] }
 0x43e   : > { %16873 = vst [vmem:[#allocation199_spill] sm:$0xff] %v13864_v31  ;;  %v2690_v62 = vadd.f32 %v2626_v5, %v16877_v33  ;;  %16878 = vst [vmem:[#allocation227_spill] sm:$0xff] %v13876_v43  ;;  %v13880_v51 = vmul.f32 %v13500_v57, %v16879_v22  ;;  %v16881_v31 = vld [vmem:[#allocation14_spill] sm:$0xff]  ;;  %v16882_v59 = vld [vmem:[#allocation69_spill] sm:$0xff]  ;;  %v3077_v5 = vadd.f32 %v3013_v56, %v13552_v24  ;;  %v2436_v33 = vpop.permute.xlu0 %2435 }
 0x43f   : > { %16875 = vst [vmem:[#allocation201_spill] sm:$0xff] %v13868_v21  ;;  %v13884_v35 = vmul.f32 %v16882_v59, %v16881_v31  ;;  %v16884_v21 = vld [vmem:[#allocation45_spill] sm:$0xff]  ;;  %v16885_v16 = vld [vmem:[#allocation84_spill] sm:$0xff]  ;;  %v3076_v22 = vadd.f32 %v13753_v41, %v2688_v52  ;;  %v10813_v31 = vld [vmem:[%s11557_s20 + $0xa8] sm:$0xff]  ;;  %v3023_v24 = vmul.f32 %v13500_v57, %v16888_v38  ;;  %v13911_v41 = vadd.f32 %v3017_v40, %v13563_v50 }
 0x440   : > { %16880 = vst [vmem:[#allocation203_spill] sm:$0xff] %v13880_v51  ;;  %v13888_v32 = vmul.f32 %v16882_v59, %v16884_v21  ;;  %v3019_v39 = vmul.f32 %v13500_v57, %v16885_v16  ;;  %v16886_v43 = vld [vmem:[#allocation20_spill] sm:$0xff]  ;;  %v13896_v51 = vpop.f32.mrf.mxu1  ;;  %5423 = vperm.xlu0 %10669, %v10813_v31   ;;  %v3079_v21 = vadd.f32 %v3015_v0, %v13560_v23  ;;  %v16889_v48 = vld [vmem:[#allocation21_spill] sm:$0xff]  ;;  %v13918_v38 = vpop.permute.xlu1 %5491  ;;  %v16894_v31 = vld [vmem:[#allocation15_spill] sm:$0xff] }
 0x441   : > { %16883 = vst [vmem:[#allocation230_spill] sm:$0xff] %v13884_v35  ;;  %v3021_v2 = vmul.f32 %v13500_v57, %v16886_v43  ;;  %v16887_v35 = vld [vmem:[#allocation301_spill] sm:$0xff]  ;;  %v3025_v56 = vmul.f32 %v13500_v57, %v16889_v48  ;;  %v2628_v16 = vmul.f32 %v13242_v44, %v2436_v33  ;;  %v13908_v43 = vmul.f32 %v16882_v59, %v16890_v14  ;;  %v16896_v48 = vld [vmem:[#allocation47_spill] sm:$0xff]  ;;  %v16898_v50 = vld [vmem:[#allocation82_spill] sm:$0xff] }
 0x442   : > { %6263 = vperm.xlu1 %10634, %v16887_v35   ;;  %v16892_v52 = vld [vmem:[#allocation53_spill] sm:$0xff]  ;;  %v3078_v23 = vadd.f32 %v13757_v54, %v2690_v62  ;;  %v13916_v0 = vpop.f32.mrf.mxu1  ;;  %16893 = vst [vmem:[#allocation207_spill] sm:$0xff] %v13918_v38  ;;  %v13922_v33 = vmul.f32 %v16882_v59, %v16894_v31  ;;  %v13926_v14 = vmul.f32 %v16882_v59, %v16896_v48  ;;  %v16900_v38 = vld [vmem:[#allocation90_spill] sm:$0xff]  ;;  %v10814_v48 = vld [vmem:[%s11557_s20 + $0xb8] sm:$0xff] }
 0x443   : > { %16891 = vst [vmem:[#allocation205_spill] sm:$0xff] %v13908_v43  ;;  %v3027_v35 = vmul.f32 %v13500_v57, %v16892_v52  ;;  %v3141_v43 = vmax.f32 %v3077_v5, 0.0  ;;  %v13930_v40 = vmul.f32 %v16882_v59, %v16898_v50  ;;  %v2444_v52 = vpop.permute.xlu0 %2443  ;;  %v13933_v54 = vadd.f32 %v3019_v39, %v13566_v49  ;;  %v16901_v5 = vld [vmem:[#allocation304_spill] sm:$0xff]  ;;  %v16902_v39 = vld [vmem:[#allocation114_spill] sm:$0xff]  ;;  %v16913_v28 = vld [vmem:[#allocation57_spill] sm:$0xff] }
 0x444   : > { %16895 = vst [vmem:[#allocation209_spill] sm:$0xff] %v13922_v33  ;;  %16897 = vst [vmem:[#allocation232_spill] sm:$0xff] %v13926_v14  ;;  %v13936_v62 = vadd.f32 %v3021_v2, %v13573_v6  ;;  %v3029_v31 = vmul.f32 %v13500_v57, %v16900_v38  ;;  %v3140_v33 = vmax.f32 %v3076_v22, 0.0  ;;  %v13940_v30 = vpop.f32.mrf.mxu1  ;;  %5431 = vperm.xlu0 %10669, %v10814_v48   ;;  %v3143_v14 = vmax.f32 %v3079_v21, 0.0  ;;  %v16903_v2 = vld [vmem:[#allocation18_spill] sm:$0xff] }
 0x445   : > { %16899 = vst [vmem:[#allocation211_spill] sm:$0xff] %v13930_v40  ;;  %v13945_v50 = vadd.f32 %v3023_v24, %v13576_v26  ;;  %v13948_v49 = vadd.f32 %v3025_v56, %v13579_v60  ;;  %v2692_v6 = vadd.f32 %v2628_v16, %v16902_v39  ;;  %v13953_v40 = vmul.f32 %v16882_v59, %v16903_v2  ;;  %v13961_v26 = vpop.permute.xlu1 %5499  ;;  %v16906_v24 = vld [vmem:[#allocation50_spill] sm:$0xff]  ;;  %v16908_v56 = vld [vmem:[#allocation24_spill] sm:$0xff]  ;;  %v16910_v2 = vld [vmem:[#allocation25_spill] sm:$0xff] }
 0x446   : > { %6271 = vperm.xlu1 %10634, %v16901_v5   ;;  %v13957_v38 = vadd.f32 %v3027_v35, %v13607_v45  ;;  %v3142_v48 = vmax.f32 %v3078_v23, 0.0  ;;  %v13959_v21 = vpop.f32.mrf.mxu1  ;;  %16905 = vst [vmem:[#allocation215_spill] sm:$0xff] %v13961_v26  ;;  %v13965_v60 = vmul.f32 %v16882_v59, %v16906_v24  ;;  %v3031_v16 = vmul.f32 %v13500_v57, %v16908_v56  ;;  %v16909_v5 = vld [vmem:[#allocation56_spill] sm:$0xff]  ;;  %v10815_v59 = vld [vmem:[%s11557_s20 + $0xc8] sm:$0xff]  ;;  %v16912_v56 = vld [vmem:[#allocation307_spill] sm:$0xff] }
 0x447   : > { %16904 = vst [vmem:[#allocation213_spill] sm:$0xff] %v13953_v40  ;;  %v3033_v39 = vmul.f32 %v13500_v57, %v16909_v5  ;;  %v3035_v22 = vmul.f32 %v13500_v57, %v16910_v2  ;;  %v2452_v45 = vpop.permute.xlu0 %2451  ;;  %v13976_v26 = vadd.f32 %v3029_v31, %v13624_v37  ;;  %v3195_v40 = vpack.c.bf16 %v3141_v43, %v3140_v33  ;;  %v16914_v43 = vld [vmem:[#allocation96_spill] sm:$0xff] }
 0x448   : > { %16907 = vst [vmem:[#allocation234_spill] sm:$0xff] %v13965_v60  ;;  %v13978_v24 = vpop.f32.mrf.mxu1  ;;  %5439 = vperm.xlu0 %10669, %v10815_v59   ;;  %v3080_v2 = vadd.f32 %v13761_v7, %v2692_v6  ;;  %v2630_v35 = vmul.f32 %v13242_v44, %v2444_v52  ;;  %v3037_v37 = vmul.f32 %v13500_v57, %v16913_v28  ;;  %v16916_v28 = vld [vmem:[#allocation116_spill] sm:$0xff] }
 0x449   : > { %16911 = vst [vmem:[#allocation217_spill] sm:$0xff] %v13976_v26  ;;  %v3039_v33 = vmul.f32 %v13500_v57, %v16914_v43  ;;  %10181 = vmatmul.mubr.msk.bf16.gmra.mxu0 %vm1667_vm1, %v3195_v40  ;;  %v3196_v59 = vpack.c.bf16 %v3143_v14, %v3142_v48  ;;  %v13997_v7 = vadd.f32 %v3031_v16, %v13627_v42  ;;  %v16917_v40 = vld [vmem:[#allocation28_spill] sm:$0xff] }
 0x44a   : > { %6279 = vperm.xlu1 %10634, %v16912_v56   ;;  %v13992_v31 = vpop.f32.mrf.mxu1  ;;  %v13994_v56 = vpop.permute.xlu1 %5507  ;;  %v14000_v52 = vadd.f32 %v3033_v39, %v13630_v55  ;;  %v14003_v6 = vadd.f32 %v3035_v22, %v13651_v4  ;;  %v2694_v23 = vadd.f32 %v2630_v35, %v16916_v28  ;;  %v3041_v14 = vmul.f32 %v13500_v57, %v16917_v40  ;;  %v16918_v48 = vld [vmem:[#allocation60_spill] sm:$0xff]  ;;  %v16920_v22 = vld [vmem:[#allocation61_spill] sm:$0xff]  ;;  %v16921_v39 = vld [vmem:[#allocation102_spill] sm:$0xff] }
 0x44b   : > { %16915 = vst [vmem:[#allocation86_spill] sm:$0xff] %v13994_v56  ;;  %v2460_v43 = vpop.permute.xlu0 %2459  ;;  %v3043_v5 = vmul.f32 %v13500_v57, %v16918_v48  ;;  %v16919_v56 = vld [vmem:[#allocation29_spill] sm:$0xff]  ;;  %10184 = vmatprep.mubr.msk.bf16.mxu0 %vm1667_vm1, %v3196_v59  ;;  %v10816_v4 = vld [vmem:[%s11557_s20 + $0xd8] sm:$0xff]  ;;  %v3047_v16 = vmul.f32 %v13500_v57, %v16920_v22  ;;  %v3049_v35 = vmul.f32 %v13500_v57, %v16921_v39  ;;  %v3144_v60 = vmax.f32 %v3080_v2, 0.0  ;;  %v16923_v48 = vld [vmem:[#allocation310_spill] sm:$0xff] }
 0x44c   : > { %v3045_v42 = vmul.f32 %v13500_v57, %v16919_v56  ;;  %v14014_v55 = vpop.f32.mrf.mxu1  ;;  %5447 = vperm.xlu0 %10669, %v10816_v4   ;;  %v16922_v28 = vld [vmem:[#allocation32_spill] sm:$0xff]  ;;  %v14025_v56 = vadd.f32 %v3037_v37, %v13663_v13  ;;  %v14028_v59 = vadd.f32 %v3039_v33, %v13666_v18  ;;  %v3082_v22 = vadd.f32 %v13765_v27, %v2694_v23  ;;  %v10817_v2 = vld [vmem:[%s11557_s20 + $0xe8] sm:$0xff] }
 0x44d   : > { %v3051_v40 = vmul.f32 %v13500_v57, %v16922_v28  ;;  %v16924_v4 = vld [vmem:[#allocation64_spill] sm:$0xff]  ;;  %v16926_v28 = vld [vmem:[#allocation33_spill] sm:$0xff]  ;;  %v2632_v13 = vmul.f32 %v13242_v44, %v2452_v45  ;;  %v14044_v33 = vadd.f32 %v3041_v14, %v13678_v17  ;;  %v14047_v27 = vadd.f32 %v3043_v5, %v13681_v11 }
 0x44e   : > { %6287 = vperm.xlu1 %10634, %v16923_v48   ;;  %v3053_v26 = vmul.f32 %v13500_v57, %v16924_v4  ;;  %v14033_v61 = vpop.permute.xlu1 %5515  ;;  %v3055_v48 = vmul.f32 %v13500_v57, %v16926_v28  ;;  %v14050_v23 = vadd.f32 %v3045_v42, %v13684_v15  ;;  %v14052_v4 = vpop.f32.mrf.mxu1  ;;  %v14056_v28 = vadd.f32 %v3047_v16, %v13705_v9  ;;  %v16929_v5 = vld [vmem:[#allocation313_spill] sm:$0xff] }
 0x44f   : > { %16925 = vst [vmem:[#allocation89_spill] sm:$0xff] %v14033_v61  ;;  %v14040_v37 = vpop.permute.xlu0 %2467  ;;  %v14059_v45 = vadd.f32 %v3049_v35, %v13720_v19  ;;  %v14062_v18 = vadd.f32 %v3051_v40, %v13723_v25  ;;  %v16928_v17 = vmax.f32 %v13911_v41, 0.0  ;;  %v3146_v9 = vmax.f32 %v3082_v22, 0.0  ;;  %v16933_v25 = vld [vmem:[#allocation65_spill] sm:$0xff]  ;;  %v16934_v35 = vld [vmem:[#allocation118_spill] sm:$0xff] }
 0x450   : > { %5455 = vperm.xlu0 %10669, %v10817_v2   ;;  %v14070_v42 = vadd.f32 %v3053_v26, %v13738_v53  ;;  %v14075_v19 = vadd.f32 %v3055_v48, %v13741_v29  ;;  %v3057_v41 = vmul.f32 %v13500_v57, %v16933_v25  ;;  %v2696_v40 = vadd.f32 %v2632_v13, %v16934_v35  ;;  %v14088_v48 = vpop.f32.mrf.mxu1 }
 0x451   : > { %16927 = vst [vmem:[#allocation236_spill] sm:$0xff] %v14062_v18  ;;  %v3197_v11 = vpack.c.bf16 %v16928_v17, %v3144_v60  ;;  %v1635_v60 = vmax.f32 %v13823_v12, 0.0  ;;  %v2634_v29 = vmul.f32 %v13242_v44, %v2460_v43  ;;  %v10818_v17 = vld [vmem:[%s11557_s20 + $0xf8] sm:$0xff]  ;;  %v1637_v35 = vmax.f32 %v13789_v36, 0.0  ;;  %v10820_v12 = vld [vmem:[%s11557_s20 + $0x190] sm:$0xff] }
 0x452   : > { %6295 = vperm.xlu1 %10634, %v16929_v5   ;;  %16930 = vst [vmem:[#allocation79_spill] sm:$0xff] %v14070_v42  ;;  %v14072_v16 = vpop.permute.xlu1 %5523  ;;  %16932 = vst [vmem:[#allocation85_spill] sm:$0xff] %v14075_v19  ;;  %v16935_v5 = vld [vmem:[#allocation316_spill] sm:$0xff]  ;;  %v16937_v26 = vmax.f32 %v13933_v54, 0.0  ;;  %v14105_v13 = vadd.f32 %v3057_v41, %v13744_v58  ;;  %v1641_v58 = vmax.f32 %v13896_v51, 0.0  ;;  %v14122_v41 = vpop.f32.mrf.mxu1  ;;  %v16960_v19 = vld [vmem:[#allocation123_spill] sm:$0xff] }
 0x453   : > { %16931 = vst [vmem:[#allocation81_spill] sm:$0xff] %v14072_v16  ;;  %10185 = vmatmul.mubr.msk.bf16.gmra.mxu0 %vm1667_vm1, %v3197_v11  ;;  %v14082_v2 = vpop.permute.xlu0 %2475  ;;  %v1636_v11 = vmax.f32 %v13873_v46, 0.0  ;;  %v16936_v43 = vld [vmem:[#allocation120_spill] sm:$0xff]  ;;  %v1668_v46 = vsel %vm1667_vm1, %v1635_v60, -inf  ;;  %v10819_v60 = vld [vmem:[%s11557_s20 + $0x108] sm:$0xff]  ;;  %v1682_v57 = vsel %vm1667_vm1, %v1637_v35, -inf }
 0x454   : > { %5463 = vperm.xlu0 %10669, %v10818_v17   ;;  %v2698_v22 = vadd.f32 %v2634_v29, %v16936_v43  ;;  %v3198_v17 = vpack.c.bf16 %v16937_v26, %v3146_v9  ;;  %v16939_v36 = vld [vmem:[#allocation108_spill] sm:$0xff]  ;;  %v1638_v26 = vmax.f32 %v13844_v3, 0.0  ;;  %v16945_v3 = vld [vmem:[#allocation249_spill] sm:$0xff]  ;;  %v1683_v61 = vrot.slane %v1682_v57, 4 }
 0x455   : > { %v14113_v29 = vmul.f32 %v13613_v20, %v16939_v36  ;;  %v16941_v54 = vld [vmem:[#allocation36_spill] sm:$0xff]  ;;  %v1675_v43 = vsel %vm1667_vm1, %v1636_v11, -inf  ;;  %v1639_v36 = vmax.f32 %v13916_v0, 0.0  ;;  %v14135_v51 = vmul.f32 %v13613_v20, %v16945_v3  ;;  %v16949_v11 = vld [vmem:[#allocation251_spill] sm:$0xff] }
 0x456   : > { %6303 = vperm.xlu1 %10634, %v16935_v5   ;;  %v14101_v53 = vpop.permute.xlu1 %5531  ;;  %v3084_v5 = vadd.f32 %v13774_v47, %v2696_v40  ;;  %v14117_v9 = vmul.f32 %v13613_v20, %v16941_v54  ;;  %10188 = vmatprep.mubr.msk.bf16.mxu0 %vm1667_vm1, %v3198_v17  ;;  %v16943_v47 = vld [vmem:[#allocation68_spill] sm:$0xff]  ;;  %v3086_v54 = vadd.f32 %v13778_v1, %v2698_v22  ;;  %v16947_v17 = vld [vmem:[#allocation330_spill] sm:$0xff]  ;;  %v16951_v1 = vld [vmem:[#allocation253_spill] sm:$0xff]  ;;  %v1689_v39 = vsel %vm1667_vm1, %v1638_v26, -inf }
 0x457   : > { %16938 = vst [vmem:[#allocation94_spill] sm:$0xff] %v14101_v53  ;;  %v14109_v25 = vpop.permute.xlu0 %2483  ;;  %16940 = vst [vmem:[#allocation92_spill] sm:$0xff] %v14113_v29  ;;  %v14127_v40 = vmul.f32 %v13613_v20, %v16943_v47  ;;  %v1669_v47 = vrot.slane %v1668_v46, 4  ;;  %v14144_v0 = vmul.f32 %v13613_v20, %v16949_v11  ;;  %v14148_v22 = vmul.f32 %v13613_v20, %v16951_v1  ;;  %v14160_v53 = vpop.f32.mrf.mxu1  ;;  %v10821_v16 = vld [vmem:[%s11557_s20 + $0x118] sm:$0xff]  ;;  %v16958_v26 = vld [vmem:[#allocation73_spill] sm:$0xff] }
 0x458   : > { %16942 = vst [vmem:[#allocation286_spill] sm:$0xff] %v14117_v9  ;;  %5471 = vperm.xlu0 %10669, %v10819_v60   ;;  %16946 = vst [vmem:[#allocation98_spill] sm:$0xff] %v14135_v51  ;;  %v5855_v60 = vmul.f32 %v13585_v8, %v16947_v17  ;;  %v2636_v3 = vmul.f32 %v13242_v44, %v14040_v37  ;;  %v16953_v17 = vld [vmem:[#allocation255_spill] sm:$0xff]  ;;  %v1710_v11 = vsel %vm1667_vm1, %v1641_v58, -inf  ;;  %v16955_v1 = vld [vmem:[#allocation332_spill] sm:$0xff]  ;;  %v1696_v37 = vsel %vm1667_vm1, %v1639_v36, -inf }
 0x459   : > { %16944 = vst [vmem:[#allocation95_spill] sm:$0xff] %v14127_v40  ;;  %16950 = vst [vmem:[#allocation80_spill] sm:$0xff] %v14144_v0  ;;  %v14156_v35 = vmul.f32 %v13613_v20, %v16953_v17  ;;  %v10822_v0 = vld [vmem:[%s11557_s20 + $0x1a0] sm:$0xff]  ;;  %v5858_v58 = vmul.f32 %v13585_v8, %v16958_v26  ;;  %v1670_v51 = vmax.f32 %v1668_v46, %v1669_v47  ;;  %v1642_v40 = vmax.f32 %v13940_v30, 0.0  ;;  %v14184_v46 = vpop.f32.mrf.mxu1  ;;  %v10823_v47 = vld [vmem:[%s11557_s20 + $0x128] sm:$0xff] }
 0x45a   : > { %6311 = vperm.xlu1 %10634, %v10820_v12   ;;  %v14140_v14 = vpop.permute.xlu1 %5539  ;;  %16952 = vst [vmem:[#allocation83_spill] sm:$0xff] %v14148_v22  ;;  %v3148_v12 = vmax.f32 %v3084_v5, 0.0  ;;  %v5856_v5 = vmul.f32 %v13585_v8, %v16955_v1  ;;  %v3150_v22 = vmax.f32 %v3086_v54, 0.0  ;;  %v16956_v17 = vld [vmem:[#allocation121_spill] sm:$0xff]  ;;  %v1690_v9 = vrot.slane %v1689_v39, 4 }
 0x45b   : > { %16948 = vst [vmem:[#allocation238_spill] sm:$0xff] %v14140_v14  ;;  %v14152_v15 = vpop.permute.xlu0 %2491  ;;  %16954 = vst [vmem:[#allocation100_spill] sm:$0xff] %v14156_v35  ;;  %v1676_v14 = vrot.slane %v1675_v43, 4  ;;  %v14168_v35 = vadd.f32 %v5855_v60, %v16956_v17  ;;  %v1711_v1 = vrot.slane %v1710_v11, 4  ;;  %v2700_v36 = vadd.f32 %v2636_v3, %v16960_v19  ;;  %v16962_v60 = vld [vmem:[#allocation77_spill] sm:$0xff] }
 0x45c   : > { %5479 = vperm.xlu0 %10669, %v10821_v16   ;;  %v16961_v54 = vmax.f32 %v13936_v62, 0.0  ;;  %v5860_v17 = vmul.f32 %v13585_v8, %v16962_v60  ;;  %v1697_v26 = vrot.slane %v1696_v37, 4  ;;  %v2638_v30 = vmul.f32 %v13242_v44, %v14082_v2  ;;  %v16967_v2 = vld [vmem:[#allocation106_spill] sm:$0xff] }
 0x45d   : > { %16957 = vst [vmem:[#allocation101_spill] sm:$0xff] %v14168_v35  ;;  %v1677_v35 = vmax.f32 %v1675_v43, %v1676_v14  ;;  %v1684_v19 = vmax.f32 %v1682_v57, %v1683_v61  ;;  %v1640_v62 = vmax.f32 %v13959_v21, 0.0  ;;  %v10824_v14 = vld [vmem:[%s11557_s20 + $0x1b0] sm:$0xff]  ;;  %v16965_v43 = vld [vmem:[#allocation124_spill] sm:$0xff]  ;;  %v5862_v60 = vmul.f32 %v13585_v8, %v16967_v2  ;;  %v14213_v2 = vpop.f32.mrf.mxu1 }
 0x45e   : > { %6319 = vperm.xlu1 %10634, %v10822_v0   ;;  %v14173_v16 = vpop.permute.xlu1 %5547  ;;  %v3199_v0 = vpack.c.bf16 %v16961_v54, %v3148_v12  ;;  %v16964_v12 = vmax.f32 %v13945_v50, 0.0  ;;  %v14196_v54 = vadd.f32 %v5858_v58, %v16965_v43  ;;  %v1671_v21 = vrot.slane %v1670_v51, 2  ;;  %v16970_v58 = vld [vmem:[#allocation126_spill] sm:$0xff] }
 0x45f   : > { %16959 = vst [vmem:[#allocation104_spill] sm:$0xff] %v14173_v16  ;;  %v14178_v29 = vpop.permute.xlu0 %2499  ;;  %v14188_v16 = vadd.f32 %v5856_v5, %v13888_v32  ;;  %v1717_v32 = vsel %vm1667_vm1, %v1642_v40, -inf  ;;  %v16968_v5 = vld [vmem:[#allocation125_spill] sm:$0xff]  ;;  %v3088_v50 = vadd.f32 %v13782_v34, %v2700_v36  ;;  %v1678_v43 = vrot.slane %v1677_v35, 2 }
 0x460   : > { %5487 = vperm.xlu0 %10669, %v10823_v47   ;;  %10189 = vmatmul.mubr.msk.bf16.gmra.mxu0 %vm1667_vm1, %v3199_v0  ;;  %v3200_v3 = vpack.c.bf16 %v16964_v12, %v3150_v22  ;;  %16966 = vst [vmem:[#allocation289_spill] sm:$0xff] %v14196_v54  ;;  %v2702_v61 = vadd.f32 %v2638_v30, %v16968_v5  ;;  %v10825_v5 = vld [vmem:[%s11557_s20 + $0x138] sm:$0xff]  ;;  %v1703_v34 = vsel %vm1667_vm1, %v1640_v62, -inf  ;;  %v16974_v36 = vld [vmem:[#allocation129_spill] sm:$0xff]  ;;  %v10827_v54 = vld [vmem:[%s11557_s20 + $0x148] sm:$0xff] }
 0x461   : > { %16963 = vst [vmem:[#allocation107_spill] sm:$0xff] %v14188_v16  ;;  %v1691_v0 = vmax.f32 %v1689_v39, %v1690_v9  ;;  %v1712_v47 = vmax.f32 %v1710_v11, %v1711_v1  ;;  %v14209_v12 = vadd.f32 %v5860_v17, %v16970_v58  ;;  %v1698_v30 = vmax.f32 %v1696_v37, %v1697_v26  ;;  %v10826_v58 = vld [vmem:[%s11557_s20 + $0x1d8] sm:$0xff] }
 0x462   : > { %6327 = vperm.xlu1 %10634, %v10824_v14   ;;  %v14202_v57 = vpop.permute.xlu1 %5555  ;;  %10192 = vmatprep.mubr.msk.bf16.mxu0 %vm1667_vm1, %v3200_v3  ;;  %v16972_v14 = vld [vmem:[#allocation127_spill] sm:$0xff]  ;;  %v1685_v39 = vrot.slane %v1684_v19, 2  ;;  %v1718_v9 = vrot.slane %v1717_v32, 4  ;;  %v3090_v11 = vadd.f32 %v13786_v10, %v2702_v61  ;;  %v16973_v1 = vmov 1  }
 0x463   : > { %16969 = vst [vmem:[#allocation109_spill] sm:$0xff] %v14202_v57  ;;  %v14206_v22 = vpop.permute.xlu0 %2507  ;;  %16971 = vst [vmem:[#allocation113_spill] sm:$0xff] %v14209_v12  ;;  %v5864_v40 = vmul.f32 %v13585_v8, %v16972_v14  ;;  %v14220_v17 = vadd.f32 %v5862_v60, %v16974_v36  ;;  %v1645_v3 = vmax.f32 %v13978_v24, 0.0  ;;  %v1643_v37 = vmax.f32 %v13992_v31, 0.0  ;;  %v16977_v60 = vld [vmem:[#allocation131_spill] sm:$0xff]  ;;  %v14234_v31 = vpop.f32.mrf.mxu1 }
 0x464   : > { %5495 = vperm.xlu0 %10669, %v10825_v5   ;;  %v2640_v26 = vmul.f32 %v13242_v44, %v14109_v25  ;;  %v1672_v62 = vmax.f32 %v1670_v51, %v1671_v21  ;;  %v1692_v5 = vrot.slane %v1691_v0, 2  ;;  %v1713_v10 = vrot.slane %v1712_v47, 2  ;;  %v16979_v25 = vld [vmem:[#allocation142_spill] sm:$0xff] }
 0x465   : > { %16975 = vst [vmem:[#allocation240_spill] sm:$0xff] %v14220_v17  ;;  %v3152_v61 = vmax.f32 %v3088_v50, 0.0  ;;  %v14232_v36 = vadd.f32 %v5864_v40, %v16977_v60  ;;  %v1679_v24 = vmax.f32 %v1677_v35, %v1678_v43  ;;  %v1699_v17 = vrot.slane %v1698_v30, 2  ;;  %v16980_v43 = vld [vmem:[#allocation128_spill] sm:$0xff] }
 0x466   : > { %10635 = vset.pattern.permute.xlu1 %v16973_v1  ;;  %v14227_v14 = vpop.permute.xlu1 %5563  ;;  %v1704_v12 = vrot.slane %v1703_v34, 4  ;;  %v1686_v51 = vmax.f32 %v1684_v19, %v1685_v39  ;;  %v1719_v21 = vmax.f32 %v1717_v32, %v1718_v9  ;;  %v3154_v50 = vmax.f32 %v3090_v11, 0.0  ;;  %v14249_v39 = vld [vmem:[%s11557_s20 + $0x1c8] sm:$0xff] }
 0x467   : > { %5575 = vperm.xlu1 %10635, %v10826_v58   ;;  %16976 = vst [vmem:[#allocation155_spill] sm:$0xff] %v14227_v14  ;;  %v14229_v57 = vpop.permute.xlu0 %2515  ;;  %16978 = vst [vmem:[#allocation16_spill] sm:$0xff] %v14232_v36  ;;  %v5866_v14 = vmul.f32 %v13585_v8, %v16979_v25  ;;  %v1738_v16 = vsel %vm1667_vm1, %v1645_v3, -inf  ;;  %v1724_v40 = vsel %vm1667_vm1, %v1643_v37, -inf  ;;  %v1644_v35 = vmax.f32 %v14052_v4, 0.0 }
 0x468   : > { %5503 = vperm.xlu0 %10669, %v10827_v54   ;;  %v2704_v60 = vadd.f32 %v2640_v26, %v16980_v43  ;;  %v16981_v36 = vmov 2   ;;  %v1673_v42 = vrot.slane %v1672_v62, 1  ;;  %v1693_v20 = vmax.f32 %v1691_v0, %v1692_v5  ;;  %v14256_v26 = vpop.f32.mrf.mxu1  ;;  %v10829_v43 = vld [vmem:[%s11557_s20 + $0x158] sm:$0xff] }
 0x469   : > { %v1714_v25 = vmax.f32 %v1712_v47, %v1713_v10  ;;  %v16983_v19 = vmax.f32 %v13948_v49, 0.0  ;;  %v1680_v4 = vrot.slane %v1679_v24, 1  ;;  %v1700_v11 = vmax.f32 %v1698_v30, %v1699_v17  ;;  %v16986_v17 = vld [vmem:[#allocation133_spill] sm:$0xff] }
 0x46a   : > { %v14244_v54 = vpop.permute.xlu1 %5571  ;;  %v1705_v3 = vmax.f32 %v1703_v34, %v1704_v12  ;;  %v2642_v37 = vmul.f32 %v13242_v44, %v14152_v15  ;;  %v1720_v0 = vrot.slane %v1719_v21, 2  ;;  %v1739_v47 = vrot.slane %v1738_v16, 4  ;;  %v16985_v15 = vld [vmem:[#allocation130_spill] sm:$0xff] }
 0x46b   : > { %10636 = vset.pattern.permute.xlu1 %v16981_v36  ;;  %16982 = vst [vmem:[#allocation88_spill] sm:$0xff] %v14244_v54  ;;  %v3201_v32 = vpack.c.bf16 %v16983_v19, %v3152_v61  ;;  %v14252_v9 = vpop.permute.xlu0 %2523  ;;  %v1725_v49 = vrot.slane %v1724_v40, 4  ;;  %v16984_v5 = vmax.f32 %v13957_v38, 0.0  ;;  %v1646_v61 = vmax.f32 %v14014_v55, 0.0 }
 0x46c   : > { %6339 = vperm.xlu1 %10636, %v14249_v39   ;;  %5511 = vperm.xlu0 %10669, %v10829_v43   ;;  %v1731_v30 = vsel %vm1667_vm1, %v1644_v35, -inf  ;;  %v3092_v12 = vadd.f32 %v13798_v63, %v2704_v60  ;;  %v2706_v34 = vadd.f32 %v2642_v37, %v16985_v15  ;;  %v14267_v19 = vadd.f32 %v5866_v14, %v16986_v17  ;;  %v14275_v60 = vpop.f32.mrf.mxu1  ;;  %v10830_v37 = vld [vmem:[%s11557_s20 + $0x168] sm:$0xff] }
 0x46d   : > { %10193 = vmatmul.mubr.msk.bf16.gmra.mxu0 %vm1667_vm1, %v3201_v32  ;;  %v3202_v10 = vpack.c.bf16 %v16984_v5, %v3154_v50  ;;  %v1687_v43 = vrot.slane %v1686_v51, 1  ;;  %v1694_v54 = vrot.slane %v1693_v20, 1  ;;  %v1715_v8 = vrot.slane %v1714_v25, 1  ;;  %v16989_v5 = vld [vmem:[#allocation167_spill] sm:$0xff] }
 0x46e   : > { %16987 = vst [vmem:[#allocation115_spill] sm:$0xff] %v14267_v19  ;;  %v14272_v50 = vpop.permute.xlu1 %6115  ;;  %v1681_v55 = vmax.f32 %v1679_v24, %v1680_v4  ;;  %v1701_v35 = vrot.slane %v1700_v11, 1  ;;  %v1706_v32 = vrot.slane %v1705_v3, 2  ;;  %v3094_v63 = vadd.f32 %v16989_v5, %v2706_v34  ;;  %v16997_v5 = vld [vmem:[#allocation132_spill] sm:$0xff] }
 0x46f   : > { %10196 = vmatprep.mubr.msk.bf16.mxu0 %vm1667_vm1, %v3202_v10  ;;  %v14270_v38 = vpop.permute.xlu0 %2531  ;;  %16988 = vst [vmem:[#allocation117_spill] sm:$0xff] %v14272_v50  ;;  %v1674_v14 = vmax.f32 %v1672_v62, %v1673_v42  ;;  %v1721_v15 = vmax.f32 %v1719_v21, %v1720_v0  ;;  %v1740_v17 = vmax.f32 %v1738_v16, %v1739_v47  ;;  %v1732_v19 = vrot.slane %v1731_v30, 4 }
 0x470   : > { %6347 = vperm.xlu1 %10636, %v10826_v58   ;;  %5519 = vperm.xlu0 %10669, %v10830_v37   ;;  %v1726_v18 = vmax.f32 %v1724_v40, %v1725_v49  ;;  %v1745_v58 = vsel %vm1667_vm1, %v1646_v61, -inf  ;;  %v1649_v10 = vmax.f32 %v14088_v48, 0.0  ;;  %v3156_v24 = vmax.f32 %v3092_v12, 0.0 }
 0x471   : > { %v14280_v4 = vmax.f32 %v1686_v51, %v1687_v43  ;;  %v14282_v50 = vmax.f32 %v1693_v20, %v1694_v54  ;;  %v14284_v34 = vmax.f32 %v1714_v25, %v1715_v8  ;;  %v2644_v42 = vmul.f32 %v13242_v44, %v14178_v29  ;;  %v14298_v20 = vpop.f32.mrf.mxu1  ;;  %v10831_v8 = vld [vmem:[%s11557_s20 + $0x1e8] sm:$0xff]  ;;  %v10832_v54 = vld [vmem:[%s11557_s20 + $0x178] sm:$0xff] }
 0x472   : > { %v14291_v62 = vpop.permute.xlu1 %6119  ;;  %v14294_v21 = vsel %vm9269_vm2, %v1681_v55, %v1674_v14  ;;  %v14296_v48 = vmax.f32 %v1700_v11, %v1701_v35  ;;  %v1707_v51 = vmax.f32 %v1705_v3, %v1706_v32  ;;  %v3158_v40 = vmax.f32 %v3094_v63, 0.0  ;;  %v16995_v11 = vld [vmem:[#allocation217_spill] sm:$0xff] }
 0x473   : > { %16990 = vst [vmem:[#allocation119_spill] sm:$0xff] %v14280_v4  ;;  %16991 = vst [vmem:[#allocation242_spill] sm:$0xff] %v14282_v50  ;;  %v14289_v16 = vpop.permute.xlu0 %2539  ;;  %v1722_v29 = vrot.slane %v1721_v15, 1  ;;  %v1741_v25 = vrot.slane %v1740_v17, 2  ;;  %v1746_v0 = vrot.slane %v1745_v58, 4  ;;  %v1733_v47 = vmax.f32 %v1731_v30, %v1732_v19 }
 0x474   : > { %16992 = vst [vmem:[#allocation292_spill] sm:$0xff] %v14284_v34  ;;  %10637 = vset.pattern.permute.xlu1 %v16973_v1  ;;  %16993 = vst [vmem:[#allocation244_spill] sm:$0xff] %v14294_v21  ;;  %5527 = vperm.xlu0 %10669, %v10832_v54   ;;  %v1727_v49 = vrot.slane %v1726_v18, 2  ;;  %v1766_v61 = vsel %vm1667_vm1, %v1649_v10, -inf  ;;  %v1647_v12 = vmax.f32 %v14122_v41, 0.0  ;;  %v16996_v43 = vmax.f32 %v16995_v11, 0.0  ;;  %v14315_v41 = vpop.f32.mrf.mxu1 }
 0x475   : > { %16994 = vst [vmem:[#allocation247_spill] sm:$0xff] %v14296_v48  ;;  %5583 = vperm.xlu1 %10637, %v10831_v8   ;;  %v1650_v55 = vmax.f32 %v14160_v53, 0.0  ;;  %v1648_v35 = vmax.f32 %v14184_v46, 0.0  ;;  %v1653_v32 = vmax.f32 %v14213_v2, 0.0  ;;  %v2708_v63 = vadd.f32 %v2644_v42, %v16997_v5  ;;  %v10833_v10 = vld [vmem:[%s11557_s20 + $0x1f0] sm:$0xff]  ;;  %v10834_v11 = vld [vmem:[%s11557_s20 + $0x188] sm:$0xff] }
 0x476   : > { %v3203_v3 = vpack.c.bf16 %v16996_v43, %v3156_v24  ;;  %v14312_v30 = vpop.permute.xlu1 %6127  ;;  %v1708_v19 = vrot.slane %v1707_v51, 1  ;;  %v1651_v14 = vmax.f32 %v14234_v31, 0.0  ;;  %v2646_v53 = vmul.f32 %v13242_v44, %v14206_v22  ;;  %v10685_v31 = vld [vmem:[%s16080_s8 + $0x18] sm:$0xff]  }
 0x477   : > { %v14310_v37 = vpop.permute.xlu0 %2547  ;;  %16998 = vst [vmem:[#allocation6_spill] sm:$0xff] %v14312_v30  ;;  %v16999_v46 = vmax.f32 %v13997_v7, 0.0  ;;  %v14323_v24 = vmax.f32 %v1721_v15, %v1722_v29  ;;  %v14325_v42 = vmax.f32 %v1740_v17, %v1741_v25  ;;  %v1747_v8 = vmax.f32 %v1745_v58, %v1746_v0  ;;  %v10686_v15 = vld [vmem:[%s16080_s8 + $0x10] sm:$0xff]   ;;  %v17001_v25 = vld [vmem:[#allocation181_spill] sm:$0xff]  ;;  %10228 = vmatprep.subr.bf16.mxu1 %v10685_v31 }
 0x478   : > { %10197 = vmatmul.mubr.msk.bf16.gmra.mxu0 %vm1667_vm1, %v3203_v3  ;;  %v1734_v54 = vrot.slane %v1733_v47, 2  ;;  %5535 = vperm.xlu0 %10669, %v10834_v11   ;;  %v14331_v43 = vmax.f32 %v1726_v18, %v1727_v49  ;;  %v1767_v22 = vrot.slane %v1766_v61, 4  ;;  %v1752_v7 = vsel %vm1667_vm1, %v1647_v12, -inf  ;;  %v17003_v3 = vld [vmem:[#allocation134_spill] sm:$0xff]  ;;  %v10835_v11 = vld [vmem:[%s11557_s20 + $0x198] sm:$0xff] }
 0x479   : > { %v3204_v2 = vpack.c.bf16 %v16999_v46, %v3158_v40  ;;  %5587 = vperm.xlu1 %10637, %v10833_v10   ;;  %17000 = vst [vmem:[#allocation7_spill] sm:$0xff] %v14323_v24  ;;  %v1652_v40 = vmax.f32 %v14275_v60, 0.0  ;;  %v1773_v17 = vsel %vm1667_vm1, %v1650_v55, -inf  ;;  %v1759_v58 = vsel %vm1667_vm1, %v1648_v35, -inf  ;;  %v14350_v55 = vpop.f32.mrf.mxu1  ;;  %10229 = vmatpush3.bf16.msra.mxu1 %v10685_v31 }
 0x47a   : > { %v1794_v29 = vsel %vm1667_vm1, %v1653_v32, -inf  ;;  %v3096_v18 = vadd.f32 %v17001_v25, %v2708_v63  ;;  %v14345_v49 = vpop.permute.xlu1 %6135  ;;  %v1780_v60 = vsel %vm1667_vm1, %v1651_v14, -inf  ;;  %v1654_v12 = vmax.f32 %v14256_v26, 0.0  ;;  %v14359_v14 = vld [vmem:[%s11557_s20 + $0x1e0] sm:$0xff]  ;;  %10230 = vmatprep.subr.bf16.mxu1 %v10686_v15 }
 0x47b   : > { %10200 = vmatprep.mubr.msk.bf16.mxu0 %vm1667_vm1, %v3204_v2  ;;  %v14343_v0 = vpop.permute.xlu0 %2555  ;;  %17002 = vst [vmem:[#allocation97_spill] sm:$0xff] %v14345_v49  ;;  %v2710_v5 = vadd.f32 %v2646_v53, %v17003_v3  ;;  %v2648_v35 = vmul.f32 %v13242_v44, %v14229_v57  ;;  %v14355_v32 = vmax.f32 %v1707_v51, %v1708_v19  ;;  %v1748_v63 = vrot.slane %v1747_v8, 2  ;;  %v14371_v34 = vpop.f32.mrf.mxu1 }
 0x47c   : > { %v1735_v46 = vmax.f32 %v1733_v47, %v1734_v54  ;;  %v1753_v2 = vrot.slane %v1752_v7, 4  ;;  %5543 = vperm.xlu0 %10669, %v10835_v11   ;;  %v1768_v26 = vmax.f32 %v1766_v61, %v1767_v22  ;;  %v1774_v53 = vrot.slane %v1773_v17, 4  ;;  %v17006_v61 = vld [vmem:[#allocation183_spill] sm:$0xff] }
 0x47d   : > { %10638 = vset.pattern.permute.xlu1 %v16981_v36  ;;  %17004 = vst [vmem:[#allocation8_spill] sm:$0xff] %v14355_v32  ;;  %v1760_v25 = vrot.slane %v1759_v58, 4  ;;  %v1787_v3 = vsel %vm1667_vm1, %v1652_v40, -inf  ;;  %v1743_v57 = vrot.slane %v14325_v42, 1  ;;  %v1795_v51 = vrot.slane %v1794_v29, 4  ;;  %v17007_v40 = vld [vmem:[#allocation135_spill] sm:$0xff]  ;;  %10231 = vmatpush3.bf16.msra.mxu1 %v10686_v15 }
 0x47e   : > { %6351 = vperm.xlu1 %10638, %v14359_v14   ;;  %v1781_v19 = vrot.slane %v1780_v60, 4  ;;  %v3160_v31 = vmax.f32 %v3096_v18, 0.0  ;;  %v14366_v54 = vpop.permute.xlu1 %6143  ;;  %v1729_v11 = vrot.slane %v14331_v43, 1  ;;  %v1801_v24 = vsel %vm1667_vm1, %v1654_v12, -inf  ;;  %v10837_v18 = vld [vmem:[%s11557_s20 + $0x1a8] sm:$0xff]  ;;  %v10688_v15 = vld [vmem:[%s16080_s8] sm:$0xff]  }
 0x47f   : > { %v14364_v47 = vpop.permute.xlu0 %2563  ;;  %17005 = vst [vmem:[#allocation39_spill] sm:$0xff] %v14366_v54  ;;  %v3098_v22 = vadd.f32 %v17006_v61, %v2710_v5  ;;  %v2712_v32 = vadd.f32 %v2648_v35, %v17007_v40  ;;  %v1749_v48 = vmax.f32 %v1747_v8, %v1748_v63  ;;  %v1736_v49 = vrot.slane %v1735_v46, 1  ;;  %v10687_v54 = vld [vmem:[%s16080_s8 + $0x8] sm:$0xff]   ;;  %v14403_v40 = vld [vmem:[%s11557_s20 + $0x1f8] sm:$0xff] }
 0x480   : > { %v1754_v50 = vmax.f32 %v1752_v7, %v1753_v2  ;;  %v1788_v4 = vrot.slane %v1787_v3, 4  ;;  %5551 = vperm.xlu0 %10669, %v10837_v18   ;;  %v1769_v21 = vrot.slane %v1768_v26, 2  ;;  %v1775_v12 = vmax.f32 %v1773_v17, %v1774_v53  ;;  %10232 = vmatprep.subr.bf16.mxu1 %v10687_v54 }
 0x481   : > { %v1761_v30 = vmax.f32 %v1759_v58, %v1760_v25  ;;  %v1657_v5 = vmax.f32 %v14298_v20, 0.0  ;;  %v1796_v8 = vmax.f32 %v1794_v29, %v1795_v51  ;;  %v1782_v35 = vmax.f32 %v1780_v60, %v1781_v19  ;;  %v17009_v58 = vld [vmem:[#allocation185_spill] sm:$0xff]  ;;  %v14392_v25 = vpop.f32.mrf.mxu1  ;;  %10233 = vmatpush3.bf16.msra.mxu1 %v10687_v54 }
 0x482   : > { %6359 = vperm.xlu1 %10638, %v10833_v10   ;;  %v1802_v7 = vrot.slane %v1801_v24, 4  ;;  %v17008_v63 = vmax.f32 %v14000_v52, 0.0  ;;  %v14386_v61 = vpop.permute.xlu1 %6151  ;;  %v14389_v17 = vmax.f32 %v14325_v42, %v1743_v57  ;;  %v3162_v20 = vmax.f32 %v3098_v22, 0.0  ;;  %10234 = vmatprep.subr.bf16.mxu1 %v10688_v15 }
 0x483   : > { %v14384_v2 = vpop.permute.xlu0 %2571  ;;  %v3100_v53 = vadd.f32 %v17009_v58, %v2712_v32  ;;  %v2650_v29 = vmul.f32 %v13242_v44, %v14252_v9  ;;  %v1730_v52 = vmax.f32 %v14331_v43, %v1729_v11  ;;  %v1750_v60 = vrot.slane %v1749_v48, 1 }
 0x484   : > { %v3205_v10 = vpack.c.bf16 %v17008_v63, %v3160_v31  ;;  %v1755_v51 = vrot.slane %v1754_v50, 2  ;;  %v1789_v19 = vmax.f32 %v1787_v3, %v1788_v4  ;;  %v10838_v31 = vld [vmem:[%s11557_s20 + $0x1b8] sm:$0xff]  ;;  %v1737_v42 = vmax.f32 %v1735_v46, %v1736_v49  ;;  %v14411_v46 = vpop.f32.mrf.mxu1 }
 0x485   : > { %5559 = vperm.xlu0 %10669, %v10838_v31   ;;  %v14399_v57 = vmax.f32 %v1768_v26, %v1769_v21  ;;  %v1776_v22 = vrot.slane %v1775_v12, 2  ;;  %v1822_v32 = vsel %vm1667_vm1, %v1657_v5, -inf  ;;  %v1762_v9 = vrot.slane %v1761_v30, 2  ;;  %v17011_v26 = vld [vmem:[#allocation136_spill] sm:$0xff]  ;;  %10235 = vmatpush3.bf16.msra.mxu1 %v10688_v15 }
 0x486   : > { %10201 = vmatmul.mubr.msk.bf16.gmra.mxu0 %vm1667_vm1, %v3205_v10  ;;  %6363 = vperm.xlu1 %10638, %v14403_v40   ;;  %v1797_v43 = vrot.slane %v1796_v8, 2  ;;  %v1783_v54 = vrot.slane %v1782_v35, 2  ;;  %v1803_v11 = vmax.f32 %v1801_v24, %v1802_v7  ;;  %v14408_v3 = vpop.permute.xlu1 %6159  ;;  %v1655_v49 = vmax.f32 %v14315_v41, 0.0 }
 0x487   : > { %v14406_v4 = vpop.permute.xlu0 %2579  ;;  %17010 = vst [vmem:[#allocation70_spill] sm:$0xff] %v14408_v3  ;;  %v3164_v21 = vmax.f32 %v3100_v53, 0.0  ;;  %v2714_v18 = vadd.f32 %v2650_v29, %v17011_v26  ;;  %v17012_v5 = vmax.f32 %v14003_v6, 0.0  ;;  %v1756_v10 = vmax.f32 %v1754_v50, %v1755_v51 }
 0x488   : > { %v1790_v58 = vrot.slane %v1789_v19, 2  ;;  %v1823_v31 = vrot.slane %v1822_v32, 4  ;;  %v2652_v24 = vmul.f32 %v13242_v44, %v14270_v38  ;;  %v14420_v7 = vmax.f32 %v1749_v48, %v1750_v60  ;;  %v10840_v38 = vld [vmem:[%s11557_s20 + $0x208] sm:$0xff] }
 0x489   : > { %v3206_v63 = vpack.c.bf16 %v17012_v5, %v3162_v20  ;;  %5567 = vperm.xlu0 %10669, %v14249_v39   ;;  %v14423_v53 = vsel %vm9269_vm2, %v1737_v42, %v1730_v52  ;;  %v1777_v29 = vmax.f32 %v1775_v12, %v1776_v22  ;;  %v1763_v6 = vmax.f32 %v1761_v30, %v1762_v9  ;;  %v17013_v20 = vld [vmem:[#allocation137_spill] sm:$0xff]  ;;  %v17015_v60 = vld [vmem:[#allocation246_spill] sm:$0xff]  ;;  %v14435_v42 = vpop.f32.mrf.mxu1 }
 0x48a   : > { %10639 = vset.pattern.permute.xlu1 %v16973_v1  ;;  %v1798_v50 = vmax.f32 %v1796_v8, %v1797_v43  ;;  %v1784_v15 = vmax.f32 %v1782_v35, %v1783_v54  ;;  %v2716_v51 = vadd.f32 %v2652_v24, %v17013_v20  ;;  %v14431_v26 = vpop.permute.xlu1 %6167  ;;  %v1804_v48 = vrot.slane %v1803_v11, 2 }
 0x48b   : > { %10204 = vmatprep.mubr.msk.bf16.mxu0 %vm1667_vm1, %v3206_v63  ;;  %5599 = vperm.xlu1 %10639, %v10840_v38   ;;  %v14429_v39 = vpop.permute.xlu0 %2587  ;;  %17014 = vst [vmem:[#allocation74_spill] sm:$0xff] %v14431_v26  ;;  %v1808_v52 = vsel %vm1667_vm1, %v1655_v49, -inf  ;;  %v3102_v12 = vadd.f32 %v17015_v60, %v2714_v18  ;;  %v17016_v22 = vmax.f32 %v14025_v56, 0.0  ;;  %v1771_v8 = vrot.slane %v14399_v57, 1  ;;  %v17017_v49 = vld [vmem:[#allocation189_spill] sm:$0xff]  ;;  %v10841_v38 = vld [vmem:[%s11557_s20 + $0x210] sm:$0xff] }
 0x48c   : > { %v1757_v35 = vrot.slane %v1756_v10, 1  ;;  %v1791_v9 = vmax.f32 %v1789_v19, %v1790_v58  ;;  %v1824_v43 = vmax.f32 %v1822_v32, %v1823_v31  ;;  %v1658_v54 = vmax.f32 %v14350_v55, 0.0  ;;  %v14452_v58 = vpop.f32.mrf.mxu1  ;;  %v17019_v31 = vld [vmem:[#allocation138_spill] sm:$0xff] }
 0x48d   : > { %v3207_v30 = vpack.c.bf16 %v17016_v22, %v3164_v21  ;;  %5579 = vperm.xlu0 %10669, %v14359_v14   ;;  %v1656_v5 = vmax.f32 %v14371_v34, 0.0  ;;  %v3104_v63 = vadd.f32 %v17017_v49, %v2716_v51  ;;  %v2654_v56 = vmul.f32 %v13242_v44, %v14289_v16 }
 0x48e   : > { %v1778_v18 = vrot.slane %v1777_v29, 1  ;;  %v1764_v21 = vrot.slane %v1763_v6, 1  ;;  %v1799_v24 = vrot.slane %v1798_v50, 1  ;;  %v1809_v20 = vrot.slane %v1808_v52, 4  ;;  %v14450_v14 = vpop.permute.xlu1 %6175 }
 0x48f   : > { %10205 = vmatmul.mubr.msk.bf16.gmra.mxu0 %vm1667_vm1, %v3207_v30  ;;  %5603 = vperm.xlu1 %10639, %v10841_v38   ;;  %v14448_v19 = vpop.permute.xlu0 %2595  ;;  %17018 = vst [vmem:[#allocation295_spill] sm:$0xff] %v14450_v14  ;;  %v1785_v55 = vrot.slane %v1784_v15, 1  ;;  %v1805_v32 = vmax.f32 %v1803_v11, %v1804_v48  ;;  %v3166_v34 = vmax.f32 %v3102_v12, 0.0  ;;  %v2718_v51 = vadd.f32 %v2654_v56, %v17019_v31  ;;  %v17020_v48 = vld [vmem:[#allocation112_spill] sm:$0xff] }
 0x490   : > { %v14456_v60 = vmax.f32 %v14399_v57, %v1771_v8  ;;  %v14458_v16 = vmax.f32 %v1756_v10, %v1757_v35  ;;  %v1792_v22 = vrot.slane %v1791_v9, 1  ;;  %v1825_v30 = vrot.slane %v1824_v43, 2 }
 0x491   : > { %5591 = vperm.xlu0 %10669, %v14403_v40   ;;  %v1829_v49 = vsel %vm1667_vm1, %v1658_v54, -inf  ;;  %v1815_v41 = vsel %vm1667_vm1, %v1656_v5, -inf  ;;  %v3168_v11 = vmax.f32 %v3104_v63, 0.0  ;;  %v3106_v12 = vadd.f32 %v17020_v48, %v2718_v51  ;;  %v14476_v63 = vpop.f32.mrf.mxu1  ;;  %v17024_v48 = vld [vmem:[#allocation140_spill] sm:$0xff] }
 0x492   : > { %v14464_v14 = vmax.f32 %v1777_v29, %v1778_v18  ;;  %v14466_v56 = vmax.f32 %v1763_v6, %v1764_v21  ;;  %v1810_v57 = vmax.f32 %v1808_v52, %v1809_v20  ;;  %v1661_v10 = vmax.f32 %v14392_v25, 0.0  ;;  %v14472_v40 = vpop.permute.xlu1 %6183  ;;  %v10842_v6 = vld [vmem:[%s11557_s20 + $0x200] sm:$0xff] }
 0x493   : > { %10640 = vset.pattern.permute.xlu1 %v16981_v36  ;;  %v14470_v8 = vpop.permute.xlu0 %5339  ;;  %17021 = vst [vmem:[#allocation5_spill] sm:$0xff] %v14472_v40  ;;  %v14474_v35 = vmax.f32 %v1798_v50, %v1799_v24  ;;  %v1786_v54 = vmax.f32 %v1784_v15, %v1785_v55  ;;  %v1806_v5 = vrot.slane %v1805_v32, 1  ;;  %v17022_v29 = vmax.f32 %v14028_v59, 0.0 }
 0x494   : > { %6367 = vperm.xlu1 %10640, %v10842_v6   ;;  %v1830_v52 = vrot.slane %v1829_v49, 4  ;;  %v1816_v21 = vrot.slane %v1815_v41, 4  ;;  %v3170_v25 = vmax.f32 %v3106_v12, 0.0  ;;  %v2656_v20 = vmul.f32 %v13242_v44, %v14310_v37 }
 0x495   : > { %v3208_v18 = vpack.c.bf16 %v17022_v29, %v3166_v34  ;;  %5595 = vperm.xlu0 %10669, %v10842_v6   ;;  %v1793_v31 = vmax.f32 %v1791_v9, %v1792_v22  ;;  %v14483_v51 = vmax.f32 %v1824_v43, %v1825_v30  ;;  %v17023_v50 = vmax.f32 %v14044_v33, 0.0  ;;  %v14501_v30 = vpop.f32.mrf.mxu1  ;;  %v17027_v29 = vld [vmem:[#allocation191_spill] sm:$0xff] }
 0x496   : > { %v2658_v59 = vmul.f32 %v13242_v44, %v14343_v0  ;;  %v1811_v24 = vrot.slane %v1810_v57, 2  ;;  %v1850_v55 = vsel %vm1667_vm1, %v1661_v10, -inf  ;;  %v1659_v34 = vmax.f32 %v14411_v46, 0.0  ;;  %v14495_v9 = vpop.permute.xlu1 %6191  ;;  %v17026_v0 = vld [vmem:[#allocation141_spill] sm:$0xff] }
 0x497   : > { %10208 = vmatprep.mubr.msk.bf16.mxu0 %vm1667_vm1, %v3208_v18  ;;  %v3209_v15 = vpack.c.bf16 %v17023_v50, %v3168_v11  ;;  %v2720_v37 = vadd.f32 %v2656_v20, %v17024_v48  ;;  %v14493_v12 = vpop.permute.xlu0 %5351  ;;  %17025 = vst [vmem:[#allocation40_spill] sm:$0xff] %v14495_v9  ;;  %v14497_v43 = vmax.f32 %v1805_v32, %v1806_v5  ;;  %v1662_v33 = vmax.f32 %v14435_v42, 0.0  ;;  %v10843_v32 = vld [vmem:[%s11557_s20 + $0x218] sm:$0xff]  ;;  %v17029_v50 = vld [vmem:[#allocation193_spill] sm:$0xff] }
 0x498   : > { %v1660_v22 = vmax.f32 %v14452_v58, 0.0  ;;  %v2722_v11 = vadd.f32 %v2658_v59, %v17026_v0  ;;  %6375 = vperm.xlu1 %10640, %v10841_v38   ;;  %v1831_v46 = vmax.f32 %v1829_v49, %v1830_v52  ;;  %v1817_v10 = vmax.f32 %v1815_v41, %v1816_v21 }
 0x499   : > { %10209 = vmatmul.mubr.msk.bf16.gmra.mxu0 %vm1667_vm1, %v3209_v15  ;;  %v3108_v18 = vadd.f32 %v17027_v29, %v2720_v37  ;;  %v17028_v6 = vmax.f32 %v14047_v27, 0.0  ;;  %5607 = vperm.xlu0 %10669, %v10843_v32   ;;  %v14510_v42 = vsel %vm9269_vm2, %v1793_v31, %v1786_v54  ;;  %v1851_v5 = vrot.slane %v1850_v55, 4  ;;  %v17033_v29 = vld [vmem:[#allocation144_spill] sm:$0xff] }
 0x49a   : > { %v3110_v15 = vadd.f32 %v17029_v50, %v2722_v11  ;;  %v14514_v48 = vmax.f32 %v1810_v57, %v1811_v24  ;;  %v1836_v38 = vsel %vm1667_vm1, %v1659_v34, -inf  ;;  %v2660_v27 = vmul.f32 %v13242_v44, %v14364_v47  ;;  %v14522_v54 = vpop.permute.xlu1 %6199  ;;  %v17031_v34 = vld [vmem:[#allocation143_spill] sm:$0xff]  ;;  %v14534_v11 = vld [vmem:[%s11557_s20 + $0x220] sm:$0xff] }
 0x49b   : > { %v3210_v20 = vpack.c.bf16 %v17028_v6, %v3170_v25  ;;  %v3172_v41 = vmax.f32 %v3108_v18, 0.0  ;;  %v14520_v49 = vpop.permute.xlu0 %5359  ;;  %17030 = vst [vmem:[#allocation72_spill] sm:$0xff] %v14522_v54  ;;  %v1857_v52 = vsel %vm1667_vm1, %v1662_v33, -inf  ;;  %v1843_v21 = vsel %vm1667_vm1, %v1660_v22, -inf  ;;  %v14526_v25 = vpop.f32.mrf.mxu1  ;;  %v17035_v50 = vld [vmem:[#allocation195_spill] sm:$0xff] }
 0x49c   : > { %v3174_v57 = vmax.f32 %v3110_v15, 0.0  ;;  %v2662_v31 = vmul.f32 %v13242_v44, %v14384_v2  ;;  %6379 = vperm.xlu1 %10640, %v10843_v32   ;;  %v1832_v59 = vrot.slane %v1831_v46, 2  ;;  %v1818_v24 = vrot.slane %v1817_v10, 2 }
 0x49d   : > { %10212 = vmatprep.mubr.msk.bf16.mxu0 %vm1667_vm1, %v3210_v20  ;;  %v2724_v37 = vadd.f32 %v2660_v27, %v17031_v34  ;;  %v17032_v47 = vmax.f32 %v14050_v23, 0.0  ;;  %5611 = vperm.xlu0 %10669, %v14534_v11   ;;  %v1852_v33 = vmax.f32 %v1850_v55, %v1851_v5  ;;  %v1837_v22 = vrot.slane %v1836_v38, 4  ;;  %v1623_v5 = vpop.f32.mrf.mxu1 }
 0x49e   : > { %v2726_v18 = vadd.f32 %v2662_v31, %v17033_v29  ;;  %v17034_v6 = vmax.f32 %v14056_v28, 0.0  ;;  %v1858_v2 = vrot.slane %v1857_v52, 4  ;;  %v1844_v32 = vrot.slane %v1843_v21, 4  ;;  %v17037_v28 = vld [vmem:[#allocation197_spill] sm:$0xff] }
 0x49f   : > { %v3211_v0 = vpack.c.bf16 %v17032_v47, %v3172_v41  ;;  %v3112_v15 = vadd.f32 %v17035_v50, %v2724_v37  ;;  %v2664_v27 = vmul.f32 %v13242_v44, %v14406_v4  ;;  %v14543_v23 = vpop.permute.xlu0 %5367  ;;  %v14545_v41 = vpop.permute.xlu1 %6207  ;;  %v1813_v34 = vrot.slane %v14514_v48, 1  ;;  %v17038_v29 = vld [vmem:[#allocation145_spill] sm:$0xff] }
 0x4a0   : > { %v3212_v20 = vpack.c.bf16 %v17034_v6, %v3174_v57  ;;  %17036 = vst [vmem:[#allocation9_spill] sm:$0xff] %v14545_v41  ;;  %v1665_v55 = vmax.f32 %v14476_v63, 0.0  ;;  %v3114_v57 = vadd.f32 %v17037_v28, %v2726_v18  ;;  %v2666_v31 = vmul.f32 %v13242_v44, %v14429_v39  ;;  %10641 = vset.pattern.permute.xlu1 %v16973_v1  ;;  %v10845_v18 = vld [vmem:[%s11557_s20 + $0x228] sm:$0xff]  ;;  %v14562_v28 = vld [vmem:[%s11557_s20 + $0x238] sm:$0xff] }
 0x4a1   : > { %10213 = vmatmul.mubr.msk.bf16.gmra.mxu0 %vm1667_vm1, %v3211_v0  ;;  %v14553_v37 = vmax.f32 %v1831_v46, %v1832_v59  ;;  %v1663_v4 = vmax.f32 %v14501_v30, 0.0  ;;  %v3176_v47 = vmax.f32 %v3112_v15, 0.0  ;;  %v2728_v6 = vadd.f32 %v2664_v27, %v17038_v29  ;;  %v17039_v0 = vld [vmem:[#allocation147_spill] sm:$0xff]  ;;  %5615 = vperm.xlu1 %10641, %v10845_v18  }
 0x4a2   : > { %10216 = vmatprep.mubr.msk.bf16.mxu0 %vm1667_vm1, %v3212_v20  ;;  %v1853_v63 = vrot.slane %v1852_v33, 2  ;;  %v1838_v50 = vmax.f32 %v1836_v38, %v1837_v22  ;;  %v3178_v58 = vmax.f32 %v3114_v57, 0.0  ;;  %v2730_v41 = vadd.f32 %v2666_v31, %v17039_v0  ;;  %5623 = vperm.xlu0 %10669, %v14562_v28   ;;  %v17041_v22 = vld [vmem:[#allocation199_spill] sm:$0xff] }
 0x4a3   : > { %v14565_v39 = vmax.f32 %v1817_v10, %v1818_v24  ;;  %v1859_v30 = vmax.f32 %v1857_v52, %v1858_v2  ;;  %v1845_v46 = vmax.f32 %v1843_v21, %v1844_v32  ;;  %v1664_v59 = vmax.f32 %v1623_v5, 0.0  ;;  %v14567_v20 = vpop.permute.xlu0 %5375  ;;  %v14569_v15 = vpop.permute.xlu1 %6215  ;;  %v17043_v21 = vld [vmem:[#allocation201_spill] sm:$0xff]  ;;  %v17044_v2 = vld [vmem:[#allocation236_spill] sm:$0xff]  ;;  %v17046_v29 = vld [vmem:[#allocation171_spill] sm:$0xff] }
 0x4a4   : > { %17040 = vst [vmem:[#allocation10_spill] sm:$0xff] %v14569_v15  ;;  %v1878_v38 = vsel %vm1667_vm1, %v1665_v55, -inf  ;;  %v3116_v27 = vadd.f32 %v17041_v22, %v2728_v6  ;;  %v17042_v57 = vmax.f32 %v14059_v45, 0.0  ;;  %v2668_v10 = vmul.f32 %v13242_v44, %v14448_v19  ;;  %v10847_v19 = vld [vmem:[%s11557_s20 + $0x230] sm:$0xff] }
 0x4a5   : > { %v1864_v52 = vsel %vm1667_vm1, %v1663_v4, -inf  ;;  %v3118_v24 = vadd.f32 %v17043_v21, %v2730_v41  ;;  %v17045_v32 = vmax.f32 %v17044_v2, 0.0  ;;  %v5854_v0 = vmul.f32 %v17046_v29, %v14470_v8  ;;  %5619 = vperm.xlu1 %10641, %v10847_v19   ;;  %v14593_v4 = vld [vmem:[%s11557_s20 + $0x240] sm:$0xff] }
 0x4a6   : > { %v3213_v31 = vpack.c.bf16 %v17042_v57, %v3176_v47  ;;  %v17047_v55 = vrot.slane %v14483_v51, 1  ;;  %v14588_v45 = vmax.f32 %v1852_v33, %v1853_v63  ;;  %v1839_v47 = vrot.slane %v1838_v50, 2  ;;  %5627 = vperm.xlu0 %10669, %v14593_v4   ;;  %v17049_v57 = vld [vmem:[#allocation149_spill] sm:$0xff] }
 0x4a7   : > { %v3214_v5 = vpack.c.bf16 %v17045_v32, %v3178_v58  ;;  %v1666_v44 = vmax.f32 %v14526_v25, 0.0  ;;  %v14597_v58 = vmax.f32 %v14514_v48, %v1813_v34  ;;  %v1846_v8 = vrot.slane %v1845_v46, 2  ;;  %v14602_v33 = vpop.permute.xlu1 %6223 }
 0x4a8   : > { %v14586_v6 = vmax.f32 %v14483_v51, %v17047_v55  ;;  %v1879_v41 = vrot.slane %v1878_v38, 4  ;;  %v1871_v18 = vsel %vm1667_vm1, %v1664_v59, -inf  ;;  %v14600_v51 = vpop.permute.xlu0 %5383  ;;  %17048 = vst [vmem:[#allocation37_spill] sm:$0xff] %v14602_v33  ;;  %v1860_v63 = vrot.slane %v1859_v30, 2  ;;  %v17050_v59 = vld [vmem:[#allocation230_spill] sm:$0xff] }
 0x4a9   : > { %v1865_v25 = vrot.slane %v1864_v52, 4  ;;  %v3180_v22 = vmax.f32 %v3116_v27, 0.0  ;;  %10217 = vmatmul.mubr.msk.bf16.gmra.mxu0 %vm1667_vm1, %v3213_v31  ;;  %v2732_v21 = vadd.f32 %v2668_v10, %v17049_v57  ;;  %v1834_v2 = vrot.slane %v14553_v37, 1  ;;  %10642 = vset.pattern.permute.xlu1 %v16981_v36  ;;  %v14614_v27 = vld [vmem:[%s11557_s20 + $0x258] sm:$0xff]  ;;  %v17052_v10 = vld [vmem:[#allocation117_spill] sm:$0xff]  ;;  %v17053_v57 = vld [vmem:[#allocation175_spill] sm:$0xff] }
 0x4aa   : > { %v1820_v48 = vrot.slane %v14565_v39, 1  ;;  %v3182_v34 = vmax.f32 %v3118_v24, 0.0  ;;  %10220 = vmatprep.mubr.msk.bf16.mxu0 %vm1667_vm1, %v3214_v5  ;;  %v5982_v32 = vadd.f32 %v5854_v0, %v17050_v59  ;;  %v1855_v55 = vrot.slane %v14588_v45, 1  ;;  %17051 = vst [vmem:[#allocation41_spill] sm:$0xff] %v14614_v27  ;;  %5639 = vperm.xlu0 %10669, %v14614_v27   ;;  %v17055_v59 = vld [vmem:[#allocation203_spill] sm:$0xff] }
 0x4ab   : > { %v1840_v33 = vmax.f32 %v1838_v50, %v1839_v47  ;;  %v1885_v15 = vsel %vm1667_vm1, %v1666_v44, -inf  ;;  %v1872_v54 = vrot.slane %v1871_v18, 4  ;;  %v1847_v31 = vmax.f32 %v1845_v46, %v1846_v8  ;;  %6383 = vperm.xlu1 %10642, %v14534_v11   ;;  %v14624_v0 = vpop.permute.xlu1 %6231  ;;  %v17056_v46 = vld [vmem:[#allocation79_spill] sm:$0xff] }
 0x4ac   : > { %v6627_v24 = vmul.f32 %v17053_v57, %v17052_v10  ;;  %v1880_v9 = vmax.f32 %v1878_v38, %v1879_v41  ;;  %v5857_v5 = vmul.f32 %v17046_v29, %v14493_v12  ;;  %v14622_v50 = vpop.permute.xlu0 %5391  ;;  %17054 = vst [vmem:[#allocation42_spill] sm:$0xff] %v14624_v0  ;;  %v1861_v47 = vmax.f32 %v1859_v30, %v1860_v63  ;;  %v17058_v41 = vld [vmem:[#allocation92_spill] sm:$0xff]  ;;  %v17059_v12 = vld [vmem:[#allocation85_spill] sm:$0xff] }
 0x4ad   : > { %v1866_v44 = vmax.f32 %v1864_v52, %v1865_v25  ;;  %v3120_v40 = vadd.f32 %v17055_v59, %v2732_v21  ;;  %v17057_v8 = vmax.f32 %v17056_v46, 0.0  ;;  %v1886_v38 = vrot.slane %v1885_v15, 4  ;;  %v14640_v25 = vld [vmem:[%s11557_s20 + $0x260] sm:$0xff] }
 0x4ae   : > { %v6754_v10 = vadd.f32 %v17058_v41, %v5982_v32  ;;  %v17060_v27 = vmax.f32 %v17059_v12, 0.0  ;;  %v5859_v3 = vmul.f32 %v17046_v29, %v14520_v49  ;;  %v14635_v0 = vmax.f32 %v14553_v37, %v1834_v2  ;;  %5643 = vperm.xlu0 %10669, %v14640_v25   ;;  %v17061_v21 = vld [vmem:[#allocation101_spill] sm:$0xff]  ;;  %v17064_v12 = vld [vmem:[#allocation107_spill] sm:$0xff] }
 0x4af   : > { %v3215_v26 = vpack.c.bf16 %v17057_v8, %v3180_v22  ;;  %v1841_v30 = vrot.slane %v1840_v33, 1  ;;  %v6628_v52 = vmul.f32 %v17053_v57, %v14291_v62  ;;  %v1873_v63 = vmax.f32 %v1871_v18, %v1872_v54  ;;  %6391 = vperm.xlu1 %10642, %v10847_v19   ;;  %v14647_v37 = vpop.permute.xlu1 %6239  ;;  %v17063_v46 = vld [vmem:[#allocation209_spill] sm:$0xff] }
 0x4b0   : > { %v3216_v11 = vpack.c.bf16 %v17060_v27, %v3182_v34  ;;  %v1848_v22 = vrot.slane %v1847_v31, 1  ;;  %v6755_v32 = vadd.f32 %v6627_v24, %v17061_v21  ;;  %v1881_v34 = vrot.slane %v1880_v9, 2  ;;  %v17062_v27 = vld [vmem:[#allocation205_spill] sm:$0xff]  ;;  %v14645_v49 = vpop.permute.xlu0 %5399 }
 0x4b1   : > { %v5985_v59 = vadd.f32 %v5857_v5, %v17062_v27  ;;  %v14650_v62 = vmax.f32 %v14565_v39, %v1820_v48  ;;  %v14653_v54 = vmax.f32 %v14588_v45, %v1855_v55  ;;  %v1867_v18 = vrot.slane %v1866_v44, 2  ;;  %10221 = vmatmul.mubr.msk.bf16.gmra.mxu0 %vm1667_vm1, %v3215_v26  ;;  %v17065_v48 = vld [vmem:[#allocation6_spill] sm:$0xff]  ;;  %v14662_v55 = vld [vmem:[%s11557_s20 + $0x278] sm:$0xff] }
 0x4b2   : > { %v3184_v2 = vmax.f32 %v3120_v40, 0.0  ;;  %v1862_v24 = vrot.slane %v1861_v47, 1  ;;  %v1887_v5 = vmax.f32 %v1885_v15, %v1886_v38  ;;  %v6882_v19 = vmax.f32 %v6754_v10, 0.0  ;;  %10224 = vmatprep.mubr.msk.bf16.mxu0 %vm1667_vm1, %v3216_v11  ;;  %5655 = vperm.xlu0 %10669, %v14662_v55   ;;  %v17066_v38 = vld [vmem:[#allocation286_spill] sm:$0xff] }
 0x4b3   : > { %v5987_v8 = vadd.f32 %v5859_v3, %v17063_v46  ;;  %v1842_v41 = vmax.f32 %v1840_v33, %v1841_v30  ;;  %v6756_v21 = vadd.f32 %v6628_v52, %v17064_v12  ;;  %v1874_v39 = vrot.slane %v1873_v63, 2  ;;  %6395 = vperm.xlu1 %10642, %v14562_v28   ;;  %v14669_v33 = vpop.permute.xlu1 %6247  ;;  %v17069_v12 = vld [vmem:[#allocation289_spill] sm:$0xff] }
 0x4b4   : > { %v6630_v45 = vmul.f32 %v17053_v57, %v17065_v48  ;;  %v1849_v26 = vmax.f32 %v1847_v31, %v1848_v22  ;;  %v6883_v40 = vmax.f32 %v6755_v32, 0.0  ;;  %v1882_v15 = vmax.f32 %v1880_v9, %v1881_v34  ;;  %v14667_v3 = vpop.permute.xlu0 %5407  ;;  %v17068_v32 = vld [vmem:[#allocation95_spill] sm:$0xff] }
 0x4b5   : > { %v6757_v10 = vadd.f32 %v17066_v38, %v5985_v59  ;;  %v1868_v11 = vmax.f32 %v1866_v44, %v1867_v18  ;;  %v17067_v30 = vmax.f32 %v14105_v13, 0.0  ;;  %v5861_v27 = vmul.f32 %v17046_v29, %v14543_v23  ;;  %v14682_v44 = vld [vmem:[%s11557_s20 + $0x280] sm:$0xff]  ;;  %v17070_v13 = vld [vmem:[#allocation244_spill] sm:$0xff]  ;;  %v17071_v23 = vld [vmem:[#allocation119_spill] sm:$0xff] }
 0x4b6   : > { %v5863_v31 = vmul.f32 %v17046_v29, %v14567_v20  ;;  %v14677_v9 = vmax.f32 %v1861_v47, %v1862_v24  ;;  %v1888_v22 = vrot.slane %v1887_v5, 2  ;;  %v6759_v34 = vadd.f32 %v17068_v32, %v5987_v8  ;;  %5659 = vperm.xlu0 %10669, %v14682_v44  }
 0x4b7   : > { %v3217_v52 = vpack.c.bf16 %v17067_v30, %v3184_v2  ;;  %v7010_v28 = vpack.c.bf16 %v6883_v40, %v6882_v19  ;;  %v6884_v59 = vmax.f32 %v6756_v21, 0.0  ;;  %v1875_v46 = vmax.f32 %v1873_v63, %v1874_v39  ;;  %10643 = vset.pattern.permute.xlu1 %v16973_v1  ;;  %v14692_v63 = vpop.permute.xlu1 %6255  ;;  %v17072_v19 = vld [vmem:[#allocation242_spill] sm:$0xff]  ;;  %v17073_v39 = vld [vmem:[#allocation97_spill] sm:$0xff]  ;;  %v17074_v40 = vld [vmem:[#allocation232_spill] sm:$0xff] }
 0x4b8   : > { %v6758_v48 = vadd.f32 %v6630_v45, %v17069_v12  ;;  %v9272_v18 = vsel %vm9271_vm3, %v17071_v23, %v17070_v13  ;;  %v9297_v20 = vsel %vm9269_vm2, %v1849_v26, %v1842_v41  ;;  %v1883_v47 = vrot.slane %v1882_v15, 1  ;;  %v14690_v24 = vpop.permute.xlu0 %5415  ;;  %v17075_v26 = vld [vmem:[#allocation211_spill] sm:$0xff] }
 0x4b9   : > { %v6885_v2 = vmax.f32 %v6757_v10, 0.0  ;;  %v9274_v8 = vsel %vm9273_vm4, %v17072_v19, %v9272_v18  ;;  %v1869_v21 = vrot.slane %v1868_v11, 1  ;;  %v6632_v45 = vmul.f32 %v17053_v57, %v17073_v39  ;;  %10225 = vmatmul.mubr.msk.bf16.gmra.mxu0 %vm1667_vm1, %v3217_v52  ;;  %v10853_v10 = vld [vmem:[%s11557_s20 + $0x248] sm:$0xff]  ;;  %v17076_v12 = vld [vmem:[#allocation247_spill] sm:$0xff]  ;;  %v14713_v19 = vld [vmem:[%s11557_s20 + $0x298] sm:$0xff] }
 0x4ba   : > { %v5989_v41 = vadd.f32 %v5861_v27, %v17074_v40  ;;  %v5991_v38 = vadd.f32 %v5863_v31, %v17075_v26  ;;  %5631 = vperm.xlu1 %10643, %v10853_v10   ;;  %v14702_v30 = vmax.f32 %v1887_v5, %v1888_v22  ;;  %v6887_v32 = vmax.f32 %v6759_v34, 0.0  ;;  %10308 = vmatprep.mubr.msk.bf16.mxu0 %vm1667_vm1, %v7010_v28  ;;  %v17077_v27 = vld [vmem:[#allocation39_spill] sm:$0xff]  ;;  %v17078_v5 = vld [vmem:[#allocation8_spill] sm:$0xff]  ;;  %v17080_v40 = vld [vmem:[#allocation98_spill] sm:$0xff] }
 0x4bb   : > { %v9276_v13 = vsel %vm9275_vm5, %v17076_v12, %v9274_v8  ;;  %v9284_v23 = vsel %vm9271_vm3, %v14389_v17, %v14423_v53  ;;  %v1876_v18 = vrot.slane %v1875_v46, 1  ;;  %v6886_v52 = vmax.f32 %v6758_v48, 0.0  ;;  %5671 = vperm.xlu0 %10669, %v14713_v19   ;;  %v17079_v39 = vld [vmem:[#allocation292_spill] sm:$0xff] }
 0x4bc   : > { %v6634_v31 = vmul.f32 %v17053_v57, %v17077_v27  ;;  %v9278_v22 = vsel %vm9277_vm6, %v17078_v5, %v9276_v13  ;;  %v7011_v34 = vpack.c.bf16 %v6885_v2, %v6884_v59  ;;  %v14718_v28 = vpop.permute.xlu0 %5423  ;;  %v9285_v53 = vsel %vm9273_vm4, %v14420_v7, %v9284_v23  ;;  %v17081_v10 = vld [vmem:[#allocation80_spill] sm:$0xff]  ;;  %v10855_v13 = vld [vmem:[%s11557_s20 + $0x250] sm:$0xff]  ;;  %v17084_v23 = vld [vmem:[#allocation113_spill] sm:$0xff] }
 0x4bd   : > { %v14720_v8 = vpop.permute.xlu1 %6263  ;;  %v9280_v17 = vsel %vm9279_vm7, %v17079_v39, %v9278_v22  ;;  %v9291_v48 = vsel %vm9271_vm3, %v14474_v35, %v14510_v42  ;;  %v6761_v26 = vadd.f32 %v17080_v40, %v5989_v41  ;;  %v6763_v12 = vadd.f32 %v17081_v10, %v5991_v38  ;;  %v17082_v5 = vld [vmem:[#allocation7_spill] sm:$0xff]  ;;  %v14746_v22 = vld [vmem:[%s11557_s20 + $0x2a0] sm:$0xff] }
 0x4be   : > { %v5865_v59 = vmul.f32 %v17046_v29, %v14600_v51  ;;  %v5867_v2 = vmul.f32 %v17046_v29, %v14622_v50  ;;  %5635 = vperm.xlu1 %10643, %v10855_v13   ;;  %v7012_v27 = vpack.c.bf16 %v6887_v32, %v6886_v52  ;;  %v14738_v7 = vsel %vm9281_vm8, %v17082_v5, %v9280_v17  ;;  %v17085_v32 = vld [vmem:[#allocation240_spill] sm:$0xff] }
 0x4bf   : > { %17083 = vst [vmem:[#allocation76_spill] sm:$0xff] %v14738_v7  ;;  %v9286_v35 = vsel %vm9275_vm5, %v14458_v16, %v9285_v53  ;;  %v9292_v42 = vsel %vm9273_vm4, %v14497_v43, %v9291_v48  ;;  %v1884_v41 = vmax.f32 %v1882_v15, %v1883_v47  ;;  %v1870_v38 = vmax.f32 %v1868_v11, %v1869_v21  ;;  %v17086_v21 = vld [vmem:[#allocation213_spill] sm:$0xff] }
 0x4c0   : > { %v6760_v51 = vadd.f32 %v6632_v45, %v17084_v23  ;;  %5675 = vperm.xlu0 %10669, %v14746_v22   ;;  %v9287_v50 = vsel %vm9277_vm6, %v14466_v56, %v9286_v35  ;;  %v6762_v52 = vadd.f32 %v6634_v31, %v17085_v32  ;;  %v14752_v39 = vpop.permute.xlu0 %5431  ;;  %v9293_v43 = vsel %vm9275_vm5, %v14597_v58, %v9292_v42  ;;  %v17093_v23 = vld [vmem:[#allocation19_spill] sm:$0xff]  ;;  %v14808_v32 = vld [vmem:[%s11557_s20 + $0x2c0] sm:$0xff] }
 0x4c1   : > { %v14754_v17 = vpop.permute.xlu1 %6271  ;;  %v9288_v16 = vsel %vm9279_vm7, %v14456_v60, %v9287_v50  ;;  %v9298_v15 = vsel %vm9271_vm3, %v14653_v54, %v9297_v20  ;;  %v1890_v11 = vrot.slane %v14702_v30, 1  ;;  %v1877_v47 = vmax.f32 %v1875_v46, %v1876_v18  ;;  %10309 = vmatmul.mubr.msk.bf16.vlgmr.msra.gmra.mxu0 %vm1667_vm1, %v7011_v34  ;;  %v17087_v60 = vld [vmem:[#allocation234_spill] sm:$0xff]  ;;  %v14778_v18 = vld [vmem:[%s11557_s20 + $0x2b8] sm:$0xff] }
 0x4c2   : > { %v6889_v56 = vmax.f32 %v6761_v26, 0.0  ;;  %v5993_v45 = vadd.f32 %v5865_v59, %v17086_v21  ;;  %10644 = vset.pattern.permute.xlu1 %v16981_v36  ;;  %v6891_v31 = vmax.f32 %v6763_v12, 0.0  ;;  %10312 = vmatprep.mubr.msk.bf16.mxu0 %vm1667_vm1, %v7012_v27  ;;  %v5995_v53 = vadd.f32 %v5867_v2, %v17087_v60  ;;  %v17091_v12 = vld [vmem:[#allocation83_spill] sm:$0xff]  ;;  %v17092_v27 = vld [vmem:[#allocation100_spill] sm:$0xff] }
 0x4c3   : > { %6399 = vperm.xlu1 %10644, %v14593_v4   ;;  %v14771_v58 = vsel %vm9281_vm8, %v14464_v14, %v9288_v16  ;;  %v9294_v54 = vsel %vm9277_vm6, %v14650_v62, %v9293_v43  ;;  %v6888_v46 = vmax.f32 %v6760_v51, 0.0  ;;  %v6636_v20 = vmul.f32 %v17053_v57, %v14386_v61  ;;  %v17089_v14 = vld [vmem:[#allocation70_spill] sm:$0xff]  ;;  %v17094_v51 = vld [vmem:[#allocation69_spill] sm:$0xff]  ;;  %v17095_v50 = vld [vmem:[#allocation16_spill] sm:$0xff] }
 0x4c4   : > { %17088 = vst [vmem:[#allocation48_spill] sm:$0xff] %v14771_v58  ;;  %5687 = vperm.xlu0 %10669, %v14778_v18   ;;  %v9295_v34 = vsel %vm9279_vm7, %v14586_v6, %v9294_v54  ;;  %v9299_v4 = vsel %vm9273_vm4, %v14677_v9, %v9298_v15  ;;  %v6890_v48 = vmax.f32 %v6762_v52, 0.0  ;;  %v6638_v40 = vmul.f32 %v17053_v57, %v17089_v14  ;;  %v14787_v62 = vpop.permute.xlu0 %5439  ;;  %v17096_v52 = vld [vmem:[#allocation51_spill] sm:$0xff]  ;;  %v17101_v54 = vld [vmem:[#allocation41_spill] sm:$0xff]  ;;  %v17104_v14 = vld [vmem:[#allocation74_spill] sm:$0xff] }
 0x4c5   : > { %v14789_v26 = vpop.permute.xlu1 %6279  ;;  %v14793_v61 = vsel %vm9281_vm8, %v14635_v0, %v9295_v34  ;;  %v9300_v10 = vsel %vm9275_vm5, %v1870_v38, %v9299_v4  ;;  %v1891_v6 = vmax.f32 %v14702_v30, %v1890_v11  ;;  %v6765_v59 = vadd.f32 %v17091_v12, %v5993_v45  ;;  %v17097_v43 = vld [vmem:[#allocation115_spill] sm:$0xff]  ;;  %v17099_v11 = vld [vmem:[#allocation153_spill] sm:$0xff] }
 0x4c6   : > { %17090 = vst [vmem:[#allocation103_spill] sm:$0xff] %v14793_v61  ;;  %v7013_v9 = vpack.c.bf16 %v6889_v56, %v6888_v46  ;;  %v5869_v2 = vmul.f32 %v17046_v29, %v14645_v49  ;;  %v6767_v5 = vadd.f32 %v17092_v27, %v5995_v53  ;;  %v7014_v35 = vpack.c.bf16 %v6891_v31, %v6890_v48  ;;  %v17102_v46 = vld [vmem:[#allocation146_spill] sm:$0xff]  ;;  %v17103_v34 = vld [vmem:[#allocation257_spill] sm:$0xff]  ;;  %v17108_v27 = vld [vmem:[#allocation295_spill] sm:$0xff] }
 0x4c7   : > { %v5871_v42 = vmul.f32 %v17046_v29, %v14667_v3  ;;  %6407 = vperm.xlu1 %10644, %v10855_v13   ;;  %v9301_v0 = vsel %vm9277_vm6, %v1877_v47, %v9300_v10  ;;  %v5225_v38 = vmul.f32 %v17094_v51, %v17093_v23  ;;  %v6764_v30 = vadd.f32 %v6636_v20, %v17095_v50  ;;  %v14836_v10 = vld [vmem:[%s11557_s20 + $0x2d8] sm:$0xff]  ;;  %v17145_v61 = vld [vmem:[#allocation58_spill] sm:$0xff] }
 0x4c8   : > { %5691 = vperm.xlu0 %10669, %v14808_v32   ;;  %v9302_v49 = vsel %vm9279_vm7, %v1884_v41, %v9301_v0  ;;  %v5227_v16 = vmul.f32 %v17094_v51, %v17096_v52  ;;  %v6766_v15 = vadd.f32 %v6638_v40, %v17097_v43  ;;  %v14815_v3 = vpop.permute.xlu0 %5447  ;;  %v5868_v47 = vmul.f32 %v17046_v29, %v17099_v11  ;;  %v17100_v41 = vld [vmem:[#allocation157_spill] sm:$0xff]  ;;  %v17109_v43 = vld [vmem:[#allocation87_spill] sm:$0xff] }
 0x4c9   : > { %v14818_v13 = vsel %vm9281_vm8, %v1891_v6, %v9302_v49  ;;  %v6893_v56 = vmax.f32 %v6765_v59, 0.0  ;;  %10313 = vmatmul.mubr.msk.bf16.gmra.mxu0 %vm1667_vm1, %v7013_v9  ;;  %v5997_v21 = vadd.f32 %v5869_v2, %v5225_v38  ;;  %v14823_v45 = vpop.permute.xlu1 %6287  ;;  %v5870_v31 = vmul.f32 %v17046_v29, %v17100_v41  ;;  %17105 = vst [vmem:[#allocation11_spill] sm:$0xff] %v14836_v10  ;;  %v17106_v6 = vld [vmem:[#allocation148_spill] sm:$0xff]  ;;  %v17107_v59 = vld [vmem:[#allocation259_spill] sm:$0xff] }
 0x4ca   : > { %17098 = vst [vmem:[#allocation298_spill] sm:$0xff] %v14818_v13  ;;  %v6895_v60 = vmax.f32 %v6767_v5, 0.0  ;;  %10316 = vmatprep.mubr.msk.bf16.mxu0 %vm1667_vm1, %v7014_v35  ;;  %v5999_v53 = vadd.f32 %v5871_v42, %v5227_v16  ;;  %v5224_v20 = vmul.f32 %v17094_v51, %v17102_v46  ;;  %v6641_v4 = vmul.f32 %v17053_v57, %v17103_v34 }
 0x4cb   : > { %6411 = vperm.xlu1 %10644, %v17101_v54   ;;  %v6892_v48 = vmax.f32 %v6764_v30, 0.0  ;;  %v6640_v40 = vmul.f32 %v17053_v57, %v17104_v14  ;;  %v5226_v12 = vmul.f32 %v17094_v51, %v17106_v6  ;;  %v6643_v9 = vmul.f32 %v17053_v57, %v17107_v59  ;;  %v17113_v14 = vld [vmem:[#allocation150_spill] sm:$0xff]  ;;  %v17114_v6 = vld [vmem:[#allocation261_spill] sm:$0xff] }
 0x4cc   : > { %5703 = vperm.xlu0 %10669, %v14836_v10   ;;  %v6894_v2 = vmax.f32 %v6766_v15, 0.0  ;;  %v6642_v5 = vmul.f32 %v17053_v57, %v17108_v27  ;;  %v14845_v35 = vpop.permute.xlu0 %5455  ;;  %v5996_v42 = vadd.f32 %v5868_v47, %v5224_v20  ;;  %v6769_v0 = vadd.f32 %v6641_v4, %v5997_v21  ;;  %v10860_v47 = vld [vmem:[%s11557_s20 + $0x268] sm:$0xff]  ;;  %v17112_v20 = vld [vmem:[#allocation173_spill] sm:$0xff]  ;;  %v10862_v27 = vld [vmem:[%s11557_s20 + $0x270] sm:$0xff] }
 0x4cd   : > { %v7015_v23 = vpack.c.bf16 %v6893_v56, %v6892_v48  ;;  %v5873_v38 = vmul.f32 %v17046_v29, %v14690_v24  ;;  %v14849_v50 = vpop.permute.xlu1 %6295  ;;  %v5998_v30 = vadd.f32 %v5870_v31, %v5226_v12  ;;  %v6771_v49 = vadd.f32 %v6643_v9, %v5999_v53  ;;  %v10861_v56 = vld [vmem:[%s11557_s20 + $0x2e0] sm:$0xff]  ;;  %v17110_v21 = vld [vmem:[#allocation22_spill] sm:$0xff] }
 0x4ce   : > { %v7016_v52 = vpack.c.bf16 %v6895_v60, %v6894_v2  ;;  %v5875_v16 = vmul.f32 %v17046_v29, %v14718_v28  ;;  %v5229_v15 = vmul.f32 %v17094_v51, %v17109_v43  ;;  %v6768_v11 = vadd.f32 %v6640_v40, %v5996_v42  ;;  %v17111_v60 = vld [vmem:[#allocation169_spill] sm:$0xff]  ;;  %v17116_v42 = vld [vmem:[#allocation152_spill] sm:$0xff] }
 0x4cf   : > { %10645 = vset.pattern.permute.xlu1 %v16973_v1  ;;  %v5231_v24 = vmul.f32 %v17094_v51, %v17110_v21  ;;  %v6770_v41 = vadd.f32 %v6642_v5, %v5998_v30  ;;  %v5872_v28 = vmul.f32 %v17046_v29, %v17111_v60  ;;  %v6897_v53 = vmax.f32 %v6769_v0, 0.0  ;;  %v17115_v9 = vld [vmem:[#allocation5_spill] sm:$0xff]  ;;  %v10863_v5 = vld [vmem:[%s11557_s20 + $0x2f8] sm:$0xff] }
 0x4d0   : > { %5647 = vperm.xlu1 %10645, %v10860_v47   ;;  %5707 = vperm.xlu0 %10669, %v10861_v56   ;;  %v14860_v31 = vpop.permute.xlu0 %5463  ;;  %v6001_v54 = vadd.f32 %v5873_v38, %v5229_v15  ;;  %v5874_v34 = vmul.f32 %v17046_v29, %v17112_v20  ;;  %v6899_v4 = vmax.f32 %v6771_v49, 0.0  ;;  %v5228_v40 = vmul.f32 %v17094_v51, %v17113_v14  ;;  %v17118_v49 = vld [vmem:[#allocation40_spill] sm:$0xff] }
 0x4d1   : > { %10317 = vmatmul.mubr.msk.bf16.gmra.mxu0 %vm1667_vm1, %v7015_v23  ;;  %v14865_v46 = vpop.permute.xlu1 %6303  ;;  %v6003_v48 = vadd.f32 %v5875_v16, %v5231_v24  ;;  %v6645_v12 = vmul.f32 %v17053_v57, %v17114_v6  ;;  %v6896_v59 = vmax.f32 %v6768_v11, 0.0  ;;  %v6644_v2 = vmul.f32 %v17053_v57, %v17115_v9  ;;  %v17117_v23 = vld [vmem:[#allocation263_spill] sm:$0xff] }
 0x4d2   : > { %10320 = vmatprep.mubr.msk.bf16.mxu0 %vm1667_vm1, %v7016_v52  ;;  %v5230_v0 = vmul.f32 %v17094_v51, %v17116_v42  ;;  %v6647_v38 = vmul.f32 %v17053_v57, %v17117_v23  ;;  %v6898_v30 = vmax.f32 %v6770_v41, 0.0  ;;  %v6646_v52 = vmul.f32 %v17053_v57, %v17118_v49  ;;  %v17119_v41 = vld [vmem:[#allocation54_spill] sm:$0xff] }
 0x4d3   : > { %v6000_v43 = vadd.f32 %v5872_v28, %v5228_v40  ;;  %v6773_v15 = vadd.f32 %v6645_v12, %v6001_v54  ;;  %v7017_v11 = vpack.c.bf16 %v6897_v53, %v6896_v59  ;;  %v5877_v47 = vmul.f32 %v17046_v29, %v14752_v39  ;;  %v10864_v28 = vld [vmem:[%s11557_s20 + $0x300] sm:$0xff]  ;;  %v17120_v53 = vld [vmem:[#allocation23_spill] sm:$0xff]  ;;  %v17123_v42 = vld [vmem:[#allocation154_spill] sm:$0xff] }
 0x4d4   : > { %5651 = vperm.xlu1 %10645, %v10862_v27   ;;  %5719 = vperm.xlu0 %10669, %v10863_v5   ;;  %v14884_v16 = vpop.permute.xlu0 %5471  ;;  %v6002_v21 = vadd.f32 %v5874_v34, %v5230_v0  ;;  %v6775_v24 = vadd.f32 %v6647_v38, %v6003_v48  ;;  %v7018_v60 = vpack.c.bf16 %v6899_v4, %v6898_v30  ;;  %v17121_v4 = vld [vmem:[#allocation177_spill] sm:$0xff]  ;;  %v17122_v59 = vld [vmem:[#allocation179_spill] sm:$0xff]  ;;  %v17125_v30 = vld [vmem:[#allocation72_spill] sm:$0xff] }
 0x4d5   : > { %v14888_v56 = vpop.permute.xlu1 %6311  ;;  %v5879_v20 = vmul.f32 %v17046_v29, %v14787_v62  ;;  %v5233_v14 = vmul.f32 %v17094_v51, %v17119_v41  ;;  %v6772_v6 = vadd.f32 %v6644_v2, %v6000_v43  ;;  %v5235_v54 = vmul.f32 %v17094_v51, %v17120_v53  ;;  %v17124_v0 = vld [vmem:[#allocation265_spill] sm:$0xff]  ;;  %v17126_v43 = vld [vmem:[#allocation156_spill] sm:$0xff] }
 0x4d6   : > { %v6774_v39 = vadd.f32 %v6646_v52, %v6002_v21  ;;  %v5876_v62 = vmul.f32 %v17046_v29, %v17121_v4  ;;  %v6901_v48 = vmax.f32 %v6773_v15, 0.0  ;;  %v5878_v9 = vmul.f32 %v17046_v29, %v17122_v59  ;;  %v10865_v52 = vld [vmem:[%s11557_s20 + $0x318] sm:$0xff] }
 0x4d7   : > { %v6005_v40 = vadd.f32 %v5877_v47, %v5233_v14  ;;  %v6903_v2 = vmax.f32 %v6775_v24, 0.0  ;;  %v6007_v5 = vadd.f32 %v5879_v20, %v5235_v54  ;;  %v6649_v23 = vmul.f32 %v17053_v57, %v17124_v0  ;;  %v17128_v24 = vld [vmem:[#allocation9_spill] sm:$0xff] }
 0x4d8   : > { %10646 = vset.pattern.permute.xlu1 %v16981_v36  ;;  %5723 = vperm.xlu0 %10669, %v10864_v28   ;;  %v14899_v34 = vpop.permute.xlu0 %5479  ;;  %v6900_v38 = vmax.f32 %v6772_v6, 0.0  ;;  %v6648_v49 = vmul.f32 %v17053_v57, %v17125_v30  ;;  %v5234_v15 = vmul.f32 %v17094_v51, %v17126_v43  ;;  %v6902_v21 = vmax.f32 %v6774_v39, 0.0 }
 0x4d9   : > { %6415 = vperm.xlu1 %10646, %v14640_v25   ;;  %10321 = vmatmul.mubr.msk.bf16.gmra.mxu0 %vm1667_vm1, %v7017_v11  ;;  %v14904_v12 = vpop.permute.xlu1 %6319  ;;  %v5232_v25 = vmul.f32 %v17094_v51, %v17123_v42  ;;  %v17127_v11 = vld [vmem:[#allocation267_spill] sm:$0xff]  ;;  %v6777_v6 = vadd.f32 %v6649_v23, %v6005_v40  ;;  %v5881_v28 = vmul.f32 %v17046_v29, %v14815_v3  ;;  %v17129_v42 = vld [vmem:[#allocation158_spill] sm:$0xff]  ;;  %v17131_v40 = vld [vmem:[#allocation160_spill] sm:$0xff] }
 0x4da   : > { %10324 = vmatprep.mubr.msk.bf16.mxu0 %vm1667_vm1, %v7018_v60  ;;  %v6651_v47 = vmul.f32 %v17053_v57, %v17127_v11  ;;  %v6650_v60 = vmul.f32 %v17053_v57, %v17128_v24  ;;  %v7019_v14 = vpack.c.bf16 %v6901_v48, %v6900_v38  ;;  %v6006_v54 = vadd.f32 %v5878_v9, %v5234_v15  ;;  %v10866_v48 = vld [vmem:[%s11557_s20 + $0x320] sm:$0xff]  ;;  %v17134_v38 = vld [vmem:[#allocation162_spill] sm:$0xff] }
 0x4db   : > { %v6004_v41 = vadd.f32 %v5876_v62, %v5232_v25  ;;  %v7020_v59 = vpack.c.bf16 %v6903_v2, %v6902_v21  ;;  %v5883_v39 = vmul.f32 %v17046_v29, %v14845_v35  ;;  %v5236_v0 = vmul.f32 %v17094_v51, %v17129_v42  ;;  %v17132_v25 = vld [vmem:[#allocation93_spill] sm:$0xff]  ;;  %v17138_v42 = vld [vmem:[#allocation168_spill] sm:$0xff] }
 0x4dc   : > { %5735 = vperm.xlu0 %10669, %v10865_v52   ;;  %v14922_v20 = vpop.permute.xlu0 %5487  ;;  %v6779_v4 = vadd.f32 %v6651_v47, %v6007_v5  ;;  %v5238_v3 = vmul.f32 %v17094_v51, %v17131_v40  ;;  %v5239_v9 = vmul.f32 %v17094_v51, %v17132_v25  ;;  %v17133_v5 = vld [vmem:[#allocation159_spill] sm:$0xff]  ;;  %v6778_v23 = vadd.f32 %v6650_v60, %v6006_v54  ;;  %v17135_v52 = vld [vmem:[#allocation164_spill] sm:$0xff]  ;;  %v17136_v47 = vld [vmem:[#allocation166_spill] sm:$0xff] }
 0x4dd   : > { %6423 = vperm.xlu1 %10646, %v10862_v27   ;;  %v14926_v53 = vpop.permute.xlu1 %6327  ;;  %v17130_v27 = vld [vmem:[#allocation55_spill] sm:$0xff]  ;;  %v6776_v62 = vadd.f32 %v6648_v49, %v6004_v41  ;;  %v5880_v2 = vmul.f32 %v17046_v29, %v17133_v5  ;;  %v5240_v49 = vmul.f32 %v17094_v51, %v17134_v38  ;;  %v5242_v43 = vmul.f32 %v17094_v51, %v17135_v52  ;;  %v17137_v24 = vld [vmem:[#allocation161_spill] sm:$0xff]  ;;  %v10867_v40 = vld [vmem:[%s11557_s20 + $0x338] sm:$0xff] }
 0x4de   : > { %v5237_v30 = vmul.f32 %v17094_v51, %v17130_v27  ;;  %v6905_v15 = vmax.f32 %v6777_v6, 0.0  ;;  %v14951_v21 = vmul.f32 %v17094_v51, %v17136_v47  ;;  %v6907_v60 = vmax.f32 %v6779_v4, 0.0  ;;  %v17139_v6 = vld [vmem:[#allocation269_spill] sm:$0xff]  ;;  %v17141_v25 = vld [vmem:[#allocation271_spill] sm:$0xff] }
 0x4df   : > { %v6011_v41 = vadd.f32 %v5883_v39, %v5239_v9  ;;  %v14960_v27 = vmul.f32 %v17094_v51, %v17138_v42  ;;  %v6008_v39 = vadd.f32 %v5880_v2, %v5236_v0  ;;  %v6906_v9 = vmax.f32 %v6778_v23, 0.0  ;;  %v17142_v5 = vld [vmem:[#allocation37_spill] sm:$0xff]  ;;  %v17143_v47 = vld [vmem:[#allocation163_spill] sm:$0xff] }
 0x4e0   : > { %5739 = vperm.xlu0 %10669, %v10866_v48   ;;  %v14942_v35 = vpop.permute.xlu0 %5495  ;;  %v6009_v11 = vadd.f32 %v5881_v28, %v5237_v30  ;;  %v6904_v28 = vmax.f32 %v6776_v62, 0.0  ;;  %v17140_v30 = vld [vmem:[#allocation10_spill] sm:$0xff]  ;;  %v6654_v38 = vmul.f32 %v17053_v57, %v17142_v5  ;;  %v5884_v62 = vmul.f32 %v17046_v29, %v17143_v47 }
 0x4e1   : > { %6427 = vperm.xlu1 %10646, %v14662_v55   ;;  %10325 = vmatmul.mubr.msk.bf16.gmra.mxu0 %vm1667_vm1, %v7019_v14  ;;  %v5882_v55 = vmul.f32 %v17046_v29, %v17137_v24  ;;  %v6653_v14 = vmul.f32 %v17053_v57, %v17139_v6  ;;  %v6652_v48 = vmul.f32 %v17053_v57, %v17140_v30  ;;  %v10166_v4 = vpop.f32.mrf.mxu0  ;;  %v10868_v30 = vld [vmem:[%s11557_s20 + $0x288] sm:$0xff] }
 0x4e2   : > { %10328 = vmatprep.mubr.msk.bf16.mxu0 %vm1667_vm1, %v7020_v59  ;;  %v14956_v54 = vpop.permute.xlu1 %5575  ;;  %v6655_v59 = vmul.f32 %v17053_v57, %v17141_v25  ;;  %v7021_v24 = vpack.c.bf16 %v6905_v15, %v6904_v28  ;;  %v5885_v6 = vmul.f32 %v17046_v29, %v14860_v31  ;;  %v5887_v25 = vmul.f32 %v17046_v29, %v14884_v16  ;;  %v17144_v5 = vld [vmem:[#allocation26_spill] sm:$0xff]  ;;  %v17146_v15 = vld [vmem:[#allocation165_spill] sm:$0xff] }
 0x4e3   : > { %v6781_v42 = vadd.f32 %v6653_v14, %v6009_v11  ;;  %v3380_v0 = vpop.f32.mrf.mxu0  ;;  %v6010_v2 = vadd.f32 %v5882_v55, %v5238_v3  ;;  %v5241_v13 = vmul.f32 %v17094_v51, %v17144_v5  ;;  %v5243_v47 = vmul.f32 %v17094_v51, %v17145_v61  ;;  %v10869_v14 = vld [vmem:[%s11557_s20 + $0x340] sm:$0xff]  ;;  %v17147_v55 = vld [vmem:[#allocation27_spill] sm:$0xff] }
 0x4e4   : > { %5751 = vperm.xlu0 %10669, %v10867_v40   ;;  %v14972_v52 = vpop.permute.xlu0 %5503  ;;  %v6783_v23 = vadd.f32 %v6655_v59, %v6011_v41  ;;  %v7022_v40 = vpack.c.bf16 %v6907_v60, %v6906_v9  ;;  %v5886_v11 = vmul.f32 %v17046_v29, %v17146_v15  ;;  %v6780_v31 = vadd.f32 %v6652_v48, %v6008_v39  ;;  %v17148_v16 = vld [vmem:[#allocation273_spill] sm:$0xff]  ;;  %v17149_v59 = vld [vmem:[#allocation275_spill] sm:$0xff] }
 0x4e5   : > { %10647 = vset.pattern.permute.xlu1 %v16973_v1  ;;  %v10167_v3 = vpop.f32.mrf.mxu0  ;;  %v5245_v60 = vmul.f32 %v17094_v51, %v17147_v55  ;;  %v6657_v41 = vmul.f32 %v17053_v57, %v17148_v16  ;;  %v6659_v9 = vmul.f32 %v17053_v57, %v17149_v59  ;;  %v6782_v61 = vadd.f32 %v6654_v38, %v6010_v2  ;;  %v10870_v39 = vld [vmem:[%s11557_s20 + $0x290] sm:$0xff]  ;;  %v17150_v2 = vld [vmem:[#allocation42_spill] sm:$0xff] }
 0x4e6   : > { %5663 = vperm.xlu1 %10647, %v10868_v30   ;;  %v6012_v5 = vadd.f32 %v5884_v62, %v5240_v49  ;;  %v6909_v15 = vmax.f32 %v6781_v42, 0.0  ;;  %v6013_v48 = vadd.f32 %v5885_v6, %v5241_v13  ;;  %v6911_v55 = vmax.f32 %v6783_v23, 0.0  ;;  %v10871_v42 = vld [vmem:[%s11557_s20 + $0x358] sm:$0xff]  ;;  %v17151_v6 = vld [vmem:[#allocation187_spill] sm:$0xff] }
 0x4e7   : > { %v14988_v28 = vpop.permute.xlu1 %6339  ;;  %v3383_v58 = vpop.f32.mrf.mxu0  ;;  %v6015_v16 = vadd.f32 %v5887_v25, %v5243_v47  ;;  %v3635_v7 = vmax.f32 %v3380_v0, 0.0  ;;  %v6014_v59 = vadd.f32 %v5886_v11, %v5242_v43  ;;  %v6908_v38 = vmax.f32 %v6780_v31, 0.0 }
 0x4e8   : > { %5755 = vperm.xlu0 %10669, %v10869_v14   ;;  %v14996_v30 = vpop.permute.xlu0 %5511  ;;  %v3638_v14 = vmax.f32 %v10167_v3, 0.0  ;;  %v3636_v10 = vmax.f32 %v3383_v58, 0.0  ;;  %v6656_v49 = vmul.f32 %v17053_v57, %v17150_v2  ;;  %v3637_v62 = vmax.f32 %v10166_v4, 0.0 }
 0x4e9   : > { %10329 = vmatmul.mubr.msk.bf16.gmra.mxu0 %vm1667_vm1, %v7021_v24  ;;  %v10170_v13 = vpop.f32.mrf.mxu0  ;;  %v5888_v3 = vmul.f32 %v17046_v29, %v17151_v6  ;;  %v6910_v23 = vmax.f32 %v6782_v61, 0.0  ;;  %v7023_v43 = vpack.c.bf16 %v6909_v15, %v6908_v38  ;;  %v6785_v25 = vadd.f32 %v6657_v41, %v6013_v48  ;;  %v10872_v15 = vld [vmem:[%s11557_s20 + $0x360] sm:$0xff] }
 0x4ea   : > { %5667 = vperm.xlu1 %10647, %v10870_v39   ;;  %10332 = vmatprep.mubr.msk.bf16.mxu0 %vm1667_vm1, %v7022_v40  ;;  %v6658_v40 = vmul.f32 %v17053_v57, %v14647_v37  ;;  %v3699_v0 = vpack.c.bf16 %v3636_v10, %v3635_v7  ;;  %v5889_v4 = vmul.f32 %v17046_v29, %v14899_v34  ;;  %v17152_v37 = vld [vmem:[#allocation59_spill] sm:$0xff] }
 0x4eb   : > { %v15004_v24 = vpop.permute.xlu1 %6347  ;;  %v3700_v47 = vpack.c.bf16 %v3638_v14, %v3637_v62  ;;  %v3396_v11 = vpop.f32.mrf.mxu0  ;;  %v6787_v31 = vadd.f32 %v6659_v9, %v6015_v16  ;;  %v7024_v2 = vpack.c.bf16 %v6911_v55, %v6910_v23  ;;  %v5891_v61 = vmul.f32 %v17046_v29, %v14922_v20  ;;  %v17153_v10 = vld [vmem:[#allocation227_spill] sm:$0xff]  ;;  %v17155_v20 = vld [vmem:[#allocation277_spill] sm:$0xff] }
 0x4ec   : > { %5767 = vperm.xlu0 %10669, %v10871_v42   ;;  %v15010_v58 = vpop.permute.xlu0 %5519  ;;  %10236 = vmatprep.mubr.msk.bf16.mxu1 %vm1667_vm1, %v3699_v0  ;;  %v5247_v7 = vmul.f32 %v17094_v51, %v17152_v37  ;;  %v5890_v41 = vmul.f32 %v17046_v29, %v17153_v10  ;;  %v6784_v34 = vadd.f32 %v6656_v49, %v6012_v5  ;;  %v17154_v9 = vld [vmem:[#allocation99_spill] sm:$0xff]  ;;  %v6913_v49 = vmax.f32 %v6785_v25, 0.0  ;;  %v10873_v25 = vld [vmem:[%s11557_s20 + $0x378] sm:$0xff] }
 0x4ed   : > { %v10171_v48 = vpop.f32.mrf.mxu0  ;;  %10237 = vmatmul.mubr.msk.bf16.vlgmr.msra.gmra.mxu1 %vm1667_vm1, %v3700_v47  ;;  %v5249_v14 = vmul.f32 %v17094_v51, %v17154_v9  ;;  %v17156_v55 = vld [vmem:[#allocation279_spill] sm:$0xff]  ;;  %v6786_v38 = vadd.f32 %v6658_v40, %v6014_v59  ;;  %v6016_v5 = vadd.f32 %v5888_v3, %v14951_v21  ;;  %v6017_v6 = vadd.f32 %v5889_v4, %v5245_v60  ;;  %v17158_v9 = vld [vmem:[#allocation170_spill] sm:$0xff] }
 0x4ee   : > { %10648 = vset.pattern.permute.xlu1 %v16981_v36  ;;  %v6663_v16 = vmul.f32 %v17053_v57, %v17156_v55  ;;  %v3642_v23 = vmax.f32 %v10171_v48, 0.0  ;;  %v6915_v47 = vmax.f32 %v6787_v31, 0.0  ;;  %v6019_v37 = vadd.f32 %v5891_v61, %v5247_v7 }
 0x4ef   : > { %6431 = vperm.xlu1 %10648, %v14682_v44   ;;  %v6661_v44 = vmul.f32 %v17053_v57, %v17155_v20  ;;  %v3399_v0 = vpop.f32.mrf.mxu0  ;;  %v3639_v10 = vmax.f32 %v3396_v11, 0.0  ;;  %v6018_v40 = vadd.f32 %v5890_v41, %v14960_v27  ;;  %v6660_v21 = vmul.f32 %v17053_v57, %v14669_v33  ;;  %v17157_v27 = vld [vmem:[#allocation207_spill] sm:$0xff] }
 0x4f0   : > { %5771 = vperm.xlu0 %10669, %v10872_v15   ;;  %v15031_v62 = vpop.permute.xlu1 %5583  ;;  %v15033_v42 = vpop.permute.xlu0 %5527  ;;  %v3640_v59 = vmax.f32 %v3399_v0, 0.0  ;;  %v6912_v15 = vmax.f32 %v6784_v34, 0.0  ;;  %v3641_v3 = vmax.f32 %v10170_v13, 0.0  ;;  %v6914_v60 = vmax.f32 %v6786_v38, 0.0 }
 0x4f1   : > { %10333 = vmatmul.mubr.msk.bf16.gmra.mxu0 %vm1667_vm1, %v7023_v43  ;;  %v15042_v43 = vpop.f32.mrf.mxu0  ;;  %v6662_v4 = vmul.f32 %v17053_v57, %v14692_v63  ;;  %v5893_v11 = vmul.f32 %v17046_v29, %v14942_v35  ;;  %v6789_v13 = vadd.f32 %v6661_v44, %v6017_v6  ;;  %v6791_v34 = vadd.f32 %v6663_v16, %v6019_v37  ;;  %v10689_v35 = vld [vmem:[%s16083_s11 + $0x28] sm:$0xff]   ;;  %v17159_v44 = vld [vmem:[#allocation172_spill] sm:$0xff]  ;;  %v10874_v16 = vld [vmem:[%s11557_s20 + $0x380] sm:$0xff] }
 0x4f2   : > { %10336 = vmatprep.mubr.msk.bf16.mxu0 %vm1667_vm1, %v7024_v2  ;;  %v5892_v2 = vmul.f32 %v17046_v29, %v17157_v27  ;;  %v7025_v33 = vpack.c.bf16 %v6913_v49, %v6912_v15  ;;  %v3702_v61 = vpack.c.bf16 %v3642_v23, %v3641_v3  ;;  %v7026_v48 = vpack.c.bf16 %v6915_v47, %v6914_v60  ;;  %v17161_v6 = vld [vmem:[#allocation215_spill] sm:$0xff]  ;;  %v17162_v37 = vld [vmem:[#allocation174_spill] sm:$0xff] }
 0x4f3   : > { %6439 = vperm.xlu1 %10648, %v10870_v39   ;;  %v3701_v39 = vpack.c.bf16 %v3640_v59, %v3639_v10  ;;  %v3412_v41 = vpop.f32.mrf.mxu0  ;;  %v5895_v63 = vmul.f32 %v17046_v29, %v14972_v52  ;;  %v5248_v20 = vmul.f32 %v17094_v51, %v17158_v9  ;;  %v5250_v55 = vmul.f32 %v17094_v51, %v17159_v44  ;;  %v17160_v52 = vld [vmem:[#allocation30_spill] sm:$0xff]  ;;  %v17163_v59 = vld [vmem:[#allocation281_spill] sm:$0xff]  ;;  %v17164_v15 = vld [vmem:[#allocation283_spill] sm:$0xff] }
 0x4f4   : > { %5783 = vperm.xlu0 %10669, %v10873_v25   ;;  %v15048_v31 = vpop.permute.xlu1 %5587  ;;  %v15052_v7 = vpop.permute.xlu0 %5535  ;;  %v6788_v38 = vadd.f32 %v6660_v21, %v6016_v5  ;;  %v5894_v23 = vmul.f32 %v17046_v29, %v17161_v6  ;;  %v6790_v0 = vadd.f32 %v6662_v4, %v6018_v40  ;;  %v6021_v47 = vadd.f32 %v5893_v11, %v5249_v14 }
 0x4f5   : > { %10240 = vmatprep.mubr.msk.bf16.mxu1 %vm1667_vm1, %v3701_v39  ;;  %v10175_v49 = vpop.f32.mrf.mxu0  ;;  %10436 = vmatprep.subr.bf16.mxu1 %v10689_v35  ;;  %v15073_v10 = vmul.f32 %v17094_v51, %v17162_v37  ;;  %v6665_v5 = vmul.f32 %v17053_v57, %v17163_v59  ;;  %v6667_v21 = vmul.f32 %v17053_v57, %v17164_v15  ;;  %v6917_v3 = vmax.f32 %v6789_v13, 0.0  ;;  %v10690_v39 = vld [vmem:[%s16083_s11 + $0x20] sm:$0xff]   ;;  %v10877_v59 = vld [vmem:[%s11557_s20 + $0x2b0] sm:$0xff] }
 0x4f6   : > { %10241 = vmatmul.mubr.msk.bf16.gmra.mxu1 %vm1667_vm1, %v3702_v61  ;;  %v6020_v14 = vadd.f32 %v5892_v2, %v5248_v20  ;;  %v6664_v40 = vmul.f32 %v17053_v57, %v14720_v8  ;;  %v6919_v60 = vmax.f32 %v6791_v34, 0.0  ;;  %v6916_v27 = vmax.f32 %v6788_v38, 0.0  ;;  %v10875_v2 = vld [vmem:[%s11557_s20 + $0x2a8] sm:$0xff]  ;;  %v17167_v15 = vld [vmem:[#allocation31_spill] sm:$0xff] }
 0x4f7   : > { %6443 = vperm.xlu1 %10648, %v14713_v19   ;;  %v5251_v19 = vmul.f32 %v17094_v51, %v17160_v52  ;;  %10437 = vmatpush3.bf16.msra.mxu1 %v10689_v35  ;;  %v3415_v11 = vpop.f32.mrf.mxu0  ;;  %v3646_v13 = vmax.f32 %v10175_v49, 0.0  ;;  %v10876_v35 = vld [vmem:[%s11557_s20 + $0x398] sm:$0xff]  ;;  %v6022_v34 = vadd.f32 %v5894_v23, %v5250_v55  ;;  %v6793_v9 = vadd.f32 %v6665_v5, %v6021_v47  ;;  %v17166_v47 = vld [vmem:[#allocation62_spill] sm:$0xff]  ;;  %v10878_v5 = vld [vmem:[%s11557_s20 + $0x3a0] sm:$0xff] }
 0x4f8   : > { %5787 = vperm.xlu0 %10669, %v10874_v16   ;;  %v15089_v61 = vpop.permute.xlu0 %5543  ;;  %v3644_v8 = vmax.f32 %v3415_v11, 0.0  ;;  %10438 = vmatprep.subr.bf16.mxu1 %v10690_v39  ;;  %v7027_v44 = vpack.c.bf16 %v6917_v3, %v6916_v27  ;;  %v3645_v38 = vmax.f32 %v15042_v43, 0.0  ;;  %v6792_v55 = vadd.f32 %v6664_v40, %v6020_v14  ;;  %v10691_v23 = vld [vmem:[%s16083_s11 + $0x18] sm:$0xff]  }
 0x4f9   : > { %10337 = vmatmul.mubr.msk.bf16.gmra.mxu0 %vm1667_vm1, %v7025_v33  ;;  %v15080_v25 = vpop.permute.xlu1 %6351  ;;  %v6023_v4 = vadd.f32 %v5895_v63, %v5251_v19  ;;  %v3643_v33 = vmax.f32 %v3412_v41, 0.0  ;;  %v6666_v63 = vmul.f32 %v17053_v57, %v14754_v17  ;;  %v15095_v20 = vpop.f32.mrf.mxu0  ;;  %v5897_v41 = vmul.f32 %v17046_v29, %v14996_v30 }
 0x4fa   : > { %10340 = vmatprep.mubr.msk.bf16.mxu0 %vm1667_vm1, %v7026_v48  ;;  %v6918_v48 = vmax.f32 %v6790_v0, 0.0  ;;  %v5899_v17 = vmul.f32 %v17046_v29, %v15010_v58  ;;  %v17165_v0 = vld [vmem:[#allocation176_spill] sm:$0xff]  ;;  %v5253_v43 = vmul.f32 %v17094_v51, %v17166_v47  ;;  %v3704_v37 = vpack.c.bf16 %v3646_v13, %v3645_v38  ;;  %v17168_v58 = vld [vmem:[#allocation86_spill] sm:$0xff] }
 0x4fb   : > { %10649 = vset.pattern.permute.xlu1 %v16973_v1  ;;  %v3703_v16 = vpack.c.bf16 %v3644_v8, %v3643_v33  ;;  %10439 = vmatpush3.bf16.msra.mxu1 %v10690_v39  ;;  %v6795_v52 = vadd.f32 %v6667_v21, %v6023_v4  ;;  %v3428_v6 = vpop.f32.mrf.mxu0  ;;  %v5254_v30 = vmul.f32 %v17094_v51, %v17165_v0  ;;  %v6921_v40 = vmax.f32 %v6793_v9, 0.0  ;;  %v17169_v4 = vld [vmem:[#allocation285_spill] sm:$0xff]  ;;  %v17170_v39 = vld [vmem:[#allocation288_spill] sm:$0xff] }
 0x4fc   : > { %5679 = vperm.xlu1 %10649, %v10875_v2   ;;  %5799 = vperm.xlu0 %10669, %v10876_v35   ;;  %v7028_v19 = vpack.c.bf16 %v6919_v60, %v6918_v48  ;;  %v5255_v21 = vmul.f32 %v17094_v51, %v17167_v15  ;;  %v5896_v3 = vmul.f32 %v17046_v29, %v17168_v58  ;;  %v15123_v13 = vpop.permute.xlu0 %5551  ;;  %v17171_v2 = vld [vmem:[#allocation89_spill] sm:$0xff]  ;;  %v6920_v8 = vmax.f32 %v6792_v55, 0.0  ;;  %v10879_v55 = vld [vmem:[%s11557_s20 + $0x3b8] sm:$0xff] }
 0x4fd   : > { %v15100_v49 = vpop.permute.xlu1 %6359  ;;  %v6794_v14 = vadd.f32 %v6666_v63, %v6022_v34  ;;  %10244 = vmatprep.mubr.msk.bf16.mxu1 %vm1667_vm1, %v3703_v16  ;;  %v10179_v60 = vpop.f32.mrf.mxu0  ;;  %10440 = vmatprep.subr.bf16.mxu1 %v10691_v23  ;;  %v6669_v11 = vmul.f32 %v17053_v57, %v17169_v4  ;;  %v6671_v27 = vmul.f32 %v17053_v57, %v17170_v39  ;;  %v6923_v34 = vmax.f32 %v6795_v52, 0.0 }
 0x4fe   : > { %v6025_v33 = vadd.f32 %v5897_v41, %v5253_v43  ;;  %10245 = vmatmul.mubr.msk.bf16.gmra.mxu1 %vm1667_vm1, %v3704_v37  ;;  %v5898_v35 = vmul.f32 %v17046_v29, %v17171_v2  ;;  %v6027_v48 = vadd.f32 %v5899_v17, %v5255_v21  ;;  %v6668_v41 = vmul.f32 %v17053_v57, %v14789_v26  ;;  %v17176_v2 = vld [vmem:[#allocation94_spill] sm:$0xff] }
 0x4ff   : > { %v3431_v9 = vpop.f32.mrf.mxu0  ;;  %10441 = vmatpush3.bf16.msra.mxu1 %v10691_v23  ;;  %v3647_v38 = vmax.f32 %v3428_v6, 0.0  ;;  %v3650_v16 = vmax.f32 %v10179_v60, 0.0  ;;  %v6922_v17 = vmax.f32 %v6794_v14, 0.0  ;;  %v6670_v23 = vmul.f32 %v17053_v57, %v14823_v45  ;;  %v17172_v45 = vld [vmem:[#allocation63_spill] sm:$0xff]  ;;  %v17173_v14 = vld [vmem:[#allocation105_spill] sm:$0xff] }
 0x500   : > { %5683 = vperm.xlu1 %10649, %v10877_v59   ;;  %5803 = vperm.xlu0 %10669, %v10878_v5   ;;  %v3648_v52 = vmax.f32 %v3431_v9, 0.0  ;;  %v7029_v0 = vpack.c.bf16 %v6921_v40, %v6920_v8  ;;  %v6797_v47 = vadd.f32 %v6669_v11, %v6025_v33  ;;  %v5901_v26 = vmul.f32 %v17046_v29, %v15033_v42  ;;  %v15152_v42 = vpop.permute.xlu0 %5559  ;;  %v17174_v60 = vld [vmem:[#allocation81_spill] sm:$0xff] }
 0x501   : > { %10341 = vmatmul.mubr.msk.bf16.gmra.mxu0 %vm1667_vm1, %v7027_v44  ;;  %v15129_v63 = vpop.permute.xlu1 %6363  ;;  %v10692_v44 = vld [vmem:[%s16083_s11 + $0x10] sm:$0xff]   ;;  %v3649_v6 = vmax.f32 %v15095_v20, 0.0  ;;  %v6026_v37 = vadd.f32 %v5898_v35, %v5254_v30  ;;  %v7030_v5 = vpack.c.bf16 %v6923_v34, %v6922_v17  ;;  %v6799_v15 = vadd.f32 %v6671_v27, %v6027_v48  ;;  %v10880_v20 = vld [vmem:[%s11557_s20 + $0x3c0] sm:$0xff]  ;;  %v17175_v27 = vld [vmem:[#allocation178_spill] sm:$0xff] }
 0x502   : > { %10344 = vmatprep.mubr.msk.bf16.mxu0 %vm1667_vm1, %v7028_v19  ;;  %v6024_v19 = vadd.f32 %v5896_v3, %v15073_v10  ;;  %10442 = vmatprep.subr.bf16.mxu1 %v10692_v44  ;;  %v3705_v43 = vpack.c.bf16 %v3648_v52, %v3647_v38  ;;  %v5903_v10 = vmul.f32 %v17046_v29, %v15052_v7  ;;  %v6925_v11 = vmax.f32 %v6797_v47, 0.0  ;;  %v10694_v34 = vld [vmem:[%s16083_s11] sm:$0xff]   ;;  %v17177_v48 = vld [vmem:[#allocation180_spill] sm:$0xff]  ;;  %v17179_v17 = vld [vmem:[#allocation182_spill] sm:$0xff] }
 0x503   : > { %10443 = vmatpush3.bf16.msra.mxu1 %v10692_v44  ;;  %v5257_v21 = vmul.f32 %v17094_v51, %v17172_v45  ;;  %v3706_v3 = vpack.c.bf16 %v3650_v16, %v3649_v6  ;;  %v5259_v7 = vmul.f32 %v17094_v51, %v17173_v14  ;;  %v6798_v40 = vadd.f32 %v6670_v23, %v6026_v37  ;;  %v17178_v44 = vld [vmem:[#allocation291_spill] sm:$0xff]  ;;  %v10881_v52 = vld [vmem:[%s11557_s20 + $0x3d8] sm:$0xff] }
 0x504   : > { %10650 = vset.pattern.permute.xlu1 %v16981_v36  ;;  %5815 = vperm.xlu0 %10669, %v10879_v55   ;;  %v6796_v58 = vadd.f32 %v6668_v41, %v6024_v19  ;;  %v5900_v4 = vmul.f32 %v17046_v29, %v17174_v60  ;;  %v5256_v33 = vmul.f32 %v17094_v51, %v17175_v27  ;;  %v6927_v8 = vmax.f32 %v6799_v15, 0.0  ;;  %v5568_v15 = vpop.permute.xlu0 %5567 }
 0x505   : > { %6447 = vperm.xlu1 %10650, %v14746_v22   ;;  %v10693_v22 = vld [vmem:[%s16083_s11 + $0x8] sm:$0xff]   ;;  %10248 = vmatprep.mubr.msk.bf16.mxu1 %vm1667_vm1, %v3705_v43  ;;  %v6029_v39 = vadd.f32 %v5901_v26, %v5257_v21  ;;  %v5902_v35 = vmul.f32 %v17046_v29, %v17176_v2  ;;  %v5258_v9 = vmul.f32 %v17094_v51, %v17177_v48  ;;  %v6926_v26 = vmax.f32 %v6798_v40, 0.0  ;;  %v10882_v40 = vld [vmem:[%s11557_s20 + $0x3e0] sm:$0xff]  ;;  %v17186_v2 = vld [vmem:[#allocation104_spill] sm:$0xff] }
 0x506   : > { %v15155_v30 = vpop.permute.xlu1 %5599  ;;  %10444 = vmatprep.subr.bf16.mxu1 %v10693_v22  ;;  %10249 = vmatmul.mubr.msk.bf16.gmra.mxu1 %vm1667_vm1, %v3706_v3  ;;  %v6673_v41 = vmul.f32 %v17053_v57, %v17178_v44  ;;  %v6924_v38 = vmax.f32 %v6796_v58, 0.0  ;;  %v6672_v16 = vmul.f32 %v17053_v57, %v14849_v50  ;;  %v5260_v23 = vmul.f32 %v17094_v51, %v17179_v17  ;;  %v17181_v3 = vld [vmem:[#allocation184_spill] sm:$0xff] }
 0x507   : > { %10445 = vmatpush3.bf16.msra.mxu1 %v10693_v22  ;;  %v6674_v6 = vmul.f32 %v17053_v57, %v14865_v46  ;;  %v6028_v50 = vadd.f32 %v5900_v4, %v5256_v33  ;;  %v6030_v22 = vadd.f32 %v5902_v35, %v5258_v9  ;;  %v7032_v45 = vpack.c.bf16 %v6927_v8, %v6926_v26  ;;  %v17184_v4 = vld [vmem:[#allocation297_spill] sm:$0xff]  ;;  %v10883_v9 = vld [vmem:[%s11557_s20 + $0x2c8] sm:$0xff] }
 0x508   : > { %5819 = vperm.xlu0 %10669, %v10880_v20   ;;  %10446 = vmatprep.subr.bf16.mxu1 %v10694_v34  ;;  %v7031_v43 = vpack.c.bf16 %v6925_v11, %v6924_v38  ;;  %v6801_v37 = vadd.f32 %v6673_v41, %v6029_v39  ;;  %v5907_v58 = vmul.f32 %v17046_v29, %v15123_v13  ;;  %v17185_v39 = vld [vmem:[#allocation238_spill] sm:$0xff] }
 0x509   : > { %6455 = vperm.xlu1 %10650, %v10877_v59   ;;  %10345 = vmatmul.mubr.msk.bf16.gmra.mxu0 %vm1667_vm1, %v7029_v0  ;;  %v6031_v59 = vadd.f32 %v5903_v10, %v5259_v7  ;;  %v15178_v55 = vpop.f32.mrf.mxu0  ;;  %v17180_v0 = vld [vmem:[#allocation294_spill] sm:$0xff]  ;;  %v5262_v46 = vmul.f32 %v17094_v51, %v17181_v3  ;;  %v6800_v14 = vadd.f32 %v6672_v16, %v6028_v50  ;;  %v10884_v50 = vld [vmem:[%s11557_s20 + $0x3f8] sm:$0xff] }
 0x50a   : > { %10348 = vmatprep.mubr.msk.bf16.mxu0 %vm1667_vm1, %v7030_v5  ;;  %v15181_v19 = vpop.permute.xlu1 %5603  ;;  %v6675_v47 = vmul.f32 %v17053_v57, %v17180_v0  ;;  %v5905_v5 = vmul.f32 %v17046_v29, %v15089_v61  ;;  %v17183_v61 = vld [vmem:[#allocation66_spill] sm:$0xff]  ;;  %v6677_v11 = vmul.f32 %v17053_v57, %v17184_v4  ;;  %v5904_v13 = vmul.f32 %v17046_v29, %v17185_v39 }
 0x50b   : > { %v3444_v10 = vpop.f32.mrf.mxu0  ;;  %10447 = vmatpush3.bf16.msra.mxu1 %v10694_v34  ;;  %v5263_v60 = vmul.f32 %v17094_v51, %v17183_v61  ;;  %v6802_v27 = vadd.f32 %v6674_v6, %v6030_v22  ;;  %v5906_v35 = vmul.f32 %v17046_v29, %v17186_v2  ;;  %v6929_v8 = vmax.f32 %v6801_v37, 0.0  ;;  %v15218_v6 = vpop.permute.xlu0 %5579  ;;  %v10886_v2 = vld [vmem:[%s11557_s20 + $0x3e8] sm:$0xff] }
 0x50c   : > { %5831 = vperm.xlu0 %10669, %v10881_v52   ;;  %v6803_v21 = vadd.f32 %v6675_v47, %v6031_v59  ;;  %v3651_v38 = vmax.f32 %v3444_v10, 0.0  ;;  %v17187_v52 = vld [vmem:[#allocation300_spill] sm:$0xff]  ;;  %v6928_v0 = vmax.f32 %v6800_v14, 0.0  ;;  %v6676_v47 = vmul.f32 %v17053_v57, %v14888_v56 }
 0x50d   : > { %6459 = vperm.xlu1 %10650, %v14778_v18   ;;  %v17182_v18 = vld [vmem:[#allocation34_spill] sm:$0xff]  ;;  %v10183_v7 = vpop.f32.mrf.mxu0  ;;  %v6035_v41 = vadd.f32 %v5907_v58, %v5263_v60  ;;  %v6679_v17 = vmul.f32 %v17053_v57, %v17187_v52  ;;  %v3653_v26 = vmax.f32 %v15178_v55, 0.0  ;;  %v6930_v37 = vmax.f32 %v6802_v27, 0.0  ;;  %v10885_v55 = vld [vmem:[%s11557_s20 + $0x2d0] sm:$0xff] }
 0x50e   : > { %v5261_v20 = vmul.f32 %v17094_v51, %v17182_v18  ;;  %v3654_v34 = vmax.f32 %v10183_v7, 0.0  ;;  %v6931_v44 = vmax.f32 %v6803_v21, 0.0  ;;  %v7033_v21 = vpack.c.bf16 %v6929_v8, %v6928_v0 }
 0x50f   : > { %v15206_v33 = vpop.permute.xlu1 %6367  ;;  %v3447_v48 = vpop.f32.mrf.mxu0  ;;  %v5909_v56 = vmul.f32 %v17046_v29, %v15152_v42  ;;  %v6034_v18 = vadd.f32 %v5906_v35, %v5262_v46  ;;  %v5911_v14 = vmul.f32 %v17046_v29, %v5568_v15  ;;  %v17189_v42 = vld [vmem:[#allocation186_spill] sm:$0xff]  ;;  %v17190_v46 = vld [vmem:[#allocation67_spill] sm:$0xff]  ;;  %v17192_v35 = vld [vmem:[#allocation188_spill] sm:$0xff] }
 0x510   : > { %5835 = vperm.xlu0 %10669, %v10882_v40   ;;  %v6033_v59 = vadd.f32 %v5905_v5, %v5261_v20  ;;  %v3652_v16 = vmax.f32 %v3447_v48, 0.0  ;;  %v6678_v5 = vmul.f32 %v17053_v57, %v14904_v12  ;;  %v3708_v3 = vpack.c.bf16 %v3654_v34, %v3653_v26  ;;  %v17188_v12 = vld [vmem:[#allocation35_spill] sm:$0xff] }
 0x511   : > { %10651 = vset.pattern.permute.xlu1 %v16973_v1  ;;  %10349 = vmatmul.mubr.msk.bf16.gmra.mxu0 %vm1667_vm1, %v7031_v43  ;;  %v6032_v43 = vadd.f32 %v5904_v13, %v5260_v23  ;;  %v7034_v20 = vpack.c.bf16 %v6931_v44, %v6930_v37  ;;  %v6807_v23 = vadd.f32 %v6679_v17, %v6035_v41  ;;  %v15248_v44 = vpop.permute.xlu0 %5591  ;;  %v17194_v41 = vld [vmem:[#allocation303_spill] sm:$0xff] }
 0x512   : > { %5695 = vperm.xlu1 %10651, %v10883_v9   ;;  %10352 = vmatprep.mubr.msk.bf16.mxu0 %vm1667_vm1, %v7032_v45  ;;  %v3707_v10 = vpack.c.bf16 %v3652_v16, %v3651_v38  ;;  %v6805_v58 = vadd.f32 %v6677_v11, %v6033_v59  ;;  %v5265_v40 = vmul.f32 %v17094_v51, %v17188_v12  ;;  %v17191_v11 = vld [vmem:[#allocation155_spill] sm:$0xff]  ;;  %v17193_v59 = vld [vmem:[#allocation109_spill] sm:$0xff] }
 0x513   : > { %v10186_v22 = vpop.f32.mrf.mxu0  ;;  %v15223_v45 = vpop.permute.xlu1 %6375  ;;  %v6804_v61 = vadd.f32 %v6676_v47, %v6032_v43  ;;  %v5264_v60 = vmul.f32 %v17094_v51, %v17189_v42  ;;  %v5267_v4 = vmul.f32 %v17094_v51, %v17190_v46  ;;  %v5910_v15 = vmul.f32 %v17046_v29, %v17191_v11 }
 0x514   : > { %5847 = vperm.xlu0 %10669, %v10884_v50   ;;  %10252 = vmatprep.mubr.msk.bf16.mxu1 %vm1667_vm1, %v3707_v10  ;;  %v6806_v39 = vadd.f32 %v6678_v5, %v6034_v18  ;;  %v5266_v8 = vmul.f32 %v17094_v51, %v17192_v35  ;;  %v5908_v34 = vmul.f32 %v17046_v29, %v17193_v59  ;;  %v6933_v48 = vmax.f32 %v6805_v58, 0.0  ;;  %v17200_v35 = vld [vmem:[#allocation110_spill] sm:$0xff] }
 0x515   : > { %v3460_v7 = vpop.f32.mrf.mxu0  ;;  %10253 = vmatmul.mubr.msk.bf16.gmra.mxu1 %vm1667_vm1, %v3708_v3  ;;  %v6037_v9 = vadd.f32 %v5909_v56, %v5265_v40  ;;  %v6681_v38 = vmul.f32 %v17053_v57, %v17194_v41  ;;  %v6935_v16 = vmax.f32 %v6807_v23, 0.0  ;;  %v6039_v52 = vadd.f32 %v5911_v14, %v5267_v4  ;;  %v5596_v40 = vpop.permute.xlu0 %5595 }
 0x516   : > { %5699 = vperm.xlu1 %10651, %v10885_v55   ;;  %v6932_v47 = vmax.f32 %v6804_v61, 0.0  ;;  %v6680_v26 = vmul.f32 %v17053_v57, %v14926_v53  ;;  %v3655_v50 = vmax.f32 %v3460_v7, 0.0  ;;  %v6038_v37 = vadd.f32 %v5910_v15, %v5266_v8 }
 0x517   : > { %v10187_v13 = vpop.f32.mrf.mxu0  ;;  %v15240_v27 = vpop.permute.xlu1 %6379  ;;  %v6934_v5 = vmax.f32 %v6806_v39, 0.0  ;;  %v6683_v10 = vmul.f32 %v17053_v57, %v14988_v28  ;;  %v6036_v58 = vadd.f32 %v5908_v34, %v5264_v60  ;;  %v6809_v3 = vadd.f32 %v6681_v38, %v6037_v9  ;;  %v17198_v39 = vld [vmem:[#allocation11_spill] sm:$0xff] }
 0x518   : > { %10672 = vset.pattern.permute.xlu0 %v16981_v36  ;;  %v3658_v17 = vmax.f32 %v10187_v13, 0.0  ;;  %v7035_v56 = vpack.c.bf16 %v6933_v48, %v6932_v47  ;;  %v5914_v28 = vmul.f32 %v17046_v29, %v15218_v6  ;;  %v5913_v60 = vmul.f32 %v17046_v29, %v14956_v54  ;;  %v17201_v48 = vld [vmem:[#allocation250_spill] sm:$0xff] }
 0x519   : > { %6611 = vperm.xlu0 %10672, %v10886_v2   ;;  %10353 = vmatmul.mubr.msk.bf16.gmra.mxu0 %vm1667_vm1, %v7033_v21  ;;  %v3463_v0 = vpop.f32.mrf.mxu0  ;;  %v3657_v21 = vmax.f32 %v10186_v22, 0.0  ;;  %v6811_v14 = vadd.f32 %v6683_v10, %v6039_v52  ;;  %v6808_v7 = vadd.f32 %v6680_v26, %v6036_v58  ;;  %v17196_v22 = vld [vmem:[#allocation88_spill] sm:$0xff]  ;;  %v6937_v46 = vmax.f32 %v6809_v3, 0.0  ;;  %v17199_v2 = vld [vmem:[#allocation190_spill] sm:$0xff] }
 0x51a   : > { %10652 = vset.pattern.permute.xlu1 %v16981_v36  ;;  %10356 = vmatprep.mubr.msk.bf16.mxu0 %vm1667_vm1, %v7034_v20  ;;  %v3656_v43 = vmax.f32 %v3463_v0, 0.0  ;;  %v17195_v20 = vld [vmem:[#allocation306_spill] sm:$0xff]  ;;  %v5912_v42 = vmul.f32 %v17046_v29, %v17196_v22  ;;  %v5915_v11 = vmul.f32 %v17046_v29, %v15031_v62  ;;  %v5268_v54 = vmul.f32 %v17094_v51, %v17199_v2  ;;  %v5608_v0 = vpop.permute.xlu0 %5607  ;;  %v17206_v22 = vld [vmem:[#allocation196_spill] sm:$0xff]  ;;  %v10888_v2 = vld [vmem:[%s11557_s20 + $0x2f0] sm:$0xff] }
 0x51b   : > { %6463 = vperm.xlu1 %10652, %v14808_v32   ;;  %v6682_v23 = vmul.f32 %v17053_v57, %v17195_v20  ;;  %v7036_v32 = vpack.c.bf16 %v6935_v16, %v6934_v5  ;;  %v3710_v12 = vpack.c.bf16 %v3658_v17, %v3657_v21  ;;  %v6939_v15 = vmax.f32 %v6811_v14, 0.0  ;;  %v17203_v5 = vld [vmem:[#allocation309_spill] sm:$0xff] }
 0x51c   : > { %v3709_v18 = vpack.c.bf16 %v3656_v43, %v3655_v50  ;;  %v15261_v53 = vpop.permute.xlu1 %5615  ;;  %v5269_v8 = vmul.f32 %v17094_v51, %v17200_v35  ;;  %v6936_v59 = vmax.f32 %v6808_v7, 0.0  ;;  %v6685_v34 = vmul.f32 %v17053_v57, %v15004_v24  ;;  %v17202_v24 = vld [vmem:[#allocation194_spill] sm:$0xff] }
 0x51d   : > { %v6810_v61 = vadd.f32 %v6682_v23, %v6038_v37  ;;  %v5271_v62 = vmul.f32 %v17094_v51, %v17201_v48  ;;  %v6040_v16 = vadd.f32 %v5912_v42, %v5268_v54  ;;  %v6686_v26 = vmul.f32 %v17053_v57, %v15080_v25  ;;  %v17207_v35 = vld [vmem:[#allocation254_spill] sm:$0xff] }
 0x51e   : > { %10256 = vmatprep.mubr.msk.bf16.mxu1 %vm1667_vm1, %v3709_v18  ;;  %v6041_v52 = vadd.f32 %v5913_v60, %v5269_v8  ;;  %v7037_v17 = vpack.c.bf16 %v6937_v46, %v6936_v59  ;;  %v5272_v37 = vmul.f32 %v17094_v51, %v17202_v24  ;;  %v6684_v10 = vmul.f32 %v17053_v57, %v17203_v5  ;;  %v17204_v18 = vld [vmem:[#allocation312_spill] sm:$0xff]  ;;  %v17208_v48 = vld [vmem:[#allocation198_spill] sm:$0xff] }
 0x51f   : > { %6471 = vperm.xlu1 %10652, %v10885_v55   ;;  %10257 = vmatmul.mubr.msk.bf16.gmra.mxu1 %vm1667_vm1, %v3710_v12  ;;  %v17197_v55 = vld [vmem:[#allocation192_spill] sm:$0xff]  ;;  %v6938_v9 = vmax.f32 %v6810_v61, 0.0  ;;  %v6043_v47 = vadd.f32 %v5915_v11, %v5271_v62  ;;  %v5917_v58 = vmul.f32 %v17046_v29, %v15248_v44  ;;  %v6687_v25 = vmul.f32 %v17053_v57, %v17204_v18 }
 0x520   : > { %v5270_v4 = vmul.f32 %v17094_v51, %v17197_v55  ;;  %v10190_v6 = vpop.f32.mrf.mxu0  ;;  %v15278_v13 = vpop.permute.xlu1 %5619  ;;  %v6813_v21 = vadd.f32 %v6685_v34, %v6041_v52  ;;  %v5918_v23 = vmul.f32 %v17046_v29, %v5596_v40  ;;  %v17205_v12 = vld [vmem:[#allocation252_spill] sm:$0xff]  ;;  %v6812_v61 = vadd.f32 %v6684_v10, %v6040_v16 }
 0x521   : > { %10357 = vmatmul.mubr.msk.bf16.gmra.mxu0 %vm1667_vm1, %v7035_v56  ;;  %v7038_v50 = vpack.c.bf16 %v6939_v15, %v6938_v9  ;;  %v10887_v56 = vld [vmem:[%s11557_s20 + $0x2e8] sm:$0xff]  ;;  %v5273_v7 = vmul.f32 %v17094_v51, %v17205_v12  ;;  %v5274_v42 = vmul.f32 %v17094_v51, %v17206_v22  ;;  %v6815_v60 = vadd.f32 %v6687_v25, %v6043_v47  ;;  %v5612_v15 = vpop.permute.xlu0 %5611 }
 0x522   : > { %10360 = vmatprep.mubr.msk.bf16.mxu0 %vm1667_vm1, %v7036_v32  ;;  %v6042_v41 = vadd.f32 %v5914_v28, %v5270_v4  ;;  %v3476_v38 = vpop.f32.mrf.mxu0  ;;  %v5919_v46 = vmul.f32 %v17046_v29, %v15155_v30  ;;  %v3661_v40 = vmax.f32 %v10190_v6, 0.0  ;;  %v6941_v55 = vmax.f32 %v6813_v21, 0.0 }
 0x523   : > { %6475 = vperm.xlu1 %10652, %v17198_v39   ;;  %v3659_v44 = vmax.f32 %v3476_v38, 0.0  ;;  %v5916_v4 = vmul.f32 %v17046_v29, %v15048_v31  ;;  %v6045_v11 = vadd.f32 %v5917_v58, %v5273_v7  ;;  %v5275_v8 = vmul.f32 %v17094_v51, %v17207_v35 }
 0x524   : > { %v10191_v43 = vpop.f32.mrf.mxu0  ;;  %v6814_v20 = vadd.f32 %v6686_v26, %v6042_v41  ;;  %v6046_v34 = vadd.f32 %v5918_v23, %v5274_v42  ;;  %v5276_v6 = vmul.f32 %v17094_v51, %v17208_v48  ;;  %v6940_v62 = vmax.f32 %v6812_v61, 0.0  ;;  %v17209_v41 = vld [vmem:[#allocation315_spill] sm:$0xff] }
 0x525   : > { %v3662_v32 = vmax.f32 %v10191_v43, 0.0  ;;  %v6688_v31 = vmul.f32 %v17053_v57, %v15100_v49  ;;  %v6689_v9 = vmul.f32 %v17053_v57, %v15129_v63  ;;  %v6691_v38 = vmul.f32 %v17053_v57, %v17209_v41 }
 0x526   : > { %v15298_v3 = vpop.permute.xlu1 %6383  ;;  %v3479_v14 = vpop.f32.mrf.mxu0  ;;  %v6942_v59 = vmax.f32 %v6814_v20, 0.0  ;;  %v6943_v16 = vmax.f32 %v6815_v60, 0.0  ;;  %v6047_v52 = vadd.f32 %v5919_v46, %v5275_v8  ;;  %v7039_v26 = vpack.c.bf16 %v6941_v55, %v6940_v62 }
 0x527   : > { %10653 = vset.pattern.permute.xlu1 %v16973_v1  ;;  %v3660_v28 = vmax.f32 %v3479_v14, 0.0  ;;  %v3712_v30 = vpack.c.bf16 %v3662_v32, %v3661_v40  ;;  %v6817_v49 = vadd.f32 %v6689_v9, %v6045_v11  ;;  %v5921_v43 = vmul.f32 %v17046_v29, %v5608_v0  ;;  %v17212_v0 = vld [vmem:[#allocation258_spill] sm:$0xff]  ;;  %v5624_v32 = vpop.permute.xlu0 %5623  ;;  %v17213_v14 = vld [vmem:[#allocation260_spill] sm:$0xff] }
 0x528   : > { %5711 = vperm.xlu1 %10653, %v10887_v56   ;;  %v7040_v24 = vpack.c.bf16 %v6943_v16, %v6942_v59  ;;  %v5922_v10 = vmul.f32 %v17046_v29, %v5612_v15  ;;  %v5923_v21 = vmul.f32 %v17046_v29, %v15261_v53  ;;  %v17210_v56 = vld [vmem:[#allocation200_spill] sm:$0xff]  ;;  %v5279_v20 = vmul.f32 %v17094_v51, %v17212_v0 }
 0x529   : > { %10361 = vmatmul.mubr.msk.bf16.gmra.mxu0 %vm1667_vm1, %v7037_v17  ;;  %v3711_v39 = vpack.c.bf16 %v3660_v28, %v3659_v44  ;;  %v6690_v17 = vmul.f32 %v17053_v57, %v15206_v33  ;;  %v10889_v33 = vld [vmem:[%s11557_s20 + $0x2e0] sm:$0xff]  ;;  %v5278_v18 = vmul.f32 %v17094_v51, %v17210_v56  ;;  %v5281_v12 = vmul.f32 %v17094_v51, %v17213_v14  ;;  %v17214_v28 = vld [vmem:[#allocation318_spill] sm:$0xff]  ;;  %v17217_v56 = vld [vmem:[#allocation204_spill] sm:$0xff] }
 0x52a   : > { %10364 = vmatprep.mubr.msk.bf16.mxu0 %vm1667_vm1, %v7038_v50  ;;  %v15314_v54 = vpop.permute.xlu1 %6391  ;;  %v6044_v50 = vadd.f32 %v5916_v4, %v5272_v37  ;;  %v17211_v37 = vld [vmem:[#allocation256_spill] sm:$0xff]  ;;  %v6819_v53 = vadd.f32 %v6691_v38, %v6047_v52  ;;  %v5920_v7 = vmul.f32 %v17046_v29, %v15181_v19  ;;  %v6694_v44 = vmul.f32 %v17053_v57, %v15298_v3  ;;  %v10891_v14 = vld [vmem:[%s11557_s20 + $0x308] sm:$0xff] }
 0x52b   : > { %10260 = vmatprep.mubr.msk.bf16.mxu1 %vm1667_vm1, %v3711_v39  ;;  %v6818_v5 = vadd.f32 %v6690_v17, %v6046_v34  ;;  %v5277_v25 = vmul.f32 %v17094_v51, %v17211_v37  ;;  %v6695_v22 = vmul.f32 %v17053_v57, %v17214_v28  ;;  %v6945_v42 = vmax.f32 %v6817_v49, 0.0  ;;  %v5628_v9 = vpop.permute.xlu0 %5627  ;;  %v10890_v17 = vld [vmem:[%s11557_s20 + $0x2f8] sm:$0xff]  ;;  %v17215_v49 = vld [vmem:[#allocation262_spill] sm:$0xff] }
 0x52c   : > { %5715 = vperm.xlu1 %10653, %v10888_v2   ;;  %10261 = vmatmul.mubr.msk.bf16.gmra.mxu1 %vm1667_vm1, %v3712_v30  ;;  %v6816_v23 = vadd.f32 %v6688_v31, %v6044_v50  ;;  %v6693_v46 = vmul.f32 %v17053_v57, %v15240_v27  ;;  %v6050_v55 = vadd.f32 %v5922_v10, %v5278_v18  ;;  %v6947_v59 = vmax.f32 %v6819_v53, 0.0  ;;  %v17216_v10 = vld [vmem:[#allocation202_spill] sm:$0xff] }
 0x52d   : > { %v10194_v47 = vpop.f32.mrf.mxu0  ;;  %v6049_v60 = vadd.f32 %v5921_v43, %v5277_v25  ;;  %v6946_v40 = vmax.f32 %v6818_v5, 0.0  ;;  %v6051_v4 = vadd.f32 %v5923_v21, %v5279_v20  ;;  %v6692_v35 = vmul.f32 %v17053_v57, %v15223_v45 }
 0x52e   : > { %v6396_v63 = vpop.permute.xlu1 %6395  ;;  %v6944_v39 = vmax.f32 %v6816_v23, 0.0  ;;  %v6048_v34 = vadd.f32 %v5920_v7, %v5276_v6  ;;  %v3665_v30 = vmax.f32 %v10194_v47, 0.0  ;;  %v6822_v48 = vadd.f32 %v6694_v44, %v6050_v55  ;;  %v17218_v7 = vld [vmem:[#allocation320_spill] sm:$0xff] }
 0x52f   : > { %v3492_v58 = vpop.f32.mrf.mxu0  ;;  %v6821_v27 = vadd.f32 %v6693_v46, %v6049_v60  ;;  %v5925_v31 = vmul.f32 %v17046_v29, %v5624_v32  ;;  %v7042_v38 = vpack.c.bf16 %v6947_v59, %v6946_v40  ;;  %v5924_v6 = vmul.f32 %v17046_v29, %v15278_v13 }
 0x530   : > { %10654 = vset.pattern.permute.xlu1 %v16981_v36  ;;  %v3663_v3 = vmax.f32 %v3492_v58, 0.0  ;;  %v7041_v62 = vpack.c.bf16 %v6945_v42, %v6944_v39  ;;  %v6697_v50 = vmul.f32 %v17053_v57, %v6396_v63  ;;  %v5283_v43 = vmul.f32 %v17094_v51, %v17215_v49 }
 0x531   : > { %6479 = vperm.xlu1 %10654, %v10889_v33   ;;  %10365 = vmatmul.mubr.msk.bf16.gmra.mxu0 %vm1667_vm1, %v7039_v26  ;;  %v10195_v61 = vpop.f32.mrf.mxu0  ;;  %v6820_v26 = vadd.f32 %v6692_v35, %v6048_v34  ;;  %v6950_v5 = vmax.f32 %v6822_v48, 0.0  ;;  %v5280_v21 = vmul.f32 %v17094_v51, %v17216_v10  ;;  %v6949_v13 = vmax.f32 %v6821_v27, 0.0  ;;  %v10892_v35 = vld [vmem:[%s11557_s20 + $0x310] sm:$0xff] }
 0x532   : > { %10368 = vmatprep.mubr.msk.bf16.mxu0 %vm1667_vm1, %v7040_v24  ;;  %v3666_v11 = vmax.f32 %v10195_v61, 0.0  ;;  %v5926_v24 = vmul.f32 %v17046_v29, %v5628_v9  ;;  %v6053_v58 = vadd.f32 %v5925_v31, %v5281_v12  ;;  %v6696_v63 = vmul.f32 %v17053_v57, %v15314_v54  ;;  %v17220_v9 = vld [vmem:[#allocation264_spill] sm:$0xff] }
 0x533   : > { %v3495_v15 = vpop.f32.mrf.mxu0  ;;  %v5282_v18 = vmul.f32 %v17094_v51, %v17217_v56  ;;  %v6948_v0 = vmax.f32 %v6820_v26, 0.0  ;;  %v6052_v20 = vadd.f32 %v5924_v6, %v5280_v21  ;;  %v6699_v12 = vmul.f32 %v17053_v57, %v17218_v7 }
 0x534   : > { %v3664_v8 = vmax.f32 %v3495_v15, 0.0  ;;  %v3714_v16 = vpack.c.bf16 %v3666_v11, %v3665_v30  ;;  %v6825_v32 = vadd.f32 %v6697_v50, %v6053_v58  ;;  %v17219_v30 = vld [vmem:[#allocation206_spill] sm:$0xff] }
 0x535   : > { %6487 = vperm.xlu1 %10654, %v10888_v2   ;;  %v5632_v19 = vpop.permute.xlu1 %5631  ;;  %v6823_v2 = vadd.f32 %v6695_v22, %v6051_v4  ;;  %v6054_v61 = vadd.f32 %v5926_v24, %v5282_v18  ;;  %v7043_v28 = vpack.c.bf16 %v6949_v13, %v6948_v0  ;;  %v5640_v22 = vpop.permute.xlu0 %5639  ;;  %v6824_v60 = vadd.f32 %v6696_v63, %v6052_v20  ;;  %v10894_v0 = vld [vmem:[%s11557_s20 + $0x318] sm:$0xff] }
 0x536   : > { %v3713_v41 = vpack.c.bf16 %v3664_v8, %v3663_v3  ;;  %v5927_v52 = vmul.f32 %v17046_v29, %v5632_v19  ;;  %v6953_v19 = vmax.f32 %v6825_v32, 0.0  ;;  %v5929_v8 = vmul.f32 %v17046_v29, %v5640_v22  ;;  %v17223_v22 = vld [vmem:[#allocation322_spill] sm:$0xff] }
 0x537   : > { %v6951_v37 = vmax.f32 %v6823_v2, 0.0  ;;  %v5284_v48 = vmul.f32 %v17094_v51, %v17219_v30  ;;  %v6952_v27 = vmax.f32 %v6824_v60, 0.0  ;;  %v10896_v30 = vld [vmem:[%s11557_s20 + $0x330] sm:$0xff] }
 0x538   : > { %v10198_v47 = vpop.f32.mrf.mxu0  ;;  %10264 = vmatprep.mubr.msk.bf16.mxu1 %vm1667_vm1, %v3713_v41  ;;  %v6055_v25 = vadd.f32 %v5927_v52, %v5283_v43  ;;  %v5285_v41 = vmul.f32 %v17094_v51, %v17220_v9 }
 0x539   : > { %6491 = vperm.xlu1 %10654, %v10890_v17   ;;  %v5636_v45 = vpop.permute.xlu1 %5635  ;;  %10369 = vmatmul.mubr.msk.bf16.gmra.mxu0 %vm1667_vm1, %v7041_v62  ;;  %v7044_v54 = vpack.c.bf16 %v6951_v37, %v6950_v5  ;;  %v3669_v15 = vmax.f32 %v10198_v47, 0.0  ;;  %v7045_v2 = vpack.c.bf16 %v6953_v19, %v6952_v27  ;;  %v10893_v47 = vld [vmem:[%s11557_s20 + $0x300] sm:$0xff]  ;;  %v5644_v37 = vpop.permute.xlu0 %5643 }
 0x53a   : > { %10372 = vmatprep.mubr.msk.bf16.mxu0 %vm1667_vm1, %v7042_v38  ;;  %10265 = vmatmul.mubr.msk.bf16.gmra.mxu1 %vm1667_vm1, %v3714_v16  ;;  %v3508_v33 = vpop.f32.mrf.mxu0  ;;  %v6827_v4 = vadd.f32 %v6699_v12, %v6055_v25  ;;  %v5928_v39 = vmul.f32 %v17046_v29, %v5636_v45  ;;  %v6057_v17 = vadd.f32 %v5929_v8, %v5285_v41 }
 0x53b   : > { %v3667_v40 = vmax.f32 %v3508_v33, 0.0  ;;  %v5930_v12 = vmul.f32 %v17046_v29, %v5644_v37 }
 0x53c   : > { %v10199_v23 = vpop.f32.mrf.mxu0  ;;  %v6955_v38 = vmax.f32 %v6827_v4, 0.0  ;;  %v6056_v16 = vadd.f32 %v5928_v39, %v5284_v48  ;;  %v17224_v48 = vld [vmem:[#allocation210_spill] sm:$0xff] }
 0x53d   : > { %10655 = vset.pattern.permute.xlu1 %v16973_v1  ;;  %v3670_v42 = vmax.f32 %v10199_v23, 0.0  ;;  %v17221_v23 = vld [vmem:[#allocation266_spill] sm:$0xff]  ;;  %v5656_v4 = vpop.permute.xlu0 %5655 }
 0x53e   : > { %5727 = vperm.xlu1 %10655, %v10891_v14   ;;  %v6400_v53 = vpop.permute.xlu1 %6399  ;;  %v3511_v46 = vpop.f32.mrf.mxu0  ;;  %v5287_v32 = vmul.f32 %v17094_v51, %v17221_v23  ;;  %v5933_v27 = vmul.f32 %v17046_v29, %v5656_v4  ;;  %v17228_v4 = vld [vmem:[#allocation324_spill] sm:$0xff] }
 0x53f   : > { %v6698_v44 = vmul.f32 %v17053_v57, %v6400_v53  ;;  %v3668_v55 = vmax.f32 %v3511_v46, 0.0  ;;  %v3716_v62 = vpack.c.bf16 %v3670_v42, %v3669_v15  ;;  %v6703_v42 = vmul.f32 %v17053_v57, %v17223_v22  ;;  %v10895_v46 = vld [vmem:[%s11557_s20 + $0x328] sm:$0xff] }
 0x541   : > { %v6826_v11 = vadd.f32 %v6698_v44, %v6054_v61  ;;  %10373 = vmatmul.mubr.msk.bf16.gmra.mxu0 %vm1667_vm1, %v7043_v28  ;;  %v3715_v59 = vpack.c.bf16 %v3668_v55, %v3667_v40  ;;  %v17222_v44 = vld [vmem:[#allocation208_spill] sm:$0xff] }
 0x542   : > { %5731 = vperm.xlu1 %10655, %v10892_v35   ;;  %v6408_v3 = vpop.permute.xlu1 %6407  ;;  %10376 = vmatprep.mubr.msk.bf16.mxu0 %vm1667_vm1, %v7044_v54  ;;  %v5286_v28 = vmul.f32 %v17094_v51, %v17222_v44 }
 0x543   : > { %v6954_v34 = vmax.f32 %v6826_v11, 0.0  ;;  %v6700_v31 = vmul.f32 %v17053_v57, %v6408_v3  ;;  %10268 = vmatprep.mubr.msk.bf16.mxu1 %vm1667_vm1, %v3715_v59 }
 0x544   : > { %10269 = vmatmul.mubr.msk.bf16.gmra.mxu1 %vm1667_vm1, %v3716_v62  ;;  %v6058_v55 = vadd.f32 %v5930_v12, %v5286_v28  ;;  %v5288_v62 = vmul.f32 %v17094_v51, %v17224_v48  ;;  %v17226_v12 = vld [vmem:[#allocation270_spill] sm:$0xff] }
 0x545   : > { %v7046_v26 = vpack.c.bf16 %v6955_v38, %v6954_v34  ;;  %v6828_v50 = vadd.f32 %v6700_v31, %v6056_v16 }
 0x546   : > { %10656 = vset.pattern.permute.xlu1 %v16981_v36  ;;  %v6412_v52 = vpop.permute.xlu1 %6411  ;;  %v10202_v45 = vpop.f32.mrf.mxu0 }
 0x547   : > { %v6701_v6 = vmul.f32 %v17053_v57, %v6412_v52  ;;  %6495 = vperm.xlu1 %10656, %v10893_v47   ;;  %v6956_v21 = vmax.f32 %v6828_v50, 0.0  ;;  %v3673_v25 = vmax.f32 %v10202_v45, 0.0 }
 0x548   : > { %v3524_v49 = vpop.f32.mrf.mxu0 }
 0x549   : > { %v6829_v43 = vadd.f32 %v6701_v6, %v6057_v17  ;;  %10377 = vmatmul.mubr.msk.bf16.gmra.mxu0 %vm1667_vm1, %v7045_v2  ;;  %v3671_v33 = vmax.f32 %v3524_v49, 0.0  ;;  %v17225_v17 = vld [vmem:[#allocation268_spill] sm:$0xff]  ;;  %v10897_v49 = vld [vmem:[%s11557_s20 + $0x320] sm:$0xff] }
 0x54a   : > { %v10203_v24 = vpop.f32.mrf.mxu0  ;;  %10380 = vmatprep.mubr.msk.bf16.mxu0 %vm1667_vm1, %v7046_v26  ;;  %v5289_v45 = vmul.f32 %v17094_v51, %v17225_v17  ;;  %v17229_v17 = vld [vmem:[#allocation214_spill] sm:$0xff] }
 0x54b   : > { %v6957_v5 = vmax.f32 %v6829_v43, 0.0  ;;  %6503 = vperm.xlu1 %10656, %v10892_v35   ;;  %v5648_v10 = vpop.permute.xlu1 %5647  ;;  %v3674_v13 = vmax.f32 %v10203_v24, 0.0 }
 0x54c   : > { %v3527_v58 = vpop.f32.mrf.mxu0  ;;  %v5931_v18 = vmul.f32 %v17046_v29, %v5648_v10  ;;  %v6061_v43 = vadd.f32 %v5933_v27, %v5289_v45  ;;  %v5292_v45 = vmul.f32 %v17094_v51, %v17229_v17 }
 0x54d   : > { %v3672_v63 = vmax.f32 %v3527_v58, 0.0  ;;  %v7047_v56 = vpack.c.bf16 %v6957_v5, %v6956_v21  ;;  %v3718_v7 = vpack.c.bf16 %v3674_v13, %v3673_v25 }
 0x54e   : > { %v6059_v54 = vadd.f32 %v5931_v18, %v5287_v32  ;;  %v5660_v32 = vpop.permute.xlu0 %5659 }
 0x54f   : > { %6507 = vperm.xlu1 %10656, %v10894_v0   ;;  %v5652_v20 = vpop.permute.xlu1 %5651  ;;  %v3717_v14 = vpack.c.bf16 %v3672_v63, %v3671_v33  ;;  %v10206_v53 = vpop.f32.mrf.mxu0  ;;  %v5934_v22 = vmul.f32 %v17046_v29, %v5660_v32 }
 0x550   : > { %v6831_v19 = vadd.f32 %v6703_v42, %v6059_v54  ;;  %v3677_v8 = vmax.f32 %v10206_v53, 0.0  ;;  %v5932_v59 = vmul.f32 %v17046_v29, %v5652_v20  ;;  %v10898_v54 = vld [vmem:[%s11557_s20 + $0x338] sm:$0xff] }
 0x551   : > { %v3540_v61 = vpop.f32.mrf.mxu0  ;;  %10272 = vmatprep.mubr.msk.bf16.mxu1 %vm1667_vm1, %v3717_v14  ;;  %10381 = vmatmul.mubr.msk.bf16.gmra.mxu0 %vm1667_vm1, %v7047_v56 }
 0x552   : > { %10273 = vmatmul.mubr.msk.bf16.gmra.mxu1 %vm1667_vm1, %v3718_v7  ;;  %v3675_v35 = vmax.f32 %v3540_v61, 0.0  ;;  %v6959_v2 = vmax.f32 %v6831_v19, 0.0  ;;  %v6060_v6 = vadd.f32 %v5932_v59, %v5288_v62  ;;  %v5291_v61 = vmul.f32 %v17094_v51, %v17226_v12 }
 0x553   : > { %10657 = vset.pattern.permute.xlu1 %v16973_v1  ;;  %v10207_v60 = vpop.f32.mrf.mxu0 }
 0x554   : > { %5743 = vperm.xlu1 %10657, %v10895_v46   ;;  %v6416_v40 = vpop.permute.xlu1 %6415  ;;  %v3678_v11 = vmax.f32 %v10207_v60, 0.0 }
 0x555   : > { %v3543_v15 = vpop.f32.mrf.mxu0  ;;  %v6702_v39 = vmul.f32 %v17053_v57, %v6416_v40  ;;  %v17227_v40 = vld [vmem:[#allocation212_spill] sm:$0xff] }
 0x556   : > { %v3676_v3 = vmax.f32 %v3543_v15, 0.0  ;;  %v3720_v41 = vpack.c.bf16 %v3678_v11, %v3677_v8  ;;  %v6707_v11 = vmul.f32 %v17053_v57, %v17228_v4  ;;  %v10902_v4 = vld [vmem:[%s11557_s20 + $0x358] sm:$0xff] }
 0x557   : > { %v6830_v34 = vadd.f32 %v6702_v39, %v6058_v55  ;;  %v5290_v55 = vmul.f32 %v17094_v51, %v17227_v40 }
 0x558   : > { %5747 = vperm.xlu1 %10657, %v10896_v30   ;;  %v3719_v31 = vpack.c.bf16 %v3676_v3, %v3675_v35  ;;  %v6424_v9 = vpop.permute.xlu1 %6423  ;;  %v10899_v3 = vld [vmem:[%s11557_s20 + $0x348] sm:$0xff] }
 0x559   : > { %v10210_v38 = vpop.f32.mrf.mxu0  ;;  %v6958_v16 = vmax.f32 %v6830_v34, 0.0  ;;  %v6704_v52 = vmul.f32 %v17053_v57, %v6424_v9  ;;  %v6062_v59 = vadd.f32 %v5934_v22, %v5290_v55  ;;  %v5672_v34 = vpop.permute.xlu0 %5671 }
 0x55a   : > { %10276 = vmatprep.mubr.msk.bf16.mxu1 %vm1667_vm1, %v3719_v31  ;;  %v3681_v18 = vmax.f32 %v10210_v38, 0.0  ;;  %v5937_v38 = vmul.f32 %v17046_v29, %v5672_v34  ;;  %v17232_v34 = vld [vmem:[#allocation216_spill] sm:$0xff] }
 0x55b   : > { %v3556_v26 = vpop.f32.mrf.mxu0  ;;  %10277 = vmatmul.mubr.msk.bf16.gmra.mxu1 %vm1667_vm1, %v3720_v41  ;;  %v7048_v47 = vpack.c.bf16 %v6959_v2, %v6958_v16  ;;  %v6832_v5 = vadd.f32 %v6704_v52, %v6060_v6  ;;  %v10900_v16 = vld [vmem:[%s11557_s20 + $0x350] sm:$0xff] }
 0x55c   : > { %10658 = vset.pattern.permute.xlu1 %v16981_v36  ;;  %v6428_v50 = vpop.permute.xlu1 %6427  ;;  %v3679_v33 = vmax.f32 %v3556_v26, 0.0 }
 0x55d   : > { %6511 = vperm.xlu1 %10658, %v10897_v49   ;;  %v10211_v24 = vpop.f32.mrf.mxu0  ;;  %v6705_v10 = vmul.f32 %v17053_v57, %v6428_v50  ;;  %10384 = vmatprep.mubr.msk.bf16.mxu0 %vm1667_vm1, %v7048_v47  ;;  %v6960_v25 = vmax.f32 %v6832_v5, 0.0  ;;  %v17230_v50 = vld [vmem:[#allocation272_spill] sm:$0xff]  ;;  %v5676_v40 = vpop.permute.xlu0 %5675 }
 0x55e   : > { %v3682_v21 = vmax.f32 %v10211_v24, 0.0  ;;  %v5293_v49 = vmul.f32 %v17094_v51, %v17230_v50 }
 0x55f   : > { %v3559_v13 = vpop.f32.mrf.mxu0  ;;  %v6833_v58 = vadd.f32 %v6705_v10, %v6061_v43 }
 0x560   : > { %v3680_v63 = vmax.f32 %v3559_v13, 0.0  ;;  %v3722_v14 = vpack.c.bf16 %v3682_v21, %v3681_v18 }
 0x561   : > { %6519 = vperm.xlu1 %10658, %v10896_v30   ;;  %v5664_v56 = vpop.permute.xlu1 %5663  ;;  %v10214_v37 = vpop.f32.mrf.mxu0  ;;  %v6961_v0 = vmax.f32 %v6833_v58, 0.0  ;;  %v6065_v58 = vadd.f32 %v5937_v38, %v5293_v49 }
 0x562   : > { %v3721_v20 = vpack.c.bf16 %v3680_v63, %v3679_v33  ;;  %v5935_v23 = vmul.f32 %v17046_v29, %v5664_v56  ;;  %v3685_v39 = vmax.f32 %v10214_v37, 0.0 }
 0x563   : > { %v3572_v53 = vpop.f32.mrf.mxu0  ;;  %v7049_v7 = vpack.c.bf16 %v6961_v0, %v6960_v25  ;;  %v10901_v0 = vld [vmem:[%s11557_s20 + $0x340] sm:$0xff] }
 0x564   : > { %10280 = vmatprep.mubr.msk.bf16.mxu1 %vm1667_vm1, %v3721_v20  ;;  %v6063_v42 = vadd.f32 %v5935_v23, %v5291_v61  ;;  %v3683_v15 = vmax.f32 %v3572_v53, 0.0 }
 0x565   : > { %6523 = vperm.xlu1 %10658, %v10898_v54   ;;  %v5668_v44 = vpop.permute.xlu1 %5667  ;;  %v10215_v28 = vpop.f32.mrf.mxu0  ;;  %10281 = vmatmul.mubr.msk.bf16.gmra.mxu1 %vm1667_vm1, %v3722_v14 }
 0x566   : > { %10385 = vmatmul.mubr.msk.bf16.gmra.mxu0 %vm1667_vm1, %v7049_v7  ;;  %v3686_v60 = vmax.f32 %v10215_v28, 0.0  ;;  %v6835_v48 = vadd.f32 %v6707_v11, %v6063_v42  ;;  %v5936_v9 = vmul.f32 %v17046_v29, %v5668_v44 }
 0x567   : > { %v3575_v46 = vpop.f32.mrf.mxu0 }
 0x568   : > { %v3684_v19 = vmax.f32 %v3575_v46, 0.0  ;;  %v3724_v27 = vpack.c.bf16 %v3686_v60, %v3685_v39  ;;  %v6963_v26 = vmax.f32 %v6835_v48, 0.0  ;;  %v6064_v21 = vadd.f32 %v5936_v9, %v5292_v45  ;;  %v17233_v48 = vld [vmem:[#allocation326_spill] sm:$0xff] }
 0x569   : > { %10659 = vset.pattern.permute.xlu1 %v16973_v1  ;;  %v10218_v35 = vpop.f32.mrf.mxu0  ;;  %v10903_v9 = vld [vmem:[%s11557_s20 + $0x368] sm:$0xff] }
 0x56a   : > { %5759 = vperm.xlu1 %10659, %v10899_v3   ;;  %v6432_v8 = vpop.permute.xlu1 %6431  ;;  %v3723_v30 = vpack.c.bf16 %v3684_v19, %v3683_v15  ;;  %v3689_v33 = vmax.f32 %v10218_v35, 0.0  ;;  %v17231_v15 = vld [vmem:[#allocation274_spill] sm:$0xff]  ;;  %v5938_v3 = vmul.f32 %v17046_v29, %v5676_v40 }
 0x56b   : > { %v6706_v62 = vmul.f32 %v17053_v57, %v6432_v8  ;;  %v3588_v31 = vpop.f32.mrf.mxu0  ;;  %v5295_v19 = vmul.f32 %v17094_v51, %v17231_v15 }
 0x56c   : > { %10284 = vmatprep.mubr.msk.bf16.mxu1 %vm1667_vm1, %v3723_v30  ;;  %v3687_v5 = vmax.f32 %v3588_v31, 0.0  ;;  %v5294_v30 = vmul.f32 %v17094_v51, %v17232_v34 }
 0x56d   : > { %v6834_v41 = vadd.f32 %v6706_v62, %v6062_v59  ;;  %v10219_v2 = vpop.f32.mrf.mxu0  ;;  %10285 = vmatmul.mubr.msk.bf16.gmra.mxu1 %vm1667_vm1, %v3724_v27  ;;  %v6711_v62 = vmul.f32 %v17053_v57, %v17233_v48 }
 0x56e   : > { %5763 = vperm.xlu1 %10659, %v10900_v16   ;;  %v6440_v52 = vpop.permute.xlu1 %6439  ;;  %v3690_v43 = vmax.f32 %v10219_v2, 0.0 }
 0x56f   : > { %v6962_v6 = vmax.f32 %v6834_v41, 0.0  ;;  %v6708_v47 = vmul.f32 %v17053_v57, %v6440_v52  ;;  %v3591_v24 = vpop.f32.mrf.mxu0 }
 0x570   : > { %v3688_v10 = vmax.f32 %v3591_v24, 0.0  ;;  %v3726_v20 = vpack.c.bf16 %v3690_v43, %v3689_v33 }
 0x571   : > { %v7050_v13 = vpack.c.bf16 %v6963_v26, %v6962_v6  ;;  %v10222_v63 = vpop.f32.mrf.mxu0  ;;  %v6836_v37 = vadd.f32 %v6708_v47, %v6064_v21  ;;  %v5688_v6 = vpop.permute.xlu0 %5687 }
 0x572   : > { %10660 = vset.pattern.permute.xlu1 %v16981_v36  ;;  %v6444_v56 = vpop.permute.xlu1 %6443  ;;  %v3725_v18 = vpack.c.bf16 %v3688_v10, %v3687_v5  ;;  %v3693_v42 = vmax.f32 %v10222_v63, 0.0  ;;  %v10904_v5 = vld [vmem:[%s11557_s20 + $0x370] sm:$0xff]  ;;  %v17234_v10 = vld [vmem:[#allocation218_spill] sm:$0xff] }
 0x573   : > { %v6709_v25 = vmul.f32 %v17053_v57, %v6444_v56  ;;  %6527 = vperm.xlu1 %10660, %v10901_v0   ;;  %10388 = vmatprep.mubr.msk.bf16.mxu0 %vm1667_vm1, %v7050_v13  ;;  %v3604_v23 = vpop.f32.mrf.mxu0  ;;  %v6964_v53 = vmax.f32 %v6836_v37, 0.0  ;;  %v5296_v21 = vmul.f32 %v17094_v51, %v17234_v10  ;;  %v17235_v37 = vld [vmem:[#allocation276_spill] sm:$0xff] }
 0x574   : > { %10288 = vmatprep.mubr.msk.bf16.mxu1 %vm1667_vm1, %v3725_v18  ;;  %v3691_v44 = vmax.f32 %v3604_v23, 0.0 }
 0x575   : > { %v6837_v32 = vadd.f32 %v6709_v25, %v6065_v58  ;;  %v10223_v14 = vpop.f32.mrf.mxu0  ;;  %10289 = vmatmul.mubr.msk.bf16.gmra.mxu1 %vm1667_vm1, %v3726_v20  ;;  %v5941_v58 = vmul.f32 %v17046_v29, %v5688_v6  ;;  %v5297_v25 = vmul.f32 %v17094_v51, %v17235_v37 }
 0x576   : > { %v3694_v61 = vmax.f32 %v10223_v14, 0.0 }
 0x577   : > { %v6965_v7 = vmax.f32 %v6837_v32, 0.0  ;;  %6535 = vperm.xlu1 %10660, %v10900_v16   ;;  %v5680_v12 = vpop.permute.xlu1 %5679  ;;  %v3607_v54 = vpop.f32.mrf.mxu0  ;;  %v6066_v16 = vadd.f32 %v5938_v3, %v5294_v30 }
 0x578   : > { %v3692_v28 = vmax.f32 %v3607_v54, 0.0  ;;  %v5939_v46 = vmul.f32 %v17046_v29, %v5680_v12  ;;  %v3728_v39 = vpack.c.bf16 %v3694_v61, %v3693_v42  ;;  %v10905_v12 = vld [vmem:[%s11557_s20 + $0x360] sm:$0xff]  ;;  %v6069_v61 = vadd.f32 %v5941_v58, %v5297_v25 }
 0x579   : > { %v7051_v22 = vpack.c.bf16 %v6965_v7, %v6964_v53  ;;  %v10226_v60 = vpop.f32.mrf.mxu0 }
 0x57a   : > { %v3727_v55 = vpack.c.bf16 %v3692_v28, %v3691_v44  ;;  %v6067_v59 = vadd.f32 %v5939_v46, %v5295_v19  ;;  %v3697_v52 = vmax.f32 %v10226_v60, 0.0 }
 0x57b   : > { %6539 = vperm.xlu1 %10660, %v10902_v4   ;;  %v5684_v11 = vpop.permute.xlu1 %5683  ;;  %10389 = vmatmul.mubr.msk.bf16.gmra.mxu0 %vm1667_vm1, %v7051_v22  ;;  %v3620_v35 = vpop.f32.mrf.mxu0 }
 0x57c   : > { %10292 = vmatprep.mubr.msk.bf16.mxu1 %vm1667_vm1, %v3727_v55  ;;  %v3695_v41 = vmax.f32 %v3620_v35, 0.0  ;;  %v6839_v45 = vadd.f32 %v6711_v62, %v6067_v59  ;;  %v5940_v43 = vmul.f32 %v17046_v29, %v5684_v11  ;;  %v17236_v59 = vld [vmem:[#allocation278_spill] sm:$0xff]  ;;  %v10906_v62 = vld [vmem:[%s11557_s20 + $0x378] sm:$0xff] }
 0x57d   : > { %v10227_v8 = vpop.f32.mrf.mxu0  ;;  %10293 = vmatmul.mubr.msk.bf16.gmra.mxu1 %vm1667_vm1, %v3728_v39  ;;  %v5692_v39 = vpop.permute.xlu0 %5691  ;;  %v5299_v34 = vmul.f32 %v17094_v51, %v17236_v59 }
 0x57e   : > { %v3698_v27 = vmax.f32 %v10227_v8, 0.0  ;;  %v6967_v63 = vmax.f32 %v6839_v45, 0.0  ;;  %v6068_v23 = vadd.f32 %v5940_v43, %v5296_v21 }
 0x57f   : > { %10661 = vset.pattern.permute.xlu1 %v16973_v1  ;;  %v3623_v31 = vpop.f32.mrf.mxu0 }
 0x580   : > { %5775 = vperm.xlu1 %10661, %v10903_v9   ;;  %v3696_v38 = vmax.f32 %v3623_v31, 0.0  ;;  %v6448_v2 = vpop.permute.xlu1 %6447  ;;  %v3730_v50 = vpack.c.bf16 %v3698_v27, %v3697_v52 }
 0x581   : > { %v10310_v17 = vpop.f32.mrf.mxu0  ;;  %v6710_v26 = vmul.f32 %v17053_v57, %v6448_v2 }
 0x582   : > { %v3729_v47 = vpack.c.bf16 %v3696_v38, %v3695_v41  ;;  %v7845_v54 = vmax.f32 %v10310_v17, 0.0  ;;  %v5942_v41 = vmul.f32 %v17046_v29, %v5692_v39  ;;  %v17237_v17 = vld [vmem:[#allocation219_spill] sm:$0xff] }
 0x583   : > { %v7332_v49 = vpop.f32.mrf.mxu0  ;;  %v6838_v24 = vadd.f32 %v6710_v26, %v6066_v16  ;;  %v5298_v45 = vmul.f32 %v17094_v51, %v17237_v17  ;;  %v17238_v26 = vld [vmem:[#allocation328_spill] sm:$0xff] }
 0x584   : > { %5779 = vperm.xlu1 %10661, %v10904_v5   ;;  %10296 = vmatprep.mubr.msk.bf16.mxu1 %vm1667_vm1, %v3729_v47  ;;  %v6456_v13 = vpop.permute.xlu1 %6455  ;;  %v7843_v14 = vmax.f32 %v7332_v49, 0.0  ;;  %v6715_v6 = vmul.f32 %v17053_v57, %v17238_v26  ;;  %v10910_v17 = vld [vmem:[%s11557_s20 + $0x398] sm:$0xff] }
 0x585   : > { %10297 = vmatmul.mubr.msk.bf16.gmra.mxu1 %vm1667_vm1, %v3730_v50  ;;  %v10311_v33 = vpop.f32.mrf.mxu0  ;;  %v6966_v56 = vmax.f32 %v6838_v24, 0.0  ;;  %v6712_v18 = vmul.f32 %v17053_v57, %v6456_v13  ;;  %v10907_v50 = vld [vmem:[%s11557_s20 + $0x388] sm:$0xff]  ;;  %v6070_v43 = vadd.f32 %v5942_v41, %v5298_v45  ;;  %v5704_v24 = vpop.permute.xlu0 %5703 }
 0x586   : > { %v7846_v0 = vmax.f32 %v10311_v33, 0.0  ;;  %v5945_v25 = vmul.f32 %v17046_v29, %v5704_v24  ;;  %v17242_v24 = vld [vmem:[#allocation329_spill] sm:$0xff] }
 0x587   : > { %v7335_v20 = vpop.f32.mrf.mxu0  ;;  %v7052_v32 = vpack.c.bf16 %v6967_v63, %v6966_v56  ;;  %v6840_v28 = vadd.f32 %v6712_v18, %v6068_v23  ;;  %v17239_v18 = vld [vmem:[#allocation220_spill] sm:$0xff]  ;;  %v10908_v23 = vld [vmem:[%s11557_s20 + $0x390] sm:$0xff] }
 0x588   : > { %10662 = vset.pattern.permute.xlu1 %v16981_v36  ;;  %v7844_v53 = vmax.f32 %v7335_v20, 0.0  ;;  %v6460_v7 = vpop.permute.xlu1 %6459  ;;  %v7972_v60 = vpack.c.bf16 %v7846_v0, %v7845_v54  ;;  %v5300_v37 = vmul.f32 %v17094_v51, %v17239_v18 }
 0x589   : > { %6543 = vperm.xlu1 %10662, %v10905_v12   ;;  %v10314_v44 = vpop.f32.mrf.mxu0  ;;  %v6713_v22 = vmul.f32 %v17053_v57, %v6460_v7  ;;  %10392 = vmatprep.mubr.msk.bf16.mxu0 %vm1667_vm1, %v7052_v32  ;;  %v6968_v11 = vmax.f32 %v6840_v28, 0.0 }
 0x58a   : > { %v7971_v42 = vpack.c.bf16 %v7844_v53, %v7843_v14  ;;  %v7849_v31 = vmax.f32 %v10314_v44, 0.0  ;;  %v17240_v44 = vld [vmem:[#allocation280_spill] sm:$0xff] }
 0x58b   : > { %v7348_v46 = vpop.f32.mrf.mxu0  ;;  %v6841_v40 = vadd.f32 %v6713_v22, %v6069_v61  ;;  %v5301_v28 = vmul.f32 %v17094_v51, %v17240_v44 }
 0x58c   : > { %10448 = vmatprep.mubr.msk.bf16.mxu1 %vm8083_vm9, %v7971_v42  ;;  %v7847_v30 = vmax.f32 %v7348_v46, 0.0 }
 0x58d   : > { %6551 = vperm.xlu1 %10662, %v10904_v5   ;;  %v5696_v55 = vpop.permute.xlu1 %5695  ;;  %v10315_v4 = vpop.f32.mrf.mxu0  ;;  %10449 = vmatmul.mubr.msk.bf16.vlgmr.msra.gmra.mxu1 %vm8083_vm9, %v7972_v60  ;;  %v6969_v15 = vmax.f32 %v6841_v40, 0.0  ;;  %v6073_v40 = vadd.f32 %v5945_v25, %v5301_v28 }
 0x58e   : > { %v5943_v19 = vmul.f32 %v17046_v29, %v5696_v55  ;;  %v7850_v35 = vmax.f32 %v10315_v4, 0.0 }
 0x58f   : > { %v7351_v3 = vpop.f32.mrf.mxu0  ;;  %v7053_v8 = vpack.c.bf16 %v6969_v15, %v6968_v11  ;;  %v10909_v11 = vld [vmem:[%s11557_s20 + $0x380] sm:$0xff] }
 0x590   : > { %v7848_v48 = vmax.f32 %v7351_v3, 0.0  ;;  %v6071_v2 = vadd.f32 %v5943_v19, %v5299_v34  ;;  %v7974_v16 = vpack.c.bf16 %v7850_v35, %v7849_v31 }
 0x591   : > { %6555 = vperm.xlu1 %10662, %v10906_v62   ;;  %v5700_v27 = vpop.permute.xlu1 %5699  ;;  %v10318_v9 = vpop.f32.mrf.mxu0  ;;  %10393 = vmatmul.mubr.msk.bf16.gmra.mxu0 %vm1667_vm1, %v7053_v8 }
 0x592   : > { %v7973_v38 = vpack.c.bf16 %v7848_v48, %v7847_v30  ;;  %v6843_v5 = vadd.f32 %v6715_v6, %v6071_v2  ;;  %v5944_v63 = vmul.f32 %v17046_v29, %v5700_v27  ;;  %v7853_v0 = vmax.f32 %v10318_v9, 0.0 }
 0x593   : > { %v7364_v52 = vpop.f32.mrf.mxu0 }
 0x594   : > { %10452 = vmatprep.mubr.msk.bf16.mxu1 %vm8083_vm9, %v7973_v38  ;;  %v7851_v58 = vmax.f32 %v7364_v52, 0.0  ;;  %v6971_v53 = vmax.f32 %v6843_v5, 0.0  ;;  %v6072_v22 = vadd.f32 %v5944_v63, %v5300_v37  ;;  %v17241_v38 = vld [vmem:[#allocation282_spill] sm:$0xff]  ;;  %v6719_v5 = vmul.f32 %v17053_v57, %v17242_v24 }
 0x595   : > { %10663 = vset.pattern.permute.xlu1 %v16973_v1  ;;  %v10319_v47 = vpop.f32.mrf.mxu0  ;;  %10453 = vmatmul.mubr.msk.bf16.gmra.mxu1 %vm8083_vm9, %v7974_v16  ;;  %v5303_v2 = vmul.f32 %v17094_v51, %v17241_v38  ;;  %v5708_v16 = vpop.permute.xlu0 %5707  ;;  %v10911_v37 = vld [vmem:[%s11557_s20 + $0x3a8] sm:$0xff] }
 0x596   : > { %5791 = vperm.xlu1 %10663, %v10907_v50   ;;  %v6464_v49 = vpop.permute.xlu1 %6463  ;;  %v7854_v21 = vmax.f32 %v10319_v47, 0.0  ;;  %v5946_v50 = vmul.f32 %v17046_v29, %v5708_v16 }
 0x597   : > { %v6714_v10 = vmul.f32 %v17053_v57, %v6464_v49  ;;  %v7367_v13 = vpop.f32.mrf.mxu0 }
 0x598   : > { %v7852_v33 = vmax.f32 %v7367_v13, 0.0  ;;  %v7976_v61 = vpack.c.bf16 %v7854_v21, %v7853_v0  ;;  %v17243_v13 = vld [vmem:[#allocation221_spill] sm:$0xff] }
 0x599   : > { %v6842_v56 = vadd.f32 %v6714_v10, %v6070_v43  ;;  %v10322_v20 = vpop.f32.mrf.mxu0 }
 0x59a   : > { %5795 = vperm.xlu1 %10663, %v10908_v23   ;;  %v6472_v32 = vpop.permute.xlu1 %6471  ;;  %v7975_v14 = vpack.c.bf16 %v7852_v33, %v7851_v58  ;;  %v7857_v8 = vmax.f32 %v10322_v20, 0.0  ;;  %v5302_v58 = vmul.f32 %v17094_v51, %v17243_v13  ;;  %v5720_v20 = vpop.permute.xlu0 %5719 }
 0x59b   : > { %v6970_v7 = vmax.f32 %v6842_v56, 0.0  ;;  %v6716_v12 = vmul.f32 %v17053_v57, %v6472_v32  ;;  %v7380_v54 = vpop.f32.mrf.mxu0 }
 0x59c   : > { %10456 = vmatprep.mubr.msk.bf16.mxu1 %vm8083_vm9, %v7975_v14  ;;  %v7855_v39 = vmax.f32 %v7380_v54, 0.0  ;;  %v6074_v0 = vadd.f32 %v5946_v50, %v5302_v58 }
 0x59d   : > { %v7054_v42 = vpack.c.bf16 %v6971_v53, %v6970_v7  ;;  %v10323_v60 = vpop.f32.mrf.mxu0  ;;  %10457 = vmatmul.mubr.msk.bf16.gmra.mxu1 %vm8083_vm9, %v7976_v61  ;;  %v6844_v55 = vadd.f32 %v6716_v12, %v6072_v22  ;;  %v17244_v7 = vld [vmem:[#allocation222_spill] sm:$0xff]  ;;  %v5949_v61 = vmul.f32 %v17046_v29, %v5720_v20  ;;  %v10912_v22 = vld [vmem:[%s11557_s20 + $0x3b0] sm:$0xff] }
 0x59e   : > { %10664 = vset.pattern.permute.xlu1 %v16981_v36  ;;  %v6476_v46 = vpop.permute.xlu1 %6475  ;;  %v7858_v15 = vmax.f32 %v10323_v60, 0.0  ;;  %v5304_v12 = vmul.f32 %v17094_v51, %v17244_v7  ;;  %v5724_v38 = vpop.permute.xlu0 %5723  ;;  %v17246_v20 = vld [vmem:[#allocation287_spill] sm:$0xff] }
 0x59f   : > { %v6717_v4 = vmul.f32 %v17053_v57, %v6476_v46  ;;  %6559 = vperm.xlu1 %10664, %v10909_v11   ;;  %10396 = vmatprep.mubr.msk.bf16.mxu0 %vm1667_vm1, %v7054_v42  ;;  %v7383_v19 = vpop.f32.mrf.mxu0  ;;  %v6972_v30 = vmax.f32 %v6844_v55, 0.0 }
 0x5a0   : > { %v7856_v35 = vmax.f32 %v7383_v19, 0.0  ;;  %v7978_v27 = vpack.c.bf16 %v7858_v15, %v7857_v8  ;;  %v17245_v19 = vld [vmem:[#allocation284_spill] sm:$0xff] }
 0x5a1   : > { %v6845_v3 = vadd.f32 %v6717_v4, %v6073_v40  ;;  %v10326_v59 = vpop.f32.mrf.mxu0 }
 0x5a2   : > { %v7977_v34 = vpack.c.bf16 %v7856_v35, %v7855_v39  ;;  %v7861_v10 = vmax.f32 %v10326_v59, 0.0  ;;  %v5305_v39 = vmul.f32 %v17094_v51, %v17245_v19 }
 0x5a3   : > { %v6973_v48 = vmax.f32 %v6845_v3, 0.0  ;;  %6567 = vperm.xlu1 %10664, %v10908_v23   ;;  %v5712_v62 = vpop.permute.xlu1 %5711  ;;  %v7396_v31 = vpop.f32.mrf.mxu0 }
 0x5a4   : > { %v5947_v9 = vmul.f32 %v17046_v29, %v5712_v62  ;;  %10460 = vmatprep.mubr.msk.bf16.mxu1 %vm8083_vm9, %v7977_v34  ;;  %v7859_v49 = vmax.f32 %v7396_v31, 0.0  ;;  %v6077_v62 = vadd.f32 %v5949_v61, %v5305_v39 }
 0x5a5   : > { %v7055_v41 = vpack.c.bf16 %v6973_v48, %v6972_v30  ;;  %v10327_v52 = vpop.f32.mrf.mxu0  ;;  %10461 = vmatmul.mubr.msk.bf16.gmra.mxu1 %vm8083_vm9, %v7978_v27 }
 0x5a6   : > { %v7862_v26 = vmax.f32 %v10327_v52, 0.0  ;;  %v6075_v47 = vadd.f32 %v5947_v9, %v5303_v2  ;;  %v10913_v9 = vld [vmem:[%s11557_s20 + $0x3a0] sm:$0xff] }
 0x5a7   : > { %6571 = vperm.xlu1 %10664, %v10910_v17   ;;  %v5716_v45 = vpop.permute.xlu1 %5715  ;;  %10397 = vmatmul.mubr.msk.bf16.gmra.mxu0 %vm1667_vm1, %v7055_v41  ;;  %v7399_v6 = vpop.f32.mrf.mxu0 }
 0x5a8   : > { %v7860_v43 = vmax.f32 %v7399_v6, 0.0  ;;  %v7980_v63 = vpack.c.bf16 %v7862_v26, %v7861_v10  ;;  %v6847_v18 = vadd.f32 %v6719_v5, %v6075_v47  ;;  %v5948_v14 = vmul.f32 %v17046_v29, %v5716_v45 }
 0x5a9   : > { %v10330_v21 = vpop.f32.mrf.mxu0 }
 0x5aa   : > { %v7979_v33 = vpack.c.bf16 %v7860_v43, %v7859_v49  ;;  %v6975_v28 = vmax.f32 %v6847_v18, 0.0  ;;  %v7865_v11 = vmax.f32 %v10330_v21, 0.0  ;;  %v6076_v3 = vadd.f32 %v5948_v14, %v5304_v12  ;;  %v17247_v12 = vld [vmem:[#allocation223_spill] sm:$0xff] }
 0x5ab   : > { %10665 = vset.pattern.permute.xlu1 %v16973_v1  ;;  %v7412_v56 = vpop.f32.mrf.mxu0  ;;  %v5306_v61 = vmul.f32 %v17094_v51, %v17247_v12 }
 0x5ac   : > { %5807 = vperm.xlu1 %10665, %v10911_v37   ;;  %v6480_v25 = vpop.permute.xlu1 %6479  ;;  %10464 = vmatprep.mubr.msk.bf16.mxu1 %vm8083_vm9, %v7979_v33  ;;  %v7863_v60 = vmax.f32 %v7412_v56, 0.0 }
 0x5ad   : > { %v6718_v23 = vmul.f32 %v17053_v57, %v6480_v25  ;;  %v10331_v32 = vpop.f32.mrf.mxu0  ;;  %10465 = vmatmul.mubr.msk.bf16.gmra.mxu1 %vm8083_vm9, %v7980_v63  ;;  %v10238_v4 = vpop.f32.mrf.mxu1 }
 0x5ae   : > { %v7866_v54 = vmax.f32 %v10331_v32, 0.0  ;;  %v4150_v16 = vmax.f32 %v10238_v4, 0.0  ;;  %v5736_v32 = vpop.permute.xlu0 %5735  ;;  %v5950_v4 = vmul.f32 %v17046_v29, %v5724_v38 }
 0x5af   : > { %v6846_v53 = vadd.f32 %v6718_v23, %v6074_v0  ;;  %v7415_v44 = vpop.f32.mrf.mxu0  ;;  %v3893_v59 = vpop.f32.mrf.mxu1  ;;  %v5307_v23 = vmul.f32 %v17094_v51, %v17246_v20  ;;  %v5953_v39 = vmul.f32 %v17046_v29, %v5736_v32 }
 0x5b0   : > { %5811 = vperm.xlu1 %10665, %v10912_v22   ;;  %v6488_v42 = vpop.permute.xlu1 %6487  ;;  %v7864_v46 = vmax.f32 %v7415_v44, 0.0  ;;  %v7982_v34 = vpack.c.bf16 %v7866_v54, %v7865_v11  ;;  %v4148_v47 = vmax.f32 %v3893_v59, 0.0  ;;  %v10914_v54 = vld [vmem:[%s11557_s20 + $0x3b8] sm:$0xff] }
 0x5b1   : > { %v6974_v40 = vmax.f32 %v6846_v53, 0.0  ;;  %v6720_v55 = vmul.f32 %v17053_v57, %v6488_v42  ;;  %v10334_v15 = vpop.f32.mrf.mxu0  ;;  %v10239_v41 = vpop.f32.mrf.mxu1 }
 0x5b2   : > { %v7981_v35 = vpack.c.bf16 %v7864_v46, %v7863_v60  ;;  %v4151_v52 = vmax.f32 %v10239_v41, 0.0  ;;  %v7869_v58 = vmax.f32 %v10334_v15, 0.0 }
 0x5b3   : > { %v7056_v8 = vpack.c.bf16 %v6975_v28, %v6974_v40  ;;  %v7428_v30 = vpop.f32.mrf.mxu0  ;;  %v6848_v27 = vadd.f32 %v6720_v55, %v6076_v3  ;;  %v3896_v45 = vpop.f32.mrf.mxu1  ;;  %v17248_v40 = vld [vmem:[#allocation331_spill] sm:$0xff] }
 0x5b4   : > { %10666 = vset.pattern.permute.xlu1 %v16981_v36  ;;  %v6492_v48 = vpop.permute.xlu1 %6491  ;;  %10468 = vmatprep.mubr.msk.bf16.mxu1 %vm8083_vm9, %v7981_v35  ;;  %v4219_v50 = vmax.f32 %v4150_v16, %v4151_v52  ;;  %v4149_v49 = vmax.f32 %v3896_v45, 0.0  ;;  %v7867_v43 = vmax.f32 %v7428_v30, 0.0  ;;  %v6723_v55 = vmul.f32 %v17053_v57, %v17248_v40  ;;  %v17249_v52 = vld [vmem:[#allocation290_spill] sm:$0xff] }
 0x5b5   : > { %v6721_v31 = vmul.f32 %v17053_v57, %v6492_v48  ;;  %6575 = vperm.xlu1 %10666, %v10913_v9   ;;  %v10335_v2 = vpop.f32.mrf.mxu0  ;;  %10469 = vmatmul.mubr.msk.bf16.gmra.mxu1 %vm8083_vm9, %v7982_v34  ;;  %v6976_v5 = vmax.f32 %v6848_v27, 0.0 }
 0x5b6   : > { %10400 = vmatprep.mubr.msk.bf16.mxu0 %vm1667_vm1, %v7056_v8  ;;  %v7870_v26 = vmax.f32 %v10335_v2, 0.0  ;;  %v10242_v13 = vpop.f32.mrf.mxu1  ;;  %v4220_v63 = vrot.slane %v4219_v50, 4  ;;  %v4212_v18 = vmax.f32 %v4148_v47, %v4149_v49  ;;  %v10915_v2 = vld [vmem:[%s11557_s20 + $0x3c8] sm:$0xff] }
 0x5b7   : > { %v6849_v17 = vadd.f32 %v6721_v31, %v6077_v62  ;;  %v7431_v6 = vpop.f32.mrf.mxu0  ;;  %v4154_v11 = vmax.f32 %v10242_v13, 0.0 }
 0x5b8   : > { %v7868_v24 = vmax.f32 %v7431_v6, 0.0  ;;  %v3909_v0 = vpop.f32.mrf.mxu1  ;;  %v7984_v14 = vpack.c.bf16 %v7870_v26, %v7869_v58  ;;  %v4213_v7 = vrot.slane %v4212_v18, 4  ;;  %v4221_v42 = vmax.f32 %v4219_v50, %v4220_v63  ;;  %v17250_v50 = vld [vmem:[#allocation224_spill] sm:$0xff] }
 0x5b9   : > { %v6977_v10 = vmax.f32 %v6849_v17, 0.0  ;;  %6583 = vperm.xlu1 %10666, %v10912_v22   ;;  %v5728_v21 = vpop.permute.xlu1 %5727  ;;  %v10338_v33 = vpop.f32.mrf.mxu0  ;;  %v4152_v59 = vmax.f32 %v3909_v0, 0.0  ;;  %v5309_v17 = vmul.f32 %v17094_v51, %v17249_v52  ;;  %v5308_v49 = vmul.f32 %v17094_v51, %v17250_v50  ;;  %v10916_v0 = vld [vmem:[%s11557_s20 + $0x3d0] sm:$0xff] }
 0x5ba   : > { %v5951_v56 = vmul.f32 %v17046_v29, %v5728_v21  ;;  %v7983_v37 = vpack.c.bf16 %v7868_v24, %v7867_v43  ;;  %v10243_v28 = vpop.f32.mrf.mxu1  ;;  %v4214_v46 = vmax.f32 %v4212_v18, %v4213_v7  ;;  %v7873_v27 = vmax.f32 %v10338_v33, 0.0 }
 0x5bb   : > { %v7057_v25 = vpack.c.bf16 %v6977_v10, %v6976_v5  ;;  %v7444_v53 = vpop.f32.mrf.mxu0  ;;  %v4155_v15 = vmax.f32 %v10243_v28, 0.0  ;;  %v4222_v9 = vrot.slane %v4221_v42, 2  ;;  %v6078_v43 = vadd.f32 %v5950_v4, %v5306_v61 }
 0x5bc   : > { %10472 = vmatprep.mubr.msk.bf16.mxu1 %vm8083_vm9, %v7983_v37  ;;  %v6079_v60 = vadd.f32 %v5951_v56, %v5307_v23  ;;  %v3912_v19 = vpop.f32.mrf.mxu1  ;;  %v7871_v35 = vmax.f32 %v7444_v53, 0.0  ;;  %v4215_v30 = vrot.slane %v4214_v46, 2  ;;  %v6081_v21 = vadd.f32 %v5953_v39, %v5309_v17 }
 0x5bd   : > { %6587 = vperm.xlu1 %10666, %v10914_v54   ;;  %v5732_v44 = vpop.permute.xlu1 %5731  ;;  %v10339_v22 = vpop.f32.mrf.mxu0  ;;  %10473 = vmatmul.mubr.msk.bf16.gmra.mxu1 %vm8083_vm9, %v7984_v14  ;;  %v4233_v48 = vmax.f32 %v4154_v11, %v4155_v15  ;;  %v4153_v62 = vmax.f32 %v3912_v19, 0.0  ;;  %v15571_v56 = vmax.f32 %v4221_v42, %v4222_v9 }
 0x5be   : > { %10401 = vmatmul.mubr.msk.bf16.gmra.mxu0 %vm1667_vm1, %v7057_v25  ;;  %v7874_v3 = vmax.f32 %v10339_v22, 0.0  ;;  %v6851_v41 = vadd.f32 %v6723_v55, %v6079_v60  ;;  %v5952_v38 = vmul.f32 %v17046_v29, %v5732_v44  ;;  %v10246_v47 = vpop.f32.mrf.mxu1  ;;  %v4216_v13 = vmax.f32 %v4214_v46, %v4215_v30  ;;  %v5740_v22 = vpop.permute.xlu0 %5739  ;;  %v10917_v30 = vld [vmem:[%s11557_s20 + $0x3c0] sm:$0xff] }
 0x5bf   : > { %v7447_v8 = vpop.f32.mrf.mxu0  ;;  %v4234_v26 = vrot.slane %v4233_v48, 4  ;;  %v4226_v6 = vmax.f32 %v4152_v59, %v4153_v62  ;;  %v4158_v44 = vmax.f32 %v10246_v47, 0.0  ;;  %v5954_v17 = vmul.f32 %v17046_v29, %v5740_v22 }
 0x5c0   : > { %v7872_v34 = vmax.f32 %v7447_v8, 0.0  ;;  %v7986_v24 = vpack.c.bf16 %v7874_v3, %v7873_v27  ;;  %v3925_v33 = vpop.f32.mrf.mxu1  ;;  %v6979_v18 = vmax.f32 %v6851_v41, 0.0  ;;  %v6080_v37 = vadd.f32 %v5952_v38, %v5308_v49  ;;  %v17251_v38 = vld [vmem:[#allocation225_spill] sm:$0xff] }
 0x5c1   : > { %10667 = vset.pattern.permute.xlu1 %v16973_v1  ;;  %v10342_v31 = vpop.f32.mrf.mxu0  ;;  %v4227_v58 = vrot.slane %v4226_v6, 4  ;;  %v4235_v32 = vmax.f32 %v4233_v48, %v4234_v26  ;;  %v4217_v46 = vrot.slane %v4216_v13, 1  ;;  %v4156_v15 = vmax.f32 %v3925_v33, 0.0 }
 0x5c2   : > { %5823 = vperm.xlu1 %10667, %v10915_v2   ;;  %v6496_v16 = vpop.permute.xlu1 %6495  ;;  %v7985_v45 = vpack.c.bf16 %v7872_v34, %v7871_v35  ;;  %v10247_v7 = vpop.f32.mrf.mxu1  ;;  %v7877_v12 = vmax.f32 %v10342_v31, 0.0  ;;  %v5310_v2 = vmul.f32 %v17094_v51, %v17251_v38 }
 0x5c3   : > { %v7460_v5 = vpop.f32.mrf.mxu0  ;;  %v6722_v10 = vmul.f32 %v17053_v57, %v6496_v16  ;;  %v4228_v14 = vmax.f32 %v4226_v6, %v4227_v58  ;;  %v4159_v28 = vmax.f32 %v10247_v7, 0.0  ;;  %v4236_v59 = vrot.slane %v4235_v32, 2  ;;  %v17252_v16 = vld [vmem:[#allocation293_spill] sm:$0xff] }
 0x5c4   : > { %10476 = vmatprep.mubr.msk.bf16.mxu1 %vm8083_vm9, %v7985_v45  ;;  %v7875_v42 = vmax.f32 %v7460_v5, 0.0  ;;  %v3928_v55 = vpop.f32.mrf.mxu1  ;;  %v5311_v52 = vmul.f32 %v17094_v51, %v17252_v16  ;;  %v4224_v6 = vrot.slane %v15571_v56, 1 }
 0x5c5   : > { %v10343_v63 = vpop.f32.mrf.mxu0  ;;  %10477 = vmatmul.mubr.msk.bf16.gmra.mxu1 %vm8083_vm9, %v7986_v24  ;;  %v6850_v25 = vadd.f32 %v6722_v10, %v6078_v43  ;;  %v4229_v40 = vrot.slane %v4228_v14, 2  ;;  %v4247_v19 = vmax.f32 %v4158_v44, %v4159_v28  ;;  %v4157_v39 = vmax.f32 %v3928_v55, 0.0 }
 0x5c6   : > { %5827 = vperm.xlu1 %10667, %v10916_v0   ;;  %v6504_v20 = vpop.permute.xlu1 %6503  ;;  %v7878_v23 = vmax.f32 %v10343_v63, 0.0  ;;  %v10250_v48 = vpop.f32.mrf.mxu1  ;;  %v4218_v24 = vmax.f32 %v4216_v13, %v4217_v46  ;;  %v4237_v5 = vmax.f32 %v4235_v32, %v4236_v59  ;;  %v17254_v59 = vld [vmem:[#allocation71_spill] sm:$0xff] }
 0x5c7   : > { %v6724_v53 = vmul.f32 %v17053_v57, %v6504_v20  ;;  %v7463_v61 = vpop.f32.mrf.mxu0  ;;  %v6978_v54 = vmax.f32 %v6850_v25, 0.0  ;;  %v4230_v27 = vmax.f32 %v4228_v14, %v4229_v40  ;;  %v4248_v31 = vrot.slane %v4247_v19, 4 }
 0x5c8   : > { %v7876_v60 = vmax.f32 %v7463_v61, 0.0  ;;  %v7988_v3 = vpack.c.bf16 %v7878_v23, %v7877_v12  ;;  %v4240_v9 = vmax.f32 %v4156_v15, %v4157_v39  ;;  %v3941_v45 = vpop.f32.mrf.mxu1  ;;  %v4238_v55 = vrot.slane %v4237_v5, 1  ;;  %v17253_v15 = vld [vmem:[#allocation296_spill] sm:$0xff]  ;;  %v5752_v39 = vpop.permute.xlu0 %5751 }
 0x5c9   : > { %v10346_v4 = vpop.f32.mrf.mxu0  ;;  %v7058_v11 = vpack.c.bf16 %v6979_v18, %v6978_v54  ;;  %v6852_v34 = vadd.f32 %v6724_v53, %v6080_v37  ;;  %v4249_v47 = vmax.f32 %v4247_v19, %v4248_v31  ;;  %v4231_v37 = vrot.slane %v4230_v27, 1 }
 0x5ca   : > { %10668 = vset.pattern.permute.xlu1 %v16981_v36  ;;  %v6508_v35 = vpop.permute.xlu1 %6507  ;;  %v7987_v8 = vpack.c.bf16 %v7876_v60, %v7875_v42  ;;  %v4241_v50 = vrot.slane %v4240_v9, 4  ;;  %v7881_v43 = vmax.f32 %v10346_v4, 0.0  ;;  %v10251_v33 = vpop.f32.mrf.mxu1  ;;  %v4162_v53 = vmax.f32 %v10250_v48, 0.0  ;;  %v10918_v42 = vld [vmem:[%s11557_s20 + $0x3d8] sm:$0xff] }
 0x5cb   : > { %6591 = vperm.xlu1 %10668, %v10917_v30   ;;  %v7476_v62 = vpop.f32.mrf.mxu0  ;;  %v6725_v41 = vmul.f32 %v17053_v57, %v6508_v35  ;;  %10404 = vmatprep.mubr.msk.bf16.mxu0 %vm1667_vm1, %v7058_v11  ;;  %v6980_v10 = vmax.f32 %v6852_v34, 0.0  ;;  %v4163_v7 = vmax.f32 %v10251_v33, 0.0  ;;  %v4160_v44 = vmax.f32 %v3941_v45, 0.0 }
 0x5cc   : > { %10480 = vmatprep.mubr.msk.bf16.mxu1 %vm8083_vm9, %v7987_v8  ;;  %v4242_v25 = vmax.f32 %v4240_v9, %v4241_v50  ;;  %v7879_v23 = vmax.f32 %v7476_v62, 0.0  ;;  %v3944_v12 = vpop.f32.mrf.mxu1  ;;  %v4232_v4 = vmax.f32 %v4230_v27, %v4231_v37  ;;  %v5313_v19 = vmul.f32 %v17094_v51, %v17253_v15 }
 0x5cd   : > { %v10347_v26 = vpop.f32.mrf.mxu0  ;;  %10481 = vmatmul.mubr.msk.bf16.gmra.mxu1 %vm8083_vm9, %v7988_v3  ;;  %v6853_v49 = vadd.f32 %v6725_v41, %v6081_v21  ;;  %v4250_v21 = vrot.slane %v4249_v47, 2  ;;  %v4261_v28 = vmax.f32 %v4162_v53, %v4163_v7  ;;  %v4161_v22 = vmax.f32 %v3944_v12, 0.0  ;;  %v10920_v12 = vld [vmem:[%s11557_s20 + $0x3f0] sm:$0xff] }
 0x5ce   : > { %v7882_v63 = vmax.f32 %v10347_v26, 0.0  ;;  %v4243_v54 = vrot.slane %v4242_v25, 2  ;;  %v4225_v35 = vmax.f32 %v15571_v56, %v4224_v6  ;;  %v6727_v34 = vmul.f32 %v17053_v57, %v17254_v59  ;;  %v10919_v6 = vld [vmem:[%s11557_s20 + $0x3e8] sm:$0xff] }
 0x5cf   : > { %6599 = vperm.xlu1 %10668, %v10916_v0   ;;  %v5744_v58 = vpop.permute.xlu1 %5743  ;;  %v7479_v18 = vpop.f32.mrf.mxu0  ;;  %v6981_v20 = vmax.f32 %v6853_v49, 0.0  ;;  %v4262_v3 = vrot.slane %v4261_v28, 4  ;;  %v4254_v8 = vmax.f32 %v4160_v44, %v4161_v22  ;;  %v6082_v30 = vadd.f32 %v5954_v17, %v5310_v2 }
 0x5d0   : > { %v7880_v14 = vmax.f32 %v7479_v18, 0.0  ;;  %v5955_v32 = vmul.f32 %v17046_v29, %v5744_v58  ;;  %v7990_v46 = vpack.c.bf16 %v7882_v63, %v7881_v43  ;;  %v4244_v11 = vmax.f32 %v4242_v25, %v4243_v54 }
 0x5d1   : > { %v10350_v61 = vpop.f32.mrf.mxu0  ;;  %v7059_v13 = vpack.c.bf16 %v6981_v20, %v6980_v10  ;;  %v4251_v62 = vmax.f32 %v4249_v47, %v4250_v21  ;;  %v9340_v31 = vsel %vm9269_vm2, %v4225_v35, %v4218_v24  ;;  %v4263_v41 = vmax.f32 %v4261_v28, %v4262_v3  ;;  %v17255_v21 = vld [vmem:[#allocation226_spill] sm:$0xff] }
 0x5d2   : > { %v7989_v0 = vpack.c.bf16 %v7880_v14, %v7879_v23  ;;  %v6083_v27 = vadd.f32 %v5955_v32, %v5311_v52  ;;  %v4245_v9 = vrot.slane %v4244_v11, 1  ;;  %v4255_v38 = vrot.slane %v4254_v8, 4 }
 0x5d3   : > { %6603 = vperm.xlu1 %10668, %v10918_v42   ;;  %v5748_v60 = vpop.permute.xlu1 %5747  ;;  %v7492_v40 = vpop.f32.mrf.mxu0  ;;  %10405 = vmatmul.mubr.msk.bf16.gmra.mxu0 %vm1667_vm1, %v7059_v13  ;;  %v5957_v56 = vmul.f32 %v17046_v29, %v5752_v39  ;;  %v4239_v26 = vmax.f32 %v4237_v5, %v4238_v55  ;;  %v9341_v2 = vsel %vm9271_vm3, %v4232_v4, %v9340_v31  ;;  %v4264_v50 = vrot.slane %v4263_v41, 2  ;;  %v10921_v31 = vld [vmem:[%s11557_s20 + $0x3e0] sm:$0xff] }
 0x5d4   : > { %10484 = vmatprep.mubr.msk.bf16.mxu1 %vm8083_vm9, %v7989_v0  ;;  %v7883_v47 = vmax.f32 %v7492_v40, 0.0  ;;  %v4256_v49 = vmax.f32 %v4254_v8, %v4255_v38  ;;  %v7885_v24 = vmax.f32 %v10350_v61, 0.0  ;;  %v6855_v58 = vadd.f32 %v6727_v34, %v6083_v27 }
 0x5d5   : > { %v10351_v48 = vpop.f32.mrf.mxu0  ;;  %10485 = vmatmul.mubr.msk.bf16.gmra.mxu1 %vm8083_vm9, %v7990_v46  ;;  %v15601_v17 = vpop.f32.mrf.mxu1  ;;  %v4246_v18 = vmax.f32 %v4244_v11, %v4245_v9  ;;  %v4265_v37 = vmax.f32 %v4263_v41, %v4264_v50  ;;  %v5956_v14 = vmul.f32 %v17046_v29, %v5748_v60  ;;  %v5312_v61 = vmul.f32 %v17094_v51, %v17255_v21 }
 0x5d6   : > { %v7886_v16 = vmax.f32 %v10351_v48, 0.0  ;;  %v4257_v25 = vrot.slane %v4256_v49, 2  ;;  %v6085_v54 = vadd.f32 %v5957_v56, %v5313_v19  ;;  %v9342_v0 = vsel %vm9273_vm4, %v4239_v26, %v9341_v2 }
 0x5d7   : > { %10670 = vset.pattern.permute.xlu1 %v16973_v1  ;;  %v7495_v45 = vpop.f32.mrf.mxu0  ;;  %v4252_v1 = vrot.slane %v4251_v62, 1  ;;  %v3957_v33 = vpop.f32.mrf.mxu1  ;;  %v6983_v28 = vmax.f32 %v6855_v58, 0.0  ;;  %v4266_v22 = vrot.slane %v4265_v37, 1  ;;  %v9343_v11 = vsel %vm9275_vm5, %v4246_v18, %v9342_v0 }
 0x5d8   : > { %5839 = vperm.xlu1 %10670, %v10919_v6   ;;  %v7884_v52 = vmax.f32 %v7495_v45, 0.0  ;;  %v6512_v43 = vpop.permute.xlu1 %6511  ;;  %v7992_v20 = vpack.c.bf16 %v7886_v16, %v7885_v24  ;;  %v4258_v13 = vmax.f32 %v4256_v49, %v4257_v25  ;;  %v6084_v35 = vadd.f32 %v5956_v14, %v5312_v61  ;;  %v5756_v25 = vpop.permute.xlu0 %5755 }
 0x5d9   : > { %v10354_v10 = vpop.f32.mrf.mxu0  ;;  %v6726_v63 = vmul.f32 %v17053_v57, %v6512_v43  ;;  %v10255_v53 = vpop.f32.mrf.mxu1  ;;  %v4253_v40 = vmax.f32 %v4251_v62, %v4252_v1  ;;  %v4267_v38 = vmax.f32 %v4265_v37, %v4266_v22  ;;  %v4166_v49 = vmax.f32 %v15601_v17, 0.0 }
 0x5da   : > { %v7991_v5 = vpack.c.bf16 %v7884_v52, %v7883_v47  ;;  %v4259_v55 = vrot.slane %v4258_v13, 1  ;;  %v7889_v15 = vmax.f32 %v10354_v10, 0.0  ;;  %v4167_v45 = vmax.f32 %v10255_v53, 0.0 }
 0x5db   : > { %v7508_v23 = vpop.f32.mrf.mxu0  ;;  %v6854_v7 = vadd.f32 %v6726_v63, %v6082_v30  ;;  %v3960_v60 = vpop.f32.mrf.mxu1  ;;  %v4164_v30 = vmax.f32 %v3957_v33, 0.0  ;;  %v9344_v56 = vsel %vm9277_vm6, %v4253_v40, %v9343_v11  ;;  %v5958_v22 = vmul.f32 %v17046_v29, %v5756_v25 }
 0x5dc   : > { %5843 = vperm.xlu1 %10670, %v10920_v12   ;;  %10488 = vmatprep.mubr.msk.bf16.mxu1 %vm8083_vm9, %v7991_v5  ;;  %v6520_v32 = vpop.permute.xlu1 %6519  ;;  %v4165_v4 = vmax.f32 %v3960_v60, 0.0  ;;  %v7887_v8 = vmax.f32 %v7508_v23, 0.0  ;;  %v4260_v34 = vmax.f32 %v4258_v13, %v4259_v55  ;;  %v4275_v33 = vmax.f32 %v4166_v49, %v4167_v45 }
 0x5dd   : > { %v10355_v44 = vpop.f32.mrf.mxu0  ;;  %10489 = vmatmul.mubr.msk.bf16.gmra.mxu1 %vm8083_vm9, %v7992_v20  ;;  %v6982_v42 = vmax.f32 %v6854_v7, 0.0  ;;  %v6728_v46 = vmul.f32 %v17053_v57, %v6520_v32  ;;  %v17256_v7 = vld [vmem:[#allocation299_spill] sm:$0xff] }
 0x5de   : > { %v7890_v19 = vmax.f32 %v10355_v44, 0.0  ;;  %v9345_v2 = vsel %vm9279_vm7, %v4260_v34, %v9344_v56  ;;  %v5315_v21 = vmul.f32 %v17094_v51, %v17256_v7  ;;  %v4276_v55 = vrot.slane %v4275_v33, 4  ;;  %v17259_v34 = vld [vmem:[#allocation229_spill] sm:$0xff] }
 0x5df   : > { %v7511_v39 = vpop.f32.mrf.mxu0  ;;  %v7060_v3 = vpack.c.bf16 %v6983_v28, %v6982_v42  ;;  %v10258_v48 = vpop.f32.mrf.mxu1  ;;  %v6856_v9 = vadd.f32 %v6728_v46, %v6084_v35  ;;  %v9346_v50 = vsel %vm9281_vm8, %v4267_v38, %v9345_v2  ;;  %v10922_v28 = vld [vmem:[%s11557_s20 + $0x3f8] sm:$0xff]  ;;  %s441_s20 = sand.u32 1, %s10975_s22  }
 0x5e0   : > { %10671 = vset.pattern.permute.xlu1 %v16981_v36  ;;  %v7888_v59 = vmax.f32 %v7511_v39, 0.0  ;;  %v6524_v27 = vpop.permute.xlu1 %6523  ;;  %v4268_v36 = vmax.f32 %v4164_v30, %v4165_v4  ;;  %v7994_v6 = vpack.c.bf16 %v7890_v19, %v7889_v15  ;;  %9368 = vrot.lane.b32.xlu0 %v9346_v50, %s10988_s19  ;;  %v4170_v0 = vmax.f32 %v10258_v48, 0.0  ;;  %v17257_v15 = vld [vmem:[#allocation228_spill] sm:$0xff]  ;;  %v17258_v39 = vld [vmem:[#allocation75_spill] sm:$0xff]  ;;  %s15778_s17 = smul.u32 96, %s441_s20  ;;  %s16032_s25 = scalar_lea.sflag [#allocation3], %s441_s20 }
 0x5e1   : > { %6607 = vperm.xlu1 %10671, %v10921_v31   ;;  %v10358_v62 = vpop.f32.mrf.mxu0  ;;  %v6729_v41 = vmul.f32 %v17053_v57, %v6524_v27  ;;  %10408 = vmatprep.mubr.msk.bf16.mxu0 %vm1667_vm1, %v7060_v3  ;;  %v3973_v26 = vpop.f32.mrf.mxu1  ;;  %v6984_v1 = vmax.f32 %v6856_v9, 0.0  ;;  %v5314_v19 = vmul.f32 %v17094_v51, %v17257_v15  ;;  %v6731_v35 = vmul.f32 %v17053_v57, %v17258_v39 }
 0x5e2   : > { %v7993_v16 = vpack.c.bf16 %v7888_v59, %v7887_v8  ;;  %v4269_v63 = vrot.slane %v4268_v36, 4  ;;  %v4168_v5 = vmax.f32 %v3973_v26, 0.0  ;;  %v5316_v30 = vmul.f32 %v17094_v51, %v17259_v34  ;;  %v5768_v27 = vpop.permute.xlu0 %5767  ;;  %s15803_s18 = scalar_lea.vmem [#allocation2], %s15778_s17  ;;  %s10989_s17 = smov [#allocation2]  }
 0x5e3   : > { %v7524_v47 = vpop.f32.mrf.mxu0  ;;  %v6857_v52 = vadd.f32 %v6729_v41, %v6085_v54  ;;  %v10259_v43 = vpop.f32.mrf.mxu1  ;;  %v6086_v48 = vadd.f32 %v5958_v22, %v5314_v19  ;;  %v4277_v56 = vmax.f32 %v4275_v33, %v4276_v55  ;;  %v5961_v49 = vmul.f32 %v17046_v29, %v5768_v27  ;;  %s9487_s29 = sshll.u32 %s15803_s18, 4  ;;  %s10927_s0 = sshll.u32 %s10989_s17, 4  ;;  %s16018_s29 = int_to_ptr.vmem [resolvable:$true] %s9487_s29  ;;  %s10928_s0 = int_to_ptr.vmem [resolvable:$false] %s10927_s0 }
 0x5e4   : > { %10492 = vmatprep.mubr.msk.bf16.mxu1 %vm8083_vm9, %v7993_v16  ;;  %v4171_v23 = vmax.f32 %v10259_v43, 0.0  ;;  %v7891_v61 = vmax.f32 %v7524_v47, 0.0  ;;  %v4270_v4 = vmax.f32 %v4268_v36, %v4269_v63  ;;  %s10929_s26 = scalar_lea.vmem %s10928_s0, 3072  ;;  %p10930_p0 = scmp.lt.s32.totalorder %s16018_s29, %s10928_s0 }
 0x5e5   : > { %v5760_v24 = vpop.permute.xlu1 %5759  ;;  %v10359_v10 = vpop.f32.mrf.mxu0  ;;  %10493 = vmatmul.mubr.msk.bf16.gmra.mxu1 %vm8083_vm9, %v7994_v6  ;;  %v6985_v58 = vmax.f32 %v6857_v52, 0.0  ;;  %6615 = vperm.xlu1 %10671, %v10920_v12   ;;  %v7893_v12 = vmax.f32 %v10358_v62, 0.0  ;;  %v17260_v52 = vld [vmem:[#allocation302_spill] sm:$0xff]  ;;  %v4278_v25 = vrot.slane %v4277_v56, 2 }
 0x5e6   : > { %v3976_v18 = vpop.f32.mrf.mxu1  ;;  %v5959_v37 = vmul.f32 %v17046_v29, %v5760_v24  ;;  %v7894_v17 = vmax.f32 %v10359_v10, 0.0  ;;  %v4289_v11 = vmax.f32 %v4170_v0, %v4171_v23  ;;  %v4271_v16 = vrot.slane %v4270_v4, 2 }
 0x5e7   : > { %v7527_v20 = vpop.f32.mrf.mxu0  ;;  %v7061_v14 = vpack.c.bf16 %v6985_v58, %v6984_v1  ;;  %v4169_v53 = vmax.f32 %v3976_v18, 0.0  ;;  %v5317_v50 = vmul.f32 %v17094_v51, %v17260_v52 }
 0x5e8   : > { %v7892_v54 = vmax.f32 %v7527_v20, 0.0  ;;  %v6087_v60 = vadd.f32 %v5959_v37, %v5315_v21  ;;  %v7996_v46 = vpack.c.bf16 %v7894_v17, %v7893_v12  ;;  %v4290_v45 = vrot.slane %v4289_v11, 4 }
 0x5e9   : > { %v5764_v13 = vpop.permute.xlu1 %5763  ;;  %v10362_v32 = vpop.f32.mrf.mxu0  ;;  %v4282_v44 = vmax.f32 %v4168_v5, %v4169_v53  ;;  %6619 = vperm.xlu1 %10671, %v10922_v28   ;;  %10409 = vmatmul.mubr.msk.bf16.gmra.mxu0 %vm1667_vm1, %v7061_v14  ;;  %v4272_v14 = vmax.f32 %v4270_v4, %v4271_v16  ;;  %v6089_v28 = vadd.f32 %v5961_v49, %v5317_v50  ;;  %v17263_v49 = vld [vmem:[#allocation305_spill] sm:$0xff] }
 0x5ea   : > { %v7995_v42 = vpack.c.bf16 %v7892_v54, %v7891_v61  ;;  %v6859_v62 = vadd.f32 %v6731_v35, %v6087_v60  ;;  %v5960_v6 = vmul.f32 %v17046_v29, %v5764_v13  ;;  %v7897_v43 = vmax.f32 %v10362_v32, 0.0  ;;  %v5772_v35 = vpop.permute.xlu0 %5771 }
 0x5eb   : > { %v7540_v40 = vpop.f32.mrf.mxu0  ;;  %v4283_v8 = vrot.slane %v4282_v44, 4  ;;  %v4291_v53 = vmax.f32 %v4289_v11, %v4290_v45  ;;  %v4279_v60 = vmax.f32 %v4277_v56, %v4278_v25 }
 0x5ec   : > { %10496 = vmatprep.mubr.msk.bf16.mxu1 %vm8083_vm9, %v7995_v42  ;;  %v10262_v31 = vpop.f32.mrf.mxu1  ;;  %v7895_v36 = vmax.f32 %v7540_v40, 0.0  ;;  %v6987_v63 = vmax.f32 %v6859_v62, 0.0  ;;  %v6088_v7 = vadd.f32 %v5960_v6, %v5316_v30 }
 0x5ed   : > { %v10363_v3 = vpop.f32.mrf.mxu0  ;;  %10497 = vmatmul.mubr.msk.bf16.gmra.mxu1 %vm8083_vm9, %v7996_v46  ;;  %v4284_v10 = vmax.f32 %v4282_v44, %v4283_v8  ;;  %v4174_v20 = vmax.f32 %v10262_v31, 0.0  ;;  %v4292_v19 = vrot.slane %v4291_v53, 2  ;;  %v4273_v8 = vrot.slane %v4272_v14, 1 }
 0x5ee   : > { %v6528_v59 = vpop.permute.xlu1 %6527  ;;  %v7898_v41 = vmax.f32 %v10363_v3, 0.0  ;;  %v3989_v2 = vpop.f32.mrf.mxu1 }
 0x5ef   : > { %v6730_v9 = vmul.f32 %v17053_v57, %v6528_v59  ;;  %v7543_v38 = vpop.f32.mrf.mxu0  ;;  %v4285_v13 = vrot.slane %v4284_v10, 2  ;;  %v4172_v12 = vmax.f32 %v3989_v2, 0.0  ;;  %v4293_v6 = vmax.f32 %v4291_v53, %v4292_v19 }
 0x5f0   : > { %v7896_v26 = vmax.f32 %v7543_v38, 0.0  ;;  %v10263_v33 = vpop.f32.mrf.mxu1  ;;  %v7998_v37 = vpack.c.bf16 %v7898_v41, %v7897_v43  ;;  %v17261_v38 = vld [vmem:[#allocation231_spill] sm:$0xff]  ;;  %v5319_v43 = vmul.f32 %v17094_v51, %v17263_v49 }
 0x5f1   : > { %v6858_v47 = vadd.f32 %v6730_v9, %v6086_v48  ;;  %v10366_v24 = vpop.f32.mrf.mxu0  ;;  %v4175_v23 = vmax.f32 %v10263_v33, 0.0  ;;  %v4286_v34 = vmax.f32 %v4284_v10, %v4285_v13  ;;  %v5318_v56 = vmul.f32 %v17094_v51, %v17261_v38 }
 0x5f2   : > { %v6536_v1 = vpop.permute.xlu1 %6535  ;;  %v7997_v58 = vpack.c.bf16 %v7896_v26, %v7895_v36  ;;  %v3992_v21 = vpop.f32.mrf.mxu1  ;;  %v7901_v3 = vmax.f32 %v10366_v24, 0.0  ;;  %v17262_v26 = vld [vmem:[#allocation233_spill] sm:$0xff]  ;;  %v17264_v24 = vld [vmem:[#allocation91_spill] sm:$0xff]  ;;  %v4280_v33 = vrot.slane %v4279_v60, 1 }
 0x5f3   : > { %v6986_v5 = vmax.f32 %v6858_v47, 0.0  ;;  %v6732_v18 = vmul.f32 %v17053_v57, %v6536_v1  ;;  %v7556_v17 = vpop.f32.mrf.mxu0  ;;  %v4303_v32 = vmax.f32 %v4174_v20, %v4175_v23  ;;  %v4173_v0 = vmax.f32 %v3992_v21, 0.0 }
 0x5f4   : > { %10500 = vmatprep.mubr.msk.bf16.mxu1 %vm8083_vm9, %v7997_v58  ;;  %v7899_v11 = vmax.f32 %v7556_v17, 0.0  ;;  %v15653_v2 = vmul.f32 %v17094_v51, %v17262_v26  ;;  %v6735_v10 = vmul.f32 %v17053_v57, %v17264_v24  ;;  %v5962_v1 = vmul.f32 %v17046_v29, %v5772_v35 }
 0x5f5   : > { %v7062_v61 = vpack.c.bf16 %v6987_v63, %v6986_v5  ;;  %v10367_v54 = vpop.f32.mrf.mxu0  ;;  %10501 = vmatmul.mubr.msk.bf16.gmra.mxu1 %vm8083_vm9, %v7998_v37  ;;  %v6860_v22 = vadd.f32 %v6732_v18, %v6088_v7  ;;  %v4304_v55 = vrot.slane %v4303_v32, 4  ;;  %v4296_v4 = vmax.f32 %v4172_v12, %v4173_v0  ;;  %v5784_v0 = vpop.permute.xlu0 %5783 }
 0x5f6   : > { %v6540_v44 = vpop.permute.xlu1 %6539  ;;  %v7902_v46 = vmax.f32 %v10367_v54, 0.0  ;;  %v4274_v5 = vmax.f32 %v4272_v14, %v4273_v8  ;;  %v4287_v18 = vrot.slane %v4286_v34, 1  ;;  %v6090_v8 = vadd.f32 %v5962_v1, %v5318_v56 }
 0x5f7   : > { %v6733_v42 = vmul.f32 %v17053_v57, %v6540_v44  ;;  %10412 = vmatprep.mubr.msk.bf16.mxu0 %vm1667_vm1, %v7062_v61  ;;  %v7559_v40 = vpop.f32.mrf.mxu0  ;;  %v4297_v30 = vrot.slane %v4296_v4, 4  ;;  %v4305_v27 = vmax.f32 %v4303_v32, %v4304_v55  ;;  %v6988_v62 = vmax.f32 %v6860_v22, 0.0 }
 0x5f8   : > { %v7900_v15 = vmax.f32 %v7559_v40, 0.0  ;;  %v8000_v16 = vpack.c.bf16 %v7902_v46, %v7901_v3  ;;  %v4294_v61 = vrot.slane %v4293_v6, 1  ;;  %v4281_v46 = vmax.f32 %v4279_v60, %v4280_v33 }
 0x5f9   : > { %v6861_v39 = vadd.f32 %v6733_v42, %v6089_v28  ;;  %v10370_v59 = vpop.f32.mrf.mxu0  ;;  %v4298_v36 = vmax.f32 %v4296_v4, %v4297_v30  ;;  %v4306_v37 = vrot.slane %v4305_v27, 2  ;;  %v4288_v40 = vmax.f32 %v4286_v34, %v4287_v18 }
 0x5fa   : > { %v7999_v48 = vpack.c.bf16 %v7900_v15, %v7899_v11  ;;  %v10266_v31 = vpop.f32.mrf.mxu1  ;;  %v7905_v44 = vmax.f32 %v10370_v59, 0.0  ;;  %v5965_v30 = vmul.f32 %v17046_v29, %v5784_v0  ;;  %v4295_v60 = vmax.f32 %v4293_v6, %v4294_v61 }
 0x5fb   : > { %v6989_v9 = vmax.f32 %v6861_v39, 0.0  ;;  %v5776_v41 = vpop.permute.xlu1 %5775  ;;  %v7572_v45 = vpop.f32.mrf.mxu0  ;;  %v4299_v63 = vrot.slane %v4298_v36, 2  ;;  %v4178_v7 = vmax.f32 %v10266_v31, 0.0  ;;  %v4307_v4 = vmax.f32 %v4305_v27, %v4306_v37  ;;  %v17265_v37 = vld [vmem:[#allocation308_spill] sm:$0xff] }
 0x5fc   : > { %10504 = vmatprep.mubr.msk.bf16.mxu1 %vm8083_vm9, %v7999_v48  ;;  %v4005_v47 = vpop.f32.mrf.mxu1  ;;  %v5963_v50 = vmul.f32 %v17046_v29, %v5776_v41  ;;  %v7903_v54 = vmax.f32 %v7572_v45, 0.0  ;;  %v9347_v31 = vsel %vm9269_vm2, %v4281_v46, %v4274_v5 }
 0x5fd   : > { %v7063_v52 = vpack.c.bf16 %v6989_v9, %v6988_v62  ;;  %v10371_v58 = vpop.f32.mrf.mxu0  ;;  %10505 = vmatmul.mubr.msk.bf16.gmra.mxu1 %vm8083_vm9, %v8000_v16  ;;  %v4300_v53 = vmax.f32 %v4298_v36, %v4299_v63  ;;  %v4176_v14 = vmax.f32 %v4005_v47, 0.0  ;;  %v9348_v41 = vsel %vm9271_vm3, %v4288_v40, %v9347_v31 }
 0x5fe   : > { %v10267_v25 = vpop.f32.mrf.mxu1  ;;  %v7906_v20 = vmax.f32 %v10371_v58, 0.0  ;;  %v6091_v32 = vadd.f32 %v5963_v50, %v5319_v43  ;;  %v4308_v38 = vrot.slane %v4307_v4, 1 }
 0x5ff   : > { %v5780_v17 = vpop.permute.xlu1 %5779  ;;  %10413 = vmatmul.mubr.msk.bf16.gmra.mxu0 %vm1667_vm1, %v7063_v52  ;;  %v7575_v23 = vpop.f32.mrf.mxu0  ;;  %v4179_v21 = vmax.f32 %v10267_v25, 0.0  ;;  %v4301_v15 = vrot.slane %v4300_v53, 1  ;;  %v5321_v25 = vmul.f32 %v17094_v51, %v17265_v37 }
 0x600   : > { %v7904_v13 = vmax.f32 %v7575_v23, 0.0  ;;  %v4008_v12 = vpop.f32.mrf.mxu1  ;;  %v8002_v11 = vpack.c.bf16 %v7906_v20, %v7905_v44  ;;  %v6863_v59 = vadd.f32 %v6735_v10, %v6091_v32  ;;  %v5964_v56 = vmul.f32 %v17046_v29, %v5780_v17 }
 0x601   : > { %v10374_v28 = vpop.f32.mrf.mxu0  ;;  %v4317_v22 = vmax.f32 %v4178_v7, %v4179_v21  ;;  %v4177_v42 = vmax.f32 %v4008_v12, 0.0  ;;  %v4302_v45 = vmax.f32 %v4300_v53, %v4301_v15  ;;  %v9349_v23 = vsel %vm9273_vm4, %v4295_v60, %v9348_v41 }
 0x602   : > { %v8001_v55 = vpack.c.bf16 %v7904_v13, %v7903_v54  ;;  %v6991_v43 = vmax.f32 %v6863_v59, 0.0  ;;  %v7909_v1 = vmax.f32 %v10374_v28, 0.0  ;;  %v6092_v61 = vadd.f32 %v5964_v56, %v15653_v2  ;;  %v5788_v56 = vpop.permute.xlu0 %5787 }
 0x603   : > { %v7588_v19 = vpop.f32.mrf.mxu0  ;;  %v4318_v39 = vrot.slane %v4317_v22, 4  ;;  %v4310_v35 = vmax.f32 %v4176_v14, %v4177_v42  ;;  %v9350_v54 = vsel %vm9275_vm5, %v4302_v45, %v9349_v23  ;;  %v4309_v13 = vmax.f32 %v4307_v4, %v4308_v38 }
 0x604   : > { %v6544_v3 = vpop.permute.xlu1 %6543  ;;  %10508 = vmatprep.mubr.msk.bf16.mxu1 %vm8083_vm9, %v8001_v55  ;;  %v10270_v9 = vpop.f32.mrf.mxu1  ;;  %v7907_v49 = vmax.f32 %v7588_v19, 0.0  ;;  %v6093_v28 = vadd.f32 %v5965_v30, %v5321_v25 }
 0x605   : > { %v6734_v48 = vmul.f32 %v17053_v57, %v6544_v3  ;;  %v10375_v34 = vpop.f32.mrf.mxu0  ;;  %10509 = vmatmul.mubr.msk.bf16.gmra.mxu1 %vm8083_vm9, %v8002_v11  ;;  %v4319_v27 = vmax.f32 %v4317_v22, %v4318_v39  ;;  %v4311_v62 = vrot.slane %v4310_v35, 4  ;;  %v4182_v2 = vmax.f32 %v10270_v9, 0.0 }
 0x606   : > { %v7910_v36 = vmax.f32 %v10375_v34, 0.0  ;;  %v4021_v50 = vpop.f32.mrf.mxu1  ;;  %v9351_v55 = vsel %vm9277_vm6, %v4309_v13, %v9350_v54 }
 0x607   : > { %v6862_v16 = vadd.f32 %v6734_v48, %v6090_v8  ;;  %v7591_v26 = vpop.f32.mrf.mxu0  ;;  %v4320_v47 = vrot.slane %v4319_v27, 2  ;;  %v4312_v52 = vmax.f32 %v4310_v35, %v4311_v62  ;;  %v4180_v40 = vmax.f32 %v4021_v50, 0.0 }
 0x608   : > { %v7908_v6 = vmax.f32 %v7591_v26, 0.0  ;;  %v6552_v10 = vpop.permute.xlu1 %6551  ;;  %v10271_v33 = vpop.f32.mrf.mxu1  ;;  %v8004_v53 = vpack.c.bf16 %v7910_v36, %v7909_v1  ;;  %v5966_v1 = vmul.f32 %v17046_v29, %v5788_v56 }
 0x609   : > { %v6990_v24 = vmax.f32 %v6862_v16, 0.0  ;;  %v4321_v58 = vmax.f32 %v4319_v27, %v4320_v47  ;;  %v4313_v63 = vrot.slane %v4312_v52, 2  ;;  %v10378_v5 = vpop.f32.mrf.mxu0  ;;  %v6736_v18 = vmul.f32 %v17053_v57, %v6552_v10  ;;  %v17266_v47 = vld [vmem:[#allocation311_spill] sm:$0xff] }
 0x60a   : > { %v8003_v17 = vpack.c.bf16 %v7908_v6, %v7907_v49  ;;  %v4183_v32 = vmax.f32 %v10271_v33, 0.0  ;;  %v4024_v0 = vpop.f32.mrf.mxu1  ;;  %v7913_v48 = vmax.f32 %v10378_v5, 0.0 }
 0x60b   : > { %v7064_v20 = vpack.c.bf16 %v6991_v43, %v6990_v24  ;;  %v4314_v7 = vmax.f32 %v4312_v52, %v4313_v63  ;;  %v7604_v21 = vpop.f32.mrf.mxu0  ;;  %v4322_v12 = vrot.slane %v4321_v58, 1  ;;  %v6864_v42 = vadd.f32 %v6736_v18, %v6092_v61  ;;  %v17267_v24 = vld [vmem:[#allocation235_spill] sm:$0xff] }
 0x60c   : > { %10512 = vmatprep.mubr.msk.bf16.mxu1 %vm8083_vm9, %v8003_v17  ;;  %v6556_v44 = vpop.permute.xlu1 %6555  ;;  %v4181_v11 = vmax.f32 %v4024_v0, 0.0  ;;  %v4331_v35 = vmax.f32 %v4182_v2, %v4183_v32  ;;  %v7911_v3 = vmax.f32 %v7604_v21, 0.0  ;;  %v5323_v52 = vmul.f32 %v17094_v51, %v17266_v47  ;;  %v17268_v17 = vld [vmem:[#allocation122_spill] sm:$0xff] }
 0x60d   : > { %10416 = vmatprep.mubr.msk.bf16.mxu0 %vm1667_vm1, %v7064_v20  ;;  %v4315_v14 = vrot.slane %v4314_v7, 1  ;;  %10513 = vmatmul.mubr.msk.bf16.gmra.mxu1 %vm8083_vm9, %v8004_v53  ;;  %v10379_v22 = vpop.f32.mrf.mxu0  ;;  %v6737_v46 = vmul.f32 %v17053_v57, %v6556_v44  ;;  %v4323_v30 = vmax.f32 %v4321_v58, %v4322_v12  ;;  %v6992_v60 = vmax.f32 %v6864_v42, 0.0  ;;  %v5800_v44 = vpop.permute.xlu0 %5799 }
 0x60e   : > { %v7914_v15 = vmax.f32 %v10379_v22, 0.0  ;;  %v4324_v16 = vmax.f32 %v4180_v40, %v4181_v11  ;;  %v4332_v50 = vrot.slane %v4331_v35, 4  ;;  %v5322_v10 = vmul.f32 %v17094_v51, %v17267_v24 }
 0x60f   : > { %v4316_v4 = vmax.f32 %v4314_v7, %v4315_v14  ;;  %v7607_v19 = vpop.f32.mrf.mxu0  ;;  %v6865_v39 = vadd.f32 %v6737_v46, %v6093_v28  ;;  %v6739_v20 = vmul.f32 %v17053_v57, %v17268_v17 }
 0x610   : > { %v7912_v8 = vmax.f32 %v7607_v19, 0.0  ;;  %v8006_v45 = vpack.c.bf16 %v7914_v15, %v7913_v48  ;;  %v4325_v33 = vrot.slane %v4324_v16, 4  ;;  %v4333_v23 = vmax.f32 %v4331_v35, %v4332_v50 }
 0x611   : > { %v5792_v59 = vpop.permute.xlu1 %5791  ;;  %v9352_v31 = vsel %vm9279_vm7, %v4316_v4, %v9351_v55  ;;  %v6993_v34 = vmax.f32 %v6865_v39, 0.0  ;;  %v10382_v27 = vpop.f32.mrf.mxu0  ;;  %v6094_v0 = vadd.f32 %v5966_v1, %v5322_v10  ;;  %v5969_v15 = vmul.f32 %v17046_v29, %v5800_v44 }
 0x612   : > { %v10274_v62 = vpop.f32.mrf.mxu1  ;;  %v8005_v9 = vpack.c.bf16 %v7912_v8, %v7911_v3  ;;  %v9353_v41 = vsel %vm9281_vm8, %v4323_v30, %v9352_v31  ;;  %v5967_v38 = vmul.f32 %v17046_v29, %v5792_v59  ;;  %v7917_v12 = vmax.f32 %v10382_v27, 0.0  ;;  %v17269_v8 = vld [vmem:[#allocation237_spill] sm:$0xff] }
 0x613   : > { %9370 = vrot.lane.b32.xlu1 %v9353_v41, %s10988_s19  ;;  %v7065_v36 = vpack.c.bf16 %v6993_v34, %v6992_v60  ;;  %v7620_v26 = vpop.f32.mrf.mxu0  ;;  %v4186_v5 = vmax.f32 %v10274_v62, 0.0  ;;  %v4326_v42 = vmax.f32 %v4324_v16, %v4325_v33  ;;  %v4334_v19 = vrot.slane %v4333_v23, 2  ;;  %v17270_v60 = vld [vmem:[#allocation314_spill] sm:$0xff] }
 0x614   : > { %v4037_v49 = vpop.f32.mrf.mxu1  ;;  %10516 = vmatprep.mubr.msk.bf16.mxu1 %vm8083_vm9, %v8005_v9  ;;  %v6095_v63 = vadd.f32 %v5967_v38, %v5323_v52  ;;  %v7915_v7 = vmax.f32 %v7620_v26, 0.0  ;;  %v5324_v30 = vmul.f32 %v17094_v51, %v17269_v8  ;;  %v5325_v34 = vmul.f32 %v17094_v51, %v17270_v60 }
 0x615   : > { %v5796_v6 = vpop.permute.xlu1 %5795  ;;  %10517 = vmatmul.mubr.msk.bf16.gmra.mxu1 %vm8083_vm9, %v8006_v45  ;;  %v10383_v43 = vpop.f32.mrf.mxu0  ;;  %10417 = vmatmul.mubr.msk.bf16.gmra.mxu0 %vm1667_vm1, %v7065_v36  ;;  %v4184_v61 = vmax.f32 %v4037_v49, 0.0  ;;  %v4327_v27 = vrot.slane %v4326_v42, 2  ;;  %v4335_v26 = vmax.f32 %v4333_v23, %v4334_v19 }
 0x616   : > { %v10275_v58 = vpop.f32.mrf.mxu1  ;;  %v7918_v37 = vmax.f32 %v10383_v43, 0.0  ;;  %v6867_v28 = vadd.f32 %v6739_v20, %v6095_v63  ;;  %v5968_v4 = vmul.f32 %v17046_v29, %v5796_v6  ;;  %v6097_v36 = vadd.f32 %v5969_v15, %v5325_v34  ;;  %v5804_v49 = vpop.permute.xlu0 %5803 }
 0x617   : > { %v4187_v18 = vmax.f32 %v10275_v58, 0.0  ;;  %v7623_v25 = vpop.f32.mrf.mxu0  ;;  %v4328_v1 = vmax.f32 %v4326_v42, %v4327_v27  ;;  %v4336_v20 = vrot.slane %v4335_v26, 1 }
 0x618   : > { %v4040_v53 = vpop.f32.mrf.mxu1  ;;  %v7916_v21 = vmax.f32 %v7623_v25, 0.0  ;;  %v8008_v55 = vpack.c.bf16 %v7918_v37, %v7917_v12  ;;  %v6995_v59 = vmax.f32 %v6867_v28, 0.0  ;;  %v6096_v16 = vadd.f32 %v5968_v4, %v5324_v30  ;;  %v17272_v28 = vld [vmem:[#allocation241_spill] sm:$0xff] }
 0x619   : > { %v4345_v54 = vmax.f32 %v4186_v5, %v4187_v18  ;;  %v4185_v13 = vmax.f32 %v4040_v53, 0.0  ;;  %v5970_v18 = vmul.f32 %v17046_v29, %v5804_v49 }
 0x61a   : > { %v6560_v32 = vpop.permute.xlu1 %6559  ;;  %v8007_v14 = vpack.c.bf16 %v7916_v21, %v7915_v7 }
 0x61b   : > { %v6738_v22 = vmul.f32 %v17053_v57, %v6560_v32  ;;  %v4346_v46 = vrot.slane %v4345_v54, 4  ;;  %v4338_v2 = vmax.f32 %v4184_v61, %v4185_v13  ;;  %v10278_v40 = vpop.f32.mrf.mxu1  ;;  %v17271_v61 = vld [vmem:[#allocation239_spill] sm:$0xff]  ;;  %v4329_v13 = vrot.slane %v4328_v1, 1 }
 0x61c   : > { %10520 = vmatprep.mubr.msk.bf16.mxu1 %vm8083_vm9, %v8007_v14  ;;  %v4190_v38 = vmax.f32 %v10278_v40, 0.0  ;;  %v15713_v14 = vmul.f32 %v17094_v51, %v17272_v28  ;;  %v17274_v40 = vld [vmem:[#allocation139_spill] sm:$0xff] }
 0x61d   : > { %v6866_v11 = vadd.f32 %v6738_v22, %v6094_v0  ;;  %v4339_v39 = vrot.slane %v4338_v2, 4  ;;  %v4053_v35 = vpop.f32.mrf.mxu1  ;;  %10521 = vmatmul.mubr.msk.bf16.gmra.mxu1 %vm8083_vm9, %v8008_v55  ;;  %v4347_v62 = vmax.f32 %v4345_v54, %v4346_v46  ;;  %v5326_v54 = vmul.f32 %v17094_v51, %v17271_v61  ;;  %v17273_v22 = vld [vmem:[#allocation317_spill] sm:$0xff] }
 0x61e   : > { %v6568_v3 = vpop.permute.xlu1 %6567  ;;  %v4188_v47 = vmax.f32 %v4053_v35, 0.0  ;;  %v5327_v42 = vmul.f32 %v17094_v51, %v17273_v22  ;;  %v6743_v55 = vmul.f32 %v17053_v57, %v17274_v40  ;;  %v5816_v35 = vpop.permute.xlu0 %5815 }
 0x61f   : > { %v6994_v48 = vmax.f32 %v6866_v11, 0.0  ;;  %v6740_v31 = vmul.f32 %v17053_v57, %v6568_v3  ;;  %v4340_v9 = vmax.f32 %v4338_v2, %v4339_v39  ;;  %v10279_v41 = vpop.f32.mrf.mxu1  ;;  %v4348_v58 = vrot.slane %v4347_v62, 2 }
 0x620   : > { %v4191_v56 = vmax.f32 %v10279_v41, 0.0  ;;  %v6098_v4 = vadd.f32 %v5970_v18, %v5326_v54  ;;  %v4337_v3 = vmax.f32 %v4335_v26, %v4336_v20 }
 0x621   : > { %v7066_v45 = vpack.c.bf16 %v6995_v59, %v6994_v48  ;;  %v4056_v52 = vpop.f32.mrf.mxu1  ;;  %v6868_v24 = vadd.f32 %v6740_v31, %v6096_v16  ;;  %v4341_v63 = vrot.slane %v4340_v9, 2  ;;  %v4349_v12 = vmax.f32 %v4347_v62, %v4348_v58 }
 0x622   : > { %v6572_v50 = vpop.permute.xlu1 %6571  ;;  %v4359_v6 = vmax.f32 %v4190_v38, %v4191_v56  ;;  %v4189_v43 = vmax.f32 %v4056_v52, 0.0  ;;  %v4330_v31 = vmax.f32 %v4328_v1, %v4329_v13 }
 0x623   : > { %v6741_v10 = vmul.f32 %v17053_v57, %v6572_v50  ;;  %10420 = vmatprep.mubr.msk.bf16.mxu0 %vm1667_vm1, %v7066_v45  ;;  %v6996_v53 = vmax.f32 %v6868_v24, 0.0  ;;  %v4342_v32 = vmax.f32 %v4340_v9, %v4341_v63  ;;  %v4350_v60 = vrot.slane %v4349_v12, 1 }
 0x624   : > { %v4352_v33 = vmax.f32 %v4188_v47, %v4189_v43  ;;  %v4360_v37 = vrot.slane %v4359_v6, 4  ;;  %v5973_v50 = vmul.f32 %v17046_v29, %v5816_v35  ;;  %v9354_v24 = vsel %vm9269_vm2, %v4337_v3, %v4330_v31 }
 0x625   : > { %v6869_v5 = vadd.f32 %v6741_v10, %v6097_v36  ;;  %v10282_v25 = vpop.f32.mrf.mxu1  ;;  %v4343_v34 = vrot.slane %v4342_v32, 1 }
 0x626   : > { %v10386_v17 = vpop.f32.mrf.mxu0  ;;  %v4353_v23 = vrot.slane %v4352_v33, 4  ;;  %v4361_v11 = vmax.f32 %v4359_v6, %v4360_v37  ;;  %v4194_v30 = vmax.f32 %v10282_v25, 0.0 }
 0x627   : > { %v6997_v7 = vmax.f32 %v6869_v5, 0.0  ;;  %v5808_v21 = vpop.permute.xlu1 %5807  ;;  %v4069_v0 = vpop.f32.mrf.mxu1  ;;  %v7921_v43 = vmax.f32 %v10386_v17, 0.0  ;;  %v4344_v10 = vmax.f32 %v4342_v32, %v4343_v34  ;;  %v4351_v5 = vmax.f32 %v4349_v12, %v4350_v60 }
 0x628   : > { %v7636_v44 = vpop.f32.mrf.mxu0  ;;  %v4354_v46 = vmax.f32 %v4352_v33, %v4353_v23  ;;  %v5971_v19 = vmul.f32 %v17046_v29, %v5808_v21  ;;  %v4192_v27 = vmax.f32 %v4069_v0, 0.0  ;;  %v4362_v45 = vrot.slane %v4361_v11, 2 }
 0x629   : > { %v7067_v2 = vpack.c.bf16 %v6997_v7, %v6996_v53  ;;  %v10283_v15 = vpop.f32.mrf.mxu1  ;;  %v7919_v26 = vmax.f32 %v7636_v44, 0.0  ;;  %v9355_v12 = vsel %vm9271_vm3, %v4344_v10, %v9354_v24 }
 0x62a   : > { %v10387_v39 = vpop.f32.mrf.mxu0  ;;  %v4355_v8 = vrot.slane %v4354_v46, 2  ;;  %v4195_v59 = vmax.f32 %v10283_v15, 0.0  ;;  %v6099_v47 = vadd.f32 %v5971_v19, %v5327_v42  ;;  %v4363_v20 = vmax.f32 %v4361_v11, %v4362_v45 }
 0x62b   : > { %v5812_v48 = vpop.permute.xlu1 %5811  ;;  %10421 = vmatmul.mubr.msk.bf16.gmra.mxu0 %vm1667_vm1, %v7067_v2  ;;  %v4072_v62 = vpop.f32.mrf.mxu1  ;;  %v7922_v16 = vmax.f32 %v10387_v39, 0.0  ;;  %v9356_v31 = vsel %vm9273_vm4, %v4351_v5, %v9355_v12  ;;  %v17276_v12 = vld [vmem:[#allocation243_spill] sm:$0xff] }
 0x62c   : > { %v7639_v9 = vpop.f32.mrf.mxu0  ;;  %v4356_v41 = vmax.f32 %v4354_v46, %v4355_v8  ;;  %v4373_v38 = vmax.f32 %v4194_v30, %v4195_v59  ;;  %v4193_v56 = vmax.f32 %v4072_v62, 0.0  ;;  %v6871_v53 = vadd.f32 %v6743_v55, %v6099_v47  ;;  %v17275_v30 = vld [vmem:[#allocation319_spill] sm:$0xff] }
 0x62d   : > { %v10286_v36 = vpop.f32.mrf.mxu1  ;;  %v7920_v52 = vmax.f32 %v7639_v9, 0.0  ;;  %v8010_v25 = vpack.c.bf16 %v7922_v16, %v7921_v43  ;;  %v5972_v7 = vmul.f32 %v17046_v29, %v5812_v48  ;;  %v4364_v55 = vrot.slane %v4363_v20, 1 }
 0x62e   : > { %v4374_v49 = vrot.slane %v4373_v38, 4  ;;  %v4366_v6 = vmax.f32 %v4192_v27, %v4193_v56  ;;  %v4357_v1 = vrot.slane %v4356_v41, 1  ;;  %v4198_v54 = vmax.f32 %v10286_v36, 0.0  ;;  %v5820_v56 = vpop.permute.xlu0 %5819 }
 0x62f   : > { %v4085_v58 = vpop.f32.mrf.mxu1  ;;  %v8009_v63 = vpack.c.bf16 %v7920_v52, %v7919_v26  ;;  %v6999_v15 = vmax.f32 %v6871_v53, 0.0  ;;  %v6100_v8 = vadd.f32 %v5972_v7, %v15713_v14  ;;  %v5329_v59 = vmul.f32 %v17094_v51, %v17275_v30  ;;  %v17279_v30 = vld [vmem:[#allocation151_spill] sm:$0xff] }
 0x630   : > { %v6576_v33 = vpop.permute.xlu1 %6575  ;;  %v4375_v18 = vmax.f32 %v4373_v38, %v4374_v49  ;;  %v4367_v37 = vrot.slane %v4366_v6, 4  ;;  %v4358_v32 = vmax.f32 %v4356_v41, %v4357_v1  ;;  %v4196_v0 = vmax.f32 %v4085_v58, 0.0 }
 0x631   : > { %v10287_v23 = vpop.f32.mrf.mxu1  ;;  %v6742_v21 = vmul.f32 %v17053_v57, %v6576_v33  ;;  %10524 = vmatprep.mubr.msk.bf16.mxu1 %vm8083_vm9, %v8009_v63  ;;  %v6101_v38 = vadd.f32 %v5973_v50, %v5329_v59  ;;  %v4365_v16 = vmax.f32 %v4363_v20, %v4364_v55  ;;  %v6747_v59 = vmul.f32 %v17053_v57, %v17279_v30 }
 0x632   : > { %v4376_v17 = vrot.slane %v4375_v18, 2  ;;  %v4368_v61 = vmax.f32 %v4366_v6, %v4367_v37  ;;  %v4199_v13 = vmax.f32 %v10287_v23, 0.0  ;;  %10525 = vmatmul.mubr.msk.bf16.gmra.mxu1 %vm8083_vm9, %v8010_v25  ;;  %v9357_v9 = vsel %vm9275_vm5, %v4358_v32, %v9356_v31 }
 0x633   : > { %v4088_v44 = vpop.f32.mrf.mxu1  ;;  %v6870_v28 = vadd.f32 %v6742_v21, %v6098_v4  ;;  %v9358_v24 = vsel %vm9277_vm6, %v4365_v16, %v9357_v9  ;;  %v5330_v32 = vmul.f32 %v17094_v51, %v17276_v12 }
 0x634   : > { %v6584_v22 = vpop.permute.xlu1 %6583  ;;  %v4377_v42 = vmax.f32 %v4375_v18, %v4376_v17  ;;  %v4369_v46 = vrot.slane %v4368_v61, 2  ;;  %v4387_v2 = vmax.f32 %v4198_v54, %v4199_v13  ;;  %v4197_v40 = vmax.f32 %v4088_v44, 0.0  ;;  %v5832_v17 = vpop.permute.xlu0 %5831 }
 0x635   : > { %v10290_v11 = vpop.f32.mrf.mxu1  ;;  %v6998_v19 = vmax.f32 %v6870_v28, 0.0  ;;  %v6744_v39 = vmul.f32 %v17053_v57, %v6584_v22 }
 0x636   : > { %v4370_v35 = vmax.f32 %v4368_v61, %v4369_v46  ;;  %v4380_v3 = vmax.f32 %v4196_v0, %v4197_v40  ;;  %v4388_v48 = vrot.slane %v4387_v2, 4  ;;  %v4378_v27 = vrot.slane %v4377_v42, 1  ;;  %v17277_v0 = vld [vmem:[#allocation321_spill] sm:$0xff] }
 0x637   : > { %v4101_v4 = vpop.f32.mrf.mxu1  ;;  %v7068_v60 = vpack.c.bf16 %v6999_v15, %v6998_v19  ;;  %v6872_v41 = vadd.f32 %v6744_v39, %v6100_v8  ;;  %v4202_v6 = vmax.f32 %v10290_v11, 0.0  ;;  %v5331_v44 = vmul.f32 %v17094_v51, %v17277_v0 }
 0x638   : > { %v6588_v34 = vpop.permute.xlu1 %6587  ;;  %v4371_v62 = vrot.slane %v4370_v35, 1  ;;  %v4381_v45 = vrot.slane %v4380_v3, 4  ;;  %v4389_v49 = vmax.f32 %v4387_v2, %v4388_v48  ;;  %v4200_v1 = vmax.f32 %v4101_v4, 0.0  ;;  %v17278_v2 = vld [vmem:[#allocation245_spill] sm:$0xff] }
 0x639   : > { %v10291_v36 = vpop.f32.mrf.mxu1  ;;  %v6745_v14 = vmul.f32 %v17053_v57, %v6588_v34  ;;  %10424 = vmatprep.mubr.msk.bf16.mxu0 %vm1667_vm1, %v7068_v60  ;;  %v4379_v50 = vmax.f32 %v4377_v42, %v4378_v27  ;;  %v7000_v63 = vmax.f32 %v6872_v41, 0.0  ;;  %v5332_v40 = vmul.f32 %v17094_v51, %v17278_v2 }
 0x63a   : > { %v4372_v47 = vmax.f32 %v4370_v35, %v4371_v62  ;;  %v4203_v26 = vmax.f32 %v10291_v36, 0.0  ;;  %v4382_v18 = vmax.f32 %v4380_v3, %v4381_v45  ;;  %v4390_v28 = vrot.slane %v4389_v49, 2 }
 0x63b   : > { %v10390_v52 = vpop.f32.mrf.mxu0  ;;  %v4104_v43 = vpop.f32.mrf.mxu1  ;;  %v6873_v10 = vadd.f32 %v6745_v14, %v6101_v38  ;;  %v5974_v48 = vmul.f32 %v17046_v29, %v5820_v56 }
 0x63c   : > { %v4201_v58 = vmax.f32 %v4104_v43, 0.0  ;;  %v4401_v37 = vmax.f32 %v4202_v6, %v4203_v26  ;;  %v9359_v20 = vsel %vm9279_vm7, %v4372_v47, %v9358_v24  ;;  %v4383_v55 = vrot.slane %v4382_v18, 2  ;;  %v15753_v47 = vpop.permute.xlu0 %5835 }
 0x63d   : > { %v5824_v33 = vpop.permute.xlu1 %5823  ;;  %v7652_v5 = vpop.f32.mrf.mxu0  ;;  %v7001_v23 = vmax.f32 %v6873_v10, 0.0  ;;  %v9360_v61 = vsel %vm9281_vm8, %v4379_v50, %v9359_v20  ;;  %v15751_v34 = vmax.f32 %v4389_v49, %v4390_v28  ;;  %v7925_v9 = vmax.f32 %v10390_v52, 0.0  ;;  %v17280_v52 = vld [vmem:[#allocation323_spill] sm:$0xff] }
 0x63e   : > { %v10294_v25 = vpop.f32.mrf.mxu1  ;;  %v4394_v53 = vmax.f32 %v4200_v1, %v4201_v58  ;;  %v5975_v7 = vmul.f32 %v17046_v29, %v5824_v33  ;;  %9372 = vrot.lane.b32.xlu0 %v9360_v61, %s10988_s19  ;;  %v4402_v11 = vrot.slane %v4401_v37, 4  ;;  %v7923_v31 = vmax.f32 %v7652_v5, 0.0 }
 0x63f   : > { %v10391_v21 = vpop.f32.mrf.mxu0  ;;  %v7069_v13 = vpack.c.bf16 %v7001_v23, %v7000_v63  ;;  %v4206_v15 = vmax.f32 %v10294_v25, 0.0  ;;  %v4384_v26 = vmax.f32 %v4382_v18, %v4383_v55  ;;  %v6102_v24 = vadd.f32 %v5974_v48, %v5330_v32 }
 0x640   : > { %v4117_v54 = vpop.f32.mrf.mxu1  ;;  %v4395_v22 = vrot.slane %v4394_v53, 4  ;;  %v6103_v3 = vadd.f32 %v5975_v7, %v5331_v44  ;;  %v7926_v8 = vmax.f32 %v10391_v21, 0.0  ;;  %v4403_v41 = vmax.f32 %v4401_v37, %v4402_v11  ;;  %v15764_v44 = vpop.permute.xlu0 %5847 }
 0x641   : > { %v5828_v42 = vpop.permute.xlu1 %5827  ;;  %v7655_v46 = vpop.f32.mrf.mxu0  ;;  %10425 = vmatmul.mubr.msk.bf16.gmra.mxu0 %vm1667_vm1, %v7069_v13  ;;  %v4204_v38 = vmax.f32 %v4117_v54, 0.0  ;;  %v5333_v50 = vmul.f32 %v17094_v51, %v17280_v52  ;;  %v5977_v63 = vmul.f32 %v17046_v29, %v5832_v17  ;;  %v4392_v33 = vrot.slane %v15751_v34, 1 }
 0x642   : > { %v10295_v19 = vpop.f32.mrf.mxu1  ;;  %v4396_v39 = vmax.f32 %v4394_v53, %v4395_v22  ;;  %v7924_v60 = vmax.f32 %v7655_v46, 0.0  ;;  %v6875_v43 = vadd.f32 %v6747_v59, %v6103_v3  ;;  %v8012_v56 = vpack.c.bf16 %v7926_v8, %v7925_v9 }
 0x643   : > { %v4207_v35 = vmax.f32 %v10295_v19, 0.0  ;;  %v5976_v5 = vmul.f32 %v17046_v29, %v5828_v42  ;;  %v4404_v18 = vrot.slane %v4403_v41, 2  ;;  %v4385_v7 = vrot.slane %v4384_v26, 1 }
 0x644   : > { %v4120_v4 = vpop.f32.mrf.mxu1  ;;  %v4397_v27 = vrot.slane %v4396_v39, 2  ;;  %v8011_v36 = vpack.c.bf16 %v7924_v60, %v7923_v31  ;;  %v7003_v54 = vmax.f32 %v6875_v43, 0.0  ;;  %v4393_v60 = vmax.f32 %v15751_v34, %v4392_v33  ;;  %v6612_v9 = vpop.permute.xlu0 %6611 }
 0x645   : > { %v4415_v62 = vmax.f32 %v4206_v15, %v4207_v35  ;;  %v4205_v16 = vmax.f32 %v4120_v4, 0.0  ;;  %v6104_v46 = vadd.f32 %v5976_v5, %v5332_v40  ;;  %v4405_v2 = vmax.f32 %v4403_v41, %v4404_v18 }
 0x646   : > { %v10298_v45 = vpop.f32.mrf.mxu1  ;;  %v6592_v14 = vpop.permute.xlu1 %6591  ;;  %v4398_v10 = vmax.f32 %v4396_v39, %v4397_v27  ;;  %10528 = vmatprep.mubr.msk.bf16.mxu1 %vm8083_vm9, %v8011_v36  ;;  %v6105_v35 = vadd.f32 %v5977_v63, %v5333_v50  ;;  %v4386_v3 = vmax.f32 %v4384_v26, %v4385_v7 }
 0x647   : > { %v4416_v6 = vrot.slane %v4415_v62, 4  ;;  %v4408_v1 = vmax.f32 %v4204_v38, %v4205_v16  ;;  %v6746_v58 = vmul.f32 %v17053_v57, %v6592_v14  ;;  %10529 = vmatmul.mubr.msk.bf16.gmra.mxu1 %vm8083_vm9, %v8012_v56  ;;  %v4210_v21 = vmax.f32 %v10298_v45, 0.0 }
 0x648   : > { %v4133_v49 = vpop.f32.mrf.mxu1  ;;  %v4399_v13 = vrot.slane %v4398_v10, 1  ;;  %v4406_v41 = vrot.slane %v4405_v2, 1  ;;  %v9361_v26 = vsel %vm9269_vm2, %v4393_v60, %v4386_v3 }
 0x649   : > { %v4417_v37 = vmax.f32 %v4415_v62, %v4416_v6  ;;  %v4409_v25 = vrot.slane %v4408_v1, 4  ;;  %v6874_v23 = vadd.f32 %v6746_v58, %v6102_v24  ;;  %v4208_v28 = vmax.f32 %v4133_v49, 0.0 }
 0x64a   : > { %v10299_v20 = vpop.f32.mrf.mxu1  ;;  %v6600_v53 = vpop.permute.xlu1 %6599  ;;  %v4400_v59 = vmax.f32 %v4398_v10, %v4399_v13  ;;  %v4407_v33 = vmax.f32 %v4405_v2, %v4406_v41  ;;  %v17283_v2 = vld [vmem:[#allocation248_spill] sm:$0xff] }
 0x64b   : > { %v4211_v61 = vmax.f32 %v10299_v20, 0.0  ;;  %v4410_v12 = vmax.f32 %v4408_v1, %v4409_v25  ;;  %v7002_v17 = vmax.f32 %v6874_v23, 0.0  ;;  %v6748_v0 = vmul.f32 %v17053_v57, %v6600_v53  ;;  %v17281_v20 = vld [vmem:[#allocation325_spill] sm:$0xff] }
 0x64c   : > { %v4136_v32 = vpop.f32.mrf.mxu1  ;;  %v4418_v55 = vrot.slane %v4417_v37, 2  ;;  %v9362_v34 = vsel %vm9271_vm3, %v4400_v59, %v9361_v26  ;;  %v5335_v23 = vmul.f32 %v17094_v51, %v17281_v20  ;;  %v5978_v53 = vmul.f32 %v17046_v29, %v15753_v47 }
 0x64d   : > { %v4429_v22 = vmax.f32 %v4210_v21, %v4211_v61  ;;  %v4209_v42 = vmax.f32 %v4136_v32, 0.0  ;;  %v4411_v11 = vrot.slane %v4410_v12, 2  ;;  %v7070_v19 = vpack.c.bf16 %v7003_v54, %v7002_v17  ;;  %v17282_v17 = vld [vmem:[#allocation76_spill] sm:$0xff] }
 0x64e   : > { %v15766_v15 = vpop.f32.mrf.mxu1  ;;  %v6604_v39 = vpop.permute.xlu1 %6603  ;;  %v6876_v31 = vadd.f32 %v6748_v0, %v6104_v46  ;;  %v4419_v38 = vmax.f32 %v4417_v37, %v4418_v55  ;;  %v6751_v32 = vmul.f32 %v17053_v57, %v6612_v9  ;;  %v5334_v55 = vmul.f32 %v17094_v51, %v17283_v2 }
 0x64f   : > { %v4430_v8 = vrot.slane %v4429_v22, 4  ;;  %v4422_v30 = vmax.f32 %v4208_v28, %v4209_v42  ;;  %v4412_v48 = vmax.f32 %v4410_v12, %v4411_v11  ;;  %v6749_v40 = vmul.f32 %v17053_v57, %v6604_v39  ;;  %10428 = vmatprep.mubr.msk.bf16.mxu0 %vm1667_vm1, %v7070_v19 }
 0x650   : > { %v15769_v4 = vpop.f32.mrf.mxu1  ;;  %v7004_v10 = vmax.f32 %v6876_v31, 0.0  ;;  %v4420_v5 = vrot.slane %v4419_v38, 1  ;;  %v9363_v12 = vsel %vm9273_vm4, %v4407_v33, %v9362_v34  ;;  %v17284_v34 = vld [vmem:[#allocation38_spill] sm:$0xff] }
 0x651   : > { %v4431_v27 = vmax.f32 %v4429_v22, %v4430_v8  ;;  %v4423_v62 = vrot.slane %v4422_v30, 4  ;;  %v4413_v16 = vrot.slane %v4412_v48, 1  ;;  %v6877_v36 = vadd.f32 %v6749_v40, %v6105_v35  ;;  %v10394_v14 = vpop.f32.mrf.mxu0 }
 0x652   : > { %v15774_v45 = vpop.f32.mrf.mxu1  ;;  %v15791_v21 = vpop.permute.xlu0 %9368  ;;  %v4421_v11 = vmax.f32 %v4419_v38, %v4420_v5  ;;  %v7929_v8 = vmax.f32 %v10394_v14, 0.0 }
 0x653   : > { %v4432_v6 = vrot.slane %v4431_v27, 2  ;;  %v4424_v43 = vmax.f32 %v4422_v30, %v4423_v62  ;;  %v5840_v56 = vpop.permute.xlu1 %5839  ;;  %v7005_v1 = vmax.f32 %v6877_v36, 0.0  ;;  %v7668_v49 = vpop.f32.mrf.mxu0  ;;  %v4414_v58 = vmax.f32 %v4412_v48, %v4413_v16 }
 0x654   : > { %v15782_v24 = vpop.f32.mrf.mxu1  ;;  %v5979_v63 = vmul.f32 %v17046_v29, %v5840_v56  ;;  %v9452_v0 = vsel %vm1667_vm1, %v17282_v17, %v15791_v21  ;;  %v7927_v39 = vmax.f32 %v7668_v49, 0.0  ;;  %v6106_v30 = vadd.f32 %v5978_v53, %v5334_v55 }
 0x655   : > { %v4433_v52 = vmax.f32 %v4431_v27, %v4432_v6  ;;  %v4425_v50 = vrot.slane %v4424_v43, 2  ;;  %v7071_v37 = vpack.c.bf16 %v7005_v1, %v7004_v10  ;;  %v10395_v25 = vpop.f32.mrf.mxu0  ;;  %v9364_v47 = vsel %vm9275_vm5, %v4414_v58, %v9363_v12  ;;  %9460 = vst [vmem:[%s15803_s18] sm:$0xff] %v9452_v0 }
 0x656   : > { %v15785_v18 = vpop.f32.mrf.mxu1  ;;  %v6107_v42 = vadd.f32 %v5979_v63, %v5335_v23  ;;  %v7930_v46 = vmax.f32 %v10395_v25, 0.0  ;;  %v9365_v31 = vsel %vm9277_vm6, %v4421_v11, %v9364_v47  ;;  %v5336_v10 = vmul.f32 %v17094_v51, %v17284_v34 }
 0x657   : > { %v4426_v7 = vmax.f32 %v4424_v43, %v4425_v50  ;;  %v5844_v61 = vpop.permute.xlu1 %5843  ;;  %v4434_v54 = vrot.slane %v4433_v52, 1  ;;  %v7671_v28 = vpop.f32.mrf.mxu0  ;;  %10429 = vmatmul.mubr.msk.bf16.gmra.mxu0 %vm1667_vm1, %v7071_v37  ;;  %v5981_v1 = vmul.f32 %v17046_v29, %v15764_v44  ;;  %v17285_v50 = vld [vmem:[#allocation327_spill] sm:$0xff] }
 0x658   : > { %v15793_v13 = vpop.f32.mrf.mxu1  ;;  %v7928_v35 = vmax.f32 %v7671_v28, 0.0  ;;  %v6879_v62 = vadd.f32 %v6751_v32, %v6107_v42  ;;  %v8014_v9 = vpack.c.bf16 %v7930_v46, %v7929_v8  ;;  %v5980_v26 = vmul.f32 %v17046_v29, %v5844_v61 }
 0x659   : > { %v4427_v22 = vrot.slane %v4426_v7, 1  ;;  %v4435_v48 = vmax.f32 %v4433_v52, %v4434_v54  ;;  %v5337_v63 = vmul.f32 %v17094_v51, %v17285_v50  ;;  %v8825_v8 = vmax.f32 %v15793_v13, 0.0 }
 0x65a   : > { %v15808_v19 = vpop.f32.mrf.mxu1  ;;  %v8013_v40 = vpack.c.bf16 %v7928_v35, %v7927_v39  ;;  %v7007_v6 = vmax.f32 %v6879_v62, 0.0  ;;  %v6108_v5 = vadd.f32 %v5980_v26, %v5336_v10 }
 0x65b   : > { %v4428_v3 = vmax.f32 %v4426_v7, %v4427_v22  ;;  %v6109_v25 = vadd.f32 %v5981_v1, %v5337_v63 }
 0x65c   : > { %v15810_v59 = vpop.f32.mrf.mxu1  ;;  %v6608_v60 = vpop.permute.xlu1 %6607  ;;  %10532 = vmatprep.mubr.msk.bf16.mxu1 %vm8083_vm9, %v8013_v40  ;;  %v8821_v40 = vmax.f32 %v15769_v4, 0.0 }
 0x65d   : > { %v9366_v27 = vsel %vm9279_vm7, %v4428_v3, %v9365_v31  ;;  %v6750_v41 = vmul.f32 %v17053_v57, %v6608_v60  ;;  %10533 = vmatmul.mubr.msk.bf16.gmra.mxu1 %vm8083_vm9, %v8014_v9  ;;  %v8826_v39 = vmax.f32 %v15810_v59, 0.0  ;;  %v8822_v3 = vmax.f32 %v15782_v24, 0.0 }
 0x65e   : > { %v15815_v38 = vpop.f32.mrf.mxu1  ;;  %v9367_v16 = vsel %vm9281_vm8, %v4435_v48, %v9366_v27  ;;  %v8823_v24 = vmax.f32 %v15766_v15, 0.0 }
 0x65f   : > { %9374 = vrot.lane.b32.xlu1 %v9367_v16, %s10988_s19  ;;  %v6878_v36 = vadd.f32 %v6750_v41, %v6106_v30  ;;  %v8958_v60 = vmax.f32 %v8825_v8, %v8826_v39  ;;  %v8949_v59 = vmax.f32 %v8821_v40, %v8822_v3  ;;  %v8827_v16 = vmax.f32 %v15785_v18, 0.0 }
 0x660   : > { %v8342_v14 = vpop.f32.mrf.mxu1  ;;  %v6616_v56 = vpop.permute.xlu1 %6615 }
 0x661   : > { %v7006_v43 = vmax.f32 %v6878_v36, 0.0  ;;  %v6752_v58 = vmul.f32 %v17053_v57, %v6616_v56  ;;  %v8829_v27 = vmax.f32 %v8342_v14, 0.0  ;;  %v8959_v13 = vmax.f32 %v8958_v60, %v8827_v16 }
 0x662   : > { %v15826_v49 = vpop.f32.mrf.mxu1  ;;  %v8831_v56 = vmax.f32 %v15815_v38, 0.0  ;;  %v8950_v1 = vmax.f32 %v8949_v59, %v8823_v24  ;;  %v8828_v14 = vmax.f32 %v15808_v19, 0.0  ;;  %v17286_v59 = vld [vmem:[#allocation48_spill] sm:$0xff] }
 0x663   : > { %v7072_v52 = vpack.c.bf16 %v7007_v6, %v7006_v43  ;;  %v6880_v23 = vadd.f32 %v6752_v58, %v6108_v5  ;;  %v8824_v5 = vmax.f32 %v15774_v45, 0.0  ;;  %v8832_v15 = vmax.f32 %v15826_v49, 0.0 }
 0x664   : > { %v8345_v33 = vpop.f32.mrf.mxu1  ;;  %v6620_v37 = vpop.permute.xlu1 %6619 }
 0x665   : > { %10432 = vmatprep.mubr.msk.bf16.mxu0 %vm1667_vm1, %v7072_v52  ;;  %v6753_v53 = vmul.f32 %v17053_v57, %v6620_v37  ;;  %v7008_v12 = vmax.f32 %v6880_v23, 0.0  ;;  %v8830_v30 = vmax.f32 %v8345_v33, 0.0  ;;  %v8960_v37 = vmax.f32 %v8959_v13, %v8828_v14 }
 0x666   : > { %v10462_v20 = vpop.f32.mrf.mxu1 }
 0x667   : > { %v10398_v7 = vpop.f32.mrf.mxu0  ;;  %v6881_v44 = vadd.f32 %v6753_v53, %v6109_v25  ;;  %v8967_v36 = vmax.f32 %v8829_v27, %v8830_v30  ;;  %v8835_v4 = vmax.f32 %v10462_v20, 0.0 }
 0x668   : > { %v8358_v29 = vpop.f32.mrf.mxu1  ;;  %v7933_v2 = vmax.f32 %v10398_v7, 0.0 }
 0x669   : > { %v7684_v61 = vpop.f32.mrf.mxu0  ;;  %v7009_v32 = vmax.f32 %v6881_v44, 0.0  ;;  %v8833_v41 = vmax.f32 %v8358_v29, 0.0  ;;  %v8968_v58 = vmax.f32 %v8967_v36, %v8831_v56  ;;  %v8951_v29 = vmax.f32 %v8950_v1, %v8824_v5 }
 0x66a   : > { %v15833_v54 = vpop.f32.mrf.mxu1  ;;  %v7931_v42 = vmax.f32 %v7684_v61, 0.0 }
 0x66b   : > { %v10399_v17 = vpop.f32.mrf.mxu0  ;;  %v7073_v0 = vpack.c.bf16 %v7009_v32, %v7008_v12  ;;  %v8836_v53 = vmax.f32 %v15833_v54, 0.0  ;;  %v8969_v19 = vmax.f32 %v8968_v58, %v8832_v15 }
 0x66c   : > { %v8361_v51 = vpop.f32.mrf.mxu1  ;;  %v7934_v28 = vmax.f32 %v10399_v17, 0.0 }
 0x66d   : > { %v7687_v22 = vpop.f32.mrf.mxu0  ;;  %10433 = vmatmul.mubr.msk.bf16.gmra.mxu0 %vm1667_vm1, %v7073_v0  ;;  %v8834_v31 = vmax.f32 %v8361_v51, 0.0  ;;  %v8961_v0 = vrot.slane %v8960_v37, 4 }
 0x66e   : > { %v10466_v47 = vpop.f32.mrf.mxu1  ;;  %v7932_v46 = vmax.f32 %v7687_v22, 0.0  ;;  %v8016_v11 = vpack.c.bf16 %v7934_v28, %v7933_v2 }
 0x66f   : > { %v8976_v43 = vmax.f32 %v8833_v41, %v8834_v31  ;;  %v8839_v52 = vmax.f32 %v10466_v47, 0.0  ;;  %v8952_v47 = vrot.slane %v8951_v29, 4  ;;  %v8962_v39 = vmax.f32 %v8960_v37, %v8961_v0 }
 0x670   : > { %v8374_v57 = vpop.f32.mrf.mxu1  ;;  %v8015_v55 = vpack.c.bf16 %v7932_v46, %v7931_v42  ;;  %v8970_v42 = vrot.slane %v8969_v19, 4 }
 0x671   : > { %v8837_v26 = vmax.f32 %v8374_v57, 0.0  ;;  %v8977_v63 = vmax.f32 %v8976_v43, %v8835_v4  ;;  %v8963_v13 = vrot.slane %v8962_v39, 2 }
 0x672   : > { %v10467_v35 = vpop.f32.mrf.mxu1  ;;  %10536 = vmatprep.mubr.msk.bf16.mxu1 %vm8083_vm9, %v8015_v55 }
 0x673   : > { %10537 = vmatmul.mubr.msk.bf16.gmra.mxu1 %vm8083_vm9, %v8016_v11  ;;  %v8840_v44 = vmax.f32 %v10467_v35, 0.0  ;;  %v8978_v32 = vmax.f32 %v8977_v63, %v8836_v53 }
 0x674   : > { %v8377_v48 = vpop.f32.mrf.mxu1 }
 0x675   : > { %v8838_v62 = vmax.f32 %v8377_v48, 0.0  ;;  %v8979_v54 = vrot.slane %v8978_v32, 4 }
 0x676   : > { %v10470_v9 = vpop.f32.mrf.mxu1 }
 0x677   : > { %v8985_v34 = vmax.f32 %v8837_v26, %v8838_v62  ;;  %v8843_v20 = vmax.f32 %v10470_v9, 0.0  ;;  %v8953_v62 = vmax.f32 %v8951_v29, %v8952_v47  ;;  %v8971_v9 = vmax.f32 %v8969_v19, %v8970_v42 }
 0x678   : > { %v8390_v6 = vpop.f32.mrf.mxu1  ;;  %v8980_v26 = vmax.f32 %v8978_v32, %v8979_v54 }
 0x679   : > { %v8841_v18 = vmax.f32 %v8390_v6, 0.0  ;;  %v8986_v25 = vmax.f32 %v8985_v34, %v8839_v52  ;;  %v8954_v1 = vrot.slane %v8953_v62, 2  ;;  %v8972_v14 = vrot.slane %v8971_v9, 2 }
 0x67a   : > { %v10471_v10 = vpop.f32.mrf.mxu1  ;;  %v8981_v52 = vrot.slane %v8980_v26, 2 }
 0x67b   : > { %v8844_v17 = vmax.f32 %v10471_v10, 0.0  ;;  %v8987_v45 = vmax.f32 %v8986_v25, %v8840_v44  ;;  %v8955_v53 = vmax.f32 %v8953_v62, %v8954_v1 }
 0x67c   : > { %v8393_v50 = vpop.f32.mrf.mxu1  ;;  %v8982_v29 = vmax.f32 %v8980_v26, %v8981_v52 }
 0x67d   : > { %v8842_v33 = vmax.f32 %v8393_v50, 0.0  ;;  %v8988_v35 = vrot.slane %v8987_v45, 4 }
 0x67e   : > { %v10474_v23 = vpop.f32.mrf.mxu1  ;;  %v10402_v38 = vpop.f32.mrf.mxu0  ;;  %v8983_v42 = vrot.slane %v8982_v29, 1 }
 0x67f   : > { %v8994_v7 = vmax.f32 %v8841_v18, %v8842_v33  ;;  %v8847_v40 = vmax.f32 %v10474_v23, 0.0  ;;  %v7937_v27 = vmax.f32 %v10402_v38, 0.0  ;;  %v8989_v56 = vmax.f32 %v8987_v45, %v8988_v35 }
 0x680   : > { %v8406_v61 = vpop.f32.mrf.mxu1  ;;  %v7700_v12 = vpop.f32.mrf.mxu0  ;;  %v8964_v33 = vmax.f32 %v8962_v39, %v8963_v13  ;;  %v8956_v45 = vrot.slane %v8955_v53, 1 }
 0x681   : > { %v8995_v51 = vmax.f32 %v8994_v7, %v8843_v20  ;;  %v8845_v57 = vmax.f32 %v8406_v61, 0.0  ;;  %v7935_v30 = vmax.f32 %v7700_v12, 0.0  ;;  %v8990_v5 = vrot.slane %v8989_v56, 2 }
 0x682   : > { %v10475_v28 = vpop.f32.mrf.mxu1  ;;  %v10403_v22 = vpop.f32.mrf.mxu0  ;;  %v8973_v20 = vmax.f32 %v8971_v9, %v8972_v14  ;;  %v8965_v12 = vrot.slane %v8964_v33, 1  ;;  %v8957_v35 = vmax.f32 %v8955_v53, %v8956_v45 }
 0x683   : > { %v8996_v49 = vmax.f32 %v8995_v51, %v8844_v17  ;;  %v7938_v11 = vmax.f32 %v10403_v22, 0.0  ;;  %v8848_v6 = vmax.f32 %v10475_v28, 0.0  ;;  %v8991_v32 = vmax.f32 %v8989_v56, %v8990_v5 }
 0x684   : > { %v8409_v46 = vpop.f32.mrf.mxu1  ;;  %v7703_v2 = vpop.f32.mrf.mxu0  ;;  %v8974_v28 = vrot.slane %v8973_v20, 1 }
 0x685   : > { %v8846_v55 = vmax.f32 %v8409_v46, 0.0  ;;  %v15849_v8 = vpop.permute.xlu1 %9370  ;;  %v7936_v48 = vmax.f32 %v7703_v2, 0.0  ;;  %v8997_v31 = vrot.slane %v8996_v49, 4  ;;  %v8018_v24 = vpack.c.bf16 %v7938_v11, %v7937_v27 }
 0x686   : > { %v10478_v3 = vpop.f32.mrf.mxu1  ;;  %v9453_v16 = vsel %vm1667_vm1, %v17286_v59, %v15849_v8  ;;  %v8966_v2 = vmax.f32 %v8964_v33, %v8965_v12  ;;  %v8992_v54 = vrot.slane %v8991_v32, 1 }
 0x687   : > { %v9003_v60 = vmax.f32 %v8845_v57, %v8846_v55  ;;  %v8017_v36 = vpack.c.bf16 %v7936_v48, %v7935_v30  ;;  %9463 = vst [vmem:[%s15803_s18 + $0x18] sm:$0xff] %v9453_v16  ;;  %v8998_v10 = vmax.f32 %v8996_v49, %v8997_v31  ;;  %v8851_v23 = vmax.f32 %v10478_v3, 0.0 }
 0x688   : > { %v8422_v41 = vpop.f32.mrf.mxu1  ;;  %v8975_v3 = vmax.f32 %v8973_v20, %v8974_v28  ;;  %v8993_v27 = vmax.f32 %v8991_v32, %v8992_v54  ;;  %v9412_v9 = vsel %vm9269_vm2, %v8966_v2, %v8957_v35 }
 0x689   : > { %v9004_v43 = vmax.f32 %v9003_v60, %v8847_v40  ;;  %10540 = vmatprep.mubr.msk.bf16.mxu1 %vm8083_vm9, %v8017_v36  ;;  %v8849_v63 = vmax.f32 %v8422_v41, 0.0  ;;  %v8999_v15 = vrot.slane %v8998_v10, 2  ;;  %v8984_v40 = vmax.f32 %v8982_v29, %v8983_v42 }
 0x68a   : > { %v10479_v34 = vpop.f32.mrf.mxu1  ;;  %10541 = vmatmul.mubr.msk.bf16.gmra.mxu1 %vm8083_vm9, %v8018_v24  ;;  %v9413_v13 = vsel %vm9271_vm3, %v8975_v3, %v9412_v9 }
 0x68b   : > { %v9005_v4 = vmax.f32 %v9004_v43, %v8848_v6  ;;  %v8852_v44 = vmax.f32 %v10479_v34, 0.0  ;;  %v9000_v51 = vmax.f32 %v8998_v10, %v8999_v15  ;;  %v9414_v10 = vsel %vm9273_vm4, %v8984_v40, %v9413_v13 }
 0x68c   : > { %v8425_v58 = vpop.f32.mrf.mxu1  ;;  %v9415_v14 = vsel %vm9275_vm5, %v8993_v27, %v9414_v10 }
 0x68d   : > { %v9006_v50 = vrot.slane %v9005_v4, 4  ;;  %v8850_v18 = vmax.f32 %v8425_v58, 0.0  ;;  %v9001_v11 = vrot.slane %v9000_v51, 1 }
 0x68e   : > { %v15857_v37 = vpop.f32.mrf.mxu1 }
 0x68f   : > { %v9007_v25 = vmax.f32 %v9005_v4, %v9006_v50  ;;  %v9012_v38 = vmax.f32 %v8849_v63, %v8850_v18  ;;  %v9002_v16 = vmax.f32 %v9000_v51, %v9001_v11 }
 0x690   : > { %v15859_v7 = vpop.f32.mrf.mxu1 }
 0x691   : > { %v9008_v19 = vrot.slane %v9007_v25, 2  ;;  %v9013_v61 = vmax.f32 %v9012_v38, %v8851_v23  ;;  %v9416_v50 = vsel %vm9277_vm6, %v9002_v16, %v9415_v14 }
 0x692   : > { %v15861_v17 = vpop.f32.mrf.mxu1 }
 0x693   : > { %v9014_v0 = vmax.f32 %v9013_v61, %v8852_v44  ;;  %v9009_v22 = vmax.f32 %v9007_v25, %v9008_v19  ;;  %v10406_v47 = vpop.f32.mrf.mxu0 }
 0x694   : > { %v15863_v49 = vpop.f32.mrf.mxu1  ;;  %v7941_v56 = vmax.f32 %v10406_v47, 0.0 }
 0x695   : > { %v9015_v46 = vrot.slane %v9014_v0, 4  ;;  %v7716_v55 = vpop.f32.mrf.mxu0  ;;  %v9010_v48 = vrot.slane %v9009_v22, 1  ;;  %v8854_v47 = vmax.f32 %v15863_v49, 0.0 }
 0x696   : > { %v15865_v57 = vpop.f32.mrf.mxu1  ;;  %v7939_v26 = vmax.f32 %v7716_v55, 0.0  ;;  %v17287_v55 = vld [vmem:[#allocation103_spill] sm:$0xff] }
 0x697   : > { %v9016_v39 = vmax.f32 %v9014_v0, %v9015_v46  ;;  %v10407_v31 = vpop.f32.mrf.mxu0  ;;  %v9011_v24 = vmax.f32 %v9009_v22, %v9010_v48  ;;  %v8853_v48 = vmax.f32 %v15859_v7, 0.0  ;;  %v8859_v9 = vmax.f32 %v15865_v57, 0.0 }
 0x698   : > { %v15867_v30 = vpop.f32.mrf.mxu1  ;;  %v7942_v41 = vmax.f32 %v10407_v31, 0.0 }
 0x699   : > { %v9017_v60 = vrot.slane %v9016_v39, 2  ;;  %v7719_v59 = vpop.f32.mrf.mxu0  ;;  %v9417_v18 = vsel %vm9279_vm7, %v9011_v24, %v9416_v50  ;;  %v8857_v2 = vmax.f32 %v15867_v30, 0.0  ;;  %v9021_v27 = vmax.f32 %v8853_v48, %v8854_v47 }
 0x69a   : > { %v15869_v62 = vpop.f32.mrf.mxu1  ;;  %v7940_v6 = vmax.f32 %v7719_v59, 0.0  ;;  %v8020_v58 = vpack.c.bf16 %v7942_v41, %v7941_v56  ;;  %v8856_v50 = vmax.f32 %v15861_v17, 0.0 }
 0x69b   : > { %v9018_v36 = vmax.f32 %v9016_v39, %v9017_v60 }
 0x69c   : > { %v8457_v43 = vpop.f32.mrf.mxu1  ;;  %v8019_v4 = vpack.c.bf16 %v7940_v6, %v7939_v26  ;;  %v8855_v26 = vmax.f32 %v15857_v37, 0.0 }
 0x69d   : > { %v9019_v34 = vrot.slane %v9018_v36, 1  ;;  %v8858_v45 = vmax.f32 %v8457_v43, 0.0 }
 0x69e   : > { %v10490_v1 = vpop.f32.mrf.mxu1  ;;  %10544 = vmatprep.mubr.msk.bf16.mxu1 %vm8083_vm9, %v8019_v4  ;;  %v9022_v56 = vmax.f32 %v9021_v27, %v8855_v26 }
 0x69f   : > { %v9020_v52 = vmax.f32 %v9018_v36, %v9019_v34  ;;  %10545 = vmatmul.mubr.msk.bf16.gmra.mxu1 %vm8083_vm9, %v8020_v58  ;;  %v9030_v31 = vmax.f32 %v8857_v2, %v8858_v45  ;;  %v8863_v43 = vmax.f32 %v10490_v1, 0.0  ;;  %v8860_v34 = vmax.f32 %v15869_v62, 0.0 }
 0x6a0   : > { %v8470_v63 = vpop.f32.mrf.mxu1 }
 0x6a1   : > { %v9418_v33 = vsel %vm9281_vm8, %v9020_v52, %v9417_v18  ;;  %v8861_v49 = vmax.f32 %v8470_v63, 0.0  ;;  %v9031_v6 = vmax.f32 %v9030_v31, %v8859_v9 }
 0x6a2   : > { %9440 = vrot.lane.b32.xlu0 %v9418_v33, %s10988_s19  ;;  %v15881_v5 = vpop.f32.mrf.mxu1 }
 0x6a3   : > { %v9032_v63 = vmax.f32 %v9031_v6, %v8860_v34  ;;  %v8864_v18 = vmax.f32 %v15881_v5, 0.0 }
 0x6a4   : > { %v8473_v15 = vpop.f32.mrf.mxu1 }
 0x6a5   : > { %v8862_v54 = vmax.f32 %v8473_v15, 0.0 }
 0x6a6   : > { %v10494_v25 = vpop.f32.mrf.mxu1 }
 0x6a7   : > { %v9039_v41 = vmax.f32 %v8861_v49, %v8862_v54  ;;  %v8867_v13 = vmax.f32 %v10494_v25, 0.0 }
 0x6a8   : > { %v8486_v23 = vpop.f32.mrf.mxu1 }
 0x6a9   : > { %v10410_v53 = vpop.f32.mrf.mxu0  ;;  %v8865_v30 = vmax.f32 %v8486_v23, 0.0  ;;  %v9040_v10 = vmax.f32 %v9039_v41, %v8863_v43 }
 0x6aa   : > { %v15883_v38 = vpop.f32.mrf.mxu1  ;;  %v7945_v22 = vmax.f32 %v10410_v53, 0.0  ;;  %v9023_v53 = vmax.f32 %v9022_v56, %v8856_v50 }
 0x6ab   : > { %v7732_v29 = vpop.f32.mrf.mxu0  ;;  %v8868_v1 = vmax.f32 %v15883_v38, 0.0  ;;  %v9041_v62 = vmax.f32 %v9040_v10, %v8864_v18 }
 0x6ac   : > { %v8489_v20 = vpop.f32.mrf.mxu1  ;;  %v7943_v51 = vmax.f32 %v7732_v29, 0.0  ;;  %v9024_v45 = vrot.slane %v9023_v53, 4 }
 0x6ad   : > { %v10411_v44 = vpop.f32.mrf.mxu0  ;;  %v8866_v3 = vmax.f32 %v8489_v20, 0.0 }
 0x6ae   : > { %v10498_v19 = vpop.f32.mrf.mxu1  ;;  %v7946_v12 = vmax.f32 %v10411_v44, 0.0 }
 0x6af   : > { %v7735_v32 = vpop.f32.mrf.mxu0  ;;  %v9048_v36 = vmax.f32 %v8865_v30, %v8866_v3  ;;  %v8871_v4 = vmax.f32 %v10498_v19, 0.0 }
 0x6b0   : > { %v8502_v61 = vpop.f32.mrf.mxu1  ;;  %v7944_v0 = vmax.f32 %v7735_v32, 0.0  ;;  %v15886_v42 = vpop.permute.xlu0 %9372  ;;  %v8022_v35 = vpack.c.bf16 %v7946_v12, %v7945_v22  ;;  %v9033_v32 = vrot.slane %v9032_v63, 4  ;;  %v9042_v22 = vrot.slane %v9041_v62, 4 }
 0x6b1   : > { %v9454_v11 = vsel %vm1667_vm1, %v17287_v55, %v15886_v42  ;;  %v8869_v59 = vmax.f32 %v8502_v61, 0.0  ;;  %v9049_v58 = vmax.f32 %v9048_v36, %v8867_v13 }
 0x6b2   : > { %v10499_v28 = vpop.f32.mrf.mxu1  ;;  %v8021_v46 = vpack.c.bf16 %v7944_v0, %v7943_v51  ;;  %9466 = vst [vmem:[%s15803_s18 + $0x30] sm:$0xff] %v9454_v11  ;;  %v9034_v11 = vmax.f32 %v9032_v63, %v9033_v32  ;;  %v9043_v30 = vmax.f32 %v9041_v62, %v9042_v22 }
 0x6b3   : > { %v8872_v20 = vmax.f32 %v10499_v28, 0.0  ;;  %v9050_v19 = vmax.f32 %v9049_v58, %v8868_v1 }
 0x6b4   : > { %v8505_v39 = vpop.f32.mrf.mxu1  ;;  %10548 = vmatprep.mubr.msk.bf16.mxu1 %vm8083_vm9, %v8021_v46  ;;  %v9035_v26 = vrot.slane %v9034_v11, 2  ;;  %v9044_v56 = vrot.slane %v9043_v30, 2 }
 0x6b5   : > { %v8870_v40 = vmax.f32 %v8505_v39, 0.0  ;;  %10549 = vmatmul.mubr.msk.bf16.gmra.mxu1 %vm8083_vm9, %v8022_v35  ;;  %v9051_v38 = vrot.slane %v9050_v19, 4 }
 0x6b6   : > { %v10502_v60 = vpop.f32.mrf.mxu1  ;;  %v9045_v1 = vmax.f32 %v9043_v30, %v9044_v56 }
 0x6b7   : > { %v9057_v24 = vmax.f32 %v8869_v59, %v8870_v40  ;;  %v8875_v15 = vmax.f32 %v10502_v60, 0.0  ;;  %v9025_v60 = vmax.f32 %v9023_v53, %v9024_v45  ;;  %v9052_v41 = vmax.f32 %v9050_v19, %v9051_v38 }
 0x6b8   : > { %v8518_v16 = vpop.f32.mrf.mxu1  ;;  %v9046_v32 = vrot.slane %v9045_v1, 1 }
 0x6b9   : > { %v8873_v52 = vmax.f32 %v8518_v16, 0.0  ;;  %v9058_v37 = vmax.f32 %v9057_v24, %v8871_v4  ;;  %v9026_v13 = vrot.slane %v9025_v60, 2  ;;  %v9053_v10 = vrot.slane %v9052_v41, 2 }
 0x6ba   : > { %v10503_v7 = vpop.f32.mrf.mxu1 }
 0x6bb   : > { %v8876_v44 = vmax.f32 %v10503_v7, 0.0  ;;  %v9059_v17 = vmax.f32 %v9058_v37, %v8872_v20 }
 0x6bc   : > { %v8521_v14 = vpop.f32.mrf.mxu1 }
 0x6bd   : > { %v8874_v57 = vmax.f32 %v8521_v14, 0.0  ;;  %v9060_v28 = vrot.slane %v9059_v17, 4 }
 0x6be   : > { %v10506_v33 = vpop.f32.mrf.mxu1 }
 0x6bf   : > { %v9066_v25 = vmax.f32 %v8873_v52, %v8874_v57  ;;  %v10414_v23 = vpop.f32.mrf.mxu0  ;;  %v8879_v31 = vmax.f32 %v10506_v33, 0.0  ;;  %v9061_v6 = vmax.f32 %v9059_v17, %v9060_v28  ;;  %v9036_v52 = vmax.f32 %v9034_v11, %v9035_v26 }
 0x6c0   : > { %v8534_v29 = vpop.f32.mrf.mxu1  ;;  %v7949_v40 = vmax.f32 %v10414_v23, 0.0  ;;  %v9027_v33 = vmax.f32 %v9025_v60, %v9026_v13 }
 0x6c1   : > { %v9067_v61 = vmax.f32 %v9066_v25, %v8875_v15  ;;  %v7748_v12 = vpop.f32.mrf.mxu0  ;;  %v8877_v46 = vmax.f32 %v8534_v29, 0.0  ;;  %v9062_v57 = vrot.slane %v9061_v6, 2  ;;  %v9054_v15 = vmax.f32 %v9052_v41, %v9053_v10  ;;  %v17288_v29 = vld [vmem:[#allocation298_spill] sm:$0xff] }
 0x6c2   : > { %v10507_v51 = vpop.f32.mrf.mxu1  ;;  %v7947_v35 = vmax.f32 %v7748_v12, 0.0 }
 0x6c3   : > { %v9068_v0 = vmax.f32 %v9067_v61, %v8876_v44  ;;  %v10415_v5 = vpop.f32.mrf.mxu0  ;;  %v8880_v59 = vmax.f32 %v10507_v51, 0.0  ;;  %v9063_v20 = vmax.f32 %v9061_v6, %v9062_v57  ;;  %v9037_v44 = vrot.slane %v9036_v52, 1 }
 0x6c4   : > { %v8537_v47 = vpop.f32.mrf.mxu1  ;;  %v7950_v54 = vmax.f32 %v10415_v5, 0.0  ;;  %v9028_v51 = vrot.slane %v9027_v33, 1 }
 0x6c5   : > { %v8878_v2 = vmax.f32 %v8537_v47, 0.0  ;;  %v7751_v55 = vpop.f32.mrf.mxu0  ;;  %v9069_v48 = vrot.slane %v9068_v0, 4  ;;  %v9064_v45 = vrot.slane %v9063_v20, 1  ;;  %v9038_v47 = vmax.f32 %v9036_v52, %v9037_v44 }
 0x6c6   : > { %v10510_v39 = vpop.f32.mrf.mxu1  ;;  %v7948_v3 = vmax.f32 %v7751_v55, 0.0  ;;  %v8024_v36 = vpack.c.bf16 %v7950_v54, %v7949_v40  ;;  %v9029_v11 = vmax.f32 %v9027_v33, %v9028_v51 }
 0x6c7   : > { %v9075_v49 = vmax.f32 %v8877_v46, %v8878_v2  ;;  %v9070_v24 = vmax.f32 %v9068_v0, %v9069_v48  ;;  %v8883_v18 = vmax.f32 %v10510_v39, 0.0  ;;  %v9055_v0 = vrot.slane %v9054_v15, 1 }
 0x6c8   : > { %v8550_v27 = vpop.f32.mrf.mxu1  ;;  %v8023_v9 = vpack.c.bf16 %v7948_v3, %v7947_v35  ;;  %v9047_v2 = vmax.f32 %v9045_v1, %v9046_v32  ;;  %v9065_v35 = vmax.f32 %v9063_v20, %v9064_v45 }
 0x6c9   : > { %v9076_v16 = vmax.f32 %v9075_v49, %v8879_v31  ;;  %v8881_v14 = vmax.f32 %v8550_v27, 0.0  ;;  %v9071_v50 = vrot.slane %v9070_v24, 2  ;;  %v9056_v28 = vmax.f32 %v9054_v15, %v9055_v0 }
 0x6ca   : > { %v10511_v43 = vpop.f32.mrf.mxu1  ;;  %10552 = vmatprep.mubr.msk.bf16.mxu1 %vm8083_vm9, %v8023_v9  ;;  %v9419_v49 = vsel %vm9269_vm2, %v9038_v47, %v9029_v11 }
 0x6cb   : > { %v9077_v7 = vmax.f32 %v9076_v16, %v8880_v59  ;;  %10553 = vmatmul.mubr.msk.bf16.gmra.mxu1 %vm8083_vm9, %v8024_v36  ;;  %v8884_v23 = vmax.f32 %v10511_v43, 0.0  ;;  %v9072_v61 = vmax.f32 %v9070_v24, %v9071_v50  ;;  %v9420_v60 = vsel %vm9271_vm3, %v9047_v2, %v9419_v49 }
 0x6cc   : > { %v8553_v34 = vpop.f32.mrf.mxu1  ;;  %v9421_v9 = vsel %vm9273_vm4, %v9056_v28, %v9420_v60 }
 0x6cd   : > { %v9078_v4 = vrot.slane %v9077_v7, 4  ;;  %v8882_v58 = vmax.f32 %v8553_v34, 0.0  ;;  %v9073_v38 = vrot.slane %v9072_v61, 1  ;;  %v9422_v59 = vsel %vm9275_vm5, %v9065_v35, %v9421_v9 }
 0x6ce   : > { %v15914_v26 = vpop.f32.mrf.mxu1 }
 0x6cf   : > { %v9079_v63 = vmax.f32 %v9077_v7, %v9078_v4  ;;  %v9084_v37 = vmax.f32 %v8881_v14, %v8882_v58  ;;  %v9074_v48 = vmax.f32 %v9072_v61, %v9073_v38 }
 0x6d0   : > { %v15921_v10 = vpop.f32.mrf.mxu1 }
 0x6d1   : > { %v9080_v25 = vrot.slane %v9079_v63, 2  ;;  %v9085_v53 = vmax.f32 %v9084_v37, %v8883_v18  ;;  %v15904_v62 = vpop.permute.xlu1 %9374  ;;  %v9423_v43 = vsel %vm9277_vm6, %v9074_v48, %v9422_v59 }
 0x6d2   : > { %v9455_v19 = vsel %vm1667_vm1, %v17288_v29, %v15904_v62  ;;  %v15924_v4 = vpop.f32.mrf.mxu1 }
 0x6d3   : > { %v9086_v12 = vmax.f32 %v9085_v53, %v8884_v23  ;;  %9469 = vst [vmem:[%s15803_s18 + $0x48] sm:$0xff] %v9455_v19  ;;  %v9081_v17 = vmax.f32 %v9079_v63, %v9080_v25 }
 0x6d4   : > { %v15926_v14 = vpop.f32.mrf.mxu1 }
 0x6d5   : > { %v9087_v5 = vrot.slane %v9086_v12, 4  ;;  %v10418_v22 = vpop.f32.mrf.mxu0  ;;  %v9082_v54 = vrot.slane %v9081_v17, 1 }
 0x6d6   : > { %v7953_v24 = vmax.f32 %v10418_v22, 0.0  ;;  %v15928_v52 = vpop.f32.mrf.mxu1 }
 0x6d7   : > { %v9088_v46 = vmax.f32 %v9086_v12, %v9087_v5  ;;  %v7764_v55 = vpop.f32.mrf.mxu0  ;;  %v9083_v40 = vmax.f32 %v9081_v17, %v9082_v54 }
 0x6d8   : > { %v7951_v16 = vmax.f32 %v7764_v55, 0.0  ;;  %v15930_v63 = vpop.f32.mrf.mxu1 }
 0x6d9   : > { %v9089_v39 = vrot.slane %v9088_v46, 2  ;;  %v10419_v3 = vpop.f32.mrf.mxu0  ;;  %v9424_v7 = vsel %vm9279_vm7, %v9083_v40, %v9423_v43 }
 0x6da   : > { %v7954_v41 = vmax.f32 %v10419_v3, 0.0  ;;  %v15932_v23 = vpop.f32.mrf.mxu1 }
 0x6db   : > { %v9090_v31 = vmax.f32 %v9088_v46, %v9089_v39  ;;  %v7767_v30 = vpop.f32.mrf.mxu0 }
 0x6dc   : > { %v7952_v36 = vmax.f32 %v7767_v30, 0.0  ;;  %v8026_v34 = vpack.c.bf16 %v7954_v41, %v7953_v24  ;;  %v15936_v20 = vpop.f32.mrf.mxu1 }
 0x6dd   : > { %v9091_v27 = vrot.slane %v9090_v31, 1 }
 0x6de   : > { %v8025_v13 = vpack.c.bf16 %v7952_v36, %v7951_v16  ;;  %v15938_v29 = vpop.f32.mrf.mxu1 }
 0x6df   : > { %v9092_v6 = vmax.f32 %v9090_v31, %v9091_v27 }
 0x6e0   : > { %10556 = vmatprep.mubr.msk.bf16.mxu1 %vm8083_vm9, %v8025_v13  ;;  %v15940_v19 = vpop.f32.mrf.mxu1 }
 0x6e1   : > { %v9425_v56 = vsel %vm9281_vm8, %v9092_v6, %v9424_v7  ;;  %10557 = vmatmul.mubr.msk.bf16.gmra.mxu1 %vm8083_vm9, %v8026_v34 }
 0x6e2   : > { %9442 = vrot.lane.b32.xlu1 %v9425_v56, %s10988_s19  ;;  %v15942_v61 = vpop.f32.mrf.mxu1 }
 0x6e4   : > { %v15944_v17 = vpop.f32.mrf.mxu1 }
 0x6eb   : > { %v10422_v58 = vpop.f32.mrf.mxu0 }
 0x6ec   : > { %v7957_v15 = vmax.f32 %v10422_v58, 0.0 }
 0x6ed   : > { %v7780_v57 = vpop.f32.mrf.mxu0 }
 0x6ee   : > { %v7955_v33 = vmax.f32 %v7780_v57, 0.0 }
 0x6ef   : > { %v10423_v50 = vpop.f32.mrf.mxu0 }
 0x6f0   : > { %v7958_v18 = vmax.f32 %v10423_v50, 0.0 }
 0x6f1   : > { %v7783_v37 = vpop.f32.mrf.mxu0 }
 0x6f2   : > { %v7956_v1 = vmax.f32 %v7783_v37, 0.0  ;;  %v8028_v53 = vpack.c.bf16 %v7958_v18, %v7957_v15  ;;  %v15946_v5 = vpop.f32.mrf.mxu1  ;;  %v8890_v15 = vmax.f32 %v15936_v20, 0.0 }
 0x6f4   : > { %v8027_v25 = vpack.c.bf16 %v7956_v1, %v7955_v33  ;;  %v8614_v2 = vpop.f32.mrf.mxu1 }
 0x6f5   : > { %v8897_v20 = vmax.f32 %v8614_v2, 0.0 }
 0x6f6   : > { %10560 = vmatprep.mubr.msk.bf16.mxu1 %vm8083_vm9, %v8027_v25  ;;  %v15950_v54 = vpop.f32.mrf.mxu1 }
 0x6f7   : > { %10561 = vmatmul.mubr.msk.bf16.gmra.mxu1 %vm8083_vm9, %v8028_v53  ;;  %v8894_v53 = vmax.f32 %v15944_v17, 0.0 }
 0x6f8   : > { %v8617_v11 = vpop.f32.mrf.mxu1 }
 0x701   : > { %v10426_v44 = vpop.f32.mrf.mxu0 }
 0x702   : > { %v7961_v47 = vmax.f32 %v10426_v44, 0.0  ;;  %v8886_v44 = vmax.f32 %v15926_v14, 0.0  ;;  %v8891_v14 = vmax.f32 %v15928_v52, 0.0 }
 0x703   : > { %v7796_v12 = vpop.f32.mrf.mxu0 }
 0x704   : > { %v7959_v45 = vmax.f32 %v7796_v12, 0.0  ;;  %v8889_v12 = vmax.f32 %v15930_v63, 0.0 }
 0x705   : > { %v10427_v32 = vpop.f32.mrf.mxu0 }
 0x706   : > { %v7962_v51 = vmax.f32 %v10427_v32, 0.0  ;;  %v8898_v32 = vmax.f32 %v8617_v11, 0.0  ;;  %v8895_v11 = vmax.f32 %v15938_v29, 0.0 }
 0x707   : > { %v7799_v0 = vpop.f32.mrf.mxu0  ;;  %v15957_v39 = vpop.f32.mrf.mxu1 }
 0x708   : > { %v7960_v22 = vmax.f32 %v7799_v0, 0.0  ;;  %v8030_v46 = vpack.c.bf16 %v7962_v51, %v7961_v47  ;;  %v8893_v0 = vmax.f32 %v15940_v19, 0.0  ;;  %v9102_v47 = vmax.f32 %v8889_v12, %v8890_v15 }
 0x709   : > { %v8630_v48 = vpop.f32.mrf.mxu1  ;;  %v8887_v19 = vmax.f32 %v15914_v26, 0.0 }
 0x70a   : > { %v8029_v38 = vpack.c.bf16 %v7960_v22, %v7959_v45  ;;  %v8885_v22 = vmax.f32 %v15921_v10, 0.0  ;;  %v8901_v17 = vmax.f32 %v8630_v48, 0.0  ;;  %v8899_v10 = vmax.f32 %v15946_v5, 0.0 }
 0x70b   : > { %v15959_v60 = vpop.f32.mrf.mxu1 }
 0x70c   : > { %10564 = vmatprep.mubr.msk.bf16.mxu1 %vm8083_vm9, %v8029_v38 }
 0x70d   : > { %10565 = vmatmul.mubr.msk.bf16.gmra.mxu1 %vm8083_vm9, %v8030_v46  ;;  %v8633_v16 = vpop.f32.mrf.mxu1  ;;  %v9111_v46 = vmax.f32 %v8893_v0, %v8894_v53 }
 0x70e   : > { %v8902_v45 = vmax.f32 %v8633_v16, 0.0 }
 0x70f   : > { %v9112_v2 = vmax.f32 %v9111_v46, %v8895_v11 }
 0x714   : > { %v9441_v55 = vpop.permute.xlu0 %9440 }
 0x715   : > { %v9456_v28 = vsel %vm1667_vm1, %v15791_v21, %v9441_v55  ;;  %9462 = vst.msk [vmem:[%s15803_s18 + $0x10] sm:$0xff] %vm1667_vm1, %v9441_v55 }
 0x716   : > { %9461 = vst [vmem:[%s15803_s18 + $0x8] sm:$0xff] %v9456_v28  ;;  %v9093_v28 = vmax.f32 %v8885_v22, %v8886_v44 }
 0x717   : > { %v10430_v35 = vpop.f32.mrf.mxu0 }
 0x718   : > { %v7965_v9 = vmax.f32 %v10430_v35, 0.0  ;;  %v9120_v35 = vmax.f32 %v8897_v20, %v8898_v32 }
 0x719   : > { %v7812_v3 = vpop.f32.mrf.mxu0 }
 0x71a   : > { %v7963_v30 = vmax.f32 %v7812_v3, 0.0  ;;  %v9129_v3 = vmax.f32 %v8901_v17, %v8902_v45  ;;  %v9121_v52 = vmax.f32 %v9120_v35, %v8899_v10 }
 0x71b   : > { %v10431_v31 = vpop.f32.mrf.mxu0 }
 0x71c   : > { %v7966_v49 = vmax.f32 %v10431_v31, 0.0 }
 0x71d   : > { %v7815_v40 = vpop.f32.mrf.mxu0  ;;  %v10534_v21 = vpop.f32.mrf.mxu1 }
 0x71e   : > { %v7964_v27 = vmax.f32 %v7815_v40, 0.0  ;;  %v8032_v59 = vpack.c.bf16 %v7966_v49, %v7965_v9  ;;  %v9103_v49 = vmax.f32 %v9102_v47, %v8891_v14  ;;  %v8892_v9 = vmax.f32 %v15932_v23, 0.0 }
 0x71f   : > { %v8646_v36 = vpop.f32.mrf.mxu1 }
 0x720   : > { %v8031_v41 = vpack.c.bf16 %v7964_v27, %v7963_v30  ;;  %v8905_v63 = vmax.f32 %v8646_v36, 0.0  ;;  %v8903_v30 = vmax.f32 %v15957_v39, 0.0  ;;  %v9094_v27 = vmax.f32 %v9093_v28, %v8887_v19 }
 0x721   : > { %v15963_v6 = vpop.f32.mrf.mxu1  ;;  %v8888_v36 = vmax.f32 %v15924_v4, 0.0  ;;  %v9104_v26 = vmax.f32 %v9103_v49, %v8892_v9 }
 0x722   : > { %10568 = vmatprep.mubr.msk.bf16.mxu1 %vm8083_vm9, %v8031_v41  ;;  %v8907_v41 = vmax.f32 %v10534_v21, 0.0  ;;  %v9130_v29 = vmax.f32 %v9129_v3, %v8903_v30  ;;  %v8908_v23 = vmax.f32 %v15963_v6, 0.0 }
 0x723   : > { %10569 = vmatmul.mubr.msk.bf16.gmra.mxu1 %vm8083_vm9, %v8032_v59  ;;  %v8649_v7 = vpop.f32.mrf.mxu1  ;;  %v8896_v59 = vmax.f32 %v15942_v61, 0.0 }
 0x724   : > { %v8906_v38 = vmax.f32 %v8649_v7, 0.0  ;;  %v8904_v7 = vmax.f32 %v15959_v60, 0.0 }
 0x726   : > { %v9138_v40 = vmax.f32 %v8905_v63, %v8906_v38 }
 0x728   : > { %v9139_v5 = vmax.f32 %v9138_v40, %v8907_v41 }
 0x72a   : > { %v9140_v61 = vmax.f32 %v9139_v5, %v8908_v23 }
 0x72c   : > { %v9141_v15 = vrot.slane %v9140_v61, 4 }
 0x72d   : > { %v10434_v43 = vpop.f32.mrf.mxu0 }
 0x72e   : > { %v7969_v37 = vmax.f32 %v10434_v43, 0.0  ;;  %v8900_v43 = vmax.f32 %v15950_v54, 0.0  ;;  %v9142_v0 = vmax.f32 %v9140_v61, %v9141_v15 }
 0x72f   : > { %v7828_v24 = vpop.f32.mrf.mxu0 }
 0x730   : > { %v7967_v57 = vmax.f32 %v7828_v24, 0.0  ;;  %v9113_v24 = vmax.f32 %v9112_v2, %v8896_v59  ;;  %v9143_v28 = vrot.slane %v9142_v0, 2 }
 0x731   : > { %v10435_v13 = vpop.f32.mrf.mxu0 }
 0x732   : > { %v7970_v34 = vmax.f32 %v10435_v13, 0.0  ;;  %v9095_v13 = vmax.f32 %v9094_v27, %v8888_v36 }
 0x733   : > { %v10538_v56 = vpop.f32.mrf.mxu1  ;;  %v7831_v58 = vpop.f32.mrf.mxu0 }
 0x734   : > { %v7968_v50 = vmax.f32 %v7831_v58, 0.0  ;;  %v8034_v25 = vpack.c.bf16 %v7970_v34, %v7969_v37  ;;  %v8911_v16 = vmax.f32 %v10538_v56, 0.0  ;;  %v9122_v34 = vmax.f32 %v9121_v52, %v8900_v43 }
 0x735   : > { %v8662_v18 = vpop.f32.mrf.mxu1  ;;  %v9131_v58 = vmax.f32 %v9130_v29, %v8904_v7 }
 0x736   : > { %v8033_v33 = vpack.c.bf16 %v7968_v50, %v7967_v57  ;;  %v8909_v31 = vmax.f32 %v8662_v18, 0.0  ;;  %v9105_v57 = vrot.slane %v9104_v26, 4  ;;  %v9114_v50 = vrot.slane %v9113_v24, 4 }
 0x737   : > { %v10539_v1 = vpop.f32.mrf.mxu1  ;;  %v9096_v18 = vrot.slane %v9095_v13, 4  ;;  %v9123_v4 = vrot.slane %v9122_v34, 4  ;;  %v9132_v37 = vrot.slane %v9131_v58, 4 }
 0x738   : > { %10572 = vmatprep.mubr.msk.bf16.mxu1 %vm8083_vm9, %v8033_v33  ;;  %v8912_v21 = vmax.f32 %v10539_v1, 0.0  ;;  %v9106_v54 = vmax.f32 %v9104_v26, %v9105_v57 }
 0x739   : > { %v8665_v51 = vpop.f32.mrf.mxu1  ;;  %10573 = vmatmul.mubr.msk.bf16.gmra.mxu1 %vm8083_vm9, %v8034_v25  ;;  %v9115_v25 = vmax.f32 %v9113_v24, %v9114_v50  ;;  %v9097_v44 = vmax.f32 %v9095_v13, %v9096_v18  ;;  %v9124_v12 = vmax.f32 %v9122_v34, %v9123_v4  ;;  %v9133_v32 = vmax.f32 %v9131_v58, %v9132_v37 }
 0x73a   : > { %v8910_v55 = vmax.f32 %v8665_v51, 0.0  ;;  %v9107_v6 = vrot.slane %v9106_v54, 2 }
 0x73b   : > { %v9116_v1 = vrot.slane %v9115_v25, 2  ;;  %v9098_v47 = vrot.slane %v9097_v44, 2  ;;  %v9125_v20 = vrot.slane %v9124_v12, 2  ;;  %v9134_v17 = vrot.slane %v9133_v32, 2 }
 0x73c   : > { %v9147_v48 = vmax.f32 %v8909_v31, %v8910_v55  ;;  %v9108_v55 = vmax.f32 %v9106_v54, %v9107_v6 }
 0x73d   : > { %v9117_v11 = vmax.f32 %v9115_v25, %v9116_v1  ;;  %v9099_v19 = vmax.f32 %v9097_v44, %v9098_v47  ;;  %v9126_v49 = vmax.f32 %v9124_v12, %v9125_v20  ;;  %v9135_v2 = vmax.f32 %v9133_v32, %v9134_v17 }
 0x73e   : > { %v9148_v39 = vmax.f32 %v9147_v48, %v8911_v16  ;;  %v9109_v30 = vrot.slane %v9108_v55, 1  ;;  %v9144_v48 = vmax.f32 %v9142_v0, %v9143_v28 }
 0x73f   : > { %v9118_v9 = vrot.slane %v9117_v11, 1  ;;  %v9100_v41 = vrot.slane %v9099_v19, 1  ;;  %v9127_v59 = vrot.slane %v9126_v49, 1  ;;  %v9136_v16 = vrot.slane %v9135_v2, 1 }
 0x740   : > { %v9149_v56 = vmax.f32 %v9148_v39, %v8912_v21  ;;  %v9110_v36 = vmax.f32 %v9108_v55, %v9109_v30 }
 0x741   : > { %v9119_v43 = vmax.f32 %v9117_v11, %v9118_v9  ;;  %v9101_v24 = vmax.f32 %v9099_v19, %v9100_v41  ;;  %v9128_v7 = vmax.f32 %v9126_v49, %v9127_v59  ;;  %v9137_v13 = vmax.f32 %v9135_v2, %v9136_v16 }
 0x742   : > { %v9150_v53 = vrot.slane %v9149_v56, 4 }
 0x743   : > { %v9426_v58 = vsel %vm9269_vm2, %v9110_v36, %v9101_v24 }
 0x744   : > { %v9151_v45 = vmax.f32 %v9149_v56, %v9150_v53  ;;  %v9427_v57 = vsel %vm9271_vm3, %v9119_v43, %v9426_v58 }
 0x745   : > { %v9428_v50 = vsel %vm9273_vm4, %v9128_v7, %v9427_v57 }
 0x746   : > { %v9152_v31 = vrot.slane %v9151_v45, 2  ;;  %v9429_v56 = vsel %vm9275_vm5, %v9137_v13, %v9428_v50 }
 0x748   : > { %v9153_v52 = vmax.f32 %v9151_v45, %v9152_v31 }
 0x74a   : > { %v10542_v33 = vpop.f32.mrf.mxu1  ;;  %v9154_v5 = vrot.slane %v9153_v52, 1 }
 0x74b   : > { %v8915_v35 = vmax.f32 %v10542_v33, 0.0 }
 0x74c   : > { %v8678_v60 = vpop.f32.mrf.mxu1  ;;  %v9155_v21 = vmax.f32 %v9153_v52, %v9154_v5 }
 0x74d   : > { %v8913_v38 = vmax.f32 %v8678_v60, 0.0 }
 0x74e   : > { %v10543_v51 = vpop.f32.mrf.mxu1 }
 0x74f   : > { %v8916_v10 = vmax.f32 %v10543_v51, 0.0 }
 0x750   : > { %v8681_v22 = vpop.f32.mrf.mxu1 }
 0x751   : > { %v8914_v46 = vmax.f32 %v8681_v22, 0.0 }
 0x753   : > { %v9156_v63 = vmax.f32 %v8913_v38, %v8914_v46 }
 0x754   : > { %v9443_v14 = vpop.permute.xlu1 %9442 }
 0x755   : > { %v9457_v3 = vsel %vm1667_vm1, %v15849_v8, %v9443_v14  ;;  %9465 = vst.msk [vmem:[%s15803_s18 + $0x28] sm:$0xff] %vm1667_vm1, %v9443_v14  ;;  %v9157_v40 = vmax.f32 %v9156_v63, %v8915_v35  ;;  %v9145_v8 = vrot.slane %v9144_v48, 1 }
 0x756   : > { %9464 = vst [vmem:[%s15803_s18 + $0x20] sm:$0xff] %v9457_v3 }
 0x757   : > { %v9158_v27 = vmax.f32 %v9157_v40, %v8916_v10  ;;  %v9146_v34 = vmax.f32 %v9144_v48, %v9145_v8 }
 0x759   : > { %v9159_v29 = vrot.slane %v9158_v27, 4  ;;  %v9430_v4 = vsel %vm9277_vm6, %v9146_v34, %v9429_v56 }
 0x75a   : > { %v9431_v37 = vsel %vm9279_vm7, %v9155_v21, %v9430_v4 }
 0x75b   : > { %v9160_v26 = vmax.f32 %v9158_v27, %v9159_v29 }
 0x75d   : > { %v9161_v39 = vrot.slane %v9160_v26, 2 }
 0x75f   : > { %v9162_v23 = vmax.f32 %v9160_v26, %v9161_v39  ;;  %v10546_v54 = vpop.f32.mrf.mxu1 }
 0x760   : > { %v8919_v34 = vmax.f32 %v10546_v54, 0.0 }
 0x761   : > { %v9163_v61 = vrot.slane %v9162_v23, 1  ;;  %v8694_v15 = vpop.f32.mrf.mxu1 }
 0x762   : > { %v8917_v41 = vmax.f32 %v8694_v15, 0.0 }
 0x763   : > { %v9164_v18 = vmax.f32 %v9162_v23, %v9163_v61  ;;  %v15997_v25 = vpop.f32.mrf.mxu1 }
 0x765   : > { %v9432_v33 = vsel %vm9281_vm8, %v9164_v18, %v9431_v37  ;;  %v8697_v53 = vpop.f32.mrf.mxu1 }
 0x766   : > { %9444 = vrot.lane.b32.xlu0 %v9432_v33, %s10988_s19  ;;  %v8918_v2 = vmax.f32 %v8697_v53, 0.0 }
 0x768   : > { %v9165_v26 = vmax.f32 %v8917_v41, %v8918_v2 }
 0x76a   : > { %v9166_v56 = vmax.f32 %v9165_v26, %v8919_v34 }
 0x775   : > { %v10550_v60 = vpop.f32.mrf.mxu1 }
 0x776   : > { %v8923_v43 = vmax.f32 %v10550_v60, 0.0  ;;  %v8920_v60 = vmax.f32 %v15997_v25, 0.0 }
 0x777   : > { %v8710_v44 = vpop.f32.mrf.mxu1 }
 0x778   : > { %v8921_v30 = vmax.f32 %v8710_v44, 0.0 }
 0x779   : > { %v15999_v12 = vpop.f32.mrf.mxu1 }
 0x77a   : > { %v8924_v18 = vmax.f32 %v15999_v12, 0.0 }
 0x77b   : > { %v8713_v32 = vpop.f32.mrf.mxu1 }
 0x77c   : > { %v8922_v49 = vmax.f32 %v8713_v32, 0.0 }
 0x77e   : > { %v9174_v59 = vmax.f32 %v8921_v30, %v8922_v49 }
 0x780   : > { %v9175_v23 = vmax.f32 %v9174_v59, %v8923_v43 }
 0x782   : > { %v9176_v44 = vmax.f32 %v9175_v23, %v8924_v18 }
 0x78b   : > { %v10554_v51 = vpop.f32.mrf.mxu1 }
 0x78c   : > { %v8927_v7 = vmax.f32 %v10554_v51, 0.0 }
 0x78d   : > { %v8726_v6 = vpop.f32.mrf.mxu1 }
 0x78e   : > { %v8925_v27 = vmax.f32 %v8726_v6, 0.0 }
 0x78f   : > { %v10555_v0 = vpop.f32.mrf.mxu1 }
 0x790   : > { %v8928_v33 = vmax.f32 %v10555_v0, 0.0 }
 0x791   : > { %v8729_v1 = vpop.f32.mrf.mxu1 }
 0x792   : > { %v8926_v10 = vmax.f32 %v8729_v1, 0.0 }
 0x794   : > { %v9183_v16 = vmax.f32 %v8925_v27, %v8926_v10 }
 0x796   : > { %v9184_v57 = vmax.f32 %v9183_v16, %v8927_v7 }
 0x798   : > { %v9185_v54 = vmax.f32 %v9184_v57, %v8928_v33 }
 0x7a1   : > { %v10558_v45 = vpop.f32.mrf.mxu1 }
 0x7a2   : > { %v8931_v58 = vmax.f32 %v10558_v45, 0.0  ;;  %v9167_v45 = vmax.f32 %v9166_v56, %v8920_v60 }
 0x7a3   : > { %v8742_v22 = vpop.f32.mrf.mxu1 }
 0x7a4   : > { %v8929_v29 = vmax.f32 %v8742_v22, 0.0  ;;  %v9168_v0 = vrot.slane %v9167_v45, 4 }
 0x7a5   : > { %v10559_v47 = vpop.f32.mrf.mxu1 }
 0x7a6   : > { %v8932_v32 = vmax.f32 %v10559_v47, 0.0 }
 0x7a7   : > { %v8745_v20 = vpop.f32.mrf.mxu1 }
 0x7a8   : > { %v8930_v48 = vmax.f32 %v8745_v20, 0.0 }
 0x7aa   : > { %v9192_v5 = vmax.f32 %v8929_v29, %v8930_v48 }
 0x7ac   : > { %v9193_v4 = vmax.f32 %v9192_v5, %v8931_v58 }
 0x7ae   : > { %v9194_v22 = vmax.f32 %v9193_v4, %v8932_v32 }
 0x7b7   : > { %v10562_v38 = vpop.f32.mrf.mxu1 }
 0x7b8   : > { %v8935_v61 = vmax.f32 %v10562_v38, 0.0 }
 0x7b9   : > { %v8758_v46 = vpop.f32.mrf.mxu1 }
 0x7ba   : > { %v8933_v36 = vmax.f32 %v8758_v46, 0.0 }
 0x7bb   : > { %v10563_v17 = vpop.f32.mrf.mxu1 }
 0x7bc   : > { %v8936_v6 = vmax.f32 %v10563_v17, 0.0  ;;  %v9169_v17 = vmax.f32 %v9167_v45, %v9168_v0 }
 0x7bd   : > { %v8761_v55 = vpop.f32.mrf.mxu1 }
 0x7be   : > { %v8934_v9 = vmax.f32 %v8761_v55, 0.0  ;;  %v9177_v55 = vrot.slane %v9176_v44, 4 }
 0x7c0   : > { %v9201_v39 = vmax.f32 %v8933_v36, %v8934_v9  ;;  %v9178_v25 = vmax.f32 %v9176_v44, %v9177_v55 }
 0x7c2   : > { %v9202_v15 = vmax.f32 %v9201_v39, %v8935_v61 }
 0x7c4   : > { %v9203_v38 = vmax.f32 %v9202_v15, %v8936_v6 }
 0x7cd   : > { %v10566_v28 = vpop.f32.mrf.mxu1 }
 0x7ce   : > { %v8939_v37 = vmax.f32 %v10566_v28, 0.0 }
 0x7cf   : > { %v8774_v35 = vpop.f32.mrf.mxu1 }
 0x7d0   : > { %v8937_v24 = vmax.f32 %v8774_v35, 0.0  ;;  %v9195_v35 = vrot.slane %v9194_v22, 4 }
 0x7d1   : > { %v10567_v11 = vpop.f32.mrf.mxu1 }
 0x7d2   : > { %v8940_v20 = vmax.f32 %v10567_v11, 0.0  ;;  %v9196_v10 = vmax.f32 %v9194_v22, %v9195_v35  ;;  %v9179_v11 = vrot.slane %v9178_v25, 2 }
 0x7d3   : > { %v8777_v3 = vpop.f32.mrf.mxu1 }
 0x7d4   : > { %v9197_v41 = vrot.slane %v9196_v10, 2  ;;  %v9180_v16 = vmax.f32 %v9178_v25, %v9179_v11 }
 0x7d6   : > { %v9198_v7 = vmax.f32 %v9196_v10, %v9197_v41  ;;  %v9181_v23 = vrot.slane %v9180_v16, 1 }
 0x7d8   : > { %v9445_v14 = vpop.permute.xlu0 %9444  ;;  %v9199_v56 = vrot.slane %v9198_v7, 1 }
 0x7d9   : > { %v9458_v63 = vsel %vm1667_vm1, %v15886_v42, %v9445_v14  ;;  %9468 = vst.msk [vmem:[%s15803_s18 + $0x40] sm:$0xff] %vm1667_vm1, %v9445_v14  ;;  %v8938_v42 = vmax.f32 %v8777_v3, 0.0  ;;  %v9186_v14 = vrot.slane %v9185_v54, 4 }
 0x7da   : > { %9467 = vst [vmem:[%s15803_s18 + $0x38] sm:$0xff] %v9458_v63  ;;  %v9204_v63 = vrot.slane %v9203_v38, 4  ;;  %v9200_v32 = vmax.f32 %v9198_v7, %v9199_v56 }
 0x7db   : > { %v9210_v21 = vmax.f32 %v8937_v24, %v8938_v42  ;;  %v9187_v47 = vmax.f32 %v9185_v54, %v9186_v14 }
 0x7dc   : > { %v9205_v2 = vmax.f32 %v9203_v38, %v9204_v63 }
 0x7dd   : > { %v9211_v51 = vmax.f32 %v9210_v21, %v8939_v37  ;;  %v9182_v37 = vmax.f32 %v9180_v16, %v9181_v23 }
 0x7de   : > { %v9206_v42 = vrot.slane %v9205_v2, 2 }
 0x7df   : > { %v9212_v12 = vmax.f32 %v9211_v51, %v8940_v20 }
 0x7e0   : > { %v9207_v34 = vmax.f32 %v9205_v2, %v9206_v42 }
 0x7e2   : > { %v9208_v4 = vrot.slane %v9207_v34, 1 }
 0x7e3   : > { %v10570_v31 = vpop.f32.mrf.mxu1 }
 0x7e4   : > { %v8943_v53 = vmax.f32 %v10570_v31, 0.0  ;;  %v9213_v31 = vrot.slane %v9212_v12, 4  ;;  %v9209_v54 = vmax.f32 %v9207_v34, %v9208_v4 }
 0x7e5   : > { %v8790_v19 = vpop.f32.mrf.mxu1 }
 0x7e6   : > { %v8941_v13 = vmax.f32 %v8790_v19, 0.0  ;;  %v9214_v48 = vmax.f32 %v9212_v12, %v9213_v31 }
 0x7e7   : > { %v10571_v40 = vpop.f32.mrf.mxu1 }
 0x7e8   : > { %v8944_v46 = vmax.f32 %v10571_v40, 0.0  ;;  %v9188_v40 = vrot.slane %v9187_v47, 2  ;;  %v9215_v36 = vrot.slane %v9214_v48, 2 }
 0x7e9   : > { %v8793_v52 = vpop.f32.mrf.mxu1 }
 0x7ea   : > { %v8942_v8 = vmax.f32 %v8793_v52, 0.0  ;;  %v9170_v52 = vrot.slane %v9169_v17, 2  ;;  %v9189_v43 = vmax.f32 %v9187_v47, %v9188_v40  ;;  %v9216_v58 = vmax.f32 %v9214_v48, %v9215_v36 }
 0x7ec   : > { %v9219_v50 = vmax.f32 %v8941_v13, %v8942_v8  ;;  %v9171_v24 = vmax.f32 %v9169_v17, %v9170_v52  ;;  %v9190_v57 = vrot.slane %v9189_v43, 1  ;;  %v9217_v33 = vrot.slane %v9216_v58, 1 }
 0x7ee   : > { %v9220_v1 = vmax.f32 %v9219_v50, %v8943_v53  ;;  %v9172_v50 = vrot.slane %v9171_v24, 1  ;;  %v9191_v53 = vmax.f32 %v9189_v43, %v9190_v57 }
 0x7f0   : > { %v9221_v28 = vmax.f32 %v9220_v1, %v8944_v46  ;;  %v9173_v44 = vmax.f32 %v9171_v24, %v9172_v50  ;;  %v9218_v1 = vmax.f32 %v9216_v58, %v9217_v33 }
 0x7f2   : > { %v9222_v19 = vrot.slane %v9221_v28, 4  ;;  %v9433_v45 = vsel %vm9269_vm2, %v9182_v37, %v9173_v44 }
 0x7f3   : > { %v9434_v20 = vsel %vm9271_vm3, %v9191_v53, %v9433_v45 }
 0x7f4   : > { %v9223_v27 = vmax.f32 %v9221_v28, %v9222_v19  ;;  %v9435_v46 = vsel %vm9273_vm4, %v9200_v32, %v9434_v20 }
 0x7f5   : > { %v9436_v55 = vsel %vm9275_vm5, %v9209_v54, %v9435_v46 }
 0x7f6   : > { %v9224_v5 = vrot.slane %v9223_v27, 2  ;;  %v9437_v14 = vsel %vm9277_vm6, %v9218_v1, %v9436_v55 }
 0x7f8   : > { %v9225_v61 = vmax.f32 %v9223_v27, %v9224_v5 }
 0x7f9   : > { %v10574_v3 = vpop.f32.mrf.mxu1 }
 0x7fa   : > { %v8947_v8 = vmax.f32 %v10574_v3, 0.0  ;;  %v9226_v60 = vrot.slane %v9225_v61, 1 }
 0x7fb   : > { %v8806_v49 = vpop.f32.mrf.mxu1 }
 0x7fc   : > { %v8945_v59 = vmax.f32 %v8806_v49, 0.0  ;;  %v9227_v22 = vmax.f32 %v9225_v61, %v9226_v60 }
 0x7fd   : > { %v10575_v30 = vpop.f32.mrf.mxu1 }
 0x7fe   : > { %v8948_v39 = vmax.f32 %v10575_v30, 0.0  ;;  %v9438_v28 = vsel %vm9279_vm7, %v9227_v22, %v9437_v14 }
 0x7ff   : > { %v8809_v9 = vpop.f32.mrf.mxu1 }
 0x800   : > { %v8946_v29 = vmax.f32 %v8809_v9, 0.0 }
 0x802   : > { %v9228_v26 = vmax.f32 %v8945_v59, %v8946_v29 }
 0x804   : > { %v9229_v13 = vmax.f32 %v9228_v26, %v8947_v8 }
 0x806   : > { %v9230_v21 = vmax.f32 %v9229_v13, %v8948_v39 }
 0x808   : > { %v9231_v18 = vrot.slane %v9230_v21, 4 }
 0x80a   : > { %v9232_v15 = vmax.f32 %v9230_v21, %v9231_v18 }
 0x80c   : > { %v9233_v51 = vrot.slane %v9232_v15, 2 }
 0x80e   : > { %v9234_v6 = vmax.f32 %v9232_v15, %v9233_v51 }
 0x810   : > { %v9235_v38 = vrot.slane %v9234_v6, 1 }
 0x812   : > { %v9236_v12 = vmax.f32 %v9234_v6, %v9235_v38 }
 0x814   : > { %v9439_v0 = vsel %vm9281_vm8, %v9236_v12, %v9438_v28 }
 0x815   : > { %9446 = vrot.lane.b32.xlu1 %v9439_v0, %s10988_s19  ;;  %s10923_s19 = scalar_lea.vmem %s16018_s29, 1536 }
 0x816   : > { %p10924_p11 = scmp.ne.s32.totalorder %s16018_s29, %s10923_s19  ;;  %p10931_p1 = scmp.lt.s32.totalorder %s10929_s26, %s10923_s19 }
 0x818   : > { %p10925_p12 = pnand %p10924_p11, %p11095_p5  ;;  %p10932_p2 = por %p10931_p1, %p10930_p0 }
 0x81a   : > { %p10926_p13 = pneg %p10925_p12 }
 0x81c   : > { %p10933_p3 = pnand %p10932_p2, %p10926_p13 }
 0x887   : > { %v9447_v35 = vpop.permute.xlu1 %9446 }
 0x888   : > { %v9459_v63 = vsel %vm1667_vm1, %v15904_v62, %v9447_v35  ;;  %9471 = vst.msk [vmem:[%s15803_s18 + $0x58] sm:$0xff] %vm1667_vm1, %v9447_v35 }
 0x889   : > { %9470 = vst [vmem:[%s15803_s18 + $0x50] sm:$0xff] %v9459_v63 }
 0x88a   : > { %10936 = shalt.err (!%p10933_p3)
}
 0x88b   : > { %s10937_s20 = scalar_lea.hbm %s16023_s16, 1536  ;;  %s10941_s28 = scalar_lea.hbm %s16084_s12, 3072 }
 0x88c   : > { %p10938_p4 = scmp.ne.s32.totalorder %s16023_s16, %s10937_s20  ;;  %p10942_p9 = scmp.lt.s32.totalorder %s16023_s16, %s16084_s12 }
 0x88d   : > { %p10943_p10 = scmp.lt.s32.totalorder %s10941_s28, %s10937_s20 }
 0x88e   : > { %p10939_p7 = pnand %p10938_p4, %p11095_p5 }
 0x88f   : > { %p10944_p11 = por %p10943_p10, %p10942_p9 }
 0x890   : > { %p10940_p8 = pneg %p10939_p7 }
 0x892   : > { %p10945_p12 = pnand %p10944_p11, %p10940_p8 }
 0x894   : > { %10948 = shalt.err (!%p10945_p12)
}
 0x895   : > { %s10990_s0 = smov 384   ;;  %s10991_s19 = smov 24  }
 0x896   : > { %10578 = dma.vmem_to_hbm [thread:$0]  (%p11095_p5), %s16018_s29, 1536, %s16023_s16, %s16032_s25, %s10990_s0, %s10990_s0, %s10991_s19  }
 0x897 PF: > { %p10584_p13 = scmp.ge.s32.totalorder %s10983_s24, 2  ;;  %s9502_s26 = sand.u32 1, %s10971_s21  }
 0x898   : > { %s9503_s1 = scalar_lea.sflag [#allocation3], %s9502_s26 }
 0x899   : > { %p10581_p0 = pnand %p10584_p13, %p11099_p6 }
 0x89b   : > { %p10582_p1 = pneg %p10581_p0 }
 0x89d   : > { %10966 = dma.done.wait (%p10582_p1), %s9503_s1, 1536  }
 0x89e   : > { %10968 = vsyncadd (%p10582_p1), %s9503_s1, 4294965760  ;;  %p22_p2 = scmp.ge.s32.totalorder %s11082_s27, 4   ;;  %s17289_s21 = smov %s10975_s22 }
 0x89f   : > { %s17290_s22 = smov %s10979_s23  ;;  %s17291_s23 = smov %s11093_s30 }
 0x8a0   : > { %s17292_s24 = smov %s11082_s27  ;;  %24 = sbr.rel (!%p22_p2) target bundleno = 6 (0x6), region = 109 }
 0x8a5   :  { %9508 = vsyncpa [#allocation3], 1 }
 0x8a6   :  { %9510 = vsyncpa [#allocation3 + $0x1], 1 }

</bundles_post_ra>
